<compile_context>
chip_gen: v5e
topology: v5e:2x2
jax: 0.10.0
libtpu: 0.0.40
codegen_flags: <defaults>
</compile_context>

<pallas_src>
import functools
import math

import jax
import jax.numpy as jnp
from jax.experimental import pallas as pl
from jax.experimental.pallas import tpu as pltpu


def _rkd_angle_kernel(student_ref, teacher_ref, out_ref,
                      gs_ref, gt_ref, dsc_ref, dsr_ref, dtc_ref, dtr_ref,
                      acc_ref, *, ba):
    o = pl.program_id(0)
    i = pl.program_id(1)
    n_inner = pl.num_programs(1)
    n = gs_ref.shape[0]
    eps = jnp.float32(1e-12)
    dn = (((1,), (1,)), ((), ()))

    # ---- once per outer chunk: Gram matrices, diagonals, zero the accumulator
    @pl.when(i == 0)
    def _init():
        s = student_ref[...]
        t = teacher_ref[...]
        gs = jax.lax.dot_general(s, s, dimension_numbers=dn,
                                 preferred_element_type=jnp.float32)
        gt = jax.lax.dot_general(t, t, dimension_numbers=dn,
                                 preferred_element_type=jnp.float32)
        gs_ref[...] = gs
        gt_ref[...] = gt
        eye = (jax.lax.broadcasted_iota(jnp.int32, (n, n), 0)
               == jax.lax.broadcasted_iota(jnp.int32, (n, n), 1)).astype(jnp.float32)
        gsd = gs * eye
        gtd = gt * eye
        dsc_ref[...] = jnp.sum(gsd, axis=1, keepdims=True)   # (n, 1) diag, sublane
        dsr_ref[...] = jnp.sum(gsd, axis=0, keepdims=True)   # (1, n) diag, lane
        dtc_ref[...] = jnp.sum(gtd, axis=1, keepdims=True)
        dtr_ref[...] = jnp.sum(gtd, axis=0, keepdims=True)
        acc_ref[...] = jnp.zeros_like(acc_ref)

    # ---- this step's anchor block
    a0 = pl.multiple_of((o * n_inner + i) * ba, ba)

    gs = gs_ref[...]
    gt = gt_ref[...]
    dcol_s = dsc_ref[...]
    drow_s = dsr_ref[...]
    dcol_t = dtc_ref[...]
    drow_t = dtr_ref[...]

    # Anchor rows of G: G[i_a, k]  (lane oriented), via dynamic sublane slice.
    grows_s = gs_ref[pl.ds(a0, ba), :]            # (ba, n)
    grows_t = gt_ref[pl.ds(a0, ba), :]
    # Anchor columns of G: G[j, i_a] (sublane oriented), recomputed on the MXU
    # (cheap skinny matmul) to avoid dynamic lane slicing / transposes.
    xs = student_ref[...]
    xt = teacher_ref[...]
    xs_a = student_ref[pl.ds(a0, ba), :]          # (ba, Dp)
    xt_a = teacher_ref[pl.ds(a0, ba), :]
    gcols_s = jax.lax.dot_general(xs, xs_a, dimension_numbers=dn,
                                  preferred_element_type=jnp.float32)   # (n, ba)
    gcols_t = jax.lax.dot_general(xt, xt_a, dimension_numbers=dn,
                                  preferred_element_type=jnp.float32)

    row_ids = jax.lax.broadcasted_iota(jnp.int32, (n, 1), 0)
    col_ids = jax.lax.broadcasted_iota(jnp.int32, (1, n), 1)

    block_sum = jnp.zeros((n, n), jnp.float32)
    for a in range(ba):                            # static unroll, ba <= 8
        ia = a0 + a
        gii_s = dsc_ref[pl.ds(ia, 1), :]           # (1, 1) = G_s[i_a, i_a]
        gii_t = dtc_ref[pl.ds(ia, 1), :]

        gc_s = gcols_s[:, a:a + 1]                 # (n, 1) = G_s[j, i_a]
        gr_s = grows_s[a:a + 1, :]                 # (1, n) = G_s[i_a, k]
        gc_t = gcols_t[:, a:a + 1]
        gr_t = grows_t[a:a + 1, :]

        num_s = gs - gc_s - gr_s + gii_s           # (n, n) numerator
        num_t = gt - gc_t - gr_t + gii_t

        inv_c_s = 1.0 / jnp.maximum(
            jnp.sqrt(jnp.maximum(dcol_s + gii_s - 2.0 * gc_s, 0.0)), eps)   # (n,1)
        inv_r_s = 1.0 / jnp.maximum(
            jnp.sqrt(jnp.maximum(drow_s + gii_s - 2.0 * gr_s, 0.0)), eps)   # (1,n)
        inv_c_t = 1.0 / jnp.maximum(
            jnp.sqrt(jnp.maximum(dcol_t + gii_t - 2.0 * gc_t, 0.0)), eps)
        inv_r_t = 1.0 / jnp.maximum(
            jnp.sqrt(jnp.maximum(drow_t + gii_t - 2.0 * gr_t, 0.0)), eps)

        ang_s = num_s * inv_c_s * inv_r_s
        ang_t = num_t * inv_c_t * inv_r_t

        d = ang_s - ang_t
        ad = jnp.abs(d)
        elem = jnp.where(ad < 1.0, 0.5 * d * d, ad - 0.5)   # SmoothL1, beta=1
        # j == i_a or k == i_a -> normalized zero vector -> angle 0 for both,
        # so those entries contribute exactly 0.
        valid = (row_ids != ia) & (col_ids != ia)
        block_sum = block_sum + jnp.where(valid, elem, 0.0)

    acc_ref[...] += block_sum                      # (n, n) VPU adds only

    # ---- once per outer chunk: single cross-lane reduce + mean scaling
    @pl.when(i == n_inner - 1)
    def _finalize():
        inv_total = jnp.float32(1.0 / float(n * n * n))
        partial = jnp.sum(acc_ref[...]) * inv_total
        out_ref[...] = jnp.zeros_like(out_ref) + partial


def rkd_angle_loss(student, teacher, *, anchor_block=8):
    assert student.shape == teacher.shape
    N, D = student.shape
    student = student.astype(jnp.float32)
    teacher = teacher.astype(jnp.float32)

    # Pad feature dim to the 128-lane width; zero features change nothing.
    Dp = ((D + 127) // 128) * 128
    if Dp != D:
        pad = ((0, 0), (0, Dp - D))
        student = jnp.pad(student, pad)
        teacher = jnp.pad(teacher, pad)

    BA = math.gcd(N, anchor_block)        # anchors per grid step (divides N)
    num_blocks = N // BA
    n_outer = 2 if num_blocks % 2 == 0 else 1   # megacore split on v7x
    n_inner = num_blocks // n_outer

    kernel = functools.partial(_rkd_angle_kernel, ba=BA)

    out = pl.pallas_call(
        kernel,
        out_shape=jax.ShapeDtypeStruct((n_outer, 8, 128), jnp.float32),
        grid_spec=pltpu.PrefetchScalarGridSpec(
            num_scalar_prefetch=0,
            grid=(n_outer, n_inner),
            in_specs=[
                pl.BlockSpec((N, Dp), lambda o, i: (0, 0)),
                pl.BlockSpec((N, Dp), lambda o, i: (0, 0)),
            ],
            out_specs=pl.BlockSpec((1, 8, 128), lambda o, i: (o, 0, 0)),
            scratch_shapes=[
                pltpu.VMEM((N, N), jnp.float32),   # G_s
                pltpu.VMEM((N, N), jnp.float32),   # G_t
                pltpu.VMEM((N, 1), jnp.float32),   # diag(G_s) as column
                pltpu.VMEM((1, N), jnp.float32),   # diag(G_s) as row
                pltpu.VMEM((N, 1), jnp.float32),   # diag(G_t) as column
                pltpu.VMEM((1, N), jnp.float32),   # diag(G_t) as row
                pltpu.VMEM((N, N), jnp.float32),   # SmoothL1 vector accumulator
            ],
        ),
        compiler_params=pltpu.CompilerParams(
            dimension_semantics=("parallel", "arbitrary"),
        ),
    )(student, teacher)

    # Each outer chunk wrote (its partial sum) / N^3 into its lane-dense block.
    return jnp.sum(out[:, 0, 0])


def _reference(student, teacher):
    def angles(x):
        d = x[None, :, :] - x[:, None, :]
        norm = jnp.linalg.norm(d, axis=2, keepdims=True)
        dn = d / jnp.maximum(norm, 1e-12)
        return jnp.einsum('ijd,ikd->ijk', dn, dn, precision='highest').reshape(-1)

    s = angles(student)
    t = angles(teacher)
    diff = s - t
    ad = jnp.abs(diff)
    return jnp.mean(jnp.where(ad < 1.0, 0.5 * diff * diff, ad - 0.5))


if __name__ == "__main__":
    key = jax.random.PRNGKey(0)
    k1, k2 = jax.random.split(key)
    N, D = 32, 48
    student = jax.random.normal(k1, (N, D), dtype=jnp.float32)
    teacher = jax.random.normal(k2, (N, D), dtype=jnp.float32)

    loss = jax.block_until_ready(rkd_angle_loss(student, teacher))
    ref = jax.block_until_ready(_reference(student, teacher))

    assert jnp.allclose(loss, ref, rtol=5e-3, atol=1e-5), (loss, ref)
    print("KERNEL_OK")
</pallas_src>

<mosaic_0001>
module attributes {stable_mosaic.version = 11 : i64} {
  func.func @_rkd_angle_kernel(%arg0: i32, %arg1: i32, %arg2: memref<32x128xf32, #tpu.memory_space<vmem>>, %arg3: memref<32x128xf32, #tpu.memory_space<vmem>>, %arg4: memref<1x8x128xf32, #tpu.memory_space<vmem>>, %arg5: memref<32x32xf32, #tpu.memory_space<vmem>>, %arg6: memref<32x32xf32, #tpu.memory_space<vmem>>, %arg7: memref<32x1xf32, #tpu.memory_space<vmem>>, %arg8: memref<1x32xf32, #tpu.memory_space<vmem>>, %arg9: memref<32x1xf32, #tpu.memory_space<vmem>>, %arg10: memref<1x32xf32, #tpu.memory_space<vmem>>, %arg11: memref<32x32xf32, #tpu.memory_space<vmem>>) attributes {dimension_semantics = [#tpu.dimension_semantics<parallel>, #tpu.dimension_semantics<arbitrary>], iteration_bounds = array<i64: 2, 2>, scalar_prefetch = 0 : i64, scratch_operands = 7 : i64, tpu.core_type = #tpu.core_type<tc>, window_params = [{pipeline_mode = #tpu.pipeline_mode<synchronous>, transform_indices = @transform_0, window_bounds = array<i64: 32, 128>}, {pipeline_mode = #tpu.pipeline_mode<synchronous>, transform_indices = @transform_1, window_bounds = array<i64: 32, 128>}, {transform_indices = @transform_2, window_bounds = array<i64: 1, 8, 128>}]} {
    %c0_i32 = arith.constant 0 : i32
    %0 = arith.cmpi eq, %arg1, %c0_i32 : i32
    %1 = arith.extui %0 : i1 to i32
    %c0_i32_0 = arith.constant 0 : i32
    %2 = arith.cmpi ne, %1, %c0_i32_0 : i32
    scf.if %2 {
      %c0_206 = arith.constant 0 : index
      %c0_207 = arith.constant 0 : index
      %810 = vector.load %arg2[%c0_206, %c0_207] : memref<32x128xf32, #tpu.memory_space<vmem>>, vector<32x128xf32>
      %c0_208 = arith.constant 0 : index
      %c0_209 = arith.constant 0 : index
      %811 = vector.load %arg3[%c0_208, %c0_209] : memref<32x128xf32, #tpu.memory_space<vmem>>, vector<32x128xf32>
      %cst_210 = arith.constant dense<0.000000e+00> : vector<32x32xf32>
      %812 = tpu.matmul %810, %810, %cst_210 {dimension_numbers = #tpu.dot_dimension_numbers<[1], [1], [0], [0], [0, 0, 1, 0], [], []>} : vector<32x128xf32>, vector<32x128xf32>, vector<32x32xf32> -> vector<32x32xf32>
      %cst_211 = arith.constant dense<0.000000e+00> : vector<32x32xf32>
      %813 = tpu.matmul %811, %811, %cst_211 {dimension_numbers = #tpu.dot_dimension_numbers<[1], [1], [0], [0], [0, 0, 1, 0], [], []>} : vector<32x128xf32>, vector<32x128xf32>, vector<32x32xf32> -> vector<32x32xf32>
      %c0_212 = arith.constant 0 : index
      %c0_213 = arith.constant 0 : index
      %814 = vector.load %arg5[%c0_212, %c0_213] : memref<32x32xf32, #tpu.memory_space<vmem>>, vector<32x32xf32>
      tpu.vector_store %arg5[%c0_212, %c0_213], %812 {strides = array<i32>} : memref<32x32xf32, #tpu.memory_space<vmem>>, vector<32x32xf32>,
      %c0_214 = arith.constant 0 : index
      %c0_215 = arith.constant 0 : index
      %815 = vector.load %arg6[%c0_214, %c0_215] : memref<32x32xf32, #tpu.memory_space<vmem>>, vector<32x32xf32>
      tpu.vector_store %arg6[%c0_214, %c0_215], %813 {strides = array<i32>} : memref<32x32xf32, #tpu.memory_space<vmem>>, vector<32x32xf32>,
      %816 = tpu.iota {dimensions = array<i32: 0>} : vector<32x32xi32>
      %817 = tpu.iota {dimensions = array<i32: 1>} : vector<32x32xi32>
      %818 = arith.cmpi eq, %816, %817 : vector<32x32xi32>
      %819 = arith.extui %818 : vector<32x32xi1> to vector<32x32xi32>
      %820 = arith.sitofp %819 : vector<32x32xi32> to vector<32x32xf32>
      %821 = arith.mulf %812, %820 : vector<32x32xf32>
      %822 = arith.mulf %813, %820 : vector<32x32xf32>
      %cst_216 = arith.constant dense<0.000000e+00> : vector<32xf32>
      %823 = vector.multi_reduction <add>, %821, %cst_216 [1] : vector<32x32xf32> to vector<32xf32>
      %824 = vector.shape_cast %823 : vector<32xf32> to vector<32x1xf32>
      %c0_217 = arith.constant 0 : index
      %c0_218 = arith.constant 0 : index
      %825 = vector.load %arg7[%c0_217, %c0_218] : memref<32x1xf32, #tpu.memory_space<vmem>>, vector<32x1xf32>
      tpu.vector_store %arg7[%c0_217, %c0_218], %824 {strides = array<i32>} : memref<32x1xf32, #tpu.memory_space<vmem>>, vector<32x1xf32>,
      %cst_219 = arith.constant dense<0.000000e+00> : vector<32xf32>
      %826 = vector.multi_reduction <add>, %821, %cst_219 [0] : vector<32x32xf32> to vector<32xf32>
      %827 = vector.shape_cast %826 : vector<32xf32> to vector<1x32xf32>
      %c0_220 = arith.constant 0 : index
      %c0_221 = arith.constant 0 : index
      %828 = vector.load %arg8[%c0_220, %c0_221] : memref<1x32xf32, #tpu.memory_space<vmem>>, vector<1x32xf32>
      tpu.vector_store %arg8[%c0_220, %c0_221], %827 {strides = array<i32>} : memref<1x32xf32, #tpu.memory_space<vmem>>, vector<1x32xf32>,
      %cst_222 = arith.constant dense<0.000000e+00> : vector<32xf32>
      %829 = vector.multi_reduction <add>, %822, %cst_222 [1] : vector<32x32xf32> to vector<32xf32>
      %830 = vector.shape_cast %829 : vector<32xf32> to vector<32x1xf32>
      %c0_223 = arith.constant 0 : index
      %c0_224 = arith.constant 0 : index
      %831 = vector.load %arg9[%c0_223, %c0_224] : memref<32x1xf32, #tpu.memory_space<vmem>>, vector<32x1xf32>
      tpu.vector_store %arg9[%c0_223, %c0_224], %830 {strides = array<i32>} : memref<32x1xf32, #tpu.memory_space<vmem>>, vector<32x1xf32>,
      %cst_225 = arith.constant dense<0.000000e+00> : vector<32xf32>
      %832 = vector.multi_reduction <add>, %822, %cst_225 [0] : vector<32x32xf32> to vector<32xf32>
      %833 = vector.shape_cast %832 : vector<32xf32> to vector<1x32xf32>
      %c0_226 = arith.constant 0 : index
      %c0_227 = arith.constant 0 : index
      %834 = vector.load %arg10[%c0_226, %c0_227] : memref<1x32xf32, #tpu.memory_space<vmem>>, vector<1x32xf32>
      tpu.vector_store %arg10[%c0_226, %c0_227], %833 {strides = array<i32>} : memref<1x32xf32, #tpu.memory_space<vmem>>, vector<1x32xf32>,
      %cst_228 = arith.constant 0.000000e+00 : f32
      %835 = vector.broadcast %cst_228 : f32 to vector<32x32xf32>
      %c0_229 = arith.constant 0 : index
      %c0_230 = arith.constant 0 : index
      %836 = vector.load %arg11[%c0_229, %c0_230] : memref<32x32xf32, #tpu.memory_space<vmem>>, vector<32x32xf32>
      tpu.vector_store %arg11[%c0_229, %c0_230], %835 {strides = array<i32>} : memref<32x32xf32, #tpu.memory_space<vmem>>, vector<32x32xf32>,
    } else {
    }
    %c2_i32 = arith.constant 2 : i32
    %3 = arith.muli %arg0, %c2_i32 : i32
    %4 = arith.addi %3, %arg1 : i32
    %c8_i32 = arith.constant 8 : i32
    %5 = arith.muli %4, %c8_i32 : i32
    %6 = tpu.assume_multiple %5, 8 : i32
    %c0 = arith.constant 0 : index
    %c0_1 = arith.constant 0 : index
    %7 = vector.load %arg5[%c0, %c0_1] : memref<32x32xf32, #tpu.memory_space<vmem>>, vector<32x32xf32>
    %c0_2 = arith.constant 0 : index
    %c0_3 = arith.constant 0 : index
    %8 = vector.load %arg6[%c0_2, %c0_3] : memref<32x32xf32, #tpu.memory_space<vmem>>, vector<32x32xf32>
    %c0_4 = arith.constant 0 : index
    %c0_5 = arith.constant 0 : index
    %9 = vector.load %arg7[%c0_4, %c0_5] : memref<32x1xf32, #tpu.memory_space<vmem>>, vector<32x1xf32>
    %c0_6 = arith.constant 0 : index
    %c0_7 = arith.constant 0 : index
    %10 = vector.load %arg8[%c0_6, %c0_7] : memref<1x32xf32, #tpu.memory_space<vmem>>, vector<1x32xf32>
    %c0_8 = arith.constant 0 : index
    %c0_9 = arith.constant 0 : index
    %11 = vector.load %arg9[%c0_8, %c0_9] : memref<32x1xf32, #tpu.memory_space<vmem>>, vector<32x1xf32>
    %c0_10 = arith.constant 0 : index
    %c0_11 = arith.constant 0 : index
    %12 = vector.load %arg10[%c0_10, %c0_11] : memref<1x32xf32, #tpu.memory_space<vmem>>, vector<1x32xf32>
    %13 = arith.index_cast %6 : i32 to index
    %c0_12 = arith.constant 0 : index
    %14 = vector.load %arg5[%13, %c0_12] : memref<32x32xf32, #tpu.memory_space<vmem>>, vector<8x32xf32>
    %15 = arith.index_cast %6 : i32 to index
    %c0_13 = arith.constant 0 : index
    %16 = vector.load %arg6[%15, %c0_13] : memref<32x32xf32, #tpu.memory_space<vmem>>, vector<8x32xf32>
    %c0_14 = arith.constant 0 : index
    %c0_15 = arith.constant 0 : index
    %17 = vector.load %arg2[%c0_14, %c0_15] : memref<32x128xf32, #tpu.memory_space<vmem>>, vector<32x128xf32>
    %c0_16 = arith.constant 0 : index
    %c0_17 = arith.constant 0 : index
    %18 = vector.load %arg3[%c0_16, %c0_17] : memref<32x128xf32, #tpu.memory_space<vmem>>, vector<32x128xf32>
    %19 = arith.index_cast %6 : i32 to index
    %c0_18 = arith.constant 0 : index
    %20 = vector.load %arg2[%19, %c0_18] : memref<32x128xf32, #tpu.memory_space<vmem>>, vector<8x128xf32>
    %21 = arith.index_cast %6 : i32 to index
    %c0_19 = arith.constant 0 : index
    %22 = vector.load %arg3[%21, %c0_19] : memref<32x128xf32, #tpu.memory_space<vmem>>, vector<8x128xf32>
    %cst = arith.constant dense<0.000000e+00> : vector<32x8xf32>
    %23 = tpu.matmul %17, %20, %cst {dimension_numbers = #tpu.dot_dimension_numbers<[1], [1], [0], [0], [0, 0, 1, 0], [], []>} : vector<32x128xf32>, vector<8x128xf32>, vector<32x8xf32> -> vector<32x8xf32>
    %cst_20 = arith.constant dense<0.000000e+00> : vector<32x8xf32>
    %24 = tpu.matmul %18, %22, %cst_20 {dimension_numbers = #tpu.dot_dimension_numbers<[1], [1], [0], [0], [0, 0, 1, 0], [], []>} : vector<32x128xf32>, vector<8x128xf32>, vector<32x8xf32> -> vector<32x8xf32>
    %25 = tpu.iota {dimensions = array<i32: 0>} : vector<32x1xi32>
    %26 = tpu.iota {dimensions = array<i32: 1>} : vector<1x32xi32>
    %cst_21 = arith.constant 0.000000e+00 : f32
    %27 = vector.broadcast %cst_21 : f32 to vector<32x32xf32>
    %c0_i32_22 = arith.constant 0 : i32
    %28 = arith.addi %6, %c0_i32_22 : i32
    %29 = arith.index_cast %28 : i32 to index
    %c0_23 = arith.constant 0 : index
    %30 = vector.load %arg7[%29, %c0_23] : memref<32x1xf32, #tpu.memory_space<vmem>>, vector<1x1xf32>
    %31 = arith.index_cast %28 : i32 to index
    %c0_24 = arith.constant 0 : index
    %32 = vector.load %arg9[%31, %c0_24] : memref<32x1xf32, #tpu.memory_space<vmem>>, vector<1x1xf32>
    %33 = vector.extract_strided_slice %23 {offsets = [0, 0], sizes = [32, 1], strides = [1, 1]} : vector<32x8xf32> to vector<32x1xf32>
    %34 = vector.extract_strided_slice %14 {offsets = [0, 0], sizes = [1, 32], strides = [1, 1]} : vector<8x32xf32> to vector<1x32xf32>
    %35 = vector.extract_strided_slice %24 {offsets = [0, 0], sizes = [32, 1], strides = [1, 1]} : vector<32x8xf32> to vector<32x1xf32>
    %36 = vector.extract_strided_slice %16 {offsets = [0, 0], sizes = [1, 32], strides = [1, 1]} : vector<8x32xf32> to vector<1x32xf32>
    %37 = vector.broadcast %33 : vector<32x1xf32> to vector<32x32xf32>
    %38 = arith.subf %7, %37 : vector<32x32xf32>
    %39 = vector.broadcast %34 : vector<1x32xf32> to vector<32x32xf32>
    %40 = arith.subf %38, %39 : vector<32x32xf32>
    %41 = vector.broadcast %30 : vector<1x1xf32> to vector<32x32xf32>
    %42 = arith.addf %40, %41 : vector<32x32xf32>
    %43 = vector.broadcast %35 : vector<32x1xf32> to vector<32x32xf32>
    %44 = arith.subf %8, %43 : vector<32x32xf32>
    %45 = vector.broadcast %36 : vector<1x32xf32> to vector<32x32xf32>
    %46 = arith.subf %44, %45 : vector<32x32xf32>
    %47 = vector.broadcast %32 : vector<1x1xf32> to vector<32x32xf32>
    %48 = arith.addf %46, %47 : vector<32x32xf32>
    %49 = vector.broadcast %30 : vector<1x1xf32> to vector<32x1xf32>
    %50 = arith.addf %9, %49 : vector<32x1xf32>
    %cst_25 = arith.constant 2.000000e+00 : f32
    %51 = vector.broadcast %cst_25 : f32 to vector<32x1xf32>
    %52 = arith.mulf %51, %33 : vector<32x1xf32>
    %53 = arith.subf %50, %52 : vector<32x1xf32>
    %cst_26 = arith.constant 0.000000e+00 : f32
    %54 = vector.broadcast %cst_26 : f32 to vector<32x1xf32>
    %55 = arith.maximumf %53, %54 : vector<32x1xf32>
    %56 = math.sqrt %55 : vector<32x1xf32>
    %cst_27 = arith.constant 9.99999996E-13 : f32
    %57 = vector.broadcast %cst_27 : f32 to vector<32x1xf32>
    %58 = arith.maximumf %56, %57 : vector<32x1xf32>
    %cst_28 = arith.constant 1.000000e+00 : f32
    %59 = vector.broadcast %cst_28 : f32 to vector<32x1xf32>
    %60 = arith.divf %59, %58 : vector<32x1xf32>
    %61 = vector.broadcast %30 : vector<1x1xf32> to vector<1x32xf32>
    %62 = arith.addf %10, %61 : vector<1x32xf32>
    %cst_29 = arith.constant 2.000000e+00 : f32
    %63 = vector.broadcast %cst_29 : f32 to vector<1x32xf32>
    %64 = arith.mulf %63, %34 : vector<1x32xf32>
    %65 = arith.subf %62, %64 : vector<1x32xf32>
    %cst_30 = arith.constant 0.000000e+00 : f32
    %66 = vector.broadcast %cst_30 : f32 to vector<1x32xf32>
    %67 = arith.maximumf %65, %66 : vector<1x32xf32>
    %68 = math.sqrt %67 : vector<1x32xf32>
    %cst_31 = arith.constant 9.99999996E-13 : f32
    %69 = vector.broadcast %cst_31 : f32 to vector<1x32xf32>
    %70 = arith.maximumf %68, %69 : vector<1x32xf32>
    %cst_32 = arith.constant 1.000000e+00 : f32
    %71 = vector.broadcast %cst_32 : f32 to vector<1x32xf32>
    %72 = arith.divf %71, %70 : vector<1x32xf32>
    %73 = vector.broadcast %32 : vector<1x1xf32> to vector<32x1xf32>
    %74 = arith.addf %11, %73 : vector<32x1xf32>
    %cst_33 = arith.constant 2.000000e+00 : f32
    %75 = vector.broadcast %cst_33 : f32 to vector<32x1xf32>
    %76 = arith.mulf %75, %35 : vector<32x1xf32>
    %77 = arith.subf %74, %76 : vector<32x1xf32>
    %cst_34 = arith.constant 0.000000e+00 : f32
    %78 = vector.broadcast %cst_34 : f32 to vector<32x1xf32>
    %79 = arith.maximumf %77, %78 : vector<32x1xf32>
    %80 = math.sqrt %79 : vector<32x1xf32>
    %cst_35 = arith.constant 9.99999996E-13 : f32
    %81 = vector.broadcast %cst_35 : f32 to vector<32x1xf32>
    %82 = arith.maximumf %80, %81 : vector<32x1xf32>
    %cst_36 = arith.constant 1.000000e+00 : f32
    %83 = vector.broadcast %cst_36 : f32 to vector<32x1xf32>
    %84 = arith.divf %83, %82 : vector<32x1xf32>
    %85 = vector.broadcast %32 : vector<1x1xf32> to vector<1x32xf32>
    %86 = arith.addf %12, %85 : vector<1x32xf32>
    %cst_37 = arith.constant 2.000000e+00 : f32
    %87 = vector.broadcast %cst_37 : f32 to vector<1x32xf32>
    %88 = arith.mulf %87, %36 : vector<1x32xf32>
    %89 = arith.subf %86, %88 : vector<1x32xf32>
    %cst_38 = arith.constant 0.000000e+00 : f32
    %90 = vector.broadcast %cst_38 : f32 to vector<1x32xf32>
    %91 = arith.maximumf %89, %90 : vector<1x32xf32>
    %92 = math.sqrt %91 : vector<1x32xf32>
    %cst_39 = arith.constant 9.99999996E-13 : f32
    %93 = vector.broadcast %cst_39 : f32 to vector<1x32xf32>
    %94 = arith.maximumf %92, %93 : vector<1x32xf32>
    %cst_40 = arith.constant 1.000000e+00 : f32
    %95 = vector.broadcast %cst_40 : f32 to vector<1x32xf32>
    %96 = arith.divf %95, %94 : vector<1x32xf32>
    %97 = vector.broadcast %60 : vector<32x1xf32> to vector<32x32xf32>
    %98 = arith.mulf %42, %97 : vector<32x32xf32>
    %99 = vector.broadcast %72 : vector<1x32xf32> to vector<32x32xf32>
    %100 = arith.mulf %98, %99 : vector<32x32xf32>
    %101 = vector.broadcast %84 : vector<32x1xf32> to vector<32x32xf32>
    %102 = arith.mulf %48, %101 : vector<32x32xf32>
    %103 = vector.broadcast %96 : vector<1x32xf32> to vector<32x32xf32>
    %104 = arith.mulf %102, %103 : vector<32x32xf32>
    %105 = arith.subf %100, %104 : vector<32x32xf32>
    %106 = math.absf %105 : vector<32x32xf32>
    %cst_41 = arith.constant 1.000000e+00 : f32
    %107 = vector.broadcast %cst_41 : f32 to vector<32x32xf32>
    %108 = arith.cmpf olt, %106, %107 : vector<32x32xf32>
    %cst_42 = arith.constant 5.000000e-01 : f32
    %109 = vector.broadcast %cst_42 : f32 to vector<32x32xf32>
    %110 = arith.mulf %109, %105 : vector<32x32xf32>
    %111 = arith.mulf %110, %105 : vector<32x32xf32>
    %cst_43 = arith.constant 5.000000e-01 : f32
    %112 = vector.broadcast %cst_43 : f32 to vector<32x32xf32>
    %113 = arith.subf %106, %112 : vector<32x32xf32>
    %114 = arith.select %108, %111, %113 : vector<32x32xi1>, vector<32x32xf32>
    %115 = vector.broadcast %28 : i32 to vector<32x1xi32>
    %116 = arith.cmpi ne, %25, %115 : vector<32x1xi32>
    %117 = vector.broadcast %28 : i32 to vector<1x32xi32>
    %118 = arith.cmpi ne, %26, %117 : vector<1x32xi32>
    %119 = vector.broadcast %116 : vector<32x1xi1> to vector<32x32xi1>
    %120 = vector.broadcast %118 : vector<1x32xi1> to vector<32x32xi1>
    %121 = arith.andi %119, %120 : vector<32x32xi1>
    %cst_44 = arith.constant 0.000000e+00 : f32
    %122 = vector.broadcast %cst_44 : f32 to vector<32x32xf32>
    %123 = arith.select %121, %114, %122 : vector<32x32xi1>, vector<32x32xf32>
    %124 = arith.addf %27, %123 : vector<32x32xf32>
    %c1_i32 = arith.constant 1 : i32
    %125 = arith.addi %6, %c1_i32 : i32
    %126 = arith.index_cast %125 : i32 to index
    %c0_45 = arith.constant 0 : index
    %127 = vector.load %arg7[%126, %c0_45] : memref<32x1xf32, #tpu.memory_space<vmem>>, vector<1x1xf32>
    %128 = arith.index_cast %125 : i32 to index
    %c0_46 = arith.constant 0 : index
    %129 = vector.load %arg9[%128, %c0_46] : memref<32x1xf32, #tpu.memory_space<vmem>>, vector<1x1xf32>
    %130 = vector.extract_strided_slice %23 {offsets = [0, 1], sizes = [32, 1], strides = [1, 1]} : vector<32x8xf32> to vector<32x1xf32>
    %131 = vector.extract_strided_slice %14 {offsets = [1, 0], sizes = [1, 32], strides = [1, 1]} : vector<8x32xf32> to vector<1x32xf32>
    %132 = vector.extract_strided_slice %24 {offsets = [0, 1], sizes = [32, 1], strides = [1, 1]} : vector<32x8xf32> to vector<32x1xf32>
    %133 = vector.extract_strided_slice %16 {offsets = [1, 0], sizes = [1, 32], strides = [1, 1]} : vector<8x32xf32> to vector<1x32xf32>
    %134 = vector.broadcast %130 : vector<32x1xf32> to vector<32x32xf32>
    %135 = arith.subf %7, %134 : vector<32x32xf32>
    %136 = vector.broadcast %131 : vector<1x32xf32> to vector<32x32xf32>
    %137 = arith.subf %135, %136 : vector<32x32xf32>
    %138 = vector.broadcast %127 : vector<1x1xf32> to vector<32x32xf32>
    %139 = arith.addf %137, %138 : vector<32x32xf32>
    %140 = vector.broadcast %132 : vector<32x1xf32> to vector<32x32xf32>
    %141 = arith.subf %8, %140 : vector<32x32xf32>
    %142 = vector.broadcast %133 : vector<1x32xf32> to vector<32x32xf32>
    %143 = arith.subf %141, %142 : vector<32x32xf32>
    %144 = vector.broadcast %129 : vector<1x1xf32> to vector<32x32xf32>
    %145 = arith.addf %143, %144 : vector<32x32xf32>
    %146 = vector.broadcast %127 : vector<1x1xf32> to vector<32x1xf32>
    %147 = arith.addf %9, %146 : vector<32x1xf32>
    %cst_47 = arith.constant 2.000000e+00 : f32
    %148 = vector.broadcast %cst_47 : f32 to vector<32x1xf32>
    %149 = arith.mulf %148, %130 : vector<32x1xf32>
    %150 = arith.subf %147, %149 : vector<32x1xf32>
    %cst_48 = arith.constant 0.000000e+00 : f32
    %151 = vector.broadcast %cst_48 : f32 to vector<32x1xf32>
    %152 = arith.maximumf %150, %151 : vector<32x1xf32>
    %153 = math.sqrt %152 : vector<32x1xf32>
    %cst_49 = arith.constant 9.99999996E-13 : f32
    %154 = vector.broadcast %cst_49 : f32 to vector<32x1xf32>
    %155 = arith.maximumf %153, %154 : vector<32x1xf32>
    %cst_50 = arith.constant 1.000000e+00 : f32
    %156 = vector.broadcast %cst_50 : f32 to vector<32x1xf32>
    %157 = arith.divf %156, %155 : vector<32x1xf32>
    %158 = vector.broadcast %127 : vector<1x1xf32> to vector<1x32xf32>
    %159 = arith.addf %10, %158 : vector<1x32xf32>
    %cst_51 = arith.constant 2.000000e+00 : f32
    %160 = vector.broadcast %cst_51 : f32 to vector<1x32xf32>
    %161 = arith.mulf %160, %131 : vector<1x32xf32>
    %162 = arith.subf %159, %161 : vector<1x32xf32>
    %cst_52 = arith.constant 0.000000e+00 : f32
    %163 = vector.broadcast %cst_52 : f32 to vector<1x32xf32>
    %164 = arith.maximumf %162, %163 : vector<1x32xf32>
    %165 = math.sqrt %164 : vector<1x32xf32>
    %cst_53 = arith.constant 9.99999996E-13 : f32
    %166 = vector.broadcast %cst_53 : f32 to vector<1x32xf32>
    %167 = arith.maximumf %165, %166 : vector<1x32xf32>
    %cst_54 = arith.constant 1.000000e+00 : f32
    %168 = vector.broadcast %cst_54 : f32 to vector<1x32xf32>
    %169 = arith.divf %168, %167 : vector<1x32xf32>
    %170 = vector.broadcast %129 : vector<1x1xf32> to vector<32x1xf32>
    %171 = arith.addf %11, %170 : vector<32x1xf32>
    %cst_55 = arith.constant 2.000000e+00 : f32
    %172 = vector.broadcast %cst_55 : f32 to vector<32x1xf32>
    %173 = arith.mulf %172, %132 : vector<32x1xf32>
    %174 = arith.subf %171, %173 : vector<32x1xf32>
    %cst_56 = arith.constant 0.000000e+00 : f32
    %175 = vector.broadcast %cst_56 : f32 to vector<32x1xf32>
    %176 = arith.maximumf %174, %175 : vector<32x1xf32>
    %177 = math.sqrt %176 : vector<32x1xf32>
    %cst_57 = arith.constant 9.99999996E-13 : f32
    %178 = vector.broadcast %cst_57 : f32 to vector<32x1xf32>
    %179 = arith.maximumf %177, %178 : vector<32x1xf32>
    %cst_58 = arith.constant 1.000000e+00 : f32
    %180 = vector.broadcast %cst_58 : f32 to vector<32x1xf32>
    %181 = arith.divf %180, %179 : vector<32x1xf32>
    %182 = vector.broadcast %129 : vector<1x1xf32> to vector<1x32xf32>
    %183 = arith.addf %12, %182 : vector<1x32xf32>
    %cst_59 = arith.constant 2.000000e+00 : f32
    %184 = vector.broadcast %cst_59 : f32 to vector<1x32xf32>
    %185 = arith.mulf %184, %133 : vector<1x32xf32>
    %186 = arith.subf %183, %185 : vector<1x32xf32>
    %cst_60 = arith.constant 0.000000e+00 : f32
    %187 = vector.broadcast %cst_60 : f32 to vector<1x32xf32>
    %188 = arith.maximumf %186, %187 : vector<1x32xf32>
    %189 = math.sqrt %188 : vector<1x32xf32>
    %cst_61 = arith.constant 9.99999996E-13 : f32
    %190 = vector.broadcast %cst_61 : f32 to vector<1x32xf32>
    %191 = arith.maximumf %189, %190 : vector<1x32xf32>
    %cst_62 = arith.constant 1.000000e+00 : f32
    %192 = vector.broadcast %cst_62 : f32 to vector<1x32xf32>
    %193 = arith.divf %192, %191 : vector<1x32xf32>
    %194 = vector.broadcast %157 : vector<32x1xf32> to vector<32x32xf32>
    %195 = arith.mulf %139, %194 : vector<32x32xf32>
    %196 = vector.broadcast %169 : vector<1x32xf32> to vector<32x32xf32>
    %197 = arith.mulf %195, %196 : vector<32x32xf32>
    %198 = vector.broadcast %181 : vector<32x1xf32> to vector<32x32xf32>
    %199 = arith.mulf %145, %198 : vector<32x32xf32>
    %200 = vector.broadcast %193 : vector<1x32xf32> to vector<32x32xf32>
    %201 = arith.mulf %199, %200 : vector<32x32xf32>
    %202 = arith.subf %197, %201 : vector<32x32xf32>
    %203 = math.absf %202 : vector<32x32xf32>
    %cst_63 = arith.constant 1.000000e+00 : f32
    %204 = vector.broadcast %cst_63 : f32 to vector<32x32xf32>
    %205 = arith.cmpf olt, %203, %204 : vector<32x32xf32>
    %cst_64 = arith.constant 5.000000e-01 : f32
    %206 = vector.broadcast %cst_64 : f32 to vector<32x32xf32>
    %207 = arith.mulf %206, %202 : vector<32x32xf32>
    %208 = arith.mulf %207, %202 : vector<32x32xf32>
    %cst_65 = arith.constant 5.000000e-01 : f32
    %209 = vector.broadcast %cst_65 : f32 to vector<32x32xf32>
    %210 = arith.subf %203, %209 : vector<32x32xf32>
    %211 = arith.select %205, %208, %210 : vector<32x32xi1>, vector<32x32xf32>
    %212 = vector.broadcast %125 : i32 to vector<32x1xi32>
    %213 = arith.cmpi ne, %25, %212 : vector<32x1xi32>
    %214 = vector.broadcast %125 : i32 to vector<1x32xi32>
    %215 = arith.cmpi ne, %26, %214 : vector<1x32xi32>
    %216 = vector.broadcast %213 : vector<32x1xi1> to vector<32x32xi1>
    %217 = vector.broadcast %215 : vector<1x32xi1> to vector<32x32xi1>
    %218 = arith.andi %216, %217 : vector<32x32xi1>
    %cst_66 = arith.constant 0.000000e+00 : f32
    %219 = vector.broadcast %cst_66 : f32 to vector<32x32xf32>
    %220 = arith.select %218, %211, %219 : vector<32x32xi1>, vector<32x32xf32>
    %221 = arith.addf %124, %220 : vector<32x32xf32>
    %c2_i32_67 = arith.constant 2 : i32
    %222 = arith.addi %6, %c2_i32_67 : i32
    %223 = arith.index_cast %222 : i32 to index
    %c0_68 = arith.constant 0 : index
    %224 = vector.load %arg7[%223, %c0_68] : memref<32x1xf32, #tpu.memory_space<vmem>>, vector<1x1xf32>
    %225 = arith.index_cast %222 : i32 to index
    %c0_69 = arith.constant 0 : index
    %226 = vector.load %arg9[%225, %c0_69] : memref<32x1xf32, #tpu.memory_space<vmem>>, vector<1x1xf32>
    %227 = vector.extract_strided_slice %23 {offsets = [0, 2], sizes = [32, 1], strides = [1, 1]} : vector<32x8xf32> to vector<32x1xf32>
    %228 = vector.extract_strided_slice %14 {offsets = [2, 0], sizes = [1, 32], strides = [1, 1]} : vector<8x32xf32> to vector<1x32xf32>
    %229 = vector.extract_strided_slice %24 {offsets = [0, 2], sizes = [32, 1], strides = [1, 1]} : vector<32x8xf32> to vector<32x1xf32>
    %230 = vector.extract_strided_slice %16 {offsets = [2, 0], sizes = [1, 32], strides = [1, 1]} : vector<8x32xf32> to vector<1x32xf32>
    %231 = vector.broadcast %227 : vector<32x1xf32> to vector<32x32xf32>
    %232 = arith.subf %7, %231 : vector<32x32xf32>
    %233 = vector.broadcast %228 : vector<1x32xf32> to vector<32x32xf32>
    %234 = arith.subf %232, %233 : vector<32x32xf32>
    %235 = vector.broadcast %224 : vector<1x1xf32> to vector<32x32xf32>
    %236 = arith.addf %234, %235 : vector<32x32xf32>
    %237 = vector.broadcast %229 : vector<32x1xf32> to vector<32x32xf32>
    %238 = arith.subf %8, %237 : vector<32x32xf32>
    %239 = vector.broadcast %230 : vector<1x32xf32> to vector<32x32xf32>
    %240 = arith.subf %238, %239 : vector<32x32xf32>
    %241 = vector.broadcast %226 : vector<1x1xf32> to vector<32x32xf32>
    %242 = arith.addf %240, %241 : vector<32x32xf32>
    %243 = vector.broadcast %224 : vector<1x1xf32> to vector<32x1xf32>
    %244 = arith.addf %9, %243 : vector<32x1xf32>
    %cst_70 = arith.constant 2.000000e+00 : f32
    %245 = vector.broadcast %cst_70 : f32 to vector<32x1xf32>
    %246 = arith.mulf %245, %227 : vector<32x1xf32>
    %247 = arith.subf %244, %246 : vector<32x1xf32>
    %cst_71 = arith.constant 0.000000e+00 : f32
    %248 = vector.broadcast %cst_71 : f32 to vector<32x1xf32>
    %249 = arith.maximumf %247, %248 : vector<32x1xf32>
    %250 = math.sqrt %249 : vector<32x1xf32>
    %cst_72 = arith.constant 9.99999996E-13 : f32
    %251 = vector.broadcast %cst_72 : f32 to vector<32x1xf32>
    %252 = arith.maximumf %250, %251 : vector<32x1xf32>
    %cst_73 = arith.constant 1.000000e+00 : f32
    %253 = vector.broadcast %cst_73 : f32 to vector<32x1xf32>
    %254 = arith.divf %253, %252 : vector<32x1xf32>
    %255 = vector.broadcast %224 : vector<1x1xf32> to vector<1x32xf32>
    %256 = arith.addf %10, %255 : vector<1x32xf32>
    %cst_74 = arith.constant 2.000000e+00 : f32
    %257 = vector.broadcast %cst_74 : f32 to vector<1x32xf32>
    %258 = arith.mulf %257, %228 : vector<1x32xf32>
    %259 = arith.subf %256, %258 : vector<1x32xf32>
    %cst_75 = arith.constant 0.000000e+00 : f32
    %260 = vector.broadcast %cst_75 : f32 to vector<1x32xf32>
    %261 = arith.maximumf %259, %260 : vector<1x32xf32>
    %262 = math.sqrt %261 : vector<1x32xf32>
    %cst_76 = arith.constant 9.99999996E-13 : f32
    %263 = vector.broadcast %cst_76 : f32 to vector<1x32xf32>
    %264 = arith.maximumf %262, %263 : vector<1x32xf32>
    %cst_77 = arith.constant 1.000000e+00 : f32
    %265 = vector.broadcast %cst_77 : f32 to vector<1x32xf32>
    %266 = arith.divf %265, %264 : vector<1x32xf32>
    %267 = vector.broadcast %226 : vector<1x1xf32> to vector<32x1xf32>
    %268 = arith.addf %11, %267 : vector<32x1xf32>
    %cst_78 = arith.constant 2.000000e+00 : f32
    %269 = vector.broadcast %cst_78 : f32 to vector<32x1xf32>
    %270 = arith.mulf %269, %229 : vector<32x1xf32>
    %271 = arith.subf %268, %270 : vector<32x1xf32>
    %cst_79 = arith.constant 0.000000e+00 : f32
    %272 = vector.broadcast %cst_79 : f32 to vector<32x1xf32>
    %273 = arith.maximumf %271, %272 : vector<32x1xf32>
    %274 = math.sqrt %273 : vector<32x1xf32>
    %cst_80 = arith.constant 9.99999996E-13 : f32
    %275 = vector.broadcast %cst_80 : f32 to vector<32x1xf32>
    %276 = arith.maximumf %274, %275 : vector<32x1xf32>
    %cst_81 = arith.constant 1.000000e+00 : f32
    %277 = vector.broadcast %cst_81 : f32 to vector<32x1xf32>
    %278 = arith.divf %277, %276 : vector<32x1xf32>
    %279 = vector.broadcast %226 : vector<1x1xf32> to vector<1x32xf32>
    %280 = arith.addf %12, %279 : vector<1x32xf32>
    %cst_82 = arith.constant 2.000000e+00 : f32
    %281 = vector.broadcast %cst_82 : f32 to vector<1x32xf32>
    %282 = arith.mulf %281, %230 : vector<1x32xf32>
    %283 = arith.subf %280, %282 : vector<1x32xf32>
    %cst_83 = arith.constant 0.000000e+00 : f32
    %284 = vector.broadcast %cst_83 : f32 to vector<1x32xf32>
    %285 = arith.maximumf %283, %284 : vector<1x32xf32>
    %286 = math.sqrt %285 : vector<1x32xf32>
    %cst_84 = arith.constant 9.99999996E-13 : f32
    %287 = vector.broadcast %cst_84 : f32 to vector<1x32xf32>
    %288 = arith.maximumf %286, %287 : vector<1x32xf32>
    %cst_85 = arith.constant 1.000000e+00 : f32
    %289 = vector.broadcast %cst_85 : f32 to vector<1x32xf32>
    %290 = arith.divf %289, %288 : vector<1x32xf32>
    %291 = vector.broadcast %254 : vector<32x1xf32> to vector<32x32xf32>
    %292 = arith.mulf %236, %291 : vector<32x32xf32>
    %293 = vector.broadcast %266 : vector<1x32xf32> to vector<32x32xf32>
    %294 = arith.mulf %292, %293 : vector<32x32xf32>
    %295 = vector.broadcast %278 : vector<32x1xf32> to vector<32x32xf32>
    %296 = arith.mulf %242, %295 : vector<32x32xf32>
    %297 = vector.broadcast %290 : vector<1x32xf32> to vector<32x32xf32>
    %298 = arith.mulf %296, %297 : vector<32x32xf32>
    %299 = arith.subf %294, %298 : vector<32x32xf32>
    %300 = math.absf %299 : vector<32x32xf32>
    %cst_86 = arith.constant 1.000000e+00 : f32
    %301 = vector.broadcast %cst_86 : f32 to vector<32x32xf32>
    %302 = arith.cmpf olt, %300, %301 : vector<32x32xf32>
    %cst_87 = arith.constant 5.000000e-01 : f32
    %303 = vector.broadcast %cst_87 : f32 to vector<32x32xf32>
    %304 = arith.mulf %303, %299 : vector<32x32xf32>
    %305 = arith.mulf %304, %299 : vector<32x32xf32>
    %cst_88 = arith.constant 5.000000e-01 : f32
    %306 = vector.broadcast %cst_88 : f32 to vector<32x32xf32>
    %307 = arith.subf %300, %306 : vector<32x32xf32>
    %308 = arith.select %302, %305, %307 : vector<32x32xi1>, vector<32x32xf32>
    %309 = vector.broadcast %222 : i32 to vector<32x1xi32>
    %310 = arith.cmpi ne, %25, %309 : vector<32x1xi32>
    %311 = vector.broadcast %222 : i32 to vector<1x32xi32>
    %312 = arith.cmpi ne, %26, %311 : vector<1x32xi32>
    %313 = vector.broadcast %310 : vector<32x1xi1> to vector<32x32xi1>
    %314 = vector.broadcast %312 : vector<1x32xi1> to vector<32x32xi1>
    %315 = arith.andi %313, %314 : vector<32x32xi1>
    %cst_89 = arith.constant 0.000000e+00 : f32
    %316 = vector.broadcast %cst_89 : f32 to vector<32x32xf32>
    %317 = arith.select %315, %308, %316 : vector<32x32xi1>, vector<32x32xf32>
    %318 = arith.addf %221, %317 : vector<32x32xf32>
    %c3_i32 = arith.constant 3 : i32
    %319 = arith.addi %6, %c3_i32 : i32
    %320 = arith.index_cast %319 : i32 to index
    %c0_90 = arith.constant 0 : index
    %321 = vector.load %arg7[%320, %c0_90] : memref<32x1xf32, #tpu.memory_space<vmem>>, vector<1x1xf32>
    %322 = arith.index_cast %319 : i32 to index
    %c0_91 = arith.constant 0 : index
    %323 = vector.load %arg9[%322, %c0_91] : memref<32x1xf32, #tpu.memory_space<vmem>>, vector<1x1xf32>
    %324 = vector.extract_strided_slice %23 {offsets = [0, 3], sizes = [32, 1], strides = [1, 1]} : vector<32x8xf32> to vector<32x1xf32>
    %325 = vector.extract_strided_slice %14 {offsets = [3, 0], sizes = [1, 32], strides = [1, 1]} : vector<8x32xf32> to vector<1x32xf32>
    %326 = vector.extract_strided_slice %24 {offsets = [0, 3], sizes = [32, 1], strides = [1, 1]} : vector<32x8xf32> to vector<32x1xf32>
    %327 = vector.extract_strided_slice %16 {offsets = [3, 0], sizes = [1, 32], strides = [1, 1]} : vector<8x32xf32> to vector<1x32xf32>
    %328 = vector.broadcast %324 : vector<32x1xf32> to vector<32x32xf32>
    %329 = arith.subf %7, %328 : vector<32x32xf32>
    %330 = vector.broadcast %325 : vector<1x32xf32> to vector<32x32xf32>
    %331 = arith.subf %329, %330 : vector<32x32xf32>
    %332 = vector.broadcast %321 : vector<1x1xf32> to vector<32x32xf32>
    %333 = arith.addf %331, %332 : vector<32x32xf32>
    %334 = vector.broadcast %326 : vector<32x1xf32> to vector<32x32xf32>
    %335 = arith.subf %8, %334 : vector<32x32xf32>
    %336 = vector.broadcast %327 : vector<1x32xf32> to vector<32x32xf32>
    %337 = arith.subf %335, %336 : vector<32x32xf32>
    %338 = vector.broadcast %323 : vector<1x1xf32> to vector<32x32xf32>
    %339 = arith.addf %337, %338 : vector<32x32xf32>
    %340 = vector.broadcast %321 : vector<1x1xf32> to vector<32x1xf32>
    %341 = arith.addf %9, %340 : vector<32x1xf32>
    %cst_92 = arith.constant 2.000000e+00 : f32
    %342 = vector.broadcast %cst_92 : f32 to vector<32x1xf32>
    %343 = arith.mulf %342, %324 : vector<32x1xf32>
    %344 = arith.subf %341, %343 : vector<32x1xf32>
    %cst_93 = arith.constant 0.000000e+00 : f32
    %345 = vector.broadcast %cst_93 : f32 to vector<32x1xf32>
    %346 = arith.maximumf %344, %345 : vector<32x1xf32>
    %347 = math.sqrt %346 : vector<32x1xf32>
    %cst_94 = arith.constant 9.99999996E-13 : f32
    %348 = vector.broadcast %cst_94 : f32 to vector<32x1xf32>
    %349 = arith.maximumf %347, %348 : vector<32x1xf32>
    %cst_95 = arith.constant 1.000000e+00 : f32
    %350 = vector.broadcast %cst_95 : f32 to vector<32x1xf32>
    %351 = arith.divf %350, %349 : vector<32x1xf32>
    %352 = vector.broadcast %321 : vector<1x1xf32> to vector<1x32xf32>
    %353 = arith.addf %10, %352 : vector<1x32xf32>
    %cst_96 = arith.constant 2.000000e+00 : f32
    %354 = vector.broadcast %cst_96 : f32 to vector<1x32xf32>
    %355 = arith.mulf %354, %325 : vector<1x32xf32>
    %356 = arith.subf %353, %355 : vector<1x32xf32>
    %cst_97 = arith.constant 0.000000e+00 : f32
    %357 = vector.broadcast %cst_97 : f32 to vector<1x32xf32>
    %358 = arith.maximumf %356, %357 : vector<1x32xf32>
    %359 = math.sqrt %358 : vector<1x32xf32>
    %cst_98 = arith.constant 9.99999996E-13 : f32
    %360 = vector.broadcast %cst_98 : f32 to vector<1x32xf32>
    %361 = arith.maximumf %359, %360 : vector<1x32xf32>
    %cst_99 = arith.constant 1.000000e+00 : f32
    %362 = vector.broadcast %cst_99 : f32 to vector<1x32xf32>
    %363 = arith.divf %362, %361 : vector<1x32xf32>
    %364 = vector.broadcast %323 : vector<1x1xf32> to vector<32x1xf32>
    %365 = arith.addf %11, %364 : vector<32x1xf32>
    %cst_100 = arith.constant 2.000000e+00 : f32
    %366 = vector.broadcast %cst_100 : f32 to vector<32x1xf32>
    %367 = arith.mulf %366, %326 : vector<32x1xf32>
    %368 = arith.subf %365, %367 : vector<32x1xf32>
    %cst_101 = arith.constant 0.000000e+00 : f32
    %369 = vector.broadcast %cst_101 : f32 to vector<32x1xf32>
    %370 = arith.maximumf %368, %369 : vector<32x1xf32>
    %371 = math.sqrt %370 : vector<32x1xf32>
    %cst_102 = arith.constant 9.99999996E-13 : f32
    %372 = vector.broadcast %cst_102 : f32 to vector<32x1xf32>
    %373 = arith.maximumf %371, %372 : vector<32x1xf32>
    %cst_103 = arith.constant 1.000000e+00 : f32
    %374 = vector.broadcast %cst_103 : f32 to vector<32x1xf32>
    %375 = arith.divf %374, %373 : vector<32x1xf32>
    %376 = vector.broadcast %323 : vector<1x1xf32> to vector<1x32xf32>
    %377 = arith.addf %12, %376 : vector<1x32xf32>
    %cst_104 = arith.constant 2.000000e+00 : f32
    %378 = vector.broadcast %cst_104 : f32 to vector<1x32xf32>
    %379 = arith.mulf %378, %327 : vector<1x32xf32>
    %380 = arith.subf %377, %379 : vector<1x32xf32>
    %cst_105 = arith.constant 0.000000e+00 : f32
    %381 = vector.broadcast %cst_105 : f32 to vector<1x32xf32>
    %382 = arith.maximumf %380, %381 : vector<1x32xf32>
    %383 = math.sqrt %382 : vector<1x32xf32>
    %cst_106 = arith.constant 9.99999996E-13 : f32
    %384 = vector.broadcast %cst_106 : f32 to vector<1x32xf32>
    %385 = arith.maximumf %383, %384 : vector<1x32xf32>
    %cst_107 = arith.constant 1.000000e+00 : f32
    %386 = vector.broadcast %cst_107 : f32 to vector<1x32xf32>
    %387 = arith.divf %386, %385 : vector<1x32xf32>
    %388 = vector.broadcast %351 : vector<32x1xf32> to vector<32x32xf32>
    %389 = arith.mulf %333, %388 : vector<32x32xf32>
    %390 = vector.broadcast %363 : vector<1x32xf32> to vector<32x32xf32>
    %391 = arith.mulf %389, %390 : vector<32x32xf32>
    %392 = vector.broadcast %375 : vector<32x1xf32> to vector<32x32xf32>
    %393 = arith.mulf %339, %392 : vector<32x32xf32>
    %394 = vector.broadcast %387 : vector<1x32xf32> to vector<32x32xf32>
    %395 = arith.mulf %393, %394 : vector<32x32xf32>
    %396 = arith.subf %391, %395 : vector<32x32xf32>
    %397 = math.absf %396 : vector<32x32xf32>
    %cst_108 = arith.constant 1.000000e+00 : f32
    %398 = vector.broadcast %cst_108 : f32 to vector<32x32xf32>
    %399 = arith.cmpf olt, %397, %398 : vector<32x32xf32>
    %cst_109 = arith.constant 5.000000e-01 : f32
    %400 = vector.broadcast %cst_109 : f32 to vector<32x32xf32>
    %401 = arith.mulf %400, %396 : vector<32x32xf32>
    %402 = arith.mulf %401, %396 : vector<32x32xf32>
    %cst_110 = arith.constant 5.000000e-01 : f32
    %403 = vector.broadcast %cst_110 : f32 to vector<32x32xf32>
    %404 = arith.subf %397, %403 : vector<32x32xf32>
    %405 = arith.select %399, %402, %404 : vector<32x32xi1>, vector<32x32xf32>
    %406 = vector.broadcast %319 : i32 to vector<32x1xi32>
    %407 = arith.cmpi ne, %25, %406 : vector<32x1xi32>
    %408 = vector.broadcast %319 : i32 to vector<1x32xi32>
    %409 = arith.cmpi ne, %26, %408 : vector<1x32xi32>
    %410 = vector.broadcast %407 : vector<32x1xi1> to vector<32x32xi1>
    %411 = vector.broadcast %409 : vector<1x32xi1> to vector<32x32xi1>
    %412 = arith.andi %410, %411 : vector<32x32xi1>
    %cst_111 = arith.constant 0.000000e+00 : f32
    %413 = vector.broadcast %cst_111 : f32 to vector<32x32xf32>
    %414 = arith.select %412, %405, %413 : vector<32x32xi1>, vector<32x32xf32>
    %415 = arith.addf %318, %414 : vector<32x32xf32>
    %c4_i32 = arith.constant 4 : i32
    %416 = arith.addi %6, %c4_i32 : i32
    %417 = arith.index_cast %416 : i32 to index
    %c0_112 = arith.constant 0 : index
    %418 = vector.load %arg7[%417, %c0_112] : memref<32x1xf32, #tpu.memory_space<vmem>>, vector<1x1xf32>
    %419 = arith.index_cast %416 : i32 to index
    %c0_113 = arith.constant 0 : index
    %420 = vector.load %arg9[%419, %c0_113] : memref<32x1xf32, #tpu.memory_space<vmem>>, vector<1x1xf32>
    %421 = vector.extract_strided_slice %23 {offsets = [0, 4], sizes = [32, 1], strides = [1, 1]} : vector<32x8xf32> to vector<32x1xf32>
    %422 = vector.extract_strided_slice %14 {offsets = [4, 0], sizes = [1, 32], strides = [1, 1]} : vector<8x32xf32> to vector<1x32xf32>
    %423 = vector.extract_strided_slice %24 {offsets = [0, 4], sizes = [32, 1], strides = [1, 1]} : vector<32x8xf32> to vector<32x1xf32>
    %424 = vector.extract_strided_slice %16 {offsets = [4, 0], sizes = [1, 32], strides = [1, 1]} : vector<8x32xf32> to vector<1x32xf32>
    %425 = vector.broadcast %421 : vector<32x1xf32> to vector<32x32xf32>
    %426 = arith.subf %7, %425 : vector<32x32xf32>
    %427 = vector.broadcast %422 : vector<1x32xf32> to vector<32x32xf32>
    %428 = arith.subf %426, %427 : vector<32x32xf32>
    %429 = vector.broadcast %418 : vector<1x1xf32> to vector<32x32xf32>
    %430 = arith.addf %428, %429 : vector<32x32xf32>
    %431 = vector.broadcast %423 : vector<32x1xf32> to vector<32x32xf32>
    %432 = arith.subf %8, %431 : vector<32x32xf32>
    %433 = vector.broadcast %424 : vector<1x32xf32> to vector<32x32xf32>
    %434 = arith.subf %432, %433 : vector<32x32xf32>
    %435 = vector.broadcast %420 : vector<1x1xf32> to vector<32x32xf32>
    %436 = arith.addf %434, %435 : vector<32x32xf32>
    %437 = vector.broadcast %418 : vector<1x1xf32> to vector<32x1xf32>
    %438 = arith.addf %9, %437 : vector<32x1xf32>
    %cst_114 = arith.constant 2.000000e+00 : f32
    %439 = vector.broadcast %cst_114 : f32 to vector<32x1xf32>
    %440 = arith.mulf %439, %421 : vector<32x1xf32>
    %441 = arith.subf %438, %440 : vector<32x1xf32>
    %cst_115 = arith.constant 0.000000e+00 : f32
    %442 = vector.broadcast %cst_115 : f32 to vector<32x1xf32>
    %443 = arith.maximumf %441, %442 : vector<32x1xf32>
    %444 = math.sqrt %443 : vector<32x1xf32>
    %cst_116 = arith.constant 9.99999996E-13 : f32
    %445 = vector.broadcast %cst_116 : f32 to vector<32x1xf32>
    %446 = arith.maximumf %444, %445 : vector<32x1xf32>
    %cst_117 = arith.constant 1.000000e+00 : f32
    %447 = vector.broadcast %cst_117 : f32 to vector<32x1xf32>
    %448 = arith.divf %447, %446 : vector<32x1xf32>
    %449 = vector.broadcast %418 : vector<1x1xf32> to vector<1x32xf32>
    %450 = arith.addf %10, %449 : vector<1x32xf32>
    %cst_118 = arith.constant 2.000000e+00 : f32
    %451 = vector.broadcast %cst_118 : f32 to vector<1x32xf32>
    %452 = arith.mulf %451, %422 : vector<1x32xf32>
    %453 = arith.subf %450, %452 : vector<1x32xf32>
    %cst_119 = arith.constant 0.000000e+00 : f32
    %454 = vector.broadcast %cst_119 : f32 to vector<1x32xf32>
    %455 = arith.maximumf %453, %454 : vector<1x32xf32>
    %456 = math.sqrt %455 : vector<1x32xf32>
    %cst_120 = arith.constant 9.99999996E-13 : f32
    %457 = vector.broadcast %cst_120 : f32 to vector<1x32xf32>
    %458 = arith.maximumf %456, %457 : vector<1x32xf32>
    %cst_121 = arith.constant 1.000000e+00 : f32
    %459 = vector.broadcast %cst_121 : f32 to vector<1x32xf32>
    %460 = arith.divf %459, %458 : vector<1x32xf32>
    %461 = vector.broadcast %420 : vector<1x1xf32> to vector<32x1xf32>
    %462 = arith.addf %11, %461 : vector<32x1xf32>
    %cst_122 = arith.constant 2.000000e+00 : f32
    %463 = vector.broadcast %cst_122 : f32 to vector<32x1xf32>
    %464 = arith.mulf %463, %423 : vector<32x1xf32>
    %465 = arith.subf %462, %464 : vector<32x1xf32>
    %cst_123 = arith.constant 0.000000e+00 : f32
    %466 = vector.broadcast %cst_123 : f32 to vector<32x1xf32>
    %467 = arith.maximumf %465, %466 : vector<32x1xf32>
    %468 = math.sqrt %467 : vector<32x1xf32>
    %cst_124 = arith.constant 9.99999996E-13 : f32
    %469 = vector.broadcast %cst_124 : f32 to vector<32x1xf32>
    %470 = arith.maximumf %468, %469 : vector<32x1xf32>
    %cst_125 = arith.constant 1.000000e+00 : f32
    %471 = vector.broadcast %cst_125 : f32 to vector<32x1xf32>
    %472 = arith.divf %471, %470 : vector<32x1xf32>
    %473 = vector.broadcast %420 : vector<1x1xf32> to vector<1x32xf32>
    %474 = arith.addf %12, %473 : vector<1x32xf32>
    %cst_126 = arith.constant 2.000000e+00 : f32
    %475 = vector.broadcast %cst_126 : f32 to vector<1x32xf32>
    %476 = arith.mulf %475, %424 : vector<1x32xf32>
    %477 = arith.subf %474, %476 : vector<1x32xf32>
    %cst_127 = arith.constant 0.000000e+00 : f32
    %478 = vector.broadcast %cst_127 : f32 to vector<1x32xf32>
    %479 = arith.maximumf %477, %478 : vector<1x32xf32>
    %480 = math.sqrt %479 : vector<1x32xf32>
    %cst_128 = arith.constant 9.99999996E-13 : f32
    %481 = vector.broadcast %cst_128 : f32 to vector<1x32xf32>
    %482 = arith.maximumf %480, %481 : vector<1x32xf32>
    %cst_129 = arith.constant 1.000000e+00 : f32
    %483 = vector.broadcast %cst_129 : f32 to vector<1x32xf32>
    %484 = arith.divf %483, %482 : vector<1x32xf32>
    %485 = vector.broadcast %448 : vector<32x1xf32> to vector<32x32xf32>
    %486 = arith.mulf %430, %485 : vector<32x32xf32>
    %487 = vector.broadcast %460 : vector<1x32xf32> to vector<32x32xf32>
    %488 = arith.mulf %486, %487 : vector<32x32xf32>
    %489 = vector.broadcast %472 : vector<32x1xf32> to vector<32x32xf32>
    %490 = arith.mulf %436, %489 : vector<32x32xf32>
    %491 = vector.broadcast %484 : vector<1x32xf32> to vector<32x32xf32>
    %492 = arith.mulf %490, %491 : vector<32x32xf32>
    %493 = arith.subf %488, %492 : vector<32x32xf32>
    %494 = math.absf %493 : vector<32x32xf32>
    %cst_130 = arith.constant 1.000000e+00 : f32
    %495 = vector.broadcast %cst_130 : f32 to vector<32x32xf32>
    %496 = arith.cmpf olt, %494, %495 : vector<32x32xf32>
    %cst_131 = arith.constant 5.000000e-01 : f32
    %497 = vector.broadcast %cst_131 : f32 to vector<32x32xf32>
    %498 = arith.mulf %497, %493 : vector<32x32xf32>
    %499 = arith.mulf %498, %493 : vector<32x32xf32>
    %cst_132 = arith.constant 5.000000e-01 : f32
    %500 = vector.broadcast %cst_132 : f32 to vector<32x32xf32>
    %501 = arith.subf %494, %500 : vector<32x32xf32>
    %502 = arith.select %496, %499, %501 : vector<32x32xi1>, vector<32x32xf32>
    %503 = vector.broadcast %416 : i32 to vector<32x1xi32>
    %504 = arith.cmpi ne, %25, %503 : vector<32x1xi32>
    %505 = vector.broadcast %416 : i32 to vector<1x32xi32>
    %506 = arith.cmpi ne, %26, %505 : vector<1x32xi32>
    %507 = vector.broadcast %504 : vector<32x1xi1> to vector<32x32xi1>
    %508 = vector.broadcast %506 : vector<1x32xi1> to vector<32x32xi1>
    %509 = arith.andi %507, %508 : vector<32x32xi1>
    %cst_133 = arith.constant 0.000000e+00 : f32
    %510 = vector.broadcast %cst_133 : f32 to vector<32x32xf32>
    %511 = arith.select %509, %502, %510 : vector<32x32xi1>, vector<32x32xf32>
    %512 = arith.addf %415, %511 : vector<32x32xf32>
    %c5_i32 = arith.constant 5 : i32
    %513 = arith.addi %6, %c5_i32 : i32
    %514 = arith.index_cast %513 : i32 to index
    %c0_134 = arith.constant 0 : index
    %515 = vector.load %arg7[%514, %c0_134] : memref<32x1xf32, #tpu.memory_space<vmem>>, vector<1x1xf32>
    %516 = arith.index_cast %513 : i32 to index
    %c0_135 = arith.constant 0 : index
    %517 = vector.load %arg9[%516, %c0_135] : memref<32x1xf32, #tpu.memory_space<vmem>>, vector<1x1xf32>
    %518 = vector.extract_strided_slice %23 {offsets = [0, 5], sizes = [32, 1], strides = [1, 1]} : vector<32x8xf32> to vector<32x1xf32>
    %519 = vector.extract_strided_slice %14 {offsets = [5, 0], sizes = [1, 32], strides = [1, 1]} : vector<8x32xf32> to vector<1x32xf32>
    %520 = vector.extract_strided_slice %24 {offsets = [0, 5], sizes = [32, 1], strides = [1, 1]} : vector<32x8xf32> to vector<32x1xf32>
    %521 = vector.extract_strided_slice %16 {offsets = [5, 0], sizes = [1, 32], strides = [1, 1]} : vector<8x32xf32> to vector<1x32xf32>
    %522 = vector.broadcast %518 : vector<32x1xf32> to vector<32x32xf32>
    %523 = arith.subf %7, %522 : vector<32x32xf32>
    %524 = vector.broadcast %519 : vector<1x32xf32> to vector<32x32xf32>
    %525 = arith.subf %523, %524 : vector<32x32xf32>
    %526 = vector.broadcast %515 : vector<1x1xf32> to vector<32x32xf32>
    %527 = arith.addf %525, %526 : vector<32x32xf32>
    %528 = vector.broadcast %520 : vector<32x1xf32> to vector<32x32xf32>
    %529 = arith.subf %8, %528 : vector<32x32xf32>
    %530 = vector.broadcast %521 : vector<1x32xf32> to vector<32x32xf32>
    %531 = arith.subf %529, %530 : vector<32x32xf32>
    %532 = vector.broadcast %517 : vector<1x1xf32> to vector<32x32xf32>
    %533 = arith.addf %531, %532 : vector<32x32xf32>
    %534 = vector.broadcast %515 : vector<1x1xf32> to vector<32x1xf32>
    %535 = arith.addf %9, %534 : vector<32x1xf32>
    %cst_136 = arith.constant 2.000000e+00 : f32
    %536 = vector.broadcast %cst_136 : f32 to vector<32x1xf32>
    %537 = arith.mulf %536, %518 : vector<32x1xf32>
    %538 = arith.subf %535, %537 : vector<32x1xf32>
    %cst_137 = arith.constant 0.000000e+00 : f32
    %539 = vector.broadcast %cst_137 : f32 to vector<32x1xf32>
    %540 = arith.maximumf %538, %539 : vector<32x1xf32>
    %541 = math.sqrt %540 : vector<32x1xf32>
    %cst_138 = arith.constant 9.99999996E-13 : f32
    %542 = vector.broadcast %cst_138 : f32 to vector<32x1xf32>
    %543 = arith.maximumf %541, %542 : vector<32x1xf32>
    %cst_139 = arith.constant 1.000000e+00 : f32
    %544 = vector.broadcast %cst_139 : f32 to vector<32x1xf32>
    %545 = arith.divf %544, %543 : vector<32x1xf32>
    %546 = vector.broadcast %515 : vector<1x1xf32> to vector<1x32xf32>
    %547 = arith.addf %10, %546 : vector<1x32xf32>
    %cst_140 = arith.constant 2.000000e+00 : f32
    %548 = vector.broadcast %cst_140 : f32 to vector<1x32xf32>
    %549 = arith.mulf %548, %519 : vector<1x32xf32>
    %550 = arith.subf %547, %549 : vector<1x32xf32>
    %cst_141 = arith.constant 0.000000e+00 : f32
    %551 = vector.broadcast %cst_141 : f32 to vector<1x32xf32>
    %552 = arith.maximumf %550, %551 : vector<1x32xf32>
    %553 = math.sqrt %552 : vector<1x32xf32>
    %cst_142 = arith.constant 9.99999996E-13 : f32
    %554 = vector.broadcast %cst_142 : f32 to vector<1x32xf32>
    %555 = arith.maximumf %553, %554 : vector<1x32xf32>
    %cst_143 = arith.constant 1.000000e+00 : f32
    %556 = vector.broadcast %cst_143 : f32 to vector<1x32xf32>
    %557 = arith.divf %556, %555 : vector<1x32xf32>
    %558 = vector.broadcast %517 : vector<1x1xf32> to vector<32x1xf32>
    %559 = arith.addf %11, %558 : vector<32x1xf32>
    %cst_144 = arith.constant 2.000000e+00 : f32
    %560 = vector.broadcast %cst_144 : f32 to vector<32x1xf32>
    %561 = arith.mulf %560, %520 : vector<32x1xf32>
    %562 = arith.subf %559, %561 : vector<32x1xf32>
    %cst_145 = arith.constant 0.000000e+00 : f32
    %563 = vector.broadcast %cst_145 : f32 to vector<32x1xf32>
    %564 = arith.maximumf %562, %563 : vector<32x1xf32>
    %565 = math.sqrt %564 : vector<32x1xf32>
    %cst_146 = arith.constant 9.99999996E-13 : f32
    %566 = vector.broadcast %cst_146 : f32 to vector<32x1xf32>
    %567 = arith.maximumf %565, %566 : vector<32x1xf32>
    %cst_147 = arith.constant 1.000000e+00 : f32
    %568 = vector.broadcast %cst_147 : f32 to vector<32x1xf32>
    %569 = arith.divf %568, %567 : vector<32x1xf32>
    %570 = vector.broadcast %517 : vector<1x1xf32> to vector<1x32xf32>
    %571 = arith.addf %12, %570 : vector<1x32xf32>
    %cst_148 = arith.constant 2.000000e+00 : f32
    %572 = vector.broadcast %cst_148 : f32 to vector<1x32xf32>
    %573 = arith.mulf %572, %521 : vector<1x32xf32>
    %574 = arith.subf %571, %573 : vector<1x32xf32>
    %cst_149 = arith.constant 0.000000e+00 : f32
    %575 = vector.broadcast %cst_149 : f32 to vector<1x32xf32>
    %576 = arith.maximumf %574, %575 : vector<1x32xf32>
    %577 = math.sqrt %576 : vector<1x32xf32>
    %cst_150 = arith.constant 9.99999996E-13 : f32
    %578 = vector.broadcast %cst_150 : f32 to vector<1x32xf32>
    %579 = arith.maximumf %577, %578 : vector<1x32xf32>
    %cst_151 = arith.constant 1.000000e+00 : f32
    %580 = vector.broadcast %cst_151 : f32 to vector<1x32xf32>
    %581 = arith.divf %580, %579 : vector<1x32xf32>
    %582 = vector.broadcast %545 : vector<32x1xf32> to vector<32x32xf32>
    %583 = arith.mulf %527, %582 : vector<32x32xf32>
    %584 = vector.broadcast %557 : vector<1x32xf32> to vector<32x32xf32>
    %585 = arith.mulf %583, %584 : vector<32x32xf32>
    %586 = vector.broadcast %569 : vector<32x1xf32> to vector<32x32xf32>
    %587 = arith.mulf %533, %586 : vector<32x32xf32>
    %588 = vector.broadcast %581 : vector<1x32xf32> to vector<32x32xf32>
    %589 = arith.mulf %587, %588 : vector<32x32xf32>
    %590 = arith.subf %585, %589 : vector<32x32xf32>
    %591 = math.absf %590 : vector<32x32xf32>
    %cst_152 = arith.constant 1.000000e+00 : f32
    %592 = vector.broadcast %cst_152 : f32 to vector<32x32xf32>
    %593 = arith.cmpf olt, %591, %592 : vector<32x32xf32>
    %cst_153 = arith.constant 5.000000e-01 : f32
    %594 = vector.broadcast %cst_153 : f32 to vector<32x32xf32>
    %595 = arith.mulf %594, %590 : vector<32x32xf32>
    %596 = arith.mulf %595, %590 : vector<32x32xf32>
    %cst_154 = arith.constant 5.000000e-01 : f32
    %597 = vector.broadcast %cst_154 : f32 to vector<32x32xf32>
    %598 = arith.subf %591, %597 : vector<32x32xf32>
    %599 = arith.select %593, %596, %598 : vector<32x32xi1>, vector<32x32xf32>
    %600 = vector.broadcast %513 : i32 to vector<32x1xi32>
    %601 = arith.cmpi ne, %25, %600 : vector<32x1xi32>
    %602 = vector.broadcast %513 : i32 to vector<1x32xi32>
    %603 = arith.cmpi ne, %26, %602 : vector<1x32xi32>
    %604 = vector.broadcast %601 : vector<32x1xi1> to vector<32x32xi1>
    %605 = vector.broadcast %603 : vector<1x32xi1> to vector<32x32xi1>
    %606 = arith.andi %604, %605 : vector<32x32xi1>
    %cst_155 = arith.constant 0.000000e+00 : f32
    %607 = vector.broadcast %cst_155 : f32 to vector<32x32xf32>
    %608 = arith.select %606, %599, %607 : vector<32x32xi1>, vector<32x32xf32>
    %609 = arith.addf %512, %608 : vector<32x32xf32>
    %c6_i32 = arith.constant 6 : i32
    %610 = arith.addi %6, %c6_i32 : i32
    %611 = arith.index_cast %610 : i32 to index
    %c0_156 = arith.constant 0 : index
    %612 = vector.load %arg7[%611, %c0_156] : memref<32x1xf32, #tpu.memory_space<vmem>>, vector<1x1xf32>
    %613 = arith.index_cast %610 : i32 to index
    %c0_157 = arith.constant 0 : index
    %614 = vector.load %arg9[%613, %c0_157] : memref<32x1xf32, #tpu.memory_space<vmem>>, vector<1x1xf32>
    %615 = vector.extract_strided_slice %23 {offsets = [0, 6], sizes = [32, 1], strides = [1, 1]} : vector<32x8xf32> to vector<32x1xf32>
    %616 = vector.extract_strided_slice %14 {offsets = [6, 0], sizes = [1, 32], strides = [1, 1]} : vector<8x32xf32> to vector<1x32xf32>
    %617 = vector.extract_strided_slice %24 {offsets = [0, 6], sizes = [32, 1], strides = [1, 1]} : vector<32x8xf32> to vector<32x1xf32>
    %618 = vector.extract_strided_slice %16 {offsets = [6, 0], sizes = [1, 32], strides = [1, 1]} : vector<8x32xf32> to vector<1x32xf32>
    %619 = vector.broadcast %615 : vector<32x1xf32> to vector<32x32xf32>
    %620 = arith.subf %7, %619 : vector<32x32xf32>
    %621 = vector.broadcast %616 : vector<1x32xf32> to vector<32x32xf32>
    %622 = arith.subf %620, %621 : vector<32x32xf32>
    %623 = vector.broadcast %612 : vector<1x1xf32> to vector<32x32xf32>
    %624 = arith.addf %622, %623 : vector<32x32xf32>
    %625 = vector.broadcast %617 : vector<32x1xf32> to vector<32x32xf32>
    %626 = arith.subf %8, %625 : vector<32x32xf32>
    %627 = vector.broadcast %618 : vector<1x32xf32> to vector<32x32xf32>
    %628 = arith.subf %626, %627 : vector<32x32xf32>
    %629 = vector.broadcast %614 : vector<1x1xf32> to vector<32x32xf32>
    %630 = arith.addf %628, %629 : vector<32x32xf32>
    %631 = vector.broadcast %612 : vector<1x1xf32> to vector<32x1xf32>
    %632 = arith.addf %9, %631 : vector<32x1xf32>
    %cst_158 = arith.constant 2.000000e+00 : f32
    %633 = vector.broadcast %cst_158 : f32 to vector<32x1xf32>
    %634 = arith.mulf %633, %615 : vector<32x1xf32>
    %635 = arith.subf %632, %634 : vector<32x1xf32>
    %cst_159 = arith.constant 0.000000e+00 : f32
    %636 = vector.broadcast %cst_159 : f32 to vector<32x1xf32>
    %637 = arith.maximumf %635, %636 : vector<32x1xf32>
    %638 = math.sqrt %637 : vector<32x1xf32>
    %cst_160 = arith.constant 9.99999996E-13 : f32
    %639 = vector.broadcast %cst_160 : f32 to vector<32x1xf32>
    %640 = arith.maximumf %638, %639 : vector<32x1xf32>
    %cst_161 = arith.constant 1.000000e+00 : f32
    %641 = vector.broadcast %cst_161 : f32 to vector<32x1xf32>
    %642 = arith.divf %641, %640 : vector<32x1xf32>
    %643 = vector.broadcast %612 : vector<1x1xf32> to vector<1x32xf32>
    %644 = arith.addf %10, %643 : vector<1x32xf32>
    %cst_162 = arith.constant 2.000000e+00 : f32
    %645 = vector.broadcast %cst_162 : f32 to vector<1x32xf32>
    %646 = arith.mulf %645, %616 : vector<1x32xf32>
    %647 = arith.subf %644, %646 : vector<1x32xf32>
    %cst_163 = arith.constant 0.000000e+00 : f32
    %648 = vector.broadcast %cst_163 : f32 to vector<1x32xf32>
    %649 = arith.maximumf %647, %648 : vector<1x32xf32>
    %650 = math.sqrt %649 : vector<1x32xf32>
    %cst_164 = arith.constant 9.99999996E-13 : f32
    %651 = vector.broadcast %cst_164 : f32 to vector<1x32xf32>
    %652 = arith.maximumf %650, %651 : vector<1x32xf32>
    %cst_165 = arith.constant 1.000000e+00 : f32
    %653 = vector.broadcast %cst_165 : f32 to vector<1x32xf32>
    %654 = arith.divf %653, %652 : vector<1x32xf32>
    %655 = vector.broadcast %614 : vector<1x1xf32> to vector<32x1xf32>
    %656 = arith.addf %11, %655 : vector<32x1xf32>
    %cst_166 = arith.constant 2.000000e+00 : f32
    %657 = vector.broadcast %cst_166 : f32 to vector<32x1xf32>
    %658 = arith.mulf %657, %617 : vector<32x1xf32>
    %659 = arith.subf %656, %658 : vector<32x1xf32>
    %cst_167 = arith.constant 0.000000e+00 : f32
    %660 = vector.broadcast %cst_167 : f32 to vector<32x1xf32>
    %661 = arith.maximumf %659, %660 : vector<32x1xf32>
    %662 = math.sqrt %661 : vector<32x1xf32>
    %cst_168 = arith.constant 9.99999996E-13 : f32
    %663 = vector.broadcast %cst_168 : f32 to vector<32x1xf32>
    %664 = arith.maximumf %662, %663 : vector<32x1xf32>
    %cst_169 = arith.constant 1.000000e+00 : f32
    %665 = vector.broadcast %cst_169 : f32 to vector<32x1xf32>
    %666 = arith.divf %665, %664 : vector<32x1xf32>
    %667 = vector.broadcast %614 : vector<1x1xf32> to vector<1x32xf32>
    %668 = arith.addf %12, %667 : vector<1x32xf32>
    %cst_170 = arith.constant 2.000000e+00 : f32
    %669 = vector.broadcast %cst_170 : f32 to vector<1x32xf32>
    %670 = arith.mulf %669, %618 : vector<1x32xf32>
    %671 = arith.subf %668, %670 : vector<1x32xf32>
    %cst_171 = arith.constant 0.000000e+00 : f32
    %672 = vector.broadcast %cst_171 : f32 to vector<1x32xf32>
    %673 = arith.maximumf %671, %672 : vector<1x32xf32>
    %674 = math.sqrt %673 : vector<1x32xf32>
    %cst_172 = arith.constant 9.99999996E-13 : f32
    %675 = vector.broadcast %cst_172 : f32 to vector<1x32xf32>
    %676 = arith.maximumf %674, %675 : vector<1x32xf32>
    %cst_173 = arith.constant 1.000000e+00 : f32
    %677 = vector.broadcast %cst_173 : f32 to vector<1x32xf32>
    %678 = arith.divf %677, %676 : vector<1x32xf32>
    %679 = vector.broadcast %642 : vector<32x1xf32> to vector<32x32xf32>
    %680 = arith.mulf %624, %679 : vector<32x32xf32>
    %681 = vector.broadcast %654 : vector<1x32xf32> to vector<32x32xf32>
    %682 = arith.mulf %680, %681 : vector<32x32xf32>
    %683 = vector.broadcast %666 : vector<32x1xf32> to vector<32x32xf32>
    %684 = arith.mulf %630, %683 : vector<32x32xf32>
    %685 = vector.broadcast %678 : vector<1x32xf32> to vector<32x32xf32>
    %686 = arith.mulf %684, %685 : vector<32x32xf32>
    %687 = arith.subf %682, %686 : vector<32x32xf32>
    %688 = math.absf %687 : vector<32x32xf32>
    %cst_174 = arith.constant 1.000000e+00 : f32
    %689 = vector.broadcast %cst_174 : f32 to vector<32x32xf32>
    %690 = arith.cmpf olt, %688, %689 : vector<32x32xf32>
    %cst_175 = arith.constant 5.000000e-01 : f32
    %691 = vector.broadcast %cst_175 : f32 to vector<32x32xf32>
    %692 = arith.mulf %691, %687 : vector<32x32xf32>
    %693 = arith.mulf %692, %687 : vector<32x32xf32>
    %cst_176 = arith.constant 5.000000e-01 : f32
    %694 = vector.broadcast %cst_176 : f32 to vector<32x32xf32>
    %695 = arith.subf %688, %694 : vector<32x32xf32>
    %696 = arith.select %690, %693, %695 : vector<32x32xi1>, vector<32x32xf32>
    %697 = vector.broadcast %610 : i32 to vector<32x1xi32>
    %698 = arith.cmpi ne, %25, %697 : vector<32x1xi32>
    %699 = vector.broadcast %610 : i32 to vector<1x32xi32>
    %700 = arith.cmpi ne, %26, %699 : vector<1x32xi32>
    %701 = vector.broadcast %698 : vector<32x1xi1> to vector<32x32xi1>
    %702 = vector.broadcast %700 : vector<1x32xi1> to vector<32x32xi1>
    %703 = arith.andi %701, %702 : vector<32x32xi1>
    %cst_177 = arith.constant 0.000000e+00 : f32
    %704 = vector.broadcast %cst_177 : f32 to vector<32x32xf32>
    %705 = arith.select %703, %696, %704 : vector<32x32xi1>, vector<32x32xf32>
    %706 = arith.addf %609, %705 : vector<32x32xf32>
    %c7_i32 = arith.constant 7 : i32
    %707 = arith.addi %6, %c7_i32 : i32
    %708 = arith.index_cast %707 : i32 to index
    %c0_178 = arith.constant 0 : index
    %709 = vector.load %arg7[%708, %c0_178] : memref<32x1xf32, #tpu.memory_space<vmem>>, vector<1x1xf32>
    %710 = arith.index_cast %707 : i32 to index
    %c0_179 = arith.constant 0 : index
    %711 = vector.load %arg9[%710, %c0_179] : memref<32x1xf32, #tpu.memory_space<vmem>>, vector<1x1xf32>
    %712 = vector.extract_strided_slice %23 {offsets = [0, 7], sizes = [32, 1], strides = [1, 1]} : vector<32x8xf32> to vector<32x1xf32>
    %713 = vector.extract_strided_slice %14 {offsets = [7, 0], sizes = [1, 32], strides = [1, 1]} : vector<8x32xf32> to vector<1x32xf32>
    %714 = vector.extract_strided_slice %24 {offsets = [0, 7], sizes = [32, 1], strides = [1, 1]} : vector<32x8xf32> to vector<32x1xf32>
    %715 = vector.extract_strided_slice %16 {offsets = [7, 0], sizes = [1, 32], strides = [1, 1]} : vector<8x32xf32> to vector<1x32xf32>
    %716 = vector.broadcast %712 : vector<32x1xf32> to vector<32x32xf32>
    %717 = arith.subf %7, %716 : vector<32x32xf32>
    %718 = vector.broadcast %713 : vector<1x32xf32> to vector<32x32xf32>
    %719 = arith.subf %717, %718 : vector<32x32xf32>
    %720 = vector.broadcast %709 : vector<1x1xf32> to vector<32x32xf32>
    %721 = arith.addf %719, %720 : vector<32x32xf32>
    %722 = vector.broadcast %714 : vector<32x1xf32> to vector<32x32xf32>
    %723 = arith.subf %8, %722 : vector<32x32xf32>
    %724 = vector.broadcast %715 : vector<1x32xf32> to vector<32x32xf32>
    %725 = arith.subf %723, %724 : vector<32x32xf32>
    %726 = vector.broadcast %711 : vector<1x1xf32> to vector<32x32xf32>
    %727 = arith.addf %725, %726 : vector<32x32xf32>
    %728 = vector.broadcast %709 : vector<1x1xf32> to vector<32x1xf32>
    %729 = arith.addf %9, %728 : vector<32x1xf32>
    %cst_180 = arith.constant 2.000000e+00 : f32
    %730 = vector.broadcast %cst_180 : f32 to vector<32x1xf32>
    %731 = arith.mulf %730, %712 : vector<32x1xf32>
    %732 = arith.subf %729, %731 : vector<32x1xf32>
    %cst_181 = arith.constant 0.000000e+00 : f32
    %733 = vector.broadcast %cst_181 : f32 to vector<32x1xf32>
    %734 = arith.maximumf %732, %733 : vector<32x1xf32>
    %735 = math.sqrt %734 : vector<32x1xf32>
    %cst_182 = arith.constant 9.99999996E-13 : f32
    %736 = vector.broadcast %cst_182 : f32 to vector<32x1xf32>
    %737 = arith.maximumf %735, %736 : vector<32x1xf32>
    %cst_183 = arith.constant 1.000000e+00 : f32
    %738 = vector.broadcast %cst_183 : f32 to vector<32x1xf32>
    %739 = arith.divf %738, %737 : vector<32x1xf32>
    %740 = vector.broadcast %709 : vector<1x1xf32> to vector<1x32xf32>
    %741 = arith.addf %10, %740 : vector<1x32xf32>
    %cst_184 = arith.constant 2.000000e+00 : f32
    %742 = vector.broadcast %cst_184 : f32 to vector<1x32xf32>
    %743 = arith.mulf %742, %713 : vector<1x32xf32>
    %744 = arith.subf %741, %743 : vector<1x32xf32>
    %cst_185 = arith.constant 0.000000e+00 : f32
    %745 = vector.broadcast %cst_185 : f32 to vector<1x32xf32>
    %746 = arith.maximumf %744, %745 : vector<1x32xf32>
    %747 = math.sqrt %746 : vector<1x32xf32>
    %cst_186 = arith.constant 9.99999996E-13 : f32
    %748 = vector.broadcast %cst_186 : f32 to vector<1x32xf32>
    %749 = arith.maximumf %747, %748 : vector<1x32xf32>
    %cst_187 = arith.constant 1.000000e+00 : f32
    %750 = vector.broadcast %cst_187 : f32 to vector<1x32xf32>
    %751 = arith.divf %750, %749 : vector<1x32xf32>
    %752 = vector.broadcast %711 : vector<1x1xf32> to vector<32x1xf32>
    %753 = arith.addf %11, %752 : vector<32x1xf32>
    %cst_188 = arith.constant 2.000000e+00 : f32
    %754 = vector.broadcast %cst_188 : f32 to vector<32x1xf32>
    %755 = arith.mulf %754, %714 : vector<32x1xf32>
    %756 = arith.subf %753, %755 : vector<32x1xf32>
    %cst_189 = arith.constant 0.000000e+00 : f32
    %757 = vector.broadcast %cst_189 : f32 to vector<32x1xf32>
    %758 = arith.maximumf %756, %757 : vector<32x1xf32>
    %759 = math.sqrt %758 : vector<32x1xf32>
    %cst_190 = arith.constant 9.99999996E-13 : f32
    %760 = vector.broadcast %cst_190 : f32 to vector<32x1xf32>
    %761 = arith.maximumf %759, %760 : vector<32x1xf32>
    %cst_191 = arith.constant 1.000000e+00 : f32
    %762 = vector.broadcast %cst_191 : f32 to vector<32x1xf32>
    %763 = arith.divf %762, %761 : vector<32x1xf32>
    %764 = vector.broadcast %711 : vector<1x1xf32> to vector<1x32xf32>
    %765 = arith.addf %12, %764 : vector<1x32xf32>
    %cst_192 = arith.constant 2.000000e+00 : f32
    %766 = vector.broadcast %cst_192 : f32 to vector<1x32xf32>
    %767 = arith.mulf %766, %715 : vector<1x32xf32>
    %768 = arith.subf %765, %767 : vector<1x32xf32>
    %cst_193 = arith.constant 0.000000e+00 : f32
    %769 = vector.broadcast %cst_193 : f32 to vector<1x32xf32>
    %770 = arith.maximumf %768, %769 : vector<1x32xf32>
    %771 = math.sqrt %770 : vector<1x32xf32>
    %cst_194 = arith.constant 9.99999996E-13 : f32
    %772 = vector.broadcast %cst_194 : f32 to vector<1x32xf32>
    %773 = arith.maximumf %771, %772 : vector<1x32xf32>
    %cst_195 = arith.constant 1.000000e+00 : f32
    %774 = vector.broadcast %cst_195 : f32 to vector<1x32xf32>
    %775 = arith.divf %774, %773 : vector<1x32xf32>
    %776 = vector.broadcast %739 : vector<32x1xf32> to vector<32x32xf32>
    %777 = arith.mulf %721, %776 : vector<32x32xf32>
    %778 = vector.broadcast %751 : vector<1x32xf32> to vector<32x32xf32>
    %779 = arith.mulf %777, %778 : vector<32x32xf32>
    %780 = vector.broadcast %763 : vector<32x1xf32> to vector<32x32xf32>
    %781 = arith.mulf %727, %780 : vector<32x32xf32>
    %782 = vector.broadcast %775 : vector<1x32xf32> to vector<32x32xf32>
    %783 = arith.mulf %781, %782 : vector<32x32xf32>
    %784 = arith.subf %779, %783 : vector<32x32xf32>
    %785 = math.absf %784 : vector<32x32xf32>
    %cst_196 = arith.constant 1.000000e+00 : f32
    %786 = vector.broadcast %cst_196 : f32 to vector<32x32xf32>
    %787 = arith.cmpf olt, %785, %786 : vector<32x32xf32>
    %cst_197 = arith.constant 5.000000e-01 : f32
    %788 = vector.broadcast %cst_197 : f32 to vector<32x32xf32>
    %789 = arith.mulf %788, %784 : vector<32x32xf32>
    %790 = arith.mulf %789, %784 : vector<32x32xf32>
    %cst_198 = arith.constant 5.000000e-01 : f32
    %791 = vector.broadcast %cst_198 : f32 to vector<32x32xf32>
    %792 = arith.subf %785, %791 : vector<32x32xf32>
    %793 = arith.select %787, %790, %792 : vector<32x32xi1>, vector<32x32xf32>
    %794 = vector.broadcast %707 : i32 to vector<32x1xi32>
    %795 = arith.cmpi ne, %25, %794 : vector<32x1xi32>
    %796 = vector.broadcast %707 : i32 to vector<1x32xi32>
    %797 = arith.cmpi ne, %26, %796 : vector<1x32xi32>
    %798 = vector.broadcast %795 : vector<32x1xi1> to vector<32x32xi1>
    %799 = vector.broadcast %797 : vector<1x32xi1> to vector<32x32xi1>
    %800 = arith.andi %798, %799 : vector<32x32xi1>
    %cst_199 = arith.constant 0.000000e+00 : f32
    %801 = vector.broadcast %cst_199 : f32 to vector<32x32xf32>
    %802 = arith.select %800, %793, %801 : vector<32x32xi1>, vector<32x32xf32>
    %803 = arith.addf %706, %802 : vector<32x32xf32>
    %c0_200 = arith.constant 0 : index
    %c0_201 = arith.constant 0 : index
    %804 = vector.load %arg11[%c0_200, %c0_201] : memref<32x32xf32, #tpu.memory_space<vmem>>, vector<32x32xf32>
    %805 = arith.addf %804, %803 : vector<32x32xf32>
    %c0_202 = arith.constant 0 : index
    %c0_203 = arith.constant 0 : index
    %806 = vector.load %arg11[%c0_202, %c0_203] : memref<32x32xf32, #tpu.memory_space<vmem>>, vector<32x32xf32>
    tpu.vector_store %arg11[%c0_202, %c0_203], %805 {strides = array<i32>} : memref<32x32xf32, #tpu.memory_space<vmem>>, vector<32x32xf32>,
    %c1_i32_204 = arith.constant 1 : i32
    %807 = arith.cmpi eq, %arg1, %c1_i32_204 : i32
    %808 = arith.extui %807 : i1 to i32
    %c0_i32_205 = arith.constant 0 : i32
    %809 = arith.cmpi ne, %808, %c0_i32_205 : i32
    scf.if %809 {
      %c0_206 = arith.constant 0 : index
      %c0_207 = arith.constant 0 : index
      %810 = vector.load %arg11[%c0_206, %c0_207] : memref<32x32xf32, #tpu.memory_space<vmem>>, vector<32x32xf32>
      %811 = vector.shape_cast %810 : vector<32x32xf32> to vector<1x32x32xf32>
      %cst_208 = arith.constant dense<0.000000e+00> : vector<1xf32>
      %812 = vector.multi_reduction <add>, %811, %cst_208 [1, 2] : vector<1x32x32xf32> to vector<1xf32>
      %813 = vector.shape_cast %812 : vector<1xf32> to vector<1x1x1xf32>
      %814 = vector.extract %813[0, 0, 0] : f32 from vector<1x1x1xf32>
      %cst_209 = arith.constant 3.05175781E-5 : f32
      %815 = arith.mulf %814, %cst_209 : f32
      %cst_210 = arith.constant 0.000000e+00 : f32
      %816 = vector.broadcast %cst_210 : f32 to vector<1x8x128xf32>
      %817 = vector.broadcast %815 : f32 to vector<1x8x128xf32>
      %818 = arith.addf %816, %817 : vector<1x8x128xf32>
      %c0_211 = arith.constant 0 : index
      %c0_212 = arith.constant 0 : index
      %c0_213 = arith.constant 0 : index
      %819 = vector.load %arg4[%c0_211, %c0_212, %c0_213] : memref<1x8x128xf32, #tpu.memory_space<vmem>>, vector<1x8x128xf32>
      tpu.vector_store %arg4[%c0_211, %c0_212, %c0_213], %818 {strides = array<i32>} : memref<1x8x128xf32, #tpu.memory_space<vmem>>, vector<1x8x128xf32>,
    } else {
    }
    return
  }
  func.func @transform_0(%arg0: i32, %arg1: i32) -> (i32, i32) {
    %c0_i32 = arith.constant 0 : i32
    %c0_i32_0 = arith.constant 0 : i32
    %c0_i32_1 = arith.constant 0 : i32
    return %c0_i32, %c0_i32_0 : i32, i32
  }
  func.func @transform_1(%arg0: i32, %arg1: i32) -> (i32, i32) {
    %c0_i32 = arith.constant 0 : i32
    %c0_i32_0 = arith.constant 0 : i32
    %c0_i32_1 = arith.constant 0 : i32
    return %c0_i32, %c0_i32_0 : i32, i32
  }
  func.func @transform_2(%arg0: i32, %arg1: i32) -> (i32, i32, i32) {
    %c0_i32 = arith.constant 0 : i32
    %c0_i32_0 = arith.constant 0 : i32
    %c0_i32_1 = arith.constant 0 : i32
    return %arg0, %c0_i32, %c0_i32_0 : i32, i32, i32
  }
}

</mosaic_0001>

<bundles_post_ra>
// kernel: tpu_custom_call.1
= control target key start
LH: loop header
LB: loop body
LE: loop exit
PB: predicated region body
PF: predicated region fallthrough
CT: control target
= control target key end

     0   :  { %7 = vsyncpa [#allocation10], 0  ;;  %s10373_s0 = inlined_call_operand.hbm [shape: f32[32,128], index: 0, kind: input, shape index: {}]   ;;  %s10374_s1 = inlined_call_operand.hbm [shape: f32[32,128], index: 1, kind: input, shape index: {}]   ;;  %s10375_s2 = inlined_call_operand.hbm [shape: f32[2,8,128], index: 2, kind: output, shape index: {}]  }
   0x1   :  { %8 = vsyncpa [#allocation13], 0 }
   0x2   :  { %9 = vsyncpa [#allocation11], 0 }
   0x3   :  { %11 = vsyncpa [#allocation11 + $0x1], 0  ;;  %s5908_s9 = smov 0   ;;  %s5910_s10 = smov 0  }
   0x4   :  { %s5912_s11 = smov 0   ;;  %s5914_s12 = smov 0  }
   0x5   :  { %s5916_s13 = smov 0   ;;  %s5918_s14 = smov 0  }
   0x6   :  { %s5920_s15 = smov 0   ;;  %s5922_s16 = smov 0  }
   0x7 LB: > { %s4988_s17 = sadd.s32 4294967295, %s5871_s16   ;;  %s4989_s18 = sadd.s32 4294967294, %s5871_s16   ;;  %s5871_s16 = sphi %s5922_s16, %s17_s16   ;;  %s5867_s15 = sphi %s5920_s15, %s10976_s15   ;;  %s5863_s14 = sphi %s5918_s14, %s10975_s14   ;;  %s5859_s13 = sphi %s5916_s13, %s10974_s13   ;;  %s5855_s12 = sphi %s5914_s12, %s10973_s12   ;;  %s5851_s11 = sphi %s5912_s11, %s10972_s11   ;;  %s5847_s10 = sphi %s5910_s10, %s10971_s10   ;;  %s5843_s9 = sphi %s5908_s9, %s10970_s9  }
   0x8   : > { %s26_s19 = sadd.s32 1, %s5863_s14  ;;  %s29_s20 = sadd.s32 1, %s5867_s15 }
   0x9   : > { %p27_p0 = scmp.ge.s32.totalorder %s26_s19, 2  ;;  %s78_s21 = sadd.s32 1, %s5851_s11 }
   0xa   : > { %p88_p1 = scmp.ne.s32.totalorder %s5851_s11, %s5847_s10  ;;  %p89_p2 = scmp.eq.s32.totalorder %s4988_s17, 3 }
   0xb   : > { %s10978_s19 = smov (%p27_p0, %s26_s19), 0  ;;  %s10980_s20 = smov (!%p27_p0, %s29_s20), %s5867_s15 }
   0xc   : > { %p5958_p3 = por %p89_p2, %p88_p1  ;;  %p94_p4 = scmp.ne.s32.totalorder %s5847_s10, %s5843_s9 }
   0xd   : > { %p31_p5 = scmp.ge.s32.totalorder %s10980_s20, 2  ;;  %p95_p6 = scmp.eq.s32.totalorder %s4989_s18, 3 }
   0xe   : > { %p4990_p7 = scmp.ge.s32.totalorder %s5871_s16, 1  ;;  %p102_p8 = scmp.lt.s32.totalorder %s5871_s16, 5 }
   0xf   : > { %s10982_s20 = smov (%p31_p5, %s10980_s20), 0  ;;  %p5968_p9 = por %p95_p6, %p94_p4 }
  0x10   : > { %p5972_p10 = pnand %p4990_p7, %p102_p8  ;;  %s75_s25 = ssub.s32 %s5867_s15, %s10982_s20 }
  0x11   : > { %p76_p11 = scmp.eq.s32.totalorder %s75_s25, 0  ;;  %p5980_p13 = scmp.eq.s32.totalorder %s4988_s17, 0 }
  0x12   : > { %p5137_p12 = pneg %p5972_p10  ;;  %s113_s29 = sshll.u32 %s10373_s0, 4  ;;  %s114_s29 = int_to_ptr.hbm [resolvable:$true] %s113_s29 }
  0x13   : > { %s5988_s30 = scalar_select %p76_p11, %s5851_s11, %s78_s21  }
  0x14   : > { %s5873_s3 = smov [#allocation9]   ;;  %p5138_p0 = pnand %p5980_p13, %p5137_p12 }
  0x15   : > { %s115_s4 = sshll.u32 %s5873_s3, 4  ;;  %s5874_s5 = smov 128   ;;  %s116_s4 = int_to_ptr.vmem [resolvable:$true] %s115_s4 }
  0x16   : > { %s5875_s6 = smov 8   ;;  %s127_s17 = sshll.u32 %s10374_s1, 4  ;;  %s128_s17 = int_to_ptr.hbm [resolvable:$true] %s127_s17 }
  0x17   : > { %5140 = dma.hbm_to_vmem [thread:$0]  (!%p5138_p0), %s114_s29, 512, %s116_s4, [#allocation10], %s5874_s5, %s5874_s5, %s5875_s6  }
  0x18   : > { %s5876_s18 = smov [#allocation12]   ;;  %145 = sbr.rel (%p5972_p10) target bundleno = 1913 (0x779), region = 28 }
  0x19   : > { %s129_s25 = sshll.u32 %s5876_s18, 4  ;;  %s130_s25 = int_to_ptr.vmem [resolvable:$true] %s129_s25 }
  0x1a   : > { %5143 = dma.hbm_to_vmem [thread:$0]  (!%p5138_p0), %s128_s17, 512, %s130_s25, [#allocation13], %s5874_s5, %s5874_s5, %s5875_s6  }
  0x1d   : > { %5830 = dma.done.wait (%p5980_p13), [#allocation10], 512  }
  0x1e   : > { %5832 = vsyncadd (%p5980_p13), [#allocation10], 4294966784 }
  0x1f   : > { %5834 = dma.done.wait (%p5980_p13), [#allocation13], 512  }
  0x20   : > { %5836 = vsyncadd (%p5980_p13), [#allocation13], 4294966784  ;;  %s165_s21 = sand.u32 1, %s5847_s10   ;;  %p4997_p1 = scmp.ne.s32.totalorder %s5855_s12, 0 }
  0x21   : > { %s6008_s27 = sshll.u32 %s165_s21, 3 }
  0x22   : > { %s167_s24 = scalar_lea.vmem [#allocation14], %s6008_s27  ;;  %171 = sbr.rel (%p4997_p1) target bundleno = 323 (0x143), region = 40 }
  0x27   : > { %v175_v0 = vld [vmem:[#allocation9 + $0x18] sm:$0xff]  ;;  %v174_v2 = vld [vmem:[#allocation9 + $0x10] sm:$0xff]  ;;  %v173_v4 = vld [vmem:[#allocation9 + $0x8] sm:$0xff]  ;;  %vm238_vm0 = vcmask 261120   ;;  %v5877_v8 = vmov 0.0   ;;  %v247_v9 = vlaneseq  ;;  %vm300_vm5 = vcmask 253952  }
  0x28   : > { %v179_v1 = vld [vmem:[#allocation12 + $0x18] sm:$0xff]  ;;  %192 = vmatpush.xpose.msra.mxu0 %v175_v0  ;;  %5083 = vmatpush.xpose.msra.mxu2 %v175_v0  ;;  %v178_v3 = vld [vmem:[#allocation12 + $0x10] sm:$0xff]  ;;  %v177_v5 = vld [vmem:[#allocation12 + $0x8] sm:$0xff]  ;;  %328 = vst.msk [vmem:[#allocation8] sm:$0xff] %vm238_vm0, %v5877_v8  ;;  %vm286_vm6 = vcmask 7168  }
  0x29   : > { %5087 = vmatpush.xpose.msra.mxu3 %v179_v1  ;;  %221 = vmatpush.xpose.msra.mxu1 %v179_v1  ;;  %v172_v6 = vld [vmem:[#allocation9] sm:$0xff]  ;;  %329 = vst.msk [vmem:[#allocation8 + $0x8] sm:$0xff] %vm238_vm0, %v5877_v8  ;;  %v248_v10 = vshrl.u32 %v247_v9, 7  ;;  %v253_v11 = vand.u32 127, %v247_v9 }
  0x2a   : > { %v176_v7 = vld [vmem:[#allocation12] sm:$0xff]  ;;  %330 = vst.msk [vmem:[#allocation8 + $0x10] sm:$0xff] %vm238_vm0, %v5877_v8 }
  0x2b   : > { %331 = vst.msk [vmem:[#allocation8 + $0x18] sm:$0xff] %vm238_vm0, %v5877_v8  ;;  %vm254_vm1 = vcmp.eq.s32.totalorder %v248_v10, %v253_v11  ;;  %v250_v12 = vadd.s32 16, %v248_v10  ;;  %v249_v14 = vadd.s32 8, %v248_v10  ;;  %v251_v22 = vadd.s32 24, %v248_v10 }
  0x2c   : > { %193 = vmatpush.xpose.msra.mxu0 %v174_v2  ;;  %5084 = vmatpush.xpose.msra.mxu2 %v174_v2  ;;  %v4998_v13 = vsel %vm254_vm1, 1.0, %v5877_v8 }
  0x2d   : > { %5088 = vmatpush.xpose.msra.mxu3 %v178_v3  ;;  %222 = vmatpush.xpose.msra.mxu1 %v178_v3  ;;  %vm256_vm2 = vcmp.eq.s32.totalorder %v250_v12, %v253_v11  ;;  %vm255_vm3 = vcmp.eq.s32.totalorder %v249_v14, %v253_v11  ;;  %vm257_vm4 = vcmp.eq.s32.totalorder %v251_v22, %v253_v11 }
  0x2e   : > { %v5000_v20 = vsel %vm256_vm2, 1.0, %v5877_v8  ;;  %v4999_v24 = vsel %vm255_vm3, 1.0, %v5877_v8  ;;  %v5001_v35 = vsel %vm257_vm4, 1.0, %v5877_v8 }
  0x30   : > { %194 = vmatpush.xpose.msra.mxu0 %v173_v4  ;;  %5085 = vmatpush.xpose.msra.mxu2 %v173_v4 }
  0x31   : > { %5089 = vmatpush.xpose.msra.mxu3 %v177_v5  ;;  %223 = vmatpush.xpose.msra.mxu1 %v177_v5 }
  0x34   : > { %195 = vmatpush.xpose.msra.mxu0 %v172_v6  ;;  %5086 = vmatpush.xpose.msra.mxu2 %v172_v6 }
  0x35   : > { %5090 = vmatpush.xpose.msra.mxu3 %v176_v7  ;;  %224 = vmatpush.xpose.msra.mxu1 %v176_v7 }
  0x37   : > { %196 = vmatmul.f32.vlgmr.msra.gmra.mxu0 %v172_v6  ;;  %202 = vmatmul.f32.vlgmr.msra.gmra.mxu2 %v174_v2 }
  0x38   : > { %231 = vmatmul.f32.vlgmr.msra.gmra.mxu3 %v178_v3  ;;  %225 = vmatmul.f32.vlgmr.msra.gmra.mxu1 %v176_v7 }
  0x3f   : > { %199 = vmatmul.f32.gmra.mxu0 %v173_v4  ;;  %205 = vmatmul.f32.gmra.mxu2 %v175_v0 }
  0x40   : > { %234 = vmatmul.f32.gmra.mxu3 %v179_v1  ;;  %228 = vmatmul.f32.gmra.mxu1 %v177_v5 }
  0xb4   : > { %v197_v15 = vpop.f32.mrf.mxu0 }
  0xb5   : > { %239 = vst.msk [vmem:[#allocation2] sm:$0xff] %vm238_vm0, %v197_v15  ;;  %v266_v16 = vmul.f32 %v4998_v13, %v197_v15  ;;  %v226_v17 = vpop.f32.mrf.mxu1 }
  0xb6   : > { %243 = vst.msk [vmem:[#allocation3] sm:$0xff] %vm238_vm0, %v226_v17  ;;  %v270_v18 = vmul.f32 %v4998_v13, %v226_v17 }
  0xb7   : > { %v274_v19 = vsel %vm238_vm0, %v266_v16, 0.0 }
  0xb8   : > { %275 = vadd.xlane.f32.xlu0 %v274_v19  ;;  %v302_v21 = vsel %vm238_vm0, %v270_v18, 0.0 }
  0xb9   : > { %303 = vadd.xlane.f32.xlu2 %v302_v21 }
  0xba   : > { %v203_v23 = vpop.f32.mrf.mxu2 }
  0xbb   : > { %241 = vst.msk [vmem:[#allocation2 + $0x10] sm:$0xff] %vm238_vm0, %v203_v23  ;;  %v268_v25 = vmul.f32 %v5000_v20, %v203_v23  ;;  %v232_v26 = vpop.f32.mrf.mxu3 }
  0xbc   : > { %245 = vst.msk [vmem:[#allocation3 + $0x10] sm:$0xff] %vm238_vm0, %v232_v26  ;;  %v272_v27 = vmul.f32 %v5000_v20, %v232_v26  ;;  %v200_v28 = vpop.f32.mrf.mxu0 }
  0xbd   : > { %240 = vst.msk [vmem:[#allocation2 + $0x8] sm:$0xff] %vm238_vm0, %v200_v28  ;;  %v267_v29 = vmul.f32 %v4999_v24, %v200_v28  ;;  %v229_v30 = vpop.f32.mrf.mxu1  ;;  %v280_v31 = vsel %vm238_vm0, %v268_v25, 0.0 }
  0xbe   : > { %244 = vst.msk [vmem:[#allocation3 + $0x8] sm:$0xff] %vm238_vm0, %v229_v30  ;;  %v271_v32 = vmul.f32 %v4999_v24, %v229_v30  ;;  %281 = vadd.xlane.f32.xlu1 %v280_v31  ;;  %v308_v36 = vsel %vm238_vm0, %v272_v27, 0.0 }
  0xbf   : > { %v277_v33 = vsel %vm238_vm0, %v267_v29, 0.0 }
  0xc0   : > { %278 = vadd.xlane.f32.xlu0 %v277_v33  ;;  %v291_v34 = vadd.f32 %v277_v33, %v274_v19  ;;  %v305_v37 = vsel %vm238_vm0, %v271_v32, 0.0 }
  0xc1   : > { %306 = vadd.xlane.f32.xlu2 %v305_v37  ;;  %v318_v38 = vadd.f32 %v305_v37, %v302_v21 }
  0xc2   : > { %v206_v39 = vpop.f32.mrf.mxu2  ;;  %v292_v44 = vadd.f32 %v291_v34, %v280_v31 }
  0xc3   : > { %242 = vst.msk [vmem:[#allocation2 + $0x18] sm:$0xff] %vm238_vm0, %v206_v39  ;;  %v269_v40 = vmul.f32 %v5001_v35, %v206_v39  ;;  %v235_v41 = vpop.f32.mrf.mxu3  ;;  %v319_v42 = vadd.f32 %v318_v38, %v308_v36 }
  0xc4   : > { %246 = vst.msk [vmem:[#allocation3 + $0x18] sm:$0xff] %vm238_vm0, %v235_v41  ;;  %v273_v43 = vmul.f32 %v5001_v35, %v235_v41 }
  0xc5   : > { %v283_v45 = vsel %vm238_vm0, %v269_v40, 0.0 }
  0xc6   : > { %284 = vadd.xlane.f32.xlu1 %v283_v45  ;;  %v293_v46 = vadd.f32 %v292_v44, %v283_v45  ;;  %v311_v47 = vsel %vm238_vm0, %v273_v43, 0.0 }
  0xc7   : > { %v320_v48 = vadd.f32 %v319_v42, %v311_v47 }
  0xc8   : > { %v294_v49 = vrot.slane %v293_v46, 4  ;;  %309 = vadd.xlane.f32.xlu0 %v308_v36 }
  0xc9   : > { %v321_v50 = vrot.slane %v320_v48, 4 }
  0xca   : > { %v295_v51 = vadd.f32 %v294_v49, %v293_v46 }
  0xcb   : > { %v322_v52 = vadd.f32 %v321_v50, %v320_v48 }
  0xcc   : > { %v296_v53 = vrot.slane %v295_v51, 2 }
  0xcd   : > { %v323_v54 = vrot.slane %v322_v52, 2 }
  0xce   : > { %v297_v55 = vadd.f32 %v296_v53, %v295_v51  ;;  %312 = vadd.xlane.f32.xlu1 %v311_v47 }
  0xcf   : > { %v324_v56 = vadd.f32 %v323_v54, %v322_v52 }
  0xd0   : > { %v298_v57 = vrot.slane %v297_v55, 1 }
  0xd1   : > { %v325_v58 = vrot.slane %v324_v56, 1 }
  0xd2   : > { %v299_v59 = vadd.f32 %v298_v57, %v297_v55 }
  0xd3   : > { %v326_v60 = vadd.f32 %v325_v58, %v324_v56 }
  0xd4   : > { %301 = vst.msk [vmem:[#allocation5] sm:$0x1] %vm300_vm5, %v299_v59 }
  0xd5   : > { %327 = vst.msk [vmem:[#allocation7] sm:$0x1] %vm300_vm5, %v326_v60 }
 0x12b   : > { %v276_v61 = vpop.xlane.xlu0 %275 }
 0x12c   : > { %287 = vst.msk [vmem:[#allocation4] sm:$0xff] %vm286_vm6, %v276_v61  ;;  %v304_v62 = vpop.xlane.xlu2 %303 }
 0x12d   : > { %314 = vst.msk [vmem:[#allocation6] sm:$0xff] %vm286_vm6, %v304_v62 }
 0x131   : > { %v282_v63 = vpop.xlane.xlu1 %281 }
 0x132   : > { %289 = vst.msk [vmem:[#allocation4 + $0x10] sm:$0xff] %vm286_vm6, %v282_v63 }
 0x133   : > { %v279_v0 = vpop.xlane.xlu0 %278 }
 0x134   : > { %288 = vst.msk [vmem:[#allocation4 + $0x8] sm:$0xff] %vm286_vm6, %v279_v0  ;;  %v307_v1 = vpop.xlane.xlu2 %306 }
 0x135   : > { %315 = vst.msk [vmem:[#allocation6 + $0x8] sm:$0xff] %vm286_vm6, %v307_v1 }
 0x139   : > { %v285_v2 = vpop.xlane.xlu1 %284 }
 0x13a   : > { %290 = vst.msk [vmem:[#allocation4 + $0x18] sm:$0xff] %vm286_vm6, %v285_v2 }
 0x13b   : > { %v310_v3 = vpop.xlane.xlu0 %309 }
 0x13c   : > { %316 = vst.msk [vmem:[#allocation6 + $0x10] sm:$0xff] %vm286_vm6, %v310_v3 }
 0x141   : > { %v313_v4 = vpop.xlane.xlu1 %312 }
 0x142   : > { %317 = vst.msk [vmem:[#allocation6 + $0x18] sm:$0xff] %vm286_vm6, %v313_v4 }
 0x143 PF: > { %s5002_s26 = sshll.u32 %s5859_s13, 1  ;;  %v10378_v5 = vmov 0   ;;  %v5879_v6 = vmov 1   ;;  %v357_v9 = vld [vmem:[#allocation9] sm:$0xff]  ;;  %v359_v10 = vld [vmem:[#allocation9 + $0x10] sm:$0xff]  ;;  %v358_v17 = vld [vmem:[#allocation9 + $0x8] sm:$0xff] }
 0x144   : > { %s333_s28 = sadd.s32 %s5855_s12, %s5002_s26  ;;  %5238 = vset.pattern.permute.xlu1 %v10378_v5  ;;  %5237 = vset.pattern.permute.xlu2 %v10378_v5  ;;  %v361_v12 = vld [vmem:[#allocation12] sm:$0xff]  ;;  %v363_v13 = vld [vmem:[#allocation12 + $0x10] sm:$0xff]  ;;  %v360_v18 = vld [vmem:[#allocation9 + $0x18] sm:$0xff]  ;;  %v5880_v21 = vmov 2   ;;  %v10380_v27 = vmov 3   ;;  %s5882_s8 = smov 127  }
 0x145   : > { %s6044_s29 = sshll.u32 %s333_s28, 3  ;;  %5239 = vset.pattern.permute.xlu0 %v5879_v6  ;;  %v362_v19 = vld [vmem:[#allocation12 + $0x8] sm:$0xff]  ;;  %v364_v20 = vld [vmem:[#allocation12 + $0x18] sm:$0xff]  ;;  %s5883_s18 = smov 126  }
 0x146   : > { %s365_s3 = scalar_lea.vmem [#allocation9], %s6044_s29  ;;  %s367_s4 = scalar_lea.vmem [#allocation12], %s6044_s29  ;;  %v6156_v45 = vld [vmem:[#allocation4] sm:$0xff]  ;;  %v344_v56 = vld [vmem:[#allocation4 + $0x8] sm:$0xff]  ;;  %v350_v59 = vld [vmem:[#allocation6 + $0x10] sm:$0xff] }
 0x147   : > { %v366_v7 = vld [vmem:[%s365_s3] sm:$0xff]  ;;  %s6050_s5 = scalar_lea.vmem [#allocation4], %s6044_s29  ;;  %s6055_s6 = scalar_lea.vmem [#allocation6], %s6044_s29  ;;  %v6165_v48 = vld [vmem:[#allocation6] sm:$0xff]  ;;  %v6205_v62 = vld [vmem:[#allocation4 + $0x10] sm:$0xff] }
 0x148   : > { %v368_v8 = vld [vmem:[%s367_s4] sm:$0xff]  ;;  %384 = vmatpush.xpose.msra.mxu0 %v366_v7  ;;  %5091 = vmatpush.xpose.msra.mxu2 %v366_v7  ;;  %s6068_s7 = scalar_lea.vmem [#allocation2], %s6044_s29  ;;  %s6085_s17 = scalar_lea.vmem [#allocation3], %s6044_s29 }
 0x149   : > { %v5010_v11 = vld [vmem:[%s6050_s5 + $0x1] sm:$0x1]  ;;  %413 = vmatpush.xpose.msra.mxu1 %v368_v8  ;;  %5092 = vmatpush.xpose.msra.mxu3 %v368_v8  ;;  %v435_v14 = vld [vmem:[%s6050_s5] sm:$0x1]  ;;  %v5023_v15 = vld [vmem:[%s6055_s6 + $0x2] sm:$0x1] }
 0x14a   : > { %1173 = vperm.xlu1 %5238, %v5010_v11   ;;  %642 = vperm.xlu2 %5237, %v435_v14   ;;  %5093 = vpush %v435_v14  ;;  %v5020_v16 = vld [vmem:[%s6050_s5 + $0x2] sm:$0x1]  ;;  %v437_v32 = vld [vmem:[%s6055_s6] sm:$0x1]  ;;  %v5013_v33 = vld [vmem:[%s6055_s6 + $0x1] sm:$0x1] }
 0x14b   : > { %385 = vmatmul.f32.vlgmr.msra.gmra.mxu0 %v357_v9  ;;  %391 = vmatmul.f32.vlgmr.msra.gmra.mxu2 %v359_v10  ;;  %v354_v24 = vld [vmem:[%s6068_s7] sm:$0xff]  ;;  %5095 = vpush %v437_v32  ;;  %s5884_s25 = smov 125   ;;  %s5886_s26 = smov 124  }
 0x14c   : > { %414 = vmatmul.f32.vlgmr.msra.gmra.mxu1 %v361_v12  ;;  %420 = vmatmul.f32.vlgmr.msra.gmra.mxu3 %v363_v13  ;;  %v6071_v25 = vmul.f32 2.0, %v354_v24  ;;  %v6088_v28 = vld [vmem:[%s6085_s17] sm:$0xff]  ;;  %5097 = vpush %v5010_v11  ;;  %v10376_v24 = vmov 4   ;;  %p5078_p2 = scmp.ne.s32.totalorder %s5855_s12, 1 }
 0x14d   : > { %v6091_v29 = vmul.f32 2.0, %v6088_v28  ;;  %5099 = vpush %v5013_v33  ;;  %v5030_v38 = vld [vmem:[%s6050_s5 + $0x3] sm:$0x1]  ;;  %v6154_v44 = vld [vmem:[%s6050_s5] ss:$0 sm:$0xff] }
 0x14e   : > { %10487 = vst [vmem:[#allocation20_spill] sm:$0xff] %v6071_v25  ;;  %v5033_v41 = vld [vmem:[%s6055_s6 + $0x3] sm:$0x1]  ;;  %v6162_v47 = vld [vmem:[%s6055_s6] ss:$0 sm:$0xff]  ;;  %v513_v49 = vadd.f32 %v6154_v44, %v6156_v45  ;;  %v514_v60 = vadd.f32 %v6154_v44, %v344_v56  ;;  %v515_v3 = vadd.f32 %v6154_v44, %v6205_v62  ;;  %v349_v56 = vld [vmem:[#allocation6 + $0x8] sm:$0xff] }
 0x14f   : > { %1178 = vst [vmem:[#allocation1] sm:$0xff] %v6071_v25  ;;  %v678_v50 = vadd.f32 %v6162_v47, %v6165_v48  ;;  %v680_v61 = vadd.f32 %v6162_v47, %v350_v59 }
 0x150   : > { %10489 = vst [vmem:[#allocation22_spill] sm:$0xff] %v6091_v29 }
 0x151   : > { %5101 = vpush %v5020_v16 }
 0x152   : > { %1896 = vperm.xlu1 %5238, %v5023_v15   ;;  %1720 = vperm.xlu2 %5237, %v5020_v16   ;;  %5103 = vpush %v5023_v15 }
 0x153   : > { %388 = vmatmul.f32.gmra.mxu0 %v358_v17  ;;  %394 = vmatmul.f32.gmra.mxu2 %v360_v18  ;;  %5105 = vpush %v5030_v38 }
 0x154   : > { %417 = vmatmul.f32.gmra.mxu1 %v362_v19  ;;  %423 = vmatmul.f32.gmra.mxu3 %v364_v20  ;;  %5107 = vpush %v5033_v41  ;;  %v346_v19 = vld [vmem:[#allocation4 + $0x18] sm:$0xff] }
 0x155   : > { %v516_v41 = vadd.f32 %v6154_v44, %v346_v19 }
 0x156   : > { %v6093_v30 = vld [vmem:[#allocation1 + $0x1] ss:$9 sm:$0xff] }
 0x157   : > { %1359 = vst [vmem:[#allocation1] sm:$0xff] %v6091_v29 }
 0x15a   : > { %5241 = vset.pattern.permute.xlu1 %v5880_v21 }
 0x15e   : > { %v6110_v35 = vld [vmem:[#allocation1 + $0x1] ss:$9 sm:$0xff] }
 0x15f   : > { %10492 = vst [vmem:[#allocation25_spill] sm:$0xff] %v6110_v35 }
 0x160   : > { %1724 = vst [vmem:[#allocation1] sm:$0xff] %v6071_v25 }
 0x167   : > { %v6122_v37 = vld [vmem:[#allocation1 + $0x2] ss:$9 sm:$0xff] }
 0x168   : > { %1900 = vst [vmem:[#allocation1] sm:$0xff] %v6091_v29 }
 0x16f   : > { %v6133_v40 = vld [vmem:[#allocation1 + $0x2] ss:$9 sm:$0xff] }
 0x170   : > { %2265 = vst [vmem:[#allocation1] sm:$0xff] %v6071_v25 }
 0x17b   : > { %s6662_s28 = spop %5093 }
 0x17c   : > { %s6693_s3 = spop %5095 }
 0x17d   : > { %s5098_s4 = spop %5097 }
 0x1a4   : > { %v6191_v57 = vpop.permute.xlu2 %642 }
 0x1ac   : > { %v6216_v7 = vpop.permute.xlu2 %1720 }
 0x1bc   : > { %v1174_v59 = vpop.permute.xlu1 %1173 }
 0x1c8   : > { %v6060_v22 = vpop.f32.mrf.mxu0 }
 0x1c9   : > { %10485 = vst [vmem:[#allocation18_spill] sm:$0xff] %v6060_v22  ;;  %v6062_v23 = vpop.f32.mrf.mxu1  ;;  %1517 = vperm.xlu1 %5241, %v6060_v22   ;;  %966 = vperm.xlu0 %5239, %v6060_v22   ;;  %v6075_v26 = vmul.f32 2.0, %v6060_v22 }
 0x1ca   : > { %10486 = vst [vmem:[#allocation19_spill] sm:$0xff] %v6062_v23  ;;  %477 = vperm.xlu2 %5237, %v6062_v23   ;;  %v6097_v31 = vmul.f32 2.0, %v6062_v23 }
 0x1cb   : > { %10488 = vst [vmem:[#allocation21_spill] sm:$0xff] %v6075_v26  ;;  %v521_v52 = vsub.f32 %v513_v49, %v6075_v26 }
 0x1cc   : > { %10490 = vst [vmem:[#allocation23_spill] sm:$0xff] %v6097_v31  ;;  %v686_v53 = vsub.f32 %v678_v50, %v6097_v31  ;;  %v351_v50 = vld [vmem:[#allocation6 + $0x18] sm:$0xff] }
 0x1cd   : > { %v6186_v54 = vmax.f32 %v521_v52, 0.0  ;;  %v681_v44 = vadd.f32 %v6162_v47, %v351_v50 }
 0x1ce   : > { %v6108_v34 = vpop.f32.mrf.mxu2  ;;  %v6188_v55 = vmax.f32 %v686_v53, 0.0 }
 0x1cf   : > { %10491 = vst [vmem:[#allocation24_spill] sm:$0xff] %v6108_v34  ;;  %v6117_v36 = vpop.f32.mrf.mxu3  ;;  %v6143_v42 = vmul.f32 2.0, %v6108_v34  ;;  %5308 = vrsqrt.f32 %v6186_v54  ;;  %vm536_vm8 = vcmp.eq.f32.partialorder %v6186_v54, inf  ;;  %vm538_vm9 = vcmp.eq.f32.partialorder %v6186_v54, 0.0 }
 0x1d0   : > { %10493 = vst [vmem:[#allocation26_spill] sm:$0xff] %v6117_v36  ;;  %v6147_v43 = vpop.f32.mrf.mxu0  ;;  %v6159_v46 = vmul.f32 2.0, %v6117_v36  ;;  %5310 = vrsqrt.f32 %v6188_v55  ;;  %vm701_vm7 = vcmp.eq.f32.partialorder %v6188_v55, inf  ;;  %vm703_vm10 = vcmp.eq.f32.partialorder %v6188_v55, 0.0 }
 0x1d1   : > { %5244 = vset.pattern.permute.xlu1 %v10380_v27  ;;  %1040 = vrot.lane.b32.xlu0 %v6075_v26, %s5882_s8  ;;  %v6130_v39 = vpop.f32.mrf.mxu1  ;;  %10495 = vst [vmem:[#allocation28_spill] sm:$0xff] %v6143_v42  ;;  %v6194_v58 = vmul.f32 2.0, %v6147_v43  ;;  %v523_v13 = vsub.f32 %v515_v3, %v6143_v42 }
 0x1d2   : > { %5240 = vset.pattern.permute.xlu2 %v5879_v6  ;;  %2091 = vperm.xlu1 %5244, %v6062_v23   ;;  %10494 = vst [vmem:[#allocation27_spill] sm:$0xff] %v6130_v39  ;;  %v6177_v51 = vmul.f32 2.0, %v6130_v39  ;;  %v688_v1 = vsub.f32 %v680_v61, %v6159_v46 }
 0x1d3   : > { %999 = vperm.xlu2 %5240, %v6062_v23   ;;  %5248 = vset.pattern.permute.xlu0 %v5880_v21  ;;  %10496 = vst [vmem:[#allocation29_spill] sm:$0xff] %v6147_v43  ;;  %v522_v63 = vsub.f32 %v514_v60, %v6194_v58  ;;  %v6236_v17 = vmax.f32 %v523_v13, 0.0 }
 0x1d4   : > { %10497 = vst [vmem:[#allocation30_spill] sm:$0xff] %v6159_v46  ;;  %v6222_v10 = vmax.f32 %v688_v1, 0.0 }
 0x1d5   : > { %10498 = vst [vmem:[#allocation31_spill] sm:$0xff] %v6177_v51  ;;  %v5309_v0 = vpop.eup %5308  ;;  %v6220_v9 = vmax.f32 %v522_v63, 0.0  ;;  %v6261_v63 = vld [vmem:[#allocation5] sm:$0x1]  ;;  %vm560_vm15 = vcmp.eq.f32.partialorder %v6236_v17, inf  ;;  %vm562_vm0 = vcmp.eq.f32.partialorder %v6236_v17, 0.0 }
 0x1d6   : > { %10499 = vst [vmem:[#allocation32_spill] sm:$0xff] %v6194_v58  ;;  %v5311_v2 = vpop.eup %5310  ;;  %v530_v8 = vmul.f32 %v5309_v0, %v6186_v54  ;;  %v6227_v12 = vpop.f32.mrf.mxu2  ;;  %v1176_v19 = vadd.f32 %v1174_v59, %v6261_v63  ;;  %vm725_vm12 = vcmp.eq.f32.partialorder %v6222_v10, inf  ;;  %vm727_vm14 = vcmp.eq.f32.partialorder %v6222_v10, 0.0 }
 0x1d7   : > { %v6214_v4 = vpop.f32.mrf.mxu3  ;;  %v695_v11 = vmul.f32 %v5311_v2, %v6188_v55  ;;  %10501 = vst [vmem:[#allocation34_spill] sm:$0xff] %v6227_v12  ;;  %5312 = vrsqrt.f32 %v6220_v9  ;;  %v6234_v16 = vmul.f32 2.0, %v6227_v12  ;;  %vm548_vm11 = vcmp.eq.f32.partialorder %v6220_v9, inf }
 0x1d8   : > { %10500 = vst [vmem:[#allocation33_spill] sm:$0xff] %v6214_v4  ;;  %v531_v14 = vmul.f32 %v5309_v0, %v530_v8  ;;  %5314 = vrsqrt.f32 %v6222_v10  ;;  %v6256_v60 = vmul.f32 2.0, %v6214_v4  ;;  %vm550_vm13 = vcmp.eq.f32.partialorder %v6220_v9, 0.0 }
 0x1d9   : > { %1763 = vrot.lane.b32.xlu0 %v6097_v31, %s5883_s18  ;;  %v696_v15 = vmul.f32 %v5311_v2, %v695_v11  ;;  %10502 = vst [vmem:[#allocation35_spill] sm:$0xff] %v6234_v16  ;;  %5316 = vrsqrt.f32 %v6236_v17  ;;  %v524_v3 = vsub.f32 %v516_v41, %v6234_v16  ;;  %v679_v11 = vadd.f32 %v6162_v47, %v349_v56  ;;  %v1897_v56 = vpop.permute.xlu1 %1896 }
 0x1da   : > { %1587 = vrot.lane.b32.xlu1 %v6075_v26, %s5883_s18  ;;  %v532_v18 = vmul.f32 0.5, %v531_v14  ;;  %10503 = vst [vmem:[#allocation36_spill] sm:$0xff] %v6256_v60 }
 0x1db   : > { %5242 = vset.pattern.permute.xlu2 %v5880_v21  ;;  %5245 = vset.pattern.permute.xlu1 %v10378_v5  ;;  %v697_v32 = vmul.f32 0.5, %v696_v15  ;;  %v6278_v41 = vmax.f32 %v524_v3, 0.0 }
 0x1dc   : > { %1550 = vperm.xlu2 %5242, %v6062_v23   ;;  %v533_v49 = vsub.f32 1.5, %v532_v18 }
 0x1dd   : > { %v6243_v33 = vpop.eup %5312  ;;  %v698_v52 = vsub.f32 1.5, %v697_v32  ;;  %v689_v32 = vsub.f32 %v681_v44, %v6256_v60  ;;  %5318 = vrsqrt.f32 %v6278_v41  ;;  %vm572_vm5 = vcmp.eq.f32.partialorder %v6278_v41, inf }
 0x1de   : > { %v6246_v38 = vpop.eup %5314  ;;  %v542_v53 = vmul.f32 %v6243_v33, %v6220_v9  ;;  %v534_v1 = vmul.f32 %v5309_v0, %v533_v49 }
 0x1df   : > { %v719_v61 = vmul.f32 %v6246_v38, %v6222_v10  ;;  %v6266_v8 = vpop.eup %5316  ;;  %v699_v13 = vmul.f32 %v5311_v2, %v698_v52  ;;  %v687_v2 = vsub.f32 %v679_v11, %v6177_v51 }
 0x1e0   : > { %v543_v14 = vmul.f32 %v6243_v33, %v542_v53  ;;  %v535_v0 = vmul.f32 %v534_v1, %v6186_v54  ;;  %v554_v47 = vmul.f32 %v6266_v8, %v6236_v17  ;;  %v1182_v53 = vsub.f32 %v1176_v19, %v6093_v30 }
 0x1e1   : > { %1525 = vperm.xlu0 %5248, %v6108_v34   ;;  %v720_v18 = vmul.f32 %v6246_v38, %v719_v61  ;;  %v700_v49 = vmul.f32 %v699_v13, %v6188_v55  ;;  %v6289_v61 = vmax.f32 %v689_v32, 0.0  ;;  %v6293_v1 = vmax.f32 %v687_v2, 0.0 }
 0x1e2   : > { %450 = vperm.xlu1 %5245, %v6108_v34   ;;  %v544_v50 = vmul.f32 0.5, %v543_v14  ;;  %v537_v59 = vsel %vm536_vm8, %v6186_v54, %v535_v0  ;;  %v555_v44 = vmul.f32 %v6266_v8, %v554_v47  ;;  %v539_v30 = vand.u32 2147483648, %v6186_v54 }
 0x1e3   : > { %v721_v52 = vmul.f32 0.5, %v720_v18  ;;  %v702_v3 = vsel %vm701_vm7, %v6188_v55, %v700_v49  ;;  %v704_v13 = vand.u32 2147483648, %v6188_v55  ;;  %v6300_v18 = vmax.f32 %v1182_v53, 0.0  ;;  %v6312_v2 = vpop.eup %5318 }
 0x1e4   : > { %5243 = vset.pattern.permute.xlu2 %v10380_v27  ;;  %v545_v11 = vsub.f32 1.5, %v544_v50  ;;  %v540_v0 = vsel %vm538_vm9, %v539_v30, %v537_v59  ;;  %5320 = vrsqrt.f32 %v6289_v61  ;;  %v556_v47 = vmul.f32 0.5, %v555_v44 }
 0x1e5   : > { %2058 = vperm.xlu2 %5243, %v6060_v22   ;;  %v722_v14 = vsub.f32 1.5, %v721_v52  ;;  %10504 = vst [vmem:[#allocation37_spill] sm:$0xff] %v6300_v18  ;;  %v705_v32 = vsel %vm703_vm10, %v704_v13, %v702_v3  ;;  %5322 = vrsqrt.f32 %v6293_v1  ;;  %v6314_v49 = vmax.f32 %v540_v0, 1e-12  ;;  %v352_v3 = vld [vmem:[#allocation7] sm:$0x1] }
 0x1e6   : > { %v546_v54 = vmul.f32 %v6243_v33, %v545_v11  ;;  %5324 = vrsqrt.f32 %v6300_v18  ;;  %v6318_v50 = vmax.f32 %v705_v32, 1e-12  ;;  %v557_v59 = vsub.f32 1.5, %v556_v47 }
 0x1e7   : > { %v723_v55 = vmul.f32 %v6246_v38, %v722_v14  ;;  %v566_v33 = vmul.f32 %v6312_v2, %v6278_v41  ;;  %5326 = vrcp.f32 %v6314_v49  ;;  %v551_v11 = vand.u32 2147483648, %v6220_v9 }
 0x1e8   : > { %5328 = vrcp.f32 %v6318_v50  ;;  %v728_v14 = vand.u32 2147483648, %v6222_v10  ;;  %v1899_v32 = vadd.f32 %v1897_v56, %v352_v3  ;;  %vm586_vm1 = vweird.f32 %v6314_v49 }
 0x1e9   : > { %5251 = vset.pattern.permute.xlu0 %v10380_v27  ;;  %v724_v38 = vmul.f32 %v723_v55, %v6222_v10  ;;  %v567_v55 = vmul.f32 %v6312_v2, %v566_v33  ;;  %vm751_vm2 = vweird.f32 %v6318_v50  ;;  %vm574_vm8 = vcmp.eq.f32.partialorder %v6278_v41, 0.0 }
 0x1ea   : > { %5247 = vset.pattern.permute.xlu1 %v5879_v6  ;;  %2099 = vperm.xlu0 %5251, %v6117_v36   ;;  %v6328_v44 = vpop.eup %5320  ;;  %vm737_vm10 = vcmp.eq.f32.partialorder %v6289_v61, inf }
 0x1eb   : > { %1007 = vperm.xlu1 %5247, %v6117_v36   ;;  %v6333_v30 = vpop.eup %5322 }
 0x1ec   : > { %v6347_v0 = vpop.eup %5324 }
 0x1ed   : > { %1221 = vrot.lane.b32.xlu2 %v6097_v31, %s5882_s8  ;;  %v1185_v56 = vmul.f32 %v6347_v0, %v6300_v18 }
 0x1ee   : > { %5246 = vset.pattern.permute.xlu2 %v5879_v6 }
 0x1f2   : > { %5254 = vset.pattern.permute.xlu0 %v5879_v6 }
 0x1f3   : > { %5250 = vset.pattern.permute.xlu1 %v10380_v27  ;;  %1003 = vperm.xlu0 %5254, %v6130_v39  }
 0x1f4   : > { %2066 = vperm.xlu1 %5250, %v6108_v34  }
 0x1f5   : > { %2128 = vrot.lane.b32.xlu2 %v6075_v26, %s5884_s25 }
 0x1fb   : > { %1591 = vrot.lane.b32.xlu0 %v6143_v42, %s5883_s18 }
 0x1fc   : > { %5253 = vset.pattern.permute.xlu1 %v5879_v6  ;;  %5257 = vset.pattern.permute.xlu0 %v10380_v27 }
 0x1fd   : > { %974 = vperm.xlu2 %5246, %v6108_v34   ;;  %970 = vperm.xlu1 %5253, %v6147_v43  }
 0x203   : > { %2062 = vperm.xlu0 %5257, %v6147_v43  }
 0x205   : > { %5249 = vset.pattern.permute.xlu2 %v5880_v21  ;;  %1225 = vrot.lane.b32.xlu1 %v6159_v46, %s5882_s8 }
 0x206   : > { %1558 = vperm.xlu2 %5249, %v6117_v36   ;;  %5256 = vset.pattern.permute.xlu1 %v5880_v21 }
 0x20b   : > { %1223 = vrot.lane.b32.xlu0 %v6177_v51, %s5882_s8 }
 0x20c   : > { %5263 = vset.pattern.permute.xlu0 %v5880_v21 }
 0x20d   : > { %1554 = vperm.xlu1 %5256, %v6130_v39  }
 0x20e   : > { %5252 = vset.pattern.permute.xlu2 %v10378_v5 }
 0x20f   : > { %482 = vperm.xlu2 %5252, %v6130_v39  }
 0x213   : > { %2130 = vrot.lane.b32.xlu0 %v6194_v58, %s5884_s25 }
 0x215   : > { %1042 = vrot.lane.b32.xlu1 %v6194_v58, %s5882_s8 }
 0x216   : > { %5259 = vset.pattern.permute.xlu1 %v10378_v5  ;;  %v726_v5 = vsel %vm725_vm12, %v6222_v10, %v724_v38  ;;  %v1904_v38 = vsub.f32 %v1899_v32, %v6133_v40  ;;  %vm713_vm12 = vcmp.eq.f32.partialorder %v6293_v1, inf }
 0x217   : > { %1044 = vrot.lane.b32.xlu2 %v6143_v42, %s5882_s8  ;;  %v729_v35 = vsel %vm727_vm14, %v728_v14, %v726_v5  ;;  %v1186_v5 = vmul.f32 %v6347_v0, %v1185_v56  ;;  %v10509_v14 = vmov 3   ;;  %vm739_vm14 = vcmp.eq.f32.partialorder %v6289_v61, 0.0 }
 0x218   : > { %5255 = vset.pattern.permute.xlu2 %v5880_v21 }
 0x21b   : > { %1562 = vperm.xlu0 %5263, %v6214_v4  }
 0x21d   : > { %1765 = vrot.lane.b32.xlu1 %v6177_v51, %s5883_s18 }
 0x21f   : > { %1521 = vperm.xlu2 %5255, %v6147_v43  }
 0x223   : > { %1046 = vrot.lane.b32.xlu0 %v6234_v16, %s5882_s8 }
 0x224   : > { %v6240_v20 = vpop.permute.xlu2 %477  ;;  %5266 = vset.pattern.permute.xlu0 %v10376_v24  ;;  %v645_v24 = vadd.f32 %v6191_v57, %v6261_v63 }
 0x225   : > { %455 = vperm.xlu1 %5259, %v6227_v12  }
 0x227   : > { %1767 = vrot.lane.b32.xlu2 %v6159_v46, %s5883_s18 }
 0x228   : > { %5258 = vset.pattern.permute.xlu2 %v10380_v27 }
 0x22b   : > { %1769 = vrot.lane.b32.xlu0 %v6256_v60, %s5883_s18 }
 0x22d   : > { %v6270_v15 = vpop.permute.xlu2 %999  ;;  %492 = vperm.xlu1 %5259, %v6214_v4  }
 0x22f   : > { %2095 = vperm.xlu2 %5258, %v6130_v39  }
 0x233   : > { %2599 = vperm.xlu0 %5266, %v6060_v22  }
 0x235   : > { %5260 = vset.pattern.permute.xlu1 %v5879_v6 }
 0x236   : > { %v6302_v19 = vpop.permute.xlu2 %1550  ;;  %978 = vperm.xlu1 %5260, %v6227_v12  }
 0x237   : > { %10505 = vst [vmem:[#allocation38_spill] sm:$0xff] %v6302_v19  ;;  %1589 = vrot.lane.b32.xlu2 %v6194_v58, %s5883_s18 }
 0x238   : > { %5261 = vset.pattern.permute.xlu2 %v5879_v6  ;;  %v547_v6 = vmul.f32 %v546_v54, %v6220_v9  ;;  %v731_v54 = vmul.f32 %v6328_v44, %v6289_v61 }
 0x23a   : > { %v549_v47 = vsel %vm548_vm11, %v6220_v9, %v547_v6  ;;  %v732_v29 = vmul.f32 %v6328_v44, %v731_v54  ;;  %v647_v9 = vsub.f32 %v645_v24, %v6071_v25  ;;  %v6397_v24 = vmax.f32 %v729_v35, 1e-12 }
 0x23b   : > { %v6320_v52 = vpop.permute.xlu1 %1517  ;;  %v6322_v53 = vpop.permute.xlu0 %966  ;;  %2636 = vperm.xlu0 %5266, %v6130_v39   ;;  %v552_v6 = vsel %vm550_vm13, %v551_v11, %v549_v47  ;;  %v10388_v39 = vmov 5   ;;  %v1723_v11 = vadd.f32 %v6216_v7, %v6261_v63  ;;  %v563_v63 = vand.u32 2147483648, %v6236_v17 }
 0x23c   : > { %10506 = vst [vmem:[#allocation39_spill] sm:$0xff] %v6322_v53  ;;  %v6387_v32 = vmax.f32 %v552_v6, 1e-12  ;;  %v6400_v47 = vmax.f32 %v1904_v38, 0.0  ;;  %v733_v54 = vmul.f32 0.5, %v732_v29  ;;  %v6407_v56 = vmax.f32 %v647_v9, 0.0 }
 0x23d   : > { %v1728_v6 = vsub.f32 %v1723_v11, %v6122_v37  ;;  %v592_v38 = vand.u32 2147483648, %v6314_v49  ;;  %v1187_v25 = vmul.f32 0.5, %v1186_v5  ;;  %v740_v53 = vand.u32 2147483648, %v6289_v61 }
 0x23e   : > { %5262 = vset.pattern.permute.xlu1 %v5880_v21  ;;  %v558_v21 = vmul.f32 %v6266_v8, %v557_v59  ;;  %v707_v8 = vmul.f32 %v6333_v30, %v6293_v1  ;;  %v6360_v59 = vpop.eup %5326  ;;  %10510 = vst [vmem:[#allocation42_spill] sm:$0xff] %v6400_v47  ;;  %5330 = vrcp.f32 %v6387_v32  ;;  %v734_v9 = vsub.f32 1.5, %v733_v54 }
 0x23f   : > { %v6339_v13 = vpop.permute.xlu2 %2058  ;;  %1011 = vperm.xlu2 %5261, %v6214_v4   ;;  %1529 = vperm.xlu1 %5262, %v6227_v12   ;;  %v6371_v33 = vpop.eup %5328  ;;  %5332 = vrcp.f32 %v6397_v24  ;;  %vm587_vm3 = vweird.f32 %v6360_v59  ;;  %vm601_vm13 = vweird.f32 %v6387_v32 }
 0x240   : > { %10507 = vst [vmem:[#allocation40_spill] sm:$0xff] %v6339_v13  ;;  %v559_v57 = vmul.f32 %v558_v21, %v6236_v17  ;;  %v708_v40 = vmul.f32 %v6333_v30, %v707_v8  ;;  %v582_v21 = vmul.f32 %v6360_v59, %v6314_v49  ;;  %v747_v7 = vmul.f32 %v6371_v33, %v6318_v50  ;;  %vm6504_vm9 = vmor %vm586_vm1, %vm587_vm3 }
 0x241   : > { %5334 = vrsqrt.f32 %v6400_v47  ;;  %vm752_vm4 = vweird.f32 %v6371_v33 }
 0x242   : > { %v561_v8 = vsel %vm560_vm15, %v6236_v17, %v559_v57  ;;  %v709_v35 = vmul.f32 0.5, %v708_v40  ;;  %v757_v57 = vand.u32 2147483648, %v6318_v50  ;;  %5336 = vrsqrt.f32 %v6407_v56  ;;  %vm6518_vm11 = vmor %vm751_vm2, %vm752_vm4 }
 0x243   : > { %v6364_v3 = vpop.permute.xlu0 %1040  ;;  %2669 = vrot.lane.b32.xlu0 %v6075_v26, %s5886_s26  ;;  %v568_v26 = vmul.f32 0.5, %v567_v55  ;;  %v564_v29 = vsel %vm562_vm0, %v563_v63, %v561_v8  ;;  %v6427_v40 = vmax.f32 %v1728_v6, 0.0  ;;  %v1188_v8 = vsub.f32 1.5, %v1187_v25 }
 0x244   : > { %v6374_v27 = vpop.permute.xlu1 %2091  ;;  %5275 = vset.pattern.permute.xlu0 %v10388_v39  ;;  %v583_v39 = vsub.f32 1.0, %v582_v21  ;;  %v590_v21 = vand.u32 2147483647, %v6314_v49  ;;  %v710_v17 = vsub.f32 1.5, %v709_v35  ;;  %v6433_v63 = vmax.f32 %v564_v29, 1e-12 }
 0x245   : > { %10508 = vst [vmem:[#allocation41_spill] sm:$0xff] %v6374_v27  ;;  %v569_v55 = vsub.f32 1.5, %v568_v26  ;;  %v748_v26 = vsub.f32 1.0, %v747_v7  ;;  %v607_v7 = vand.u32 2147483648, %v6387_v32  ;;  %v6439_v6 = vor.u32 1.1754944e-38, %v592_v38 }
 0x246   : > { %v584_v5 = vmul.f32 %v6360_v59, %v583_v39  ;;  %v6444_v35 = vld [vmem:[%s6050_s5 + $0x1] ss:$0 sm:$0xff]  ;;  %v6450_v39 = vor.u32 1.1754944e-38, %v757_v57  ;;  %v735_v25 = vmul.f32 %v6328_v44, %v734_v9  ;;  %5338 = vrsqrt.f32 %v6427_v40 }
 0x247   : > { %v6391_v10 = vpop.permute.xlu2 %1221  ;;  %5264 = vset.pattern.permute.xlu2 %v10509_v14  ;;  %5265 = vset.pattern.permute.xlu1 %v10509_v14  ;;  %v570_v11 = vmul.f32 %v6312_v2, %v569_v55  ;;  %v749_v2 = vmul.f32 %v6371_v33, %v748_v26  ;;  %v755_v55 = vand.u32 2147483647, %v6318_v50  ;;  %v6441_v14 = vpop.eup %5330  ;;  %10511 = vst [vmem:[#allocation43_spill] sm:$0xff] %v6444_v35  ;;  %v10512_v29 = vmov 0  }
 0x248   : > { %2070 = vperm.xlu2 %5264, %v6227_v12   ;;  %2103 = vperm.xlu1 %5265, %v6214_v4   ;;  %v6455_v38 = vpop.eup %5332  ;;  %v711_v57 = vmul.f32 %v6333_v30, %v710_v17  ;;  %v585_v44 = vadd.f32 %v6360_v59, %v584_v5  ;;  %vm6466_vm6 = vcmp.eq.f32.partialorder %v590_v21, 8.507059e+37  ;;  %v6471_v12 = vor.u32 1.1754944e-38, %v607_v7 }
 0x249   : > { %v571_v26 = vmul.f32 %v570_v11, %v6278_v41  ;;  %v6463_v22 = vpop.eup %5334  ;;  %5340 = vrcp.f32 %v6433_v63  ;;  %v750_v21 = vadd.f32 %v6371_v33, %v749_v2  ;;  %vm6482_vm7 = vcmp.eq.f32.partialorder %v755_v55, 8.507059e+37 }
 0x24a   : > { %v6474_v23 = vpop.eup %5336  ;;  %v597_v5 = vmul.f32 %v6441_v14, %v6387_v32  ;;  %v575_v7 = vand.u32 2147483648, %v6278_v41  ;;  %v1032_v11 = vadd.f32 %v6444_v35, %v6156_v45  ;;  %v1907_v55 = vmul.f32 %v6463_v22, %v6400_v47 }
 0x24b   : > { %v6413_v58 = vpop.permute.xlu0 %1763  ;;  %2675 = vrot.lane.b32.xlu0 %v6234_v16, %s5886_s26  ;;  %v573_v2 = vsel %vm572_vm5, %v6278_v41, %v571_v26  ;;  %v712_v26 = vmul.f32 %v711_v57, %v6293_v1  ;;  %v589_v36 = vsel %vm6504_vm9, %v6360_v59, %v585_v44  ;;  %v787_v27 = vand.u32 2147483648, %v6397_v24 }
 0x24c   : > { %v6421_v37 = vpop.permute.xlu1 %1587  ;;  %v6527_v57 = vpop.eup %5338  ;;  %v754_v50 = vsel %vm6518_vm11, %v6371_v33, %v750_v21  ;;  %v598_v13 = vsub.f32 1.0, %v597_v5  ;;  %v576_v59 = vsel %vm574_vm8, %v575_v7, %v573_v2  ;;  %v1052_v19 = vsub.f32 %v1032_v11, %v6364_v3  ;;  %v6549_v33 = vld [vmem:[%s6050_s5 + $0x4] sm:$0x1] }
 0x24d   : > { %10523 = vst [vmem:[#allocation46_spill] sm:$0xff] %v6549_v33  ;;  %v716_v41 = vand.u32 2147483648, %v6293_v1  ;;  %v1908_v5 = vmul.f32 %v6463_v22, %v1907_v55  ;;  %v714_v11 = vsel %vm713_vm12, %v6293_v1, %v712_v26  ;;  %vm715_vm15 = vcmp.eq.f32.partialorder %v6293_v1, 0.0  ;;  %v6581_v26 = vld [vmem:[%s6055_s6 + $0x2] ss:$0 sm:$0xff] }
 0x24e   : > { %5109 = vpush %v6549_v33  ;;  %vm781_vm0 = vweird.f32 %v6397_v24  ;;  %v6569_v2 = vmax.f32 %v576_v59, 1e-12  ;;  %v6583_v49 = vmax.f32 %v1052_v19, 0.0  ;;  %v6592_v9 = vsel %vm6482_vm7, %v6450_v39, %v754_v50  ;;  %v6608_v39 = vld [vmem:[%s6055_s6 + $0x1] ss:$0 sm:$0xff] }
 0x24f   : > { %v6435_v54 = vpop.permute.xlu2 %2128  ;;  %v6538_v44 = vpop.eup %5340  ;;  %vm602_vm1 = vweird.f32 %v6441_v14  ;;  %v10525_v19 = vand.u32 2147483647, %v6387_v32  ;;  %vm782_vm3 = vweird.f32 %v6455_v38 }
 0x250   : > { %1227 = vrot.lane.b32.xlu2 %v6256_v60, %s5882_s8  ;;  %1593 = vrot.lane.b32.xlu1 %v6234_v16, %s5883_s18  ;;  %5342 = vrcp.f32 %v6569_v2  ;;  %vm6641_vm4 = vmor %vm601_vm13, %vm602_vm1  ;;  %vm617_vm9 = vweird.f32 %v6538_v44  ;;  %s5100_s8 = spop %5099  ;;  %s5888_s18 = smov 123   ;;  %vm631_vm13 = vweird.f32 %v6569_v2 }
 0x251   : > { %5268 = vset.pattern.permute.xlu2 %v10512_v29  ;;  %5267 = vset.pattern.permute.xlu1 %v10512_v29  ;;  %v1189_v29 = vmul.f32 %v6347_v0, %v1188_v8  ;;  %v736_v8 = vmul.f32 %v735_v25, %v6289_v61  ;;  %v777_v25 = vmul.f32 %v6455_v38, %v6397_v24  ;;  %vm6602_vm2 = vcmp.eq.f32.partialorder %v10525_v19, 8.507059e+37  ;;  %vm6675_vm7 = vmor %vm781_vm0, %vm782_vm3 }
 0x252   : > { %5344 = vrsqrt.f32 %v6583_v49  ;;  %vm658_vm3 = vcmp.eq.f32.partialorder %v6407_v56, 0.0 }
 0x253   : > { %2847 = vrot.lane.b32.xlu0 %v6177_v51, %s5886_s26  ;;  %v6479_v30 = vpop.permute.xlu0 %1525  ;;  %v738_v21 = vsel %vm737_vm10, %v6289_v61, %v736_v8  ;;  %v778_v3 = vsub.f32 1.0, %v777_v25  ;;  %v6563_v7 = vmul.f32 %v1189_v29, %v6300_v18  ;;  %v1731_v61 = vmul.f32 %v6527_v57, %v6427_v40 }
 0x254   : > { %10515 = vst [vmem:[#allocation44_spill] sm:$0xff] %v6479_v30  ;;  %v6491_v0 = vpop.permute.xlu1 %450  ;;  %v6541_v30 = vld [vmem:[%s6050_s5 + $0x2] ss:$0 sm:$0xff]  ;;  %v6576_v25 = vsel %vm6466_vm6, %v6439_v6, %v589_v36  ;;  %v741_v29 = vsel %vm739_vm14, %v740_v53, %v738_v21  ;;  %v717_v36 = vsel %vm715_vm15, %v716_v41, %v714_v11  ;;  %v1909_v53 = vmul.f32 0.5, %v1908_v5 }
 0x255   : > { %10518 = vst [vmem:[#allocation45_spill] sm:$0xff] %v6491_v0  ;;  %v650_v0 = vmul.f32 %v6474_v23, %v6407_v56  ;;  %v1583_v59 = vadd.f32 %v6541_v30, %v6156_v45  ;;  %v599_v21 = vmul.f32 %v6441_v14, %v598_v13  ;;  %v779_v17 = vmul.f32 %v6455_v38, %v778_v3 }
 0x256   : > { %10524 = vst [vmem:[#allocation47_spill] sm:$0xff] %v6563_v7  ;;  %v1732_v50 = vmul.f32 %v6527_v57, %v1731_v61  ;;  %v6611_v41 = vmax.f32 %v741_v29, 1e-12  ;;  %v785_v13 = vand.u32 2147483647, %v6397_v24  ;;  %v6615_v5 = vor.u32 1.1754944e-38, %v787_v27 }
 0x257   : > { %v6529_v43 = vpop.permute.xlu2 %974  ;;  %v651_v8 = vmul.f32 %v6474_v23, %v650_v0  ;;  %v612_v0 = vmul.f32 %v6538_v44, %v6433_v63  ;;  %v6617_v19 = vmax.f32 %v717_v36, 1e-12  ;;  %v1759_v3 = vadd.f32 %v6581_v26, %v6165_v48  ;;  %v6631_v27 = vld [vmem:[%s6050_s5 + $0x3] ss:$0 sm:$0xff] }
 0x258   : > { %2134 = vrot.lane.b32.xlu2 %v6234_v16, %s5884_s25  ;;  %2132 = vrot.lane.b32.xlu1 %v6143_v42, %s5884_s25  ;;  %10528 = vst [vmem:[#allocation48_spill] sm:$0xff] %v6631_v27  ;;  %v600_v61 = vadd.f32 %v6441_v14, %v599_v21  ;;  %v780_v29 = vadd.f32 %v6455_v38, %v779_v17  ;;  %v1733_v18 = vmul.f32 0.5, %v1732_v50  ;;  %5346 = vrcp.f32 %v6611_v41 }
 0x259   : > { %v652_v1 = vmul.f32 0.5, %v651_v8  ;;  %v613_v11 = vsub.f32 1.0, %v612_v0  ;;  %v1599_v8 = vsub.f32 %v1583_v59, %v6421_v37  ;;  %v620_v0 = vand.u32 2147483647, %v6433_v63 }
 0x25a   : > { %v622_v37 = vand.u32 2147483648, %v6433_v63  ;;  %v1910_v59 = vsub.f32 1.5, %v1909_v53  ;;  %v1213_v17 = vadd.f32 %v6608_v39, %v6165_v48  ;;  %5348 = vrcp.f32 %v6617_v19 }
 0x25b   : > { %3148 = vperm.xlu0 %5275, %v6108_v34   ;;  %v653_v36 = vsub.f32 1.5, %v652_v1  ;;  %v614_v53 = vmul.f32 %v6538_v44, %v613_v11  ;;  %v6652_v1 = vpop.eup %5342  ;;  %v1775_v32 = vsub.f32 %v1759_v3, %v6413_v58  ;;  %v6655_v50 = vmax.f32 %v1599_v8, 0.0 }
 0x25c   : > { %v6587_v55 = vpop.permute.xlu0 %2099  ;;  %vm6657_vm5 = vcmp.eq.f32.partialorder %v785_v13, 8.507059e+37  ;;  %vm616_vm6 = vweird.f32 %v6433_v63  ;;  %v2124_v48 = vadd.f32 %v6631_v27, %v6156_v45  ;;  %v604_v58 = vsel %vm6641_vm4, %v6441_v14, %v600_v61  ;;  %v6683_v45 = vpop.eup %5344  ;;  %v5043_v27 = vld [vmem:[%s6055_s6 + $0x4] sm:$0x1] }
 0x25d   : > { %v6596_v6 = vpop.permute.xlu1 %1007  ;;  %vm6679_vm8 = vcmp.eq.f32.partialorder %v620_v0, 8.507059e+37  ;;  %v623_v8 = vor.u32 1.1754944e-38, %v622_v37  ;;  %v1911_v21 = vmul.f32 %v6463_v22, %v1910_v59  ;;  %v1734_v14 = vsub.f32 1.5, %v1733_v18  ;;  %5111 = vpush %v5043_v27  ;;  %vm6740_vm11 = vmor %vm616_vm6, %vm617_vm9 }
 0x25e   : > { %v784_v24 = vsel %vm6675_vm7, %v6455_v38, %v780_v29  ;;  %v1233_v0 = vsub.f32 %v1213_v17, %v6391_v10  ;;  %v627_v37 = vmul.f32 %v6652_v1, %v6569_v2  ;;  %v615_v22 = vadd.f32 %v6538_v44, %v614_v53 }
 0x25f   : > { %v6703_v59 = vmax.f32 %v1775_v32, 0.0  ;;  %5350 = vrsqrt.f32 %v6655_v50  ;;  %v6713_v10 = vsel %vm6602_vm2, %v6471_v12, %v604_v58  ;;  %vm656_vm10 = vcmp.eq.f32.partialorder %v6407_v56, inf }
 0x260   : > { %v6623_v7 = vpop.permute.xlu2 %1558  ;;  %2306 = vrot.lane.b32.xlu2 %v6177_v51, %s5884_s25  ;;  %2304 = vrot.lane.b32.xlu1 %v6097_v31, %s5884_s25  ;;  %v654_v51 = vmul.f32 %v6474_v23, %v653_v36  ;;  %v6700_v23 = vpop.eup %5346  ;;  %v1061_v27 = vmul.f32 %v6683_v45, %v6583_v49  ;;  %v2140_v29 = vsub.f32 %v2124_v48, %v6435_v54  ;;  %v6734_v32 = vperm.slane %v6088_v28, 0 }
 0x261   : > { %v6715_v38 = vpop.eup %5348  ;;  %v6726_v17 = vsel %vm6657_vm5, %v6615_v5, %v784_v24  ;;  %v6729_v12 = vmul.f32 %v1911_v21, %v6400_v47  ;;  %v1735_v53 = vmul.f32 %v6527_v57, %v1734_v14  ;;  %v6744_v33 = vmax.f32 %v1233_v0, 0.0 }
 0x262   : > { %v655_v16 = vmul.f32 %v654_v51, %v6407_v56  ;;  %10541 = vst [vmem:[#allocation53_spill] sm:$0xff] %v6734_v32  ;;  %v792_v57 = vmul.f32 %v6700_v23, %v6611_v41  ;;  %v628_v5 = vsub.f32 1.0, %v627_v37  ;;  %v619_v21 = vsel %vm6740_vm11, %v6538_v44, %v615_v22 }
 0x263   : > { %3185 = vperm.xlu0 %5275, %v6214_v4   ;;  %10540 = vst [vmem:[#allocation52_spill] sm:$0xff] %v6729_v12  ;;  %v6754_v63 = vperm.slane %v6088_v28, 1  ;;  %v6757_v48 = vstv %s6662_s28  ;;  %5352 = vrsqrt.f32 %v6703_v59  ;;  %v10413_v58 = vmov 6  }
 0x264   : > { %10545 = vst [vmem:[#allocation55_spill] sm:$0xff] %v6757_v48  ;;  %v762_v13 = vmul.f32 %v6715_v38, %v6617_v19  ;;  %v6764_v51 = vstv %s6693_s3  ;;  %v6766_v14 = vstv %s5098_s4  ;;  %v1062_v24 = vmul.f32 %v6683_v45, %v1061_v27 }
 0x265   : > { %v6666_v11 = vpop.permute.xlu0 %1003  ;;  %10544 = vst [vmem:[#allocation54_spill] sm:$0xff] %v6754_v63  ;;  %v6769_v44 = vmax.f32 %v2140_v29, 0.0  ;;  %v6773_v37 = vpop.eup %5350  ;;  %v6776_v22 = vmul.f32 %v1735_v53, %v6427_v40  ;;  %v6778_v54 = vstv %s5100_s8  ;;  %v6783_v18 = vsel %vm6679_vm8, %v623_v8, %v619_v21 }
 0x266   : > { %10533 = vst [vmem:[#allocation49_spill] sm:$0xff] %v6666_v11  ;;  %v6687_v61 = vpop.permute.xlu1 %2066  ;;  %5354 = vrsqrt.f32 %v6744_v33  ;;  %v793_v29 = vsub.f32 1.0, %v792_v57  ;;  %vm766_vm12 = vweird.f32 %v6617_v19  ;;  %v6791_v53 = vperm.slane %v6088_v28, 2 }
 0x267   : > { %10538 = vst [vmem:[#allocation50_spill] sm:$0xff] %v6687_v61  ;;  %v763_v3 = vsub.f32 1.0, %v762_v13  ;;  %v770_v8 = vand.u32 2147483647, %v6617_v19  ;;  %v1608_v57 = vmul.f32 %v6773_v37, %v6655_v50  ;;  %5356 = vrsqrt.f32 %v6769_v44  ;;  %v6862_v61 = vld [vmem:[#allocation3] sm:$0xff] }
 0x268   : > { %2310 = vrot.lane.b32.xlu2 %v6256_v60, %s5884_s25  ;;  %2308 = vrot.lane.b32.xlu1 %v6159_v46, %s5884_s25  ;;  %10546 = vst [vmem:[#allocation56_spill] sm:$0xff] %v6764_v51  ;;  %s5102_s25 = spop %5101  ;;  %vm632_vm14 = vweird.f32 %v6652_v1  ;;  %v1063_v28 = vmul.f32 0.5, %v1062_v24  ;;  %v772_v13 = vand.u32 2147483648, %v6617_v19  ;;  %v794_v46 = vmul.f32 %v6700_v23, %v793_v29 }
 0x269   : > { %v6721_v36 = vpop.permute.xlu2 %482  ;;  %10547 = vst [vmem:[#allocation57_spill] sm:$0xff] %v6766_v14  ;;  %v629_v14 = vmul.f32 %v6652_v1, %v628_v5  ;;  %s5104_s28 = spop %5103  ;;  %v6803_v21 = vpop.eup %5352  ;;  %vm796_vm15 = vweird.f32 %v6611_v41  ;;  %vm797_vm0 = vweird.f32 %v6700_v23  ;;  %vm6819_vm1 = vmor %vm631_vm13, %vm632_vm14  ;;  %vm6824_vm2 = vcmp.eq.f32.partialorder %v770_v8, 8.507059e+37 }
 0x26a   : > { %10539 = vst [vmem:[#allocation51_spill] sm:$0xff] %v6721_v36  ;;  %v6809_v12 = vstv %s5104_s28  ;;  %v657_v29 = vsel %vm656_vm10, %v6407_v56, %v655_v16  ;;  %v1609_v48 = vmul.f32 %v6773_v37, %v1608_v57  ;;  %vm767_vm5 = vweird.f32 %v6715_v38  ;;  %v6851_v36 = vld [vmem:[%s6068_s7] sm:$0xff]  ;;  %s5106_s3 = spop %5105  ;;  %vm6875_vm6 = vmor %vm796_vm15, %vm797_vm0  ;;  %s960_s28 = sadd.s32 1, %s6044_s29 }
 0x26b   : > { %3214 = vrot.lane.b32.xlu0 %v6143_v42, %s5888_s18  ;;  %10548 = vst [vmem:[#allocation58_spill] sm:$0xff] %v6778_v54  ;;  %v630_v24 = vadd.f32 %v6652_v1, %v629_v14  ;;  %v6854_v57 = vperm.slane %v6851_v36, 2  ;;  %v6865_v11 = vperm.slane %v6851_v36, 1  ;;  %vm6893_vm7 = vmor %vm766_vm12, %vm767_vm5  ;;  %v6910_v19 = vstv %s5106_s3  ;;  %s5108_s4 = spop %5107 }
 0x26c   : > { %5279 = vset.pattern.permute.xlu0 %v10413_v58  ;;  %v637_v58 = vand.u32 2147483648, %v6569_v2  ;;  %10549 = vst [vmem:[#allocation59_spill] sm:$0xff] %v6783_v18  ;;  %v6832_v14 = vpop.eup %5354  ;;  %v1064_v18 = vsub.f32 1.5, %v1063_v28  ;;  %v795_v28 = vadd.f32 %v6700_v23, %v794_v46  ;;  %vm1737_vm9 = vcmp.eq.f32.partialorder %v6427_v40, inf }
 0x26d   : > { %v6771_v0 = vpop.permute.xlu0 %1591  ;;  %10552 = vst [vmem:[#allocation62_spill] sm:$0xff] %v6809_v12  ;;  %v6848_v42 = vpop.eup %5356  ;;  %v1242_v4 = vmul.f32 %v6832_v14, %v6744_v33  ;;  %vm1067_vm10 = vcmp.eq.f32.partialorder %v6583_v49, inf  ;;  %vm1069_vm11 = vcmp.eq.f32.partialorder %v6583_v49, 0.0  ;;  %vm1739_vm12 = vcmp.eq.f32.partialorder %v6427_v40, 0.0 }
 0x26e   : > { %v638_v54 = vor.u32 1.1754944e-38, %v637_v58  ;;  %v764_v58 = vmul.f32 %v6715_v38, %v763_v3  ;;  %v1034_v3 = vadd.f32 %v6444_v35, %v6205_v62  ;;  %10560 = vst [vmem:[#allocation64_spill] sm:$0xff] %v6851_v36  ;;  %vm1614_vm13 = vcmp.eq.f32.partialorder %v6655_v50, inf }
 0x26f   : > { %v6786_v27 = vpop.permute.xlu1 %970  ;;  %10561 = vst [vmem:[#allocation65_spill] sm:$0xff] %v6854_v57  ;;  %vm1248_vm14 = vcmp.eq.f32.partialorder %v6744_v33, inf  ;;  %vm1616_vm15 = vcmp.eq.f32.partialorder %v6655_v50, 0.0  ;;  %vm1250_vm0 = vcmp.eq.f32.partialorder %v6744_v33, 0.0 }
 0x270   : > { %10550 = vst [vmem:[#allocation60_spill] sm:$0xff] %v6786_v27  ;;  %875 = vperm.xlu2 %5268, %v6592_v9   ;;  %844 = vperm.xlu1 %5267, %v6576_v25   ;;  %v6805_v9 = vstv %s5102_s25  ;;  %v635_v25 = vand.u32 2147483647, %v6569_v2  ;;  %v1784_v2 = vmul.f32 %v6803_v21, %v6703_v59  ;;  %v802_v27 = vand.u32 2147483648, %v6611_v41  ;;  %s1511_s25 = sadd.s32 2, %s6044_s29 }
 0x271   : > { %v6800_v5 = vpop.permute.xlu2 %1044  ;;  %10551 = vst [vmem:[#allocation61_spill] sm:$0xff] %v6805_v9  ;;  %v765_v47 = vadd.f32 %v6715_v38, %v764_v58 }
 0x272   : > { %vm6843_vm4 = vcmp.eq.f32.partialorder %v635_v25, 8.507059e+37  ;;  %v634_v25 = vsel %vm6819_vm1, %v6652_v1, %v630_v24  ;;  %10563 = vst [vmem:[#allocation67_spill] sm:$0xff] %v6865_v11  ;;  %v10566_v1 = vand.u32 2147483648, %v6407_v56  ;;  %v1785_v24 = vmul.f32 %v6803_v21, %v1784_v2 }
 0x273   : > { %3386 = vrot.lane.b32.xlu0 %v6097_v31, %s5888_s18  ;;  %v800_v31 = vand.u32 2147483647, %v6611_v41  ;;  %v1065_v41 = vmul.f32 %v6683_v45, %v1064_v18  ;;  %v6898_v56 = vperm.slane %v6851_v36, 3  ;;  %v495_v45 = vsub.f32 %v6862_v61, %v6240_v20  ;;  %v6908_v18 = vld [vmem:[#allocation2] sm:$0xff]  ;;  %10571 = vst [vmem:[#allocation68_spill] sm:$0xff] %v6910_v19 }
 0x274   : > { %v799_v2 = vsel %vm6875_vm6, %v6700_v23, %v795_v28  ;;  %v1585_v20 = vadd.f32 %v6541_v30, %v6205_v62  ;;  %v1786_v16 = vmul.f32 0.5, %v1785_v24  ;;  %v5629_v28 = vld [vmem:[%s6085_s17] sm:$0xff]  ;;  %vm1790_vm1 = vcmp.eq.f32.partialorder %v6703_v59, inf }
 0x275   : > { %v6839_v8 = vpop.permute.xlu0 %2062  ;;  %vm6902_vm8 = vcmp.eq.f32.partialorder %v800_v31, 8.507059e+37  ;;  %v639_v31 = vsel %vm6843_vm4, %v638_v54, %v634_v25  ;;  %v1066_v54 = vmul.f32 %v1065_v41, %v6583_v49  ;;  %v6936_v25 = vperm.slane %v5629_v28, 3 }
 0x276   : > { %10557 = vst [vmem:[#allocation63_spill] sm:$0xff] %v6839_v8  ;;  %v773_v8 = vor.u32 1.1754944e-38, %v772_v13  ;;  %v660_v13 = vsel %vm658_vm3, %v10566_v1, %v657_v29  ;;  %v2149_v29 = vmul.f32 %v6848_v42, %v6769_v44  ;;  %v1601_v41 = vsub.f32 %v1585_v20, %v6771_v0 }
 0x277   : > { %v6856_v35 = vpop.permute.xlu1 %1225  ;;  %v6926_v1 = vmax.f32 %v660_v13, 1e-12  ;;  %10572 = vst [vmem:[#allocation69_spill] sm:$0xff] %v6936_v25  ;;  %v1014_v13 = vsub.f32 %v6862_v61, %v6270_v15  ;;  %v1068_v12 = vsel %vm1067_vm10, %v6583_v49, %v1066_v54  ;;  %v6966_v20 = vstv %s5108_s4  ;;  %s2593_s4 = sadd.s32 4, %s6044_s29 }
 0x278   : > { %10562 = vst [vmem:[#allocation66_spill] sm:$0xff] %v6856_v35  ;;  %849 = vperm.xlu2 %5268, %v6713_v10   ;;  %885 = vperm.xlu1 %5267, %v6726_v17   ;;  %v1054_v10 = vsub.f32 %v1034_v3, %v6800_v5  ;;  %v1610_v35 = vmul.f32 0.5, %v1609_v48  ;;  %v803_v48 = vor.u32 1.1754944e-38, %v802_v27  ;;  %v1243_v27 = vmul.f32 %v6832_v14, %v1242_v4 }
 0x279   : > { %v6886_v17 = vpop.permute.xlu2 %1521  ;;  %v769_v3 = vsel %vm6893_vm7, %v6715_v38, %v765_v47  ;;  %v1532_v4 = vsub.f32 %v6908_v18, %v6320_v52  ;;  %v2150_v62 = vmul.f32 %v6848_v42, %v2149_v29  ;;  %v500_v47 = vsub.f32 %v495_v45, %v6734_v32 }
 0x27a   : > { %v6928_v19 = vmax.f32 %v1054_v10, 0.0  ;;  %v1611_v23 = vsub.f32 1.5, %v1610_v35  ;;  %v804_v38 = vsel %vm6902_vm8, %v803_v48, %v799_v2  ;;  %v10573_v35 = vld [vmem:[#allocation38_spill] sm:$0xff]  ;;  %v6950_v52 = vsel %vm6824_vm2, %v773_v8, %v769_v3  ;;  %v10574_v48 = vld [vmem:[#allocation39_spill] sm:$0xff]  ;;  %v10577_v3 = vld [vmem:[#allocation29_spill] sm:$0xff] }
 0x27b   : > { %3392 = vrot.lane.b32.xlu0 %v6256_v60, %s5888_s18  ;;  %v1565_v10 = vsub.f32 %v6862_v61, %v10573_v35  ;;  %v1244_v58 = vmul.f32 0.5, %v1243_v27  ;;  %5358 = vrcp.f32 %v6926_v1  ;;  %v1787_v8 = vsub.f32 1.5, %v1786_v16  ;;  %10576 = vst [vmem:[#allocation38_spill] sm:$0xff] %v6966_v20 }
 0x27c   : > { %5360 = vrsqrt.f32 %v6928_v19  ;;  %v1612_v29 = vmul.f32 %v6773_v37, %v1611_v23  ;;  %v1537_v5 = vsub.f32 %v1532_v4, %v6854_v57  ;;  %v981_v0 = vsub.f32 %v6908_v18, %v10574_v48  ;;  %v10579_v23 = vld [vmem:[#allocation41_spill] sm:$0xff] }
 0x27d   : > { %v6930_v46 = vpop.permute.xlu0 %1223  ;;  %v1070_v45 = vand.u32 2147483648, %v6583_v49  ;;  %v2151_v2 = vmul.f32 0.5, %v2150_v62  ;;  %v6971_v37 = vadd.f32 %v6764_v51, %v500_v47  ;;  %v2106_v54 = vsub.f32 %v6862_v61, %v10579_v23  ;;  %v10610_v51 = vld [vmem:[#allocation33_spill] sm:$0xff] }
 0x27e   : > { %v6975_v16 = vmax.f32 %v1601_v41, 0.0  ;;  %v1245_v28 = vsub.f32 1.5, %v1244_v58  ;;  %v6978_v62 = vsub.f32 %v1014_v13, %v6754_v63  ;;  %v1613_v49 = vmul.f32 %v1612_v29, %v6655_v50  ;;  %v5050_v58 = vld [vmem:[%s6050_s5 + $0x5] sm:$0x1] }
 0x27f   : > { %v6946_v24 = vpop.permute.xlu1 %1554  ;;  %10578 = vst [vmem:[#allocation39_spill] sm:$0xff] %v6971_v37  ;;  %v1071_v4 = vsel %vm1069_vm11, %v1070_v45, %v1068_v12  ;;  %v1788_v47 = vmul.f32 %v6803_v21, %v1787_v8  ;;  %v6990_v61 = vsub.f32 %v1565_v10, %v6791_v53  ;;  %v6993_v41 = vsub.f32 %v981_v0, %v6865_v11  ;;  %s5110_s8 = spop %5109 }
 0x280   : > { %890 = vperm.xlu2 %5268, %v804_v38   ;;  %859 = vperm.xlu1 %5267, %v639_v31   ;;  %v10575_v31 = vld [vmem:[#allocation40_spill] sm:$0xff]  ;;  %v2152_v13 = vsub.f32 1.5, %v2151_v2  ;;  %v6997_v12 = vadd.f32 %v6805_v9, %v1537_v5  ;;  %5113 = vpush %v5050_v58  ;;  %v7006_v21 = vmax.f32 %v1071_v4, 1e-12  ;;  %v1738_v10 = vsel %vm1737_vm9, %v6427_v40, %v6776_v22  ;;  %v7021_v2 = vld [vmem:[#allocation2 + $0x10] sm:$0xff] }
 0x281   : > { %v6956_v15 = vpop.permute.xlu2 %1767  ;;  %v2073_v27 = vsub.f32 %v6908_v18, %v10575_v31  ;;  %10580 = vst [vmem:[#allocation40_spill] sm:$0xff] %v6978_v62  ;;  %v6981_v18 = vperm.slane %v6851_v36, 0  ;;  %v6987_v35 = vpop.eup %5358  ;;  %v7014_v8 = vsub.f32 %v2106_v54, %v6936_v25  ;;  %5362 = vrsqrt.f32 %v6975_v16  ;;  %v10590_v58 = vld [vmem:[#allocation26_spill] sm:$0xff]  ;;  %v10596_v62 = vld [vmem:[#allocation19_spill] sm:$0xff] }
 0x282   : > { %10582 = vst [vmem:[#allocation70_spill] sm:$0xff] %v6990_v61  ;;  %v6999_v48 = vpop.eup %5360  ;;  %v10587_v5 = vmov 4   ;;  %v1246_v0 = vmul.f32 %v6832_v14, %v1245_v28  ;;  %v1615_v22 = vsel %vm1614_vm13, %v6655_v50, %v1613_v49  ;;  %v663_v23 = vmul.f32 %v6987_v35, %v6926_v1  ;;  %v10597_v61 = vld [vmem:[#allocation34_spill] sm:$0xff] }
 0x283   : > { %3685 = vperm.xlu0 %5279, %v10577_v3   ;;  %10581 = vst [vmem:[#allocation41_spill] sm:$0xff] %v6981_v18  ;;  %v7002_v45 = vsub.f32 %v2073_v27, %v6898_v56  ;;  %v1789_v27 = vmul.f32 %v1788_v47, %v6703_v59  ;;  %v1085_v14 = vmul.f32 %v6999_v48, %v6928_v19  ;;  %v1617_v54 = vand.u32 2147483648, %v6655_v50 }
 0x284   : > { %10583 = vst [vmem:[#allocation71_spill] sm:$0xff] %v6993_v41  ;;  %v2153_v4 = vmul.f32 %v6848_v42, %v2152_v13  ;;  %v10589_v28 = vand.u32 2147483648, %v6427_v40  ;;  %5364 = vrcp.f32 %v7006_v21  ;;  %v1251_v47 = vand.u32 2147483648, %v6744_v33  ;;  %v5053_v13 = vld [vmem:[%s6055_s6 + $0x5] sm:$0x1] }
 0x285   : > { %v6983_v38 = vpop.permute.xlu0 %2130  ;;  %10584 = vst [vmem:[#allocation72_spill] sm:$0xff] %v6997_v12  ;;  %v1618_v20 = vsel %vm1616_vm15, %v1617_v54, %v1615_v22  ;;  %v1247_v42 = vmul.f32 %v1246_v0, %v6744_v33  ;;  %vm1792_vm2 = vcmp.eq.f32.partialorder %v6703_v59, 0.0  ;;  %v664_v50 = vsub.f32 1.0, %v663_v23 }
 0x286   : > { %10585 = vst [vmem:[#allocation73_spill] sm:$0xff] %v7002_v45  ;;  %v1741_v49 = vsel %vm1739_vm12, %v10589_v28, %v1738_v10  ;;  %v1791_v10 = vsel %vm1790_vm1, %v6703_v59, %v1789_v27  ;;  %v1086_v45 = vmul.f32 %v6999_v48, %v1085_v14  ;;  %v1793_v0 = vand.u32 2147483648, %v6703_v59  ;;  %v10593_v27 = vld [vmem:[#allocation45_spill] sm:$0xff] }
 0x287   : > { %v7004_v29 = vpop.permute.xlu1 %1042  ;;  %10586 = vst [vmem:[#allocation74_spill] sm:$0xff] %v7014_v8  ;;  %v7054_v28 = vmax.f32 %v1741_v49, 1e-12  ;;  %v7056_v8 = vpop.eup %5362  ;;  %v2154_v54 = vmul.f32 %v2153_v4, %v6769_v44  ;;  %v460_v9 = vsub.f32 %v7021_v2, %v10593_v27  ;;  %v7069_v49 = vmax.f32 %v1618_v20, 1e-12  ;;  %v341_v59 = vld [vmem:[#allocation3 + $0x10] sm:$0xff] }
 0x288   : > { %5270 = vset.pattern.permute.xlu2 %v10587_v5  ;;  %5269 = vset.pattern.permute.xlu1 %v10587_v5  ;;  %v10591_v5 = vld [vmem:[#allocation44_spill] sm:$0xff]  ;;  %5115 = vpush %v5053_v13  ;;  %vm2155_vm3 = vcmp.eq.f32.partialorder %v6769_v44, inf  ;;  %vm2157_vm4 = vcmp.eq.f32.partialorder %v6769_v44, 0.0  ;;  %v2158_v13 = vand.u32 2147483648, %v6769_v44  ;;  %v1249_v4 = vsel %vm1248_vm14, %v6744_v33, %v1247_v42 }
 0x289   : > { %v7023_v31 = vpop.permute.xlu2 %2095  ;;  %2607 = vperm.xlu2 %5270, %v6108_v34   ;;  %2603 = vperm.xlu1 %5269, %v10577_v3   ;;  %v1534_v34 = vsub.f32 %v7021_v2, %v10591_v5  ;;  %v7059_v5 = vld [vmem:[#allocation4 + $0x8] sm:$0xff]  ;;  %v1632_v20 = vmul.f32 %v7056_v8, %v6975_v16  ;;  %vm667_vm5 = vweird.f32 %v6926_v1  ;;  %5366 = vrcp.f32 %v7054_v28 }
 0x28a   : > { %10588 = vst [vmem:[#allocation75_spill] sm:$0xff] %v7023_v31  ;;  %v1584_v22 = vadd.f32 %v7059_v5, %v6541_v30  ;;  %v1794_v30 = vsel %vm1792_vm2, %v1793_v0, %v1791_v10  ;;  %v7082_v27 = vpop.eup %5364  ;;  %v7091_v10 = vld [vmem:[#allocation6 + $0x10] sm:$0xff]  ;;  %v10599_v12 = vmov 0   ;;  %5368 = vrcp.f32 %v7069_v49 }
 0x28b   : > { %3722 = vperm.xlu0 %5279, %v10590_v58   ;;  %v7074_v14 = vsub.f32 %v1534_v34, %v6854_v57  ;;  %v665_v34 = vmul.f32 %v6987_v35, %v664_v50  ;;  %10598 = vst [vmem:[#allocation77_spill] sm:$0xff] %v7091_v10  ;;  %v1761_v42 = vadd.f32 %v7091_v10, %v6581_v26  ;;  %v7100_v50 = vmax.f32 %v1794_v30, 1e-12 }
 0x28c   : > { %vm668_vm6 = vweird.f32 %v6987_v35  ;;  %v7106_v37 = vsub.f32 %v460_v9, %v6981_v18  ;;  %v2108_v30 = vsub.f32 %v341_v59, %v6587_v55  ;;  %v1633_v33 = vmul.f32 %v7056_v8, %v1632_v20 }
 0x28d   : > { %v7049_v40 = vpop.permute.xlu0 %1562  ;;  %10595 = vst [vmem:[#allocation76_spill] sm:$0xff] %v7074_v14  ;;  %v2156_v14 = vsel %vm2155_vm3, %v6769_v44, %v2154_v54  ;;  %v1113_v54 = vmul.f32 %v7082_v27, %v7006_v21  ;;  %vm7132_vm7 = vmor %vm667_vm5, %vm668_vm6  ;;  %v1567_v20 = vsub.f32 %v341_v59, %v6623_v7  ;;  %vm1117_vm8 = vweird.f32 %v7006_v21 }
 0x28e   : > { %10592 = vst [vmem:[#allocation44_spill] sm:$0xff] %v7049_v40  ;;  %v2159_v9 = vsel %vm2157_vm4, %v2158_v13, %v2156_v14  ;;  %v1016_v14 = vsub.f32 %v341_v59, %v6596_v6  ;;  %v7154_v6 = vsub.f32 %v2108_v30, %v6936_v25  ;;  %v1634_v18 = vmul.f32 0.5, %v1633_v33  ;;  %v10612_v33 = vld [vmem:[#allocation49_spill] sm:$0xff]  ;;  %v10631_v25 = vld [vmem:[#allocation48_spill] sm:$0xff]  ;;  %s5112_s3 = spop %5111 }
 0x28f   : > { %v7067_v23 = vpop.permute.xlu1 %1765  ;;  %10600 = vst [vmem:[#allocation78_spill] sm:$0xff] %v7106_v37  ;;  %v7136_v44 = vpop.eup %5366  ;;  %v1121_v7 = vand.u32 2147483647, %v7006_v21  ;;  %vm1118_vm9 = vweird.f32 %v7082_v27  ;;  %vm1091_vm11 = vcmp.eq.f32.partialorder %v6928_v19, inf  ;;  %vm1664_vm12 = vweird.f32 %v7069_v49 }
 0x290   : > { %10594 = vst [vmem:[#allocation45_spill] sm:$0xff] %v7067_v23  ;;  %v7151_v37 = vpop.eup %5368  ;;  %vm7260_vm13 = vmor %vm1117_vm8, %vm1118_vm9  ;;  %vm1093_vm14 = vcmp.eq.f32.partialorder %v6928_v19, 0.0  ;;  %vm1638_vm2 = vcmp.eq.f32.partialorder %v6975_v16, inf  ;;  %vm1640_vm8 = vcmp.eq.f32.partialorder %v6975_v16, 0.0 }
 0x291   : > { %v1590_v60 = vpop.permute.xlu2 %1589  ;;  %2632 = vperm.xlu2 %5270, %v10596_v62   ;;  %2611 = vperm.xlu1 %5269, %v10597_v61   ;;  %v1087_v62 = vmul.f32 0.5, %v1086_v45  ;;  %v1252_v61 = vsel %vm1250_vm0, %v1251_v47, %v1249_v4  ;;  %v10601_v45 = vld [vmem:[#allocation18_spill] sm:$0xff]  ;;  %v7122_v4 = vadd.f32 %v6987_v35, %v665_v34  ;;  %10605 = vst [vmem:[#allocation80_spill] sm:$0xff] %v7136_v44  ;;  %v1114_v34 = vsub.f32 1.0, %v1113_v54 }
 0x292   : > { %v1600_v0 = vsub.f32 %v1584_v22, %v1590_v60  ;;  %v983_v60 = vsub.f32 %v7021_v2, %v6529_v43  ;;  %v1777_v43 = vsub.f32 %v1761_v42, %v6956_v15  ;;  %v1215_v15 = vadd.f32 %v7091_v10, %v6608_v39  ;;  %10608 = vst [vmem:[#allocation83_spill] sm:$0xff] %v7154_v6 }
 0x293   : > { %5281 = vset.pattern.permute.xlu0 %v10599_v12  ;;  %v7149_v42 = vmax.f32 %v2159_v9, 1e-12  ;;  %v7173_v9 = vsub.f32 %v1016_v14, %v6754_v63  ;;  %vm7217_vm10 = vcmp.eq.f32.partialorder %v1121_v7, 8.507059e+37  ;;  %v10623_v7 = vld [vmem:[#allocation28_spill] sm:$0xff]  ;;  %vm1840_vm0 = vweird.f32 %v7100_v50 }
 0x294   : > { %v7110_v22 = vmax.f32 %v1600_v0, 0.0  ;;  %440 = vperm.xlu0 %5281, %v10601_v45   ;;  %v1088_v0 = vsub.f32 1.5, %v1087_v62  ;;  %v7126_v45 = vmax.f32 %v1252_v61, 1e-12  ;;  %v1123_v62 = vand.u32 2147483648, %v7006_v21 }
 0x295   : > { %v7117_v47 = vpop.permute.xlu0 %1046  ;;  %v7146_v61 = vsub.f32 %v983_v60, %v6865_v11  ;;  %v7165_v60 = vld [vmem:[#allocation3 + $0x8] sm:$0xff]  ;;  %v7167_v54 = vmax.f32 %v1777_v43, 0.0  ;;  %10611 = vst [vmem:[#allocation85_spill] sm:$0xff] %v7173_v9  ;;  %v7183_v43 = vsub.f32 %v1567_v20, %v6791_v53  ;;  %v10615_v9 = vld [vmem:[#allocation66_spill] sm:$0xff]  ;;  %vm1665_vm1 = vweird.f32 %v7151_v37 }
 0x296   : > { %10602 = vst [vmem:[#allocation79_spill] sm:$0xff] %v7117_v47  ;;  %5370 = vrsqrt.f32 %v7110_v22  ;;  %v1089_v30 = vmul.f32 %v6999_v48, %v1088_v0  ;;  %v7178_v6 = vor.u32 1.1754944e-38, %v1123_v62  ;;  %v1660_v48 = vmul.f32 %v7151_v37, %v7069_v49 }
 0x297   : > { %v7141_v13 = vpop.permute.xlu1 %455  ;;  %5372 = vrcp.f32 %v7100_v50  ;;  %10607 = vst [vmem:[#allocation82_spill] sm:$0xff] %v7146_v61  ;;  %v1115_v0 = vmul.f32 %v7082_v27, %v1114_v34  ;;  %v1235_v61 = vsub.f32 %v1215_v15, %v10615_v9  ;;  %v1670_v34 = vand.u32 2147483648, %v7069_v49  ;;  %v10618_v15 = vld [vmem:[#allocation51_spill] sm:$0xff] }
 0x298   : > { %10606 = vst [vmem:[#allocation81_spill] sm:$0xff] %v7141_v13  ;;  %5374 = vrcp.f32 %v7126_v45  ;;  %v1090_v13 = vmul.f32 %v1089_v30, %v6928_v19  ;;  %v496_v9 = vsub.f32 %v7165_v60, %v10618_v15  ;;  %v1661_v47 = vsub.f32 1.0, %v1660_v48 }
 0x299   : > { %v7156_v41 = vpop.permute.xlu2 %1011  ;;  %2644 = vperm.xlu2 %5270, %v10610_v51   ;;  %2640 = vperm.xlu1 %5269, %v10590_v58   ;;  %v1015_v51 = vsub.f32 %v7165_v60, %v10612_v33  ;;  %10613 = vst [vmem:[#allocation49_spill] sm:$0xff] %v7183_v43  ;;  %5376 = vrcp.f32 %v7149_v42  ;;  %v10614_v33 = vld [vmem:[#allocation50_spill] sm:$0xff]  ;;  %v1635_v43 = vsub.f32 1.5, %v1634_v18  ;;  %vm1298_vm4 = vweird.f32 %v7126_v45 }
 0x29a   : > { %10609 = vst [vmem:[#allocation84_spill] sm:$0xff] %v7156_v41  ;;  %v2075_v62 = vsub.f32 %v7021_v2, %v10614_v33  ;;  %v7195_v41 = vld [vmem:[#allocation6 + $0x8] sm:$0xff]  ;;  %5378 = vrsqrt.f32 %v7167_v54  ;;  %vm2205_vm6 = vweird.f32 %v7149_v42 }
 0x29b   : > { %v7199_v20 = vadd.f32 %v7195_v41, %v6608_v39  ;;  %v7208_v2 = vsub.f32 %v1015_v51, %v6754_v63  ;;  %v1668_v51 = vand.u32 2147483647, %v7069_v49  ;;  %v1636_v48 = vmul.f32 %v7056_v8, %v1635_v43  ;;  %v7252_v8 = vld [vmem:[#allocation2 + $0x8] sm:$0xff] }
 0x29c   : > { %v7180_v59 = vpop.eup %5370  ;;  %445 = vperm.xlu0 %5281, %v10577_v3   ;;  %v7228_v63 = vsub.f32 %v2075_v62, %v6898_v56  ;;  %v1844_v62 = vand.u32 2147483647, %v7100_v50 }
 0x29d   : > { %v7190_v14 = vpop.eup %5372  ;;  %v7201_v3 = vpop.permute.xlu0 %1769  ;;  %10617 = vst [vmem:[#allocation66_spill] sm:$0xff] %v7208_v2  ;;  %v1620_v33 = vmul.f32 %v7180_v59, %v7110_v22  ;;  %v1116_v2 = vadd.f32 %v7082_v27, %v1115_v0  ;;  %v1637_v36 = vmul.f32 %v1636_v48, %v6975_v16  ;;  %vm7299_vm15 = vcmp.eq.f32.partialorder %v1668_v51, 8.507059e+37  ;;  %v10637_v51 = vld [vmem:[#allocation46_spill] sm:$0xff] }
 0x29e   : > { %10616 = vst [vmem:[#allocation50_spill] sm:$0xff] %v7201_v3  ;;  %v7221_v30 = vpop.eup %5374  ;;  %v1836_v15 = vmul.f32 %v7190_v14, %v7100_v50  ;;  %v10624_v3 = vld [vmem:[#allocation32_spill] sm:$0xff]  ;;  %vm1841_vm3 = vweird.f32 %v7190_v14  ;;  %vm7329_vm5 = vcmp.eq.f32.partialorder %v1844_v62, 8.507059e+37 }
 0x29f   : > { %v7214_v10 = vpop.permute.xlu1 %492  ;;  %10622 = vst [vmem:[#allocation86_spill] sm:$0xff] %v7228_v63  ;;  %v7238_v23 = vpop.eup %5376  ;;  %v7250_v63 = vsub.f32 %v496_v9, %v6734_v32  ;;  %v1621_v43 = vmul.f32 %v7180_v59, %v1620_v33  ;;  %v1662_v33 = vmul.f32 %v7151_v37, %v1661_v47 }
 0x2a0   : > { %10619 = vst [vmem:[#allocation51_spill] sm:$0xff] %v7214_v10  ;;  %v7230_v10 = vmax.f32 %v1235_v61, 0.0  ;;  %v7244_v61 = vor.u32 1.1754944e-38, %v1670_v34  ;;  %v7267_v9 = vpop.eup %5378  ;;  %v1837_v21 = vsub.f32 1.0, %v1836_v15  ;;  %v2201_v32 = vmul.f32 %v7238_v23, %v7149_v42 }
 0x2a1   : > { %2673 = vrot.lane.b32.xlu2 %v10623_v7, %s5886_s26  ;;  %2671 = vrot.lane.b32.xlu1 %v10624_v3, %s5886_s26  ;;  %v1846_v7 = vand.u32 2147483648, %v7100_v50  ;;  %v1092_v3 = vsel %vm1091_vm11, %v6928_v19, %v1090_v13  ;;  %10626 = vst [vmem:[#allocation88_spill] sm:$0xff] %v7250_v63  ;;  %v1294_v13 = vmul.f32 %v7221_v30, %v7126_v45  ;;  %vm1299_vm11 = vweird.f32 %v7221_v30 }
 0x2a2   : > { %v7240_v0 = vpop.permute.xlu2 %2070  ;;  %5271 = vset.pattern.permute.xlu1 %v10599_v12  ;;  %5272 = vset.pattern.permute.xlu2 %v10599_v12  ;;  %v1094_v12 = vand.u32 2147483648, %v6928_v19  ;;  %v1120_v63 = vsel %vm7260_vm13, %v7082_v27, %v1116_v2  ;;  %5380 = vrsqrt.f32 %v7230_v10  ;;  %v7285_v34 = vadd.f32 %v7059_v5, %v10631_v25  ;;  %v10632_v27 = vld [vmem:[#allocation43_spill] sm:$0xff] }
 0x2a3   : > { %10625 = vst [vmem:[#allocation87_spill] sm:$0xff] %v7240_v0  ;;  %v7289_v19 = vadd.f32 %v7059_v5, %v10632_v27  ;;  %v7291_v2 = vor.u32 1.1754944e-38, %v1846_v7  ;;  %v1808_v15 = vmul.f32 %v7267_v9, %v7167_v54  ;;  %v1295_v25 = vsub.f32 1.0, %v1294_v13 }
 0x2a4   : > { %487 = vperm.xlu0 %5281, %v10590_v58   ;;  %v1095_v40 = vsel %vm1093_vm14, %v1094_v12, %v1092_v3  ;;  %v10630_v58 = vld [vmem:[#allocation60_spill] sm:$0xff]  ;;  %v1125_v7 = vsel %vm7217_vm10, %v7178_v6, %v1120_v63  ;;  %v1663_v13 = vadd.f32 %v7151_v37, %v1662_v33  ;;  %v2202_v27 = vsub.f32 1.0, %v2201_v32  ;;  %vm7346_vm10 = vmor %vm1664_vm12, %vm1665_vm1 }
 0x2a5   : > { %v7276_v0 = vpop.permute.xlu0 %2599  ;;  %v982_v47 = vsub.f32 %v7252_v8, %v10630_v58  ;;  %v1622_v58 = vmul.f32 0.5, %v1621_v43  ;;  %v7310_v48 = vmax.f32 %v1095_v40, 1e-12  ;;  %v1838_v43 = vmul.f32 %v7190_v14, %v1837_v21  ;;  %vm7381_vm12 = vmor %vm1840_vm0, %vm1841_vm3  ;;  %v5060_v21 = vld [vmem:[%s6050_s5 + $0x6] sm:$0x1] }
 0x2a6   : > { %10629 = vst [vmem:[#allocation89_spill] sm:$0xff] %v7276_v0  ;;  %v7295_v0 = vld [vmem:[#allocation6 + $0x18] sm:$0xff]  ;;  %v2209_v40 = vand.u32 2147483647, %v7149_v42  ;;  %v1641_v6 = vand.u32 2147483648, %v6975_v16  ;;  %v1809_v33 = vmul.f32 %v7267_v9, %v1808_v15  ;;  %v2211_v15 = vand.u32 2147483648, %v7149_v42 }
 0x2a7   : > { %v1216_v3 = vadd.f32 %v7295_v0, %v6608_v39  ;;  %v10636_v39 = vld [vmem:[#allocation23_spill] sm:$0xff]  ;;  %v7320_v18 = vsub.f32 %v982_v47, %v6865_v11  ;;  %v10641_v47 = vand.u32 2147483647, %v6926_v1  ;;  %5382 = vrcp.f32 %v7310_v48  ;;  %5117 = vpush %v5060_v21 }
 0x2a8   : > { %v7304_v5 = vpop.permute.xlu1 %978  ;;  %v1839_v49 = vadd.f32 %v7190_v14, %v1838_v43  ;;  %v10647_v11 = vld [vmem:[#allocation63_spill] sm:$0xff]  ;;  %v1533_v43 = vsub.f32 %v7252_v8, %v6886_v17  ;;  %vm2206_vm13 = vweird.f32 %v7238_v23  ;;  %vm7386_vm14 = vcmp.eq.f32.partialorder %v2209_v40, 8.507059e+37 }
 0x2a9   : > { %10635 = vst [vmem:[#allocation60_spill] sm:$0xff] %v7304_v5  ;;  %2845 = vrot.lane.b32.xlu2 %v10636_v39, %s5886_s26  ;;  %2802 = vperm.xlu1 %5271, %v10637_v51   ;;  %v1639_v5 = vsel %vm1638_vm2, %v6975_v16, %v1637_v36  ;;  %v7326_v51 = vpop.eup %5380  ;;  %v1623_v36 = vsub.f32 1.5, %v1622_v58  ;;  %vm7337_vm9 = vcmp.eq.f32.partialorder %v10641_v47, 8.507059e+37  ;;  %v1296_v16 = vmul.f32 %v7221_v30, %v1295_v25  ;;  %vm7438_vm0 = vmor %vm2205_vm6, %vm2206_vm13 }
 0x2aa   : > { %10638 = vst [vmem:[#allocation48_spill] sm:$0xff] %v7320_v18  ;;  %v1228_v63 = vpop.permute.xlu2 %1227  ;;  %v5634_v18 = vld [vmem:[%s6055_s6] sm:$0x1]  ;;  %v2203_v47 = vmul.f32 %v7238_v23, %v2202_v27  ;;  %v2074_v31 = vsub.f32 %v7252_v8, %v10647_v11  ;;  %v1266_v44 = vmul.f32 %v7326_v51, %v7230_v10  ;;  %v1302_v25 = vand.u32 2147483647, %v7126_v45 }
 0x2ab   : > { %v1236_v32 = vsub.f32 %v1216_v3, %v1228_v63  ;;  %v1642_v3 = vsel %vm1640_vm8, %v1641_v6, %v1639_v5  ;;  %v1297_v17 = vadd.f32 %v7221_v30, %v1296_v16  ;;  %v1843_v50 = vsel %vm7381_vm12, %v7190_v14, %v1839_v49  ;;  %v7414_v14 = vld [vmem:[%s6055_s6 + $0x3] ss:$0 sm:$0xff] }
 0x2ac   : > { %807 = vperm.xlu0 %5281, %v5634_v18   ;;  %v1667_v18 = vsel %vm7346_vm10, %v7151_v37, %v1663_v13  ;;  %v7369_v5 = vmax.f32 %v1642_v3, 1e-12  ;;  %v1624_v37 = vmul.f32 %v7180_v59, %v1623_v36  ;;  %v1810_v13 = vmul.f32 0.5, %v1809_v33  ;;  %v10657_v16 = vld [vmem:[#allocation59_spill] sm:$0xff] }
 0x2ad   : > { %v7353_v58 = vmax.f32 %v1236_v32, 0.0  ;;  %v7355_v63 = vpop.permute.xlu0 %2636  ;;  %v1672_v11 = vsel %vm7299_vm15, %v7244_v61, %v1667_v18  ;;  %v1234_v61 = vsub.f32 %v7199_v20, %v6930_v46  ;;  %v2204_v12 = vadd.f32 %v7238_v23, %v2203_v47  ;;  %v7400_v6 = vpop.eup %5382  ;;  %vm7421_vm15 = vmor %vm1298_vm4, %vm1299_vm11 }
 0x2ae   : > { %10646 = vst [vmem:[#allocation43_spill] sm:$0xff] %v7355_v63  ;;  %v1304_v40 = vand.u32 2147483648, %v7126_v45  ;;  %v7403_v33 = vsub.f32 %v2074_v31, %v6898_v56  ;;  %v7407_v46 = vadd.f32 %v7195_v41, %v6581_v26  ;;  %v10653_v32 = vand.u32 2147483648, %v6926_v1  ;;  %v5637_v45 = vld [vmem:[%s6055_s6 + $0x2] ss:$0 sm:$0xff] }
 0x2af   : > { %5384 = vrsqrt.f32 %v7353_v58  ;;  %v1267_v62 = vmul.f32 %v7326_v51, %v1266_v44  ;;  %v1625_v26 = vmul.f32 %v1624_v37, %v7110_v22  ;;  %v7428_v1 = vsub.f32 %v1533_v43, %v6854_v57 }
 0x2b0   : > { %10652 = vst [vmem:[#allocation46_spill] sm:$0xff] %v7403_v33  ;;  %v674_v36 = vor.u32 1.1754944e-38, %v10653_v32  ;;  %5386 = vrcp.f32 %v7369_v5  ;;  %v1848_v44 = vsel %vm7329_vm5, %v7291_v2, %v1843_v50  ;;  %v1301_v3 = vsel %vm7421_vm15, %v7221_v30, %v1297_v17  ;;  %v5636_v50 = vld [vmem:[%s6050_s5 + $0x1] ss:$0 sm:$0xff] }
 0x2b1   : > { %1936 = vperm.xlu2 %5272, %v1672_v11   ;;  %1395 = vperm.xlu1 %5271, %v1125_v7   ;;  %v7393_v8 = vpop.permute.xlu1 %1529  ;;  %v2212_v7 = vor.u32 1.1754944e-38, %v2211_v15  ;;  %v1811_v15 = vsub.f32 1.5, %v1810_v13  ;;  %10656 = vst [vmem:[#allocation63_spill] sm:$0xff] %v7428_v1  ;;  %vm7445_vm1 = vcmp.eq.f32.partialorder %v1302_v25, 8.507059e+37  ;;  %v7449_v47 = vmax.f32 %v1234_v61, 0.0  ;;  %v7474_v61 = vld [vmem:[#allocation4 + $0x18] sm:$0xff] }
 0x2b2   : > { %v7409_v20 = vpop.permute.xlu2 %2134  ;;  %v2208_v42 = vsel %vm7438_vm0, %v7238_v23, %v2204_v12  ;;  %v1143_v37 = vmul.f32 %v7400_v6, %v7310_v48  ;;  %v1305_v30 = vor.u32 1.1754944e-38, %v1304_v40  ;;  %v1566_v25 = vsub.f32 %v7165_v60, %v6946_v24 }
 0x2b3   : > { %vm1626_vm2 = vcmp.eq.f32.partialorder %v7110_v22, inf  ;;  %v10662_v43 = vsel %vm7132_vm7, %v6987_v35, %v7122_v4  ;;  %v2301_v11 = vadd.f32 %v7195_v41, %v7414_v14  ;;  %v1812_v24 = vmul.f32 %v7267_v9, %v1811_v15  ;;  %v5063_v4 = vld [vmem:[%s6055_s6 + $0x6] sm:$0x1] }
 0x2b4   : > { %854 = vperm.xlu0 %5281, %v10657_v16   ;;  %v675_v23 = vsel %vm7337_vm9, %v674_v36, %v10662_v43  ;;  %v1627_v27 = vsel %vm1626_vm2, %v7110_v22, %v1625_v26  ;;  %v1268_v17 = vmul.f32 0.5, %v1267_v62  ;;  %v7478_v12 = vadd.f32 %v5636_v50, %v7474_v61  ;;  %5119 = vpush %v5063_v4 }
 0x2b5   : > { %v5385_v49 = vpop.eup %5384  ;;  %v7451_v2 = vpop.permute.xlu0 %2669  ;;  %v7482_v35 = vsel %vm7445_vm1, %v1305_v30, %v1301_v3  ;;  %v1629_v39 = vand.u32 2147483648, %v7110_v22  ;;  %5388 = vrsqrt.f32 %v7449_v47  ;;  %v2213_v9 = vsel %vm7386_vm14, %v2212_v7, %v2208_v42 }
 0x2b6   : > { %v1278_v13 = vmul.f32 %v5385_v49, %v7353_v58  ;;  %v7486_v41 = vpop.eup %5386  ;;  %v1144_v40 = vsub.f32 1.0, %v1143_v37  ;;  %vm1628_vm7 = vcmp.eq.f32.partialorder %v7110_v22, 0.0  ;;  %v7493_v32 = vsub.f32 %v1566_v25, %v6791_v53 }
 0x2b7   : > { %v1630_v26 = vsel %vm1628_vm7, %v1629_v39, %v1627_v27  ;;  %v7497_v15 = vperm.slane %v675_v23, 0  ;;  %v2141_v16 = vsub.f32 %v7285_v34, %v6983_v38  ;;  %v1813_v7 = vmul.f32 %v1812_v24, %v7167_v54 }
 0x2b8   : > { %v1279_v55 = vmul.f32 %v5385_v49, %v1278_v13  ;;  %10663 = vst [vmem:[#allocation59_spill] sm:$0xff] %v7493_v32  ;;  %v1053_v22 = vsub.f32 %v7289_v19, %v7004_v29  ;;  %v7506_v3 = vadd.f32 %v5637_v45, %v7295_v0  ;;  %v1690_v18 = vmul.f32 %v7486_v41, %v7369_v5  ;;  %v10666_v29 = vld [vmem:[#allocation80_spill] sm:$0xff] }
 0x2b9   : > { %1967 = vperm.xlu1 %5271, %v1848_v44   ;;  %10665 = vst [vmem:[#allocation91_spill] sm:$0xff] %v7497_v15  ;;  %v1269_v44 = vsub.f32 1.5, %v1268_v17  ;;  %v1145_v34 = vmul.f32 %v7400_v6, %v1144_v40  ;;  %v7516_v37 = vmax.f32 %v1630_v26, 1e-12  ;;  %v7520_v19 = vmul.f32 %v10666_v29, %v7054_v28 }
 0x2ba   : > { %v2307_v36 = vpop.permute.xlu2 %2306  ;;  %v7495_v62 = vpop.permute.xlu1 %2103  ;;  %v1280_v31 = vmul.f32 0.5, %v1279_v55  ;;  %vm1814_vm3 = vcmp.eq.f32.partialorder %v7167_v54, inf  ;;  %vm1816_vm4 = vcmp.eq.f32.partialorder %v7167_v54, 0.0  ;;  %vm1272_vm5 = vcmp.eq.f32.partialorder %v7230_v10, inf }
 0x2bb   : > { %10664 = vst [vmem:[#allocation90_spill] sm:$0xff] %v7495_v62  ;;  %v2317_v59 = vsub.f32 %v2301_v11, %v2307_v36  ;;  %v7526_v30 = vpop.eup %5388  ;;  %v7528_v25 = vmax.f32 %v2141_v16, 0.0  ;;  %v1815_v13 = vsel %vm1814_vm3, %v7167_v54, %v1813_v7  ;;  %v1270_v43 = vmul.f32 %v7326_v51, %v1269_v44  ;;  %v5638_v36 = vld [vmem:[%s6055_s6 + $0x1] sm:$0x1]  ;;  %v10669_v44 = vld [vmem:[#allocation75_spill] sm:$0xff] }
 0x2bc   : > { %880 = vperm.xlu0 %5281, %v6950_v52   ;;  %v1281_v42 = vsub.f32 1.5, %v1280_v31  ;;  %v1817_v52 = vand.u32 2147483648, %v7167_v54  ;;  %v7533_v23 = vmax.f32 %v1053_v22, 0.0  ;;  %vm1148_vm6 = vweird.f32 %v7400_v6 }
 0x2bd   : > { %v7511_v21 = vmax.f32 %v2317_v59, 0.0  ;;  %v7513_v38 = vpop.permute.xlu0 %2675  ;;  %v1146_v27 = vadd.f32 %v7400_v6, %v1145_v34  ;;  %vm1284_vm8 = vcmp.eq.f32.partialorder %v7353_v58, inf  ;;  %v1287_v24 = vand.u32 2147483648, %v7353_v58  ;;  %v7583_v34 = vld [vmem:[#allocation4 + $0x10] sm:$0xff] }
 0x2be   : > { %v1282_v0 = vmul.f32 %v5385_v49, %v1281_v42  ;;  %v1691_v49 = vsub.f32 1.0, %v1690_v18  ;;  %vm1274_vm9 = vcmp.eq.f32.partialorder %v7230_v10, 0.0  ;;  %v1153_v17 = vand.u32 2147483648, %v7310_v48 }
 0x2bf   : > { %5390 = vrsqrt.f32 %v7511_v21  ;;  %vm1286_vm10 = vcmp.eq.f32.partialorder %v7353_v58, 0.0  ;;  %v1818_v55 = vsel %vm1816_vm4, %v1817_v52, %v1815_v13  ;;  %vm1147_vm11 = vweird.f32 %v7310_v48 }
 0x2c0   : > { %v1283_v11 = vmul.f32 %v1282_v0, %v7353_v58  ;;  %5392 = vrcp.f32 %v7516_v37  ;;  %v1151_v4 = vand.u32 2147483647, %v7310_v48  ;;  %v1254_v40 = vmul.f32 %v7526_v30, %v7449_v47  ;;  %vm7558_vm12 = vmor %vm1147_vm11, %vm1148_vm6  ;;  %v7586_v0 = vld [vmem:[%s6050_s5 + $0x3] ss:$0 sm:$0xff] }
 0x2c1   : > { %2477 = vperm.xlu1 %5271, %v2213_v9   ;;  %v1271_v9 = vmul.f32 %v1270_v43, %v7230_v10  ;;  %5394 = vrsqrt.f32 %v7528_v25  ;;  %v1275_v48 = vand.u32 2147483648, %v7230_v10  ;;  %v1150_v16 = vsel %vm7558_vm12, %v7400_v6, %v1146_v27 }
 0x2c2   : > { %v7542_v51 = vpop.permute.xlu1 %1593  ;;  %v1285_v50 = vsel %vm1284_vm8, %v7353_v58, %v1283_v11  ;;  %5396 = vrsqrt.f32 %v7533_v23  ;;  %v1692_v59 = vmul.f32 %v7486_v41, %v1691_v49  ;;  %v7574_v7 = vmax.f32 %v1818_v55, 1e-12  ;;  %v10672_v58 = vld [vmem:[#allocation64_spill] sm:$0xff] }
 0x2c3   : > { %v1288_v39 = vsel %vm1286_vm10, %v1287_v24, %v1285_v50  ;;  %v2107_v22 = vsub.f32 %v7165_v60, %v10669_v44  ;;  %v1154_v18 = vor.u32 1.1754944e-38, %v1153_v17  ;;  %vm1152_vm13 = vcmp.eq.f32.partialorder %v1151_v4, 8.507059e+37  ;;  %v10670_v17 = vld [vmem:[#allocation69_spill] sm:$0xff] }
 0x2c4   : > { %1354 = vperm.xlu0 %5281, %v5638_v36   ;;  %v7562_v54 = vmax.f32 %v1288_v39, 1e-12  ;;  %v2126_v6 = vadd.f32 %v7586_v0, %v7583_v34  ;;  %v1273_v60 = vsel %vm1272_vm5, %v7230_v10, %v1271_v9  ;;  %v1745_v52 = vsub.f32 1.0, %v7520_v19  ;;  %v7613_v36 = vld [vmem:[#allocation3 + $0x18] sm:$0xff]  ;;  %v7657_v10 = vld [vmem:[#allocation6] sm:$0xff] }
 0x2c5   : > { %v7565_v31 = vpop.eup %5390  ;;  %v7568_v26 = vpop.permute.xlu0 %2847  ;;  %v1155_v43 = vsel %vm1152_vm13, %v1154_v18, %v1150_v16  ;;  %v1698_v49 = vand.u32 2147483647, %v7369_v5  ;;  %v1700_v11 = vand.u32 2147483648, %v7369_v5  ;;  %v1693_v27 = vadd.f32 %v7486_v41, %v1692_v59 }
 0x2c6   : > { %v2337_v45 = vmul.f32 %v7565_v31, %v7511_v21  ;;  %5398 = vrcp.f32 %v7562_v54  ;;  %v7581_v42 = vpop.eup %5392  ;;  %vm1694_vm14 = vweird.f32 %v7369_v5  ;;  %vm1695_vm15 = vweird.f32 %v7486_v41 }
 0x2c7   : > { %5400 = vrcp.f32 %v7574_v7  ;;  %v7601_v24 = vpop.eup %5394  ;;  %v1255_v19 = vmul.f32 %v7526_v30, %v1254_v40  ;;  %v7605_v50 = vsub.f32 %v2107_v22, %v10670_v17  ;;  %v1675_v4 = vmul.f32 %v7581_v42, %v7516_v37  ;;  %vm7630_vm0 = vmor %vm1694_vm14, %vm1695_vm15 }
 0x2c8   : > { %v2338_v13 = vmul.f32 %v7565_v31, %v2337_v45  ;;  %v1276_v39 = vsel %vm1274_vm9, %v1275_v48, %v1273_v60  ;;  %v7611_v9 = vpop.eup %5396  ;;  %v7616_v16 = vperm.slane %v10672_v58, 4  ;;  %v7619_v40 = vmul.f32 %v10666_v29, %v1745_v52  ;;  %v10674_v45 = vld [vmem:[#allocation44_spill] sm:$0xff]  ;;  %v10681_v58 = vld [vmem:[#allocation45_spill] sm:$0xff] }
 0x2c9   : > { %1405 = vperm.xlu1 %5271, %v1155_v43   ;;  %10671 = vst [vmem:[#allocation80_spill] sm:$0xff] %v7605_v50  ;;  %v7623_v43 = vstv %s5110_s8  ;;  %vm7634_vm1 = vcmp.eq.f32.partialorder %v1698_v49, 8.507059e+37  ;;  %v7646_v5 = vmax.f32 %v1276_v39, 1e-12  ;;  %v1073_v49 = vmul.f32 %v7611_v9, %v7533_v23  ;;  %s5890_s8 = smov 122  }
 0x2ca   : > { %v2133_v55 = vpop.permute.xlu1 %2132  ;;  %10673 = vst [vmem:[#allocation75_spill] sm:$0xff] %v7616_v16  ;;  %v2339_v44 = vmul.f32 0.5, %v2338_v13  ;;  %v1347_v33 = vand.u32 2147483647, %v7562_v54  ;;  %vm1343_vm7 = vweird.f32 %v7562_v54  ;;  %vm1680_vm5 = vweird.f32 %v7581_v42 }
 0x2cb   : > { %v2142_v59 = vsub.f32 %v2126_v6, %v2133_v55  ;;  %10675 = vst [vmem:[#allocation64_spill] sm:$0xff] %v7623_v43  ;;  %v1701_v6 = vor.u32 1.1754944e-38, %v1700_v11  ;;  %v2161_v55 = vmul.f32 %v7601_v24, %v7528_v25  ;;  %v1776_v11 = vsub.f32 %v7407_v46, %v10681_v58  ;;  %v7666_v58 = vpop.permute.xlu2 %2310 }
 0x2cc   : > { %v5399_v22 = vpop.eup %5398  ;;  %1426 = vperm.xlu0 %5281, %v7482_v35   ;;  %v1697_v35 = vsel %vm7630_vm0, %v7486_v41, %v1693_v27  ;;  %v2300_v41 = vadd.f32 %v7657_v10, %v7414_v14  ;;  %v2340_v39 = vsub.f32 1.5, %v2339_v44  ;;  %v1349_v46 = vand.u32 2147483648, %v7562_v54 }
 0x2cd   : > { %v7638_v60 = vmax.f32 %v2142_v59, 0.0  ;;  %v7640_v52 = vpop.permute.xlu0 %3148  ;;  %v1339_v13 = vmul.f32 %v5399_v22, %v7562_v54  ;;  %v1676_v59 = vsub.f32 1.0, %v1675_v4  ;;  %v7654_v18 = vpop.eup %5400  ;;  %v1702_v43 = vsel %vm7634_vm1, %v1701_v6, %v1697_v35 }
 0x2ce   : > { %10680 = vst [vmem:[#allocation44_spill] sm:$0xff] %v7640_v52  ;;  %v10682_v52 = vld [vmem:[#allocation50_spill] sm:$0xff]  ;;  %v1256_v4 = vmul.f32 0.5, %v1255_v19  ;;  %vm1344_vm2 = vweird.f32 %v5399_v22  ;;  %v7671_v44 = vmul.f32 %v7601_v24, %v2161_v55  ;;  %v1866_v19 = vmul.f32 %v7654_v18, %v7574_v7 }
 0x2cf   : > { %5402 = vrsqrt.f32 %v7638_v60  ;;  %v1340_v27 = vsub.f32 1.0, %v1339_v13  ;;  %v1778_v63 = vsub.f32 %v7506_v3, %v10682_v52  ;;  %v7673_v13 = vmax.f32 %v1776_v11, 0.0  ;;  %vm1345_vm3 = vmor %vm1343_vm7, %vm1344_vm2 }
 0x2d0   : > { %5404 = vrcp.f32 %v7646_v5  ;;  %v1677_v48 = vmul.f32 %v7581_v42, %v1676_v59  ;;  %v1074_v35 = vmul.f32 %v7611_v9, %v1073_v49  ;;  %v1350_v55 = vor.u32 1.1754944e-38, %v1349_v46 }
 0x2d1   : > { %1946 = vperm.xlu1 %5271, %v1702_v43   ;;  %v1341_v50 = vmul.f32 %v5399_v22, %v1340_v27  ;;  %v2341_v43 = vmul.f32 %v7565_v31, %v2340_v39  ;;  %v7681_v27 = vmax.f32 %v1778_v63, 0.0  ;;  %v1257_v11 = vsub.f32 1.5, %v1256_v4 }
 0x2d2   : > { %v2305_v3 = vpop.permute.xlu1 %2304  ;;  %v7685_v59 = vadd.f32 %v7586_v0, %v7474_v61  ;;  %vm1348_vm4 = vcmp.eq.f32.partialorder %v1347_v33, 8.507059e+37  ;;  %v1867_v63 = vsub.f32 1.0, %v1866_v19  ;;  %v10684_v61 = vld [vmem:[#allocation77_spill] sm:$0xff]  ;;  %v1678_v39 = vadd.f32 %v7581_v42, %v1677_v48 }
 0x2d3   : > { %v2316_v6 = vsub.f32 %v2300_v41, %v2305_v3  ;;  %v1342_v52 = vadd.f32 %v5399_v22, %v1341_v50  ;;  %v2302_v0 = vadd.f32 %v10684_v61, %v7414_v14  ;;  %v2342_v46 = vmul.f32 %v2341_v43, %v7511_v21 }
 0x2d4   : > { %v1258_v4 = vmul.f32 %v7526_v30, %v1257_v11  ;;  %vm1679_vm6 = vweird.f32 %v7516_v37  ;;  %v1683_v3 = vand.u32 2147483647, %v7516_v37  ;;  %vm1870_vm8 = vweird.f32 %v7574_v7  ;;  %v7719_v30 = vpop.permute.xlu2 %875 }
 0x2d5   : > { %v5403_v17 = vpop.eup %5402  ;;  %v7687_v32 = vmax.f32 %v2316_v6, 0.0  ;;  %v7689_v41 = vpop.permute.xlu0 %3185  ;;  %v1346_v50 = vsel %vm1345_vm3, %v5399_v22, %v1342_v52  ;;  %v1685_v22 = vand.u32 2147483648, %v7516_v37  ;;  %v1874_v19 = vand.u32 2147483647, %v7574_v7  ;;  %vm7709_vm9 = vmor %vm1679_vm6, %vm1680_vm5  ;;  %10687 = vst [vmem:[#allocation50_spill] sm:$0xff] %v7719_v30 }
 0x2d6   : > { %10683 = vst [vmem:[#allocation45_spill] sm:$0xff] %v7689_v41  ;;  %v2173_v54 = vmul.f32 %v5403_v17, %v7638_v60  ;;  %v1351_v31 = vsel %vm1348_vm4, %v1350_v55, %v1346_v50  ;;  %v7693_v49 = vpop.eup %5404  ;;  %v1075_v14 = vmul.f32 0.5, %v1074_v35  ;;  %v1876_v52 = vand.u32 2147483648, %v7574_v7 }
 0x2d7   : > { %5406 = vrsqrt.f32 %v7687_v32  ;;  %1441 = vperm.xlu0 %5281, %v1351_v31   ;;  %vm2343_vm10 = vcmp.eq.f32.partialorder %v7511_v21, inf  ;;  %v7717_v37 = vmul.f32 %v7693_v49, %v7646_v5  ;;  %v1682_v35 = vsel %vm7709_vm9, %v7581_v42, %v1678_v39 }
 0x2d8   : > { %5408 = vrsqrt.f32 %v7681_v27  ;;  %v2174_v33 = vmul.f32 %v5403_v17, %v2173_v54  ;;  %v1868_v11 = vmul.f32 %v7654_v18, %v1867_v63  ;;  %v2344_v50 = vsel %vm2343_vm10, %v7511_v21, %v2342_v46 }
 0x2d9   : > { %v1686_v54 = vor.u32 1.1754944e-38, %v1685_v22  ;;  %v2346_v61 = vand.u32 2147483648, %v7511_v21  ;;  %vm1684_vm11 = vcmp.eq.f32.partialorder %v1683_v3, 8.507059e+37  ;;  %vm2345_vm12 = vcmp.eq.f32.partialorder %v7511_v21, 0.0 }
 0x2da   : > { %v2309_v6 = vpop.permute.xlu1 %2308  ;;  %v2175_v43 = vmul.f32 0.5, %v2174_v33  ;;  %v1259_v33 = vmul.f32 %v1258_v4, %v7449_v47  ;;  %v1869_v4 = vadd.f32 %v7654_v18, %v1868_v11  ;;  %vm1871_vm13 = vweird.f32 %v7654_v18 }
 0x2db   : > { %v2318_v55 = vsub.f32 %v2302_v0, %v2309_v6  ;;  %v1076_v0 = vsub.f32 1.5, %v1075_v14  ;;  %v1687_v39 = vsel %vm1684_vm11, %v1686_v54, %v1682_v35  ;;  %v2347_v22 = vsel %vm2345_vm12, %v2346_v61, %v2344_v50  ;;  %vm7751_vm0 = vmor %vm1870_vm8, %vm1871_vm13 }
 0x2dc   : > { %v2176_v31 = vsub.f32 1.5, %v2175_v43  ;;  %vm1260_vm14 = vcmp.eq.f32.partialorder %v7449_v47, inf  ;;  %v2143_v21 = vsub.f32 %v7685_v59, %v7409_v20  ;;  %vm2179_vm15 = vcmp.eq.f32.partialorder %v7638_v60, inf }
 0x2dd   : > { %v5407_v41 = vpop.eup %5406  ;;  %v7728_v1 = vmax.f32 %v2318_v55, 0.0  ;;  %v7730_v62 = vpop.permute.xlu0 %3214  ;;  %v1261_v6 = vsel %vm1260_vm14, %v7449_v47, %v1259_v33  ;;  %v7746_v48 = vmax.f32 %v2347_v22, 1e-12  ;;  %v1077_v43 = vmul.f32 %v7611_v9, %v1076_v0 }
 0x2de   : > { %v7733_v42 = vpop.eup %5408  ;;  %v2325_v63 = vmul.f32 %v5407_v41, %v7687_v32  ;;  %v2177_v46 = vmul.f32 %v5403_v17, %v2176_v31  ;;  %v2182_v17 = vand.u32 2147483648, %v7638_v60  ;;  %vm2181_vm1 = vcmp.eq.f32.partialorder %v7638_v60, 0.0  ;;  %v7770_v0 = vpop.permute.xlu2 %849 }
 0x2df   : > { %5410 = vrsqrt.f32 %v7728_v1  ;;  %1941 = vperm.xlu0 %5281, %v1687_v39   ;;  %v1263_v35 = vand.u32 2147483648, %v7449_v47  ;;  %v1873_v11 = vsel %vm7751_vm0, %v7654_v18, %v1869_v4  ;;  %vm7761_vm2 = vcmp.eq.f32.partialorder %v1874_v19, 8.507059e+37 }
 0x2e0   : > { %v2326_v3 = vmul.f32 %v5407_v41, %v2325_v63  ;;  %v2178_v14 = vmul.f32 %v2177_v46, %v7638_v60  ;;  %vm1262_vm7 = vcmp.eq.f32.partialorder %v7449_v47, 0.0  ;;  %v1877_v9 = vor.u32 1.1754944e-38, %v1876_v52 }
 0x2e1   : > { %v1264_v61 = vsel %vm1262_vm7, %v1263_v35, %v1261_v6  ;;  %v7768_v33 = vmax.f32 %v2143_v21, 0.0  ;;  %5412 = vrcp.f32 %v7746_v48  ;;  %v1325_v18 = vsub.f32 1.0, %v7717_v37 }
 0x2e2   : > { %v2180_v20 = vsel %vm2179_vm15, %v7638_v60, %v2178_v14  ;;  %v2327_v59 = vmul.f32 0.5, %v2326_v3  ;;  %v1078_v19 = vmul.f32 %v1077_v43, %v7533_v23  ;;  %v10692_v47 = vsub.f32 %v7613_v36, %v10674_v45  ;;  %v10694_v45 = vld [vmem:[#allocation79_spill] sm:$0xff] }
 0x2e3   : > { %v2183_v7 = vsel %vm2181_vm1, %v2182_v17, %v2180_v20  ;;  %v1878_v46 = vsel %vm7761_vm2, %v1877_v9, %v1873_v11  ;;  %v7790_v37 = vadd.f32 %v10666_v29, %v7619_v40  ;;  %v7792_v4 = vmax.f32 %v1264_v61, 1e-12 }
 0x2e4   : > { %v7766_v54 = vmax.f32 %v2183_v7, 1e-12  ;;  %v2328_v31 = vsub.f32 1.5, %v2327_v59  ;;  %v7781_v52 = vsub.f32 %v10692_v47, %v6791_v53  ;;  %v7795_v53 = vmul.f32 0.5, %v7671_v44 }
 0x2e5   : > { %v5411_v60 = vpop.eup %5410  ;;  %v7772_v63 = vpop.permute.xlu0 %3386  ;;  %v1055_v21 = vsub.f32 %v7478_v12, %v10694_v45  ;;  %vm1079_vm3 = vcmp.eq.f32.partialorder %v7533_v23, inf  ;;  %vm2331_vm4 = vcmp.eq.f32.partialorder %v7687_v32, inf  ;;  %v2334_v6 = vand.u32 2147483648, %v7687_v32  ;;  %v7809_v12 = vld [vmem:[#allocation2 + $0x18] sm:$0xff] }
 0x2e6   : > { %10693 = vst [vmem:[#allocation77_spill] sm:$0xff] %v7781_v52  ;;  %v2349_v39 = vmul.f32 %v5411_v60, %v7728_v1  ;;  %5414 = vrcp.f32 %v7766_v54  ;;  %v2329_v22 = vmul.f32 %v5407_v41, %v2328_v31  ;;  %v1326_v41 = vmul.f32 %v7693_v49, %v1325_v18  ;;  %v10696_v18 = vld [vmem:[#allocation81_spill] sm:$0xff]  ;;  %v5642_v45 = vld [vmem:[%s6050_s5 + $0x3] sm:$0x1] }
 0x2e7   : > { %5416 = vrsqrt.f32 %v7673_v13  ;;  %1977 = vperm.xlu0 %5281, %v1878_v46   ;;  %v1080_v40 = vsel %vm1079_vm3, %v7533_v23, %v1078_v19  ;;  %v1082_v17 = vand.u32 2147483648, %v7533_v23  ;;  %v7807_v43 = vpop.eup %5412  ;;  %vm2333_vm5 = vcmp.eq.f32.partialorder %v7687_v32, 0.0  ;;  %v5643_v52 = vld [vmem:[%s6055_s6 + $0x3] sm:$0x1] }
 0x2e8   : > { %v2350_v3 = vmul.f32 %v5411_v60, %v2349_v39  ;;  %5418 = vrsqrt.f32 %v7768_v33  ;;  %v2330_v14 = vmul.f32 %v2329_v22, %v7687_v32  ;;  %vm1081_vm6 = vcmp.eq.f32.partialorder %v7533_v23, 0.0  ;;  %v7836_v22 = vpop.permute.xlu2 %890 }
 0x2e9   : > { %5420 = vrcp.f32 %v7792_v4  ;;  %v7817_v59 = vmax.f32 %v1055_v21, 0.0  ;;  %v1083_v50 = vsel %vm1081_vm6, %v1082_v17, %v1080_v40  ;;  %v1820_v9 = vmul.f32 %v7733_v42, %v7681_v27  ;;  %10697 = vst [vmem:[#allocation81_spill] sm:$0xff] %v7836_v22 }
 0x2ea   : > { %v2351_v44 = vmul.f32 0.5, %v2350_v3  ;;  %v2332_v55 = vsel %vm2331_vm4, %v7687_v32, %v2330_v14  ;;  %v1334_v23 = vand.u32 2147483648, %v7646_v5  ;;  %v1327_v39 = vadd.f32 %v7693_v49, %v1326_v41 }
 0x2eb   : > { %v2335_v35 = vsel %vm2333_vm5, %v2334_v6, %v2332_v55  ;;  %vm1329_vm8 = vweird.f32 %v7693_v49  ;;  %v2392_v3 = vmul.f32 %v7807_v43, %v7746_v48  ;;  %v7842_v14 = vmax.f32 %v1083_v50, 1e-12 }
 0x2ec   : > { %v7815_v20 = vpop.eup %5414  ;;  %v2352_v11 = vsub.f32 1.5, %v2351_v44  ;;  %v7827_v61 = vmax.f32 %v2335_v35, 1e-12  ;;  %vm1328_vm9 = vweird.f32 %v7646_v5  ;;  %v1332_v41 = vand.u32 2147483647, %v7646_v5 }
 0x2ed   : > { %v7819_v7 = vpop.eup %5416  ;;  %v7823_v31 = vpop.permute.xlu0 %3392  ;;  %v2231_v32 = vmul.f32 %v7815_v20, %v7766_v54  ;;  %v1821_v44 = vmul.f32 %v7733_v42, %v1820_v9  ;;  %vm2355_vm10 = vcmp.eq.f32.partialorder %v7728_v1, inf  ;;  %vm7856_vm11 = vmor %vm1328_vm9, %vm1329_vm8  ;;  %v1335_v55 = vor.u32 1.1754944e-38, %v1334_v23 }
 0x2ee   : > { %10695 = vst [vmem:[#allocation79_spill] sm:$0xff] %v7823_v31  ;;  %v2353_v47 = vmul.f32 %v5411_v60, %v2352_v11  ;;  %v7834_v46 = vpop.eup %5418  ;;  %5422 = vrcp.f32 %v7827_v61  ;;  %v1796_v6 = vmul.f32 %v7819_v7, %v7673_v13  ;;  %v2358_v11 = vand.u32 2147483648, %v7728_v1 }
 0x2ef   : > { %2261 = vperm.xlu0 %5281, %v5642_v45   ;;  %v2232_v21 = vsub.f32 1.0, %v2231_v32  ;;  %5424 = vrsqrt.f32 %v7817_v59  ;;  %v7848_v40 = vpop.eup %5420  ;;  %v2185_v35 = vmul.f32 %v7834_v46, %v7768_v33  ;;  %v1331_v50 = vsel %vm7856_vm11, %v7693_v49, %v1327_v39 }
 0x2f0   : > { %v2354_v60 = vmul.f32 %v2353_v47, %v7728_v1  ;;  %v2393_v32 = vsub.f32 1.0, %v2392_v3  ;;  %vm2357_vm12 = vcmp.eq.f32.partialorder %v7728_v1, 0.0  ;;  %5426 = vrcp.f32 %v7842_v14  ;;  %v10700_v47 = vld [vmem:[#allocation84_spill] sm:$0xff] }
 0x2f1   : > { %v2233_v9 = vmul.f32 %v7815_v20, %v2232_v21  ;;  %vm1333_vm13 = vcmp.eq.f32.partialorder %v1332_v41, 8.507059e+37  ;;  %v1797_v49 = vmul.f32 %v7819_v7, %v1796_v6  ;;  %v1822_v39 = vmul.f32 0.5, %v1821_v44 }
 0x2f2   : > { %v2356_v5 = vsel %vm2355_vm10, %v7728_v1, %v2354_v60  ;;  %v7874_v60 = vmul.f32 %v7848_v40, %v7792_v4  ;;  %v7881_v1 = vsel %vm1333_vm13, %v1335_v55, %v1331_v50  ;;  %v2186_v23 = vmul.f32 %v7834_v46, %v2185_v35 }
 0x2f3   : > { %v2359_v45 = vsel %vm2357_vm12, %v2358_v11, %v2356_v5  ;;  %v2400_v5 = vand.u32 2147483647, %v7746_v48  ;;  %v2234_v6 = vadd.f32 %v7815_v20, %v2233_v9  ;;  %vm2236_vm14 = vweird.f32 %v7815_v20 }
 0x2f4   : > { %v5423_v19 = vpop.eup %5422  ;;  %v7879_v3 = vmax.f32 %v2359_v45, 1e-12  ;;  %v2394_v44 = vmul.f32 %v7807_v43, %v2393_v32  ;;  %vm2396_vm15 = vweird.f32 %v7746_v48  ;;  %v2241_v55 = vand.u32 2147483648, %v7766_v54 }
 0x2f5   : > { %v7877_v21 = vpop.permute.xlu0 %3685  ;;  %v7883_v17 = vpop.eup %5424  ;;  %v2377_v41 = vmul.f32 %v5423_v19, %v7827_v61  ;;  %v2402_v50 = vand.u32 2147483648, %v7746_v48  ;;  %v1310_v45 = vsub.f32 1.0, %v7874_v60  ;;  %vm2235_vm0 = vweird.f32 %v7766_v54 }
 0x2f6   : > { %10701 = vst [vmem:[#allocation84_spill] sm:$0xff] %v7877_v21  ;;  %5428 = vrcp.f32 %v7879_v3  ;;  %v7898_v11 = vpop.eup %5426  ;;  %v2239_v9 = vand.u32 2147483647, %v7766_v54  ;;  %v2387_v32 = vand.u32 2147483648, %v7827_v61  ;;  %v1798_v21 = vmul.f32 0.5, %v1797_v49  ;;  %vm7905_vm1 = vmor %vm2235_vm0, %vm2236_vm14 }
 0x2f7   : > { %2437 = vperm.xlu0 %5281, %v5643_v52   ;;  %v2378_v35 = vsub.f32 1.0, %v2377_v41  ;;  %v7900_v52 = vpop.permute.xlu2 %2607  ;;  %vm2382_vm2 = vweird.f32 %v5423_v19  ;;  %v2385_v22 = vand.u32 2147483647, %v7827_v61  ;;  %vm1826_vm7 = vcmp.eq.f32.partialorder %v7681_v27, inf }
 0x2f8   : > { %10702 = vst [vmem:[#allocation92_spill] sm:$0xff] %v7900_v52  ;;  %v2238_v60 = vsel %vm7905_vm1, %v7815_v20, %v2234_v6  ;;  %v2395_v52 = vadd.f32 %v7807_v43, %v2394_v44  ;;  %vm2397_vm3 = vweird.f32 %v7807_v43  ;;  %v1823_v54 = vsub.f32 1.5, %v1822_v39 }
 0x2f9   : > { %v2379_v41 = vmul.f32 %v5423_v19, %v2378_v35  ;;  %vm1802_vm4 = vcmp.eq.f32.partialorder %v7673_v13, inf  ;;  %v2242_v49 = vor.u32 1.1754944e-38, %v2241_v55  ;;  %vm2381_vm5 = vweird.f32 %v7827_v61  ;;  %vm7936_vm13 = vmor %vm2396_vm15, %vm2397_vm3 }
 0x2fa   : > { %v1128_v35 = vmul.f32 %v7898_v11, %v7842_v14  ;;  %vm1804_vm6 = vcmp.eq.f32.partialorder %v7673_v13, 0.0  ;;  %vm2240_vm8 = vcmp.eq.f32.partialorder %v2239_v9, 8.507059e+37  ;;  %vm2383_vm9 = vmor %vm2381_vm5, %vm2382_vm2  ;;  %v2388_v15 = vor.u32 1.1754944e-38, %v2387_v32 }
 0x2fb   : > { %v2380_v30 = vadd.f32 %v5423_v19, %v2379_v41  ;;  %v1824_v20 = vmul.f32 %v7733_v42, %v1823_v54  ;;  %v1799_v39 = vsub.f32 1.5, %v1798_v21  ;;  %v2243_v6 = vsel %vm2240_vm8, %v2242_v49, %v2238_v60  ;;  %v7948_v54 = vpop.permute.xlu1 %844 }
 0x2fc   : > { %v5429_v57 = vpop.eup %5428  ;;  %vm2386_vm10 = vcmp.eq.f32.partialorder %v2385_v22, 8.507059e+37  ;;  %vm1828_vm11 = vcmp.eq.f32.partialorder %v7681_v27, 0.0  ;;  %vm7926_vm12 = vcmp.eq.f32.partialorder %v2400_v5, 8.507059e+37  ;;  %v1829_v9 = vand.u32 2147483648, %v7681_v27 }
 0x2fd   : > { %v7921_v31 = vpop.permute.xlu0 %3722  ;;  %v2384_v44 = vsel %vm2383_vm9, %v5423_v19, %v2380_v30  ;;  %v2407_v41 = vmul.f32 %v5429_v57, %v7879_v3  ;;  %v1311_v42 = vmul.f32 %v7848_v40, %v1310_v45  ;;  %v1129_v19 = vsub.f32 1.0, %v1128_v35 }
 0x2fe   : > { %10705 = vst [vmem:[#allocation93_spill] sm:$0xff] %v7921_v31  ;;  %v2389_v61 = vsel %vm2386_vm10, %v2388_v15, %v2384_v44  ;;  %v1825_v22 = vmul.f32 %v1824_v20, %v7681_v27  ;;  %v1800_v21 = vmul.f32 %v7819_v7, %v1799_v39  ;;  %v2399_v5 = vsel %vm7936_vm13, %v7807_v43, %v2395_v52  ;;  %v7961_v52 = vld [vmem:[#allocation1 + $0x3] ss:$9 sm:$0xff] }
 0x2ff   : > { %2487 = vperm.xlu0 %5281, %v2243_v6   ;;  %2508 = vperm.xlu2 %5272, %v2389_v61   ;;  %v2408_v32 = vsub.f32 1.0, %v2407_v41  ;;  %vm1314_vm14 = vweird.f32 %v7848_v40  ;;  %v1805_v48 = vand.u32 2147483648, %v7673_v13  ;;  %v2187_v60 = vmul.f32 0.5, %v2186_v23  ;;  %v7956_v15 = vpop.permute.xlu2 %2632  ;;  %10711 = vst [vmem:[#allocation95_spill] sm:$0xff] %v7961_v52  ;;  %v10712_v41 = vld [vmem:[#allocation22_spill] sm:$0xff] }
 0x300   : > { %v2415_v49 = vand.u32 2147483647, %v7879_v3  ;;  %v2417_v45 = vand.u32 2147483648, %v7879_v3  ;;  %v1827_v7 = vsel %vm1826_vm7, %v7681_v27, %v1825_v22  ;;  %v1801_v35 = vmul.f32 %v1800_v21, %v7673_v13  ;;  %10710 = vst [vmem:[#allocation94_spill] sm:$0xff] %v7956_v15 }
 0x301   : > { %v2409_v43 = vmul.f32 %v5429_v57, %v2408_v32  ;;  %vm2412_vm15 = vweird.f32 %v5429_v57  ;;  %vm1313_vm0 = vweird.f32 %v7792_v4  ;;  %v1830_v23 = vsel %vm1828_vm11, %v1829_v9, %v1827_v7  ;;  %2441 = vst [vmem:[#allocation1] sm:$0xff] %v10712_v41  ;;  %v7979_v32 = vld [vmem:[#allocation2] sm:$0xff]  ;;  %v10714_v7 = vld [vmem:[#allocation37_spill] sm:$0xff] }
 0x302   : > { %v2188_v20 = vsub.f32 1.5, %v2187_v60  ;;  %v2403_v39 = vor.u32 1.1754944e-38, %v2402_v50  ;;  %v1130_v6 = vmul.f32 %v7898_v11, %v1129_v19  ;;  %v7964_v44 = vmax.f32 %v1830_v23, 1e-12  ;;  %vm8026_vm10 = vmor %vm1313_vm0, %vm1314_vm14 }
 0x303   : > { %v1803_v61 = vsel %vm1802_vm4, %v7673_v13, %v1801_v35  ;;  %v2410_v30 = vadd.f32 %v5429_v57, %v2409_v43  ;;  %vm2411_vm1 = vweird.f32 %v7879_v3  ;;  %v2418_v19 = vor.u32 1.1754944e-38, %v2417_v45 }
 0x304   : > { %v1806_v27 = vsel %vm1804_vm6, %v1805_v48, %v1803_v61  ;;  %v2189_v9 = vmul.f32 %v7834_v46, %v2188_v20  ;;  %v2404_v50 = vsel %vm7926_vm12, %v2403_v39, %v2399_v5  ;;  %vm2413_vm2 = vmor %vm2411_vm1, %vm2412_vm15  ;;  %v1312_v21 = vadd.f32 %v7848_v40, %v1311_v42  ;;  %v10713_v48 = vld [vmem:[#allocation41_spill] sm:$0xff] }
 0x305   : > { %5430 = vrcp.f32 %v7964_v44  ;;  %v2414_v13 = vsel %vm2413_vm2, %v5429_v57, %v2410_v30  ;;  %vm2416_vm7 = vcmp.eq.f32.partialorder %v2415_v49, 8.507059e+37  ;;  %vm1133_vm3 = vweird.f32 %v7898_v11 }
 0x306   : > { %v441_v22 = vpop.permute.xlu0 %440  ;;  %v2419_v46 = vsel %vm2416_vm7, %v2418_v19, %v2414_v13  ;;  %v1131_v55 = vadd.f32 %v7898_v11, %v1130_v6  ;;  %v7985_v5 = vmax.f32 %v1806_v27, 1e-12  ;;  %v2164_v42 = vsub.f32 1.5, %v7795_v53  ;;  %v10715_v53 = vld [vmem:[#allocation55_spill] sm:$0xff]  ;;  %v8020_v27 = vpop.permute.xlu1 %885 }
 0x307   : > { %v458_v3 = vsub.f32 %v7979_v32, %v441_v22  ;;  %2513 = vperm.xlu0 %5281, %v2404_v50   ;;  %1436 = vperm.xlu2 %5272, %v7881_v1   ;;  %vm1132_vm4 = vweird.f32 %v7842_v14  ;;  %v1138_v57 = vand.u32 2147483648, %v7842_v14  ;;  %v2190_v49 = vmul.f32 %v2189_v9, %v7768_v33  ;;  %v8012_v6 = vld [vmem:[%s6050_s5 + $0x4] ss:$0 sm:$0xff]  ;;  %v10722_v22 = vld [vmem:[#allocation20_spill] sm:$0xff]  ;;  %v8035_v19 = vpop.permute.xlu2 %2644 }
 0x308   : > { %2518 = vperm.xlu1 %5271, %v2419_v46   ;;  %v1136_v45 = vand.u32 2147483647, %v7842_v14  ;;  %5432 = vrcp.f32 %v7985_v5  ;;  %vm2191_vm5 = vcmp.eq.f32.partialorder %v7768_v33, inf  ;;  %v2194_v1 = vand.u32 2147483648, %v7768_v33  ;;  %vm8001_vm8 = vmor %vm1132_vm4, %vm1133_vm3  ;;  %v8005_v20 = vld [vmem:[#allocation1 + $0x3] ss:$9 sm:$0xff] }
 0x309   : > { %v463_v60 = vsub.f32 %v458_v3, %v10713_v48  ;;  %vm1191_vm6 = vcmp.eq.f32.partialorder %v10714_v7, inf  ;;  %v1317_v43 = vand.u32 2147483647, %v7792_v4  ;;  %10718 = vst [vmem:[#allocation41_spill] sm:$0xff] %v8005_v20  ;;  %v2192_v14 = vsel %vm2191_vm5, %v7768_v33, %v2190_v49 }
 0x30a   : > { %vm2193_vm9 = vcmp.eq.f32.partialorder %v7768_v33, 0.0  ;;  %v10719_v61 = vsub.f32 %v7809_v12, %v10696_v18  ;;  %v1135_v33 = vsel %vm8001_vm8, %v7898_v11, %v1131_v55  ;;  %2806 = vst [vmem:[#allocation1] sm:$0xff] %v10722_v22  ;;  %v2165_v50 = vmul.f32 %v7601_v24, %v2164_v42  ;;  %v10724_v11 = vld [vmem:[#allocation54_spill] sm:$0xff] }
 0x30b   : > { %v471_v35 = vadd.f32 %v10715_v53, %v463_v60  ;;  %v8009_v39 = vpop.eup %5430  ;;  %v2195_v18 = vsel %vm2193_vm9, %v2194_v1, %v2192_v14  ;;  %10723 = vst [vmem:[#allocation37_spill] sm:$0xff] %v8035_v19  ;;  %v1316_v13 = vsel %vm8026_vm10, %v7848_v40, %v1312_v21  ;;  %v1139_v46 = vor.u32 1.1754944e-38, %v1138_v57  ;;  %v5646_v40 = vld [vmem:[%s6055_s6 + $0x4] sm:$0x1] }
 0x30c   : > { %v8018_v30 = vsub.f32 %v10719_v61, %v10713_v48  ;;  %v1881_v60 = vmul.f32 %v8009_v39, %v7964_v44  ;;  %v10725_v55 = vsub.f32 %v7613_v36, %v10700_v47  ;;  %v10727_v42 = vand.u32 2147483648, %v7792_v4  ;;  %v5647_v61 = vld [vmem:[#allocation4] sm:$0xff] }
 0x30d   : > { %v8038_v3 = vmul.f32 %v7948_v54, %v471_v35  ;;  %vm1137_vm11 = vcmp.eq.f32.partialorder %v1136_v45, 8.507059e+37  ;;  %v8053_v54 = vmax.f32 %v2195_v18, 1e-12  ;;  %v5645_v35 = vld [vmem:[#allocation2 + $0x8] sm:$0xff]  ;;  %vm1318_vm12 = vcmp.eq.f32.partialorder %v1317_v43, 8.507059e+37 }
 0x30e   : > { %v8049_v49 = vsub.f32 %v10725_v55, %v10724_v11  ;;  %v446_v24 = vpop.permute.xlu0 %445  ;;  %v1320_v1 = vor.u32 1.1754944e-38, %v10727_v42  ;;  %v1140_v21 = vsel %vm1137_vm11, %v1139_v46, %v1135_v33  ;;  %v1882_v57 = vsub.f32 1.0, %v1881_v60  ;;  %v5433_v14 = vpop.eup %5432 }
 0x30f   : > { %v459_v23 = vsub.f32 %v5645_v35, %v446_v24  ;;  %2978 = vperm.xlu0 %5281, %v5646_v40   ;;  %v8057_v47 = vadd.f32 %v5647_v61, %v8012_v6  ;;  %1400 = vperm.xlu2 %5272, %v1140_v21   ;;  %5434 = vrcp.f32 %v8053_v54  ;;  %v2166_v4 = vmul.f32 %v2165_v50, %v7528_v25  ;;  %v8091_v21 = vpop.permute.xlu1 %859 }
 0x310   : > { %10726 = vst [vmem:[#allocation55_spill] sm:$0xff] %v8049_v49  ;;  %v1321_v9 = vsel %vm1318_vm12, %v1320_v1, %v1316_v13  ;;  %v1883_v18 = vmul.f32 %v8009_v39, %v1882_v57  ;;  %vm1886_vm13 = vweird.f32 %v8009_v39  ;;  %v1851_v43 = vmul.f32 %v5433_v14, %v7985_v5 }
 0x311   : > { %v464_v45 = vsub.f32 %v459_v23, %v10713_v48  ;;  %1431 = vperm.xlu1 %5271, %v1321_v9   ;;  %vm1885_vm14 = vweird.f32 %v7964_v44  ;;  %v1889_v33 = vand.u32 2147483647, %v7964_v44  ;;  %v1891_v13 = vand.u32 2147483648, %v7964_v44  ;;  %v8071_v11 = vld [vmem:[#allocation1 + $0x4] ss:$9 sm:$0xff] }
 0x312   : > { %v1859_v46 = vand.u32 2147483647, %v7985_v5  ;;  %v1884_v50 = vadd.f32 %v8009_v39, %v1883_v18  ;;  %v1852_v48 = vsub.f32 1.0, %v1851_v43  ;;  %vm2167_vm15 = vcmp.eq.f32.partialorder %v7528_v25, inf  ;;  %vm8074_vm0 = vmor %vm1885_vm14, %vm1886_vm13  ;;  %2982 = vst [vmem:[#allocation1] sm:$0xff] %v10712_v41  ;;  %v5648_v18 = vld [vmem:[#allocation3 + $0x10] sm:$0xff] }
 0x313   : > { %v472_v60 = vadd.f32 %v10715_v53, %v464_v45  ;;  %vm1856_vm1 = vweird.f32 %v5433_v14  ;;  %v1861_v24 = vand.u32 2147483648, %v7985_v5  ;;  %v2168_v44 = vsel %vm2167_vm15, %v7528_v25, %v2166_v4  ;;  %v10730_v4 = vld [vmem:[#allocation47_spill] sm:$0xff]  ;;  %v8097_v45 = vpop.permute.xlu2 %2673 }
 0x314   : > { %v2170_v42 = vand.u32 2147483648, %v7528_v25  ;;  %v1888_v35 = vsel %vm8074_vm0, %v8009_v39, %v1884_v50  ;;  %v1853_v23 = vmul.f32 %v5433_v14, %v1852_v48  ;;  %vm2169_vm2 = vcmp.eq.f32.partialorder %v7528_v25, 0.0  ;;  %v10731_v50 = vld [vmem:[#allocation53_spill] sm:$0xff] }
 0x315   : > { %v8083_v1 = vmul.f32 %v7770_v0, %v472_v60  ;;  %v8089_v40 = vpop.eup %5434  ;;  %vm1890_vm7 = vcmp.eq.f32.partialorder %v1889_v33, 8.507059e+37  ;;  %v1892_v61 = vor.u32 1.1754944e-38, %v1891_v13  ;;  %v1192_v0 = vsel %vm1191_vm6, %v10714_v7, %v10730_v4  ;;  %v5651_v4 = vld [vmem:[%s6055_s6 + $0x3] ss:$0 sm:$0xff] }
 0x316   : > { %v488_v57 = vpop.permute.xlu0 %487  ;;  %v2171_v9 = vsel %vm2169_vm2, %v2170_v42, %v2168_v44  ;;  %v1854_v43 = vadd.f32 %v5433_v14, %v1853_v23  ;;  %vm1855_vm3 = vweird.f32 %v7985_v5  ;;  %v2246_v25 = vmul.f32 %v8089_v40, %v8053_v54 }
 0x317   : > { %v497_v39 = vsub.f32 %v5648_v18, %v488_v57  ;;  %v1893_v60 = vsel %vm1890_vm7, %v1892_v61, %v1888_v35  ;;  %vm1857_vm4 = vmor %vm1855_vm3, %vm1856_vm1  ;;  %v1862_v33 = vor.u32 1.1754944e-38, %v1861_v24  ;;  %v8103_v13 = vmax.f32 %v2171_v9, 1e-12  ;;  %v10732_v24 = vld [vmem:[#allocation56_spill] sm:$0xff]  ;;  %v8118_v9 = vld [vmem:[#allocation6 + $0x18] sm:$0xff] }
 0x318   : > { %vm1193_vm5 = vcmp.eq.f32.partialorder %v10714_v7, 0.0  ;;  %v1858_v55 = vsel %vm1857_vm4, %v5433_v14, %v1854_v43  ;;  %vm1860_vm6 = vcmp.eq.f32.partialorder %v1859_v46, 8.507059e+37  ;;  %v2247_v44 = vsub.f32 1.0, %v2246_v25  ;;  %v10733_v46 = vld [vmem:[#allocation51_spill] sm:$0xff] }
 0x319   : > { %v502_v48 = vsub.f32 %v497_v39, %v10731_v50  ;;  %1982 = vperm.xlu1 %5271, %v1893_v60   ;;  %v2681_v5 = vsub.f32 %v8057_v47, %v7451_v2  ;;  %v1863_v42 = vsel %vm1860_vm6, %v1862_v33, %v1858_v55  ;;  %v2256_v35 = vand.u32 2147483648, %v8053_v54  ;;  %v5649_v47 = vld [vmem:[#allocation4 + $0x18] sm:$0xff] }
 0x31a   : > { %5436 = vrcp.f32 %v8103_v13  ;;  %1972 = vperm.xlu2 %5272, %v1863_v42   ;;  %v2248_v57 = vmul.f32 %v8089_v40, %v2247_v44  ;;  %vm2251_vm8 = vweird.f32 %v8089_v40  ;;  %v2254_v14 = vand.u32 2147483647, %v8053_v54  ;;  %v5301_v43 = vld [vmem:[%s6055_s6 + $0x4] ss:$0 sm:$0xff]  ;;  %v5302_v33 = vld [vmem:[%s6050_s5 + $0x5] ss:$0 sm:$0xff] }
 0x31b   : > { %v510_v23 = vadd.f32 %v10732_v24, %v502_v48  ;;  %v498_v2 = vsub.f32 %v7613_v36, %v10733_v46  ;;  %v2668_v61 = vadd.f32 %v5649_v47, %v8012_v6  ;;  %v2303_v18 = vadd.f32 %v5651_v4, %v8118_v9  ;;  %v5652_v55 = vld [vmem:[%s6050_s5 + $0x2] ss:$0 sm:$0xff] }
 0x31c   : > { %v8124_v39 = vadd.f32 %v10715_v53, %v8018_v30  ;;  %v1097_v25 = vmul.f32 %v7883_v17, %v7817_v59  ;;  %v2249_v36 = vadd.f32 %v8089_v40, %v2248_v57  ;;  %vm2250_vm9 = vweird.f32 %v8053_v54  ;;  %v5654_v30 = vld [vmem:[#allocation6 + $0x8] sm:$0xff] }
 0x31d   : > { %v8130_v60 = vmul.f32 %v8020_v27, %v510_v23  ;;  %v8135_v48 = vmax.f32 %v2681_v5, 0.0  ;;  %v1586_v44 = vadd.f32 %v5652_v55, %v5649_v47  ;;  %vm8140_vm10 = vmor %vm2250_vm9, %vm2251_vm8  ;;  %v2257_v46 = vor.u32 1.1754944e-38, %v2256_v35  ;;  %v8152_v5 = vld [vmem:[#allocation7] sm:$0x1]  ;;  %v8161_v55 = vpop.permute.xlu1 %2603 }
 0x31e   : > { %v808_v42 = vpop.permute.xlu0 %807  ;;  %v10736_v27 = vand.u32 2147483648, %v10714_v7  ;;  %v2667_v54 = vadd.f32 %v7583_v34, %v8012_v6  ;;  %vm1748_vm11 = vweird.f32 %v7054_v28  ;;  %vm1749_vm12 = vweird.f32 %v10666_v29  ;;  %v10737_v7 = vld [vmem:[#allocation42_spill] sm:$0xff]  ;;  %10738 = vst [vmem:[#allocation54_spill] sm:$0xff] %v8161_v55 }
 0x31f   : > { %v810_v57 = vadd.f32 %v8152_v5, %v808_v42  ;;  %v2253_v35 = vsel %vm8140_vm10, %v8089_v40, %v2249_v36  ;;  %vm2255_vm13 = vcmp.eq.f32.partialorder %v2254_v14, 8.507059e+37  ;;  %vm1913_vm14 = vcmp.eq.f32.partialorder %v10737_v7, inf  ;;  %v8168_v42 = vld [vmem:[%s6055_s6 + $0x5] ss:$0 sm:$0xff]  ;;  %v2846_v14 = vpop.permute.xlu2 %2845  ;;  %vm8223_vm2 = vmor %vm1748_vm11, %vm1749_vm12 }
 0x320   : > { %v1195_v23 = vsel %vm1193_vm5, %v10736_v27, %v1192_v0  ;;  %v5437_v47 = vpop.eup %5436  ;;  %v2684_v0 = vsub.f32 %v2668_v61, %v7513_v38  ;;  %v2319_v4 = vsub.f32 %v2303_v18, %v7666_v58  ;;  %v2841_v27 = vadd.f32 %v7657_v10, %v5301_v43  ;;  %v10739_v61 = vld [vmem:[#allocation87_spill] sm:$0xff] }
 0x321   : > { %v2258_v31 = vsel %vm2255_vm13, %v2257_v46, %v2253_v35  ;;  %v8165_v19 = vsub.f32 %v498_v2, %v10731_v50  ;;  %v2842_v40 = vadd.f32 %v5654_v30, %v5301_v43  ;;  %v812_v36 = vsub.f32 %v810_v57, %v10712_v41 }
 0x322   : > { %2492 = vperm.xlu1 %5271, %v2258_v31   ;;  %v2216_v38 = vmul.f32 %v5437_v47, %v8103_v13  ;;  %v8173_v58 = vmul.f32 %v7883_v17, %v1097_v25  ;;  %v3208_v46 = vadd.f32 %v7583_v34, %v5302_v33  ;;  %v8178_v50 = vmax.f32 %v1195_v23, 1e-12 }
 0x323   : > { %5438 = vrsqrt.f32 %v8135_v48  ;;  %v2683_v2 = vsub.f32 %v2667_v54, %v8097_v45  ;;  %v8182_v43 = vmax.f32 %v812_v36, 0.0  ;;  %v8184_v31 = vmax.f32 %v2684_v0, 0.0 }
 0x324   : > { %v2217_v57 = vsub.f32 1.0, %v2216_v38  ;;  %v8186_v35 = vmax.f32 %v2319_v4, 0.0  ;;  %v1602_v25 = vsub.f32 %v1586_v44, %v7542_v51  ;;  %v2857_v30 = vsub.f32 %v2841_v27, %v2846_v14  ;;  %v10741_v14 = vld [vmem:[#allocation30_spill] sm:$0xff] }
 0x325   : > { %10740 = vst [vmem:[#allocation47_spill] sm:$0xff] %v8184_v31  ;;  %v2858_v18 = vsub.f32 %v2842_v40, %v7568_v26  ;;  %v3382_v34 = vadd.f32 %v7657_v10, %v8168_v42  ;;  %5440 = vrsqrt.f32 %v8182_v43  ;;  %v2226_v33 = vand.u32 2147483648, %v8103_v13 }
 0x326   : > { %v3224_v45 = vsub.f32 %v3208_v46, %v7730_v62  ;;  %v2218_v23 = vmul.f32 %v5437_v47, %v2217_v57  ;;  %vm2221_vm15 = vweird.f32 %v5437_v47  ;;  %v2224_v54 = vand.u32 2147483647, %v8103_v13  ;;  %v8217_v46 = vpop.permute.xlu1 %2611 }
 0x327   : > { %v8196_v0 = vmax.f32 %v2683_v2, 0.0  ;;  %v1752_v51 = vand.u32 2147483647, %v7054_v28  ;;  %v1754_v44 = vand.u32 2147483648, %v7054_v28  ;;  %5442 = vrcp.f32 %v8178_v50  ;;  %10743 = vst [vmem:[#allocation56_spill] sm:$0xff] %v8217_v46 }
 0x328   : > { %5444 = vrsqrt.f32 %v8184_v31  ;;  %v8202_v26 = vmax.f32 %v2857_v30, 0.0  ;;  %v2219_v10 = vadd.f32 %v5437_v47, %v2218_v23  ;;  %vm2220_vm0 = vweird.f32 %v8103_v13  ;;  %v10747_v30 = vld [vmem:[#allocation89_spill] sm:$0xff] }
 0x329   : > { %v8205_v62 = vpop.eup %5438  ;;  %5446 = vrsqrt.f32 %v8186_v35  ;;  %v8208_v4 = vmax.f32 %v1602_v25, 0.0  ;;  %v8210_v27 = vmax.f32 %v2858_v18, 0.0  ;;  %vm2222_vm1 = vmor %vm2220_vm0, %vm2221_vm15  ;;  %v2227_v40 = vor.u32 1.1754944e-38, %v2226_v33  ;;  %v10746_v25 = vld [vmem:[#allocation52_spill] sm:$0xff] }
 0x32a   : > { %2849 = vrot.lane.b32.xlu1 %v10741_v14, %s5886_s26  ;;  %v8214_v36 = vmax.f32 %v3224_v45, 0.0  ;;  %v3398_v38 = vsub.f32 %v3382_v34, %v7772_v63  ;;  %v2223_v18 = vsel %vm2222_vm1, %v5437_v47, %v2219_v10  ;;  %vm2225_vm7 = vcmp.eq.f32.partialorder %v2224_v54, 8.507059e+37  ;;  %v10748_v45 = vld [vmem:[#allocation60_spill] sm:$0xff] }
 0x32b   : > { %v5441_v2 = vpop.eup %5440  ;;  %5448 = vrsqrt.f32 %v8196_v0  ;;  %v2228_v57 = vsel %vm2225_vm7, %v2227_v40, %v2223_v18  ;;  %v1914_v63 = vsel %vm1913_vm14, %v10737_v7, %v10746_v25  ;;  %vm1915_vm3 = vcmp.eq.f32.partialorder %v10737_v7, 0.0 }
 0x32c   : > { %10742 = vst [vmem:[#allocation53_spill] sm:$0xff] %v8214_v36  ;;  %v2614_v28 = vsub.f32 %v7979_v32, %v10747_v30  ;;  %5450 = vrsqrt.f32 %v8202_v26  ;;  %v1755_v34 = vor.u32 1.1754944e-38, %v1754_v44  ;;  %v815_v47 = vmul.f32 %v5441_v2, %v8182_v43  ;;  %2482 = vperm.xlu2 %5272, %v2228_v57  }
 0x32d   : > { %v8237_v33 = vpop.eup %5442  ;;  %v984_v23 = vsub.f32 %v7809_v12, %v10748_v45  ;;  %5452 = vrsqrt.f32 %v8208_v4  ;;  %v1751_v54 = vsel %vm8223_vm2, %v10666_v29, %v7790_v37  ;;  %vm1753_vm4 = vcmp.eq.f32.partialorder %v1752_v51, 8.507059e+37 }
 0x32e   : > { %v8246_v32 = vpop.eup %5444  ;;  %v2690_v44 = vmul.f32 %v8205_v62, %v8135_v48  ;;  %5454 = vrsqrt.f32 %v8210_v27  ;;  %v816_v10 = vmul.f32 %v5441_v2, %v815_v47  ;;  %v10749_v40 = vand.u32 2147483648, %v10737_v7 }
 0x32f   : > { %v8253_v57 = vpop.eup %5446  ;;  %v511_v25 = vadd.f32 %v10732_v24, %v8165_v19  ;;  %5456 = vrsqrt.f32 %v8214_v36  ;;  %v8258_v29 = vmax.f32 %v3398_v38, 0.0  ;;  %v3385_v37 = vadd.f32 %v8118_v9, %v8168_v42 }
 0x330   : > { %v1917_v18 = vsel %vm1915_vm3, %v10749_v40, %v1914_v63  ;;  %v1535_v51 = vsub.f32 %v7809_v12, %v7393_v8  ;;  %v1756_v13 = vsel %vm1753_vm4, %v1755_v34, %v1751_v54  ;;  %v817_v30 = vmul.f32 0.5, %v816_v10  ;;  %v10754_v34 = vld [vmem:[#allocation67_spill] sm:$0xff]  ;;  %v10757_v40 = vld [vmem:[#allocation57_spill] sm:$0xff] }
 0x331   : > { %10750 = vst [vmem:[#allocation51_spill] sm:$0xff] %v8258_v29  ;;  %v1198_v7 = vmul.f32 %v8237_v33, %v8178_v50  ;;  %v8266_v63 = vpop.eup %5448  ;;  %v1099_v47 = vmul.f32 0.5, %v8173_v58  ;;  %v10751_v19 = vsub.f32 %v7809_v12, %v10739_v61  ;;  %v8276_v9 = vsub.f32 %v2614_v28, %v7616_v16  ;;  %v10756_v58 = vld [vmem:[#allocation71_spill] sm:$0xff] }
 0x332   : > { %v8278_v42 = vmax.f32 %v1917_v18, 1e-12  ;;  %v8280_v8 = vpop.eup %5450  ;;  %v8283_v45 = vsub.f32 %v984_v23, %v10754_v34  ;;  %v2691_v54 = vmul.f32 %v8205_v62, %v2690_v44  ;;  %v818_v10 = vsub.f32 1.5, %v817_v30  ;;  %v10758_v61 = vld [vmem:[#allocation79_spill] sm:$0xff]  ;;  %v8305_v34 = vpop.permute.xlu1 %2640 }
 0x333   : > { %v8273_v38 = vsub.f32 %v10751_v19, %v6898_v56  ;;  %10753 = vst [vmem:[#allocation87_spill] sm:$0xff] %v8276_v9  ;;  %v8288_v41 = vadd.f32 %v10757_v40, %v10756_v58  ;;  %v8290_v12 = vpop.eup %5452  ;;  %v2726_v56 = vmul.f32 %v8246_v32, %v8184_v31  ;;  %5458 = vrsqrt.f32 %v8258_v29  ;;  %v10759_v19 = vld [vmem:[#allocation65_spill] sm:$0xff] }
 0x334   : > { %10755 = vst [vmem:[#allocation52_spill] sm:$0xff] %v8283_v45  ;;  %v3401_v28 = vsub.f32 %v3385_v37, %v10758_v61  ;;  %v8296_v18 = vperm.slane %v1756_v13, 0  ;;  %v8298_v23 = vpop.eup %5454  ;;  %v8301_v44 = vsub.f32 %v1535_v51, %v10759_v19  ;;  %v2714_v30 = vmul.f32 %v8266_v63, %v8196_v0 }
 0x335   : > { %10752 = vst [vmem:[#allocation42_spill] sm:$0xff] %v8273_v38  ;;  %v819_v58 = vmul.f32 %v5441_v2, %v818_v10  ;;  %v1199_v14 = vsub.f32 1.0, %v1198_v7  ;;  %v8307_v15 = vpop.eup %5456  ;;  %v2866_v46 = vmul.f32 %v8280_v8, %v8202_v26  ;;  %vm821_vm5 = vcmp.eq.f32.partialorder %v8182_v43, inf }
 0x336   : > { %10760 = vst [vmem:[#allocation89_spill] sm:$0xff] %v8301_v44  ;;  %v824_v37 = vand.u32 2147483648, %v8182_v43  ;;  %5460 = vrcp.f32 %v8278_v42  ;;  %v2692_v51 = vmul.f32 0.5, %v2691_v54  ;;  %v2361_v13 = vmul.f32 %v8253_v57, %v8186_v35  ;;  %v10764_v44 = vld [vmem:[#allocation50_spill] sm:$0xff] }
 0x337   : > { %10761 = vst [vmem:[#allocation60_spill] sm:$0xff] %v8305_v34  ;;  %v820_v61 = vmul.f32 %v819_v58, %v8182_v43  ;;  %vm823_vm6 = vcmp.eq.f32.partialorder %v8182_v43, 0.0  ;;  %v8319_v2 = vmul.f32 %v8246_v32, %v2726_v56  ;;  %v1644_v7 = vmul.f32 %v8290_v12, %v8208_v4  ;;  %v10763_v56 = vld [vmem:[#allocation39_spill] sm:$0xff] }
 0x338   : > { %10762 = vst [vmem:[#allocation67_spill] sm:$0xff] %v8307_v15  ;;  %v2878_v10 = vmul.f32 %v8298_v23, %v8210_v27  ;;  %v8325_v19 = vmax.f32 %v3401_v28, 0.0  ;;  %v3255_v54 = vmul.f32 %v8307_v15, %v8214_v36  ;;  %v865_v34 = vmul.f32 %v8091_v21, %v8124_v39 }
 0x339   : > { %v822_v58 = vsel %vm821_vm5, %v8182_v43, %v820_v61  ;;  %v1100_v9 = vsub.f32 1.5, %v1099_v47  ;;  %v8332_v38 = vpop.eup %5458  ;;  %v8336_v22 = vmul.f32 %v10764_v44, %v10763_v56  ;;  %v2715_v45 = vmul.f32 %v8266_v63, %v2714_v30  ;;  %v10765_v30 = vld [vmem:[#allocation81_spill] sm:$0xff] }
 0x33a   : > { %v2867_v28 = vmul.f32 %v8280_v8, %v2866_v46  ;;  %v825_v55 = vsel %vm823_vm6, %v824_v37, %v822_v58  ;;  %v8341_v16 = vmul.f32 %v8253_v57, %v2361_v13  ;;  %v1200_v36 = vmul.f32 %v8237_v33, %v1199_v14  ;;  %v2672_v58 = vpop.permute.xlu1 %2671 }
 0x33b   : > { %v8344_v21 = vmax.f32 %v825_v55, 1e-12  ;;  %v1101_v39 = vmul.f32 %v7883_v17, %v1100_v9  ;;  %v1645_v47 = vmul.f32 %v8290_v12, %v1644_v7  ;;  %v8351_v44 = vmul.f32 %v8298_v23, %v2878_v10  ;;  %v10766_v17 = vld [vmem:[#allocation91_spill] sm:$0xff]  ;;  %v1937_v9 = vpop.permute.xlu2 %1936  ;;  %v855_v10 = vpop.permute.xlu0 %854 }
 0x33c   : > { %v8347_v43 = vpop.eup %5460  ;;  %v8354_v61 = vmul.f32 %v10765_v30, %v511_v25  ;;  %5462 = vrsqrt.f32 %v8325_v19  ;;  %v8358_v46 = vmul.f32 %v8307_v15, %v3255_v54  ;;  %v8362_v55 = vmul.f32 %v8332_v38, %v8258_v29  ;;  %v5655_v25 = vld [vmem:[#allocation4 + $0x8] sm:$0xff] }
 0x33d   : > { %v8365_v14 = vmul.f32 %v10766_v17, %v865_v34  ;;  %5464 = vrcp.f32 %v8344_v21  ;;  %v8368_v37 = vmul.f32 0.5, %v2715_v45  ;;  %v2868_v13 = vmul.f32 0.5, %v2867_v28  ;;  %v10767_v29 = vld [vmem:[#allocation72_spill] sm:$0xff]  ;;  %v10768_v45 = vld [vmem:[#allocation78_spill] sm:$0xff] }
 0x33e   : > { %v2666_v7 = vadd.f32 %v5655_v25, %v8012_v6  ;;  %v1102_v54 = vmul.f32 %v1101_v39, %v7817_v59  ;;  %vm1103_vm8 = vcmp.eq.f32.partialorder %v7817_v59, inf  ;;  %v1106_v56 = vand.u32 2147483648, %v7817_v59 }
 0x33f   : > { %v1920_v34 = vmul.f32 %v8347_v43, %v8278_v42  ;;  %v2693_v30 = vsub.f32 1.5, %v2692_v51  ;;  %v8377_v15 = vmul.f32 %v1937_v9, %v10767_v29  ;;  %v473_v28 = vadd.f32 %v10715_v53, %v10768_v45 }
 0x340   : > { %v1104_v6 = vsel %vm1103_vm8, %v7817_v59, %v1102_v54  ;;  %vm1105_vm9 = vcmp.eq.f32.partialorder %v7817_v59, 0.0  ;;  %v8385_v39 = vmul.f32 %v10766_v17, %v8038_v3  ;;  %v1646_v52 = vmul.f32 0.5, %v1645_v47 }
 0x341   : > { %v1107_v25 = vsel %vm1105_vm9, %v1106_v56, %v1104_v6  ;;  %v2694_v20 = vmul.f32 %v8205_v62, %v2693_v30  ;;  %v2682_v51 = vsub.f32 %v2666_v7, %v2672_v58  ;;  %v8391_v29 = vadd.f32 %v8237_v33, %v1200_v36  ;;  %v10769_v6 = vld [vmem:[#allocation88_spill] sm:$0xff] }
 0x342   : > { %v8388_v49 = vpop.eup %5462  ;;  %v864_v9 = vmul.f32 %v855_v10, %v473_v28  ;;  %v8393_v53 = vmax.f32 %v1107_v25, 1e-12  ;;  %v1921_v45 = vsub.f32 1.0, %v1920_v34  ;;  %v1647_v31 = vsub.f32 1.5, %v1646_v52 }
 0x343   : > { %v5465_v54 = vpop.eup %5464  ;;  %v2695_v59 = vmul.f32 %v2694_v20, %v8135_v48  ;;  %v2869_v3 = vsub.f32 1.5, %v2868_v13  ;;  %vm832_vm10 = vweird.f32 %v8344_v21  ;;  %v836_v62 = vand.u32 2147483647, %v8344_v21  ;;  %v881_v28 = vpop.permute.xlu0 %880 }
 0x344   : > { %v828_v56 = vmul.f32 %v5465_v54, %v8344_v21  ;;  %5466 = vrcp.f32 %v8393_v53  ;;  %vm833_vm11 = vweird.f32 %v5465_v54  ;;  %v838_v36 = vand.u32 2147483648, %v8344_v21 }
 0x345   : > { %vm2696_vm12 = vcmp.eq.f32.partialorder %v8135_v48, inf  ;;  %v2699_v47 = vand.u32 2147483648, %v8135_v48  ;;  %v1648_v52 = vmul.f32 %v8290_v12, %v1647_v31  ;;  %v2870_v13 = vmul.f32 %v8280_v8, %v2869_v3  ;;  %v8416_v31 = vpop.permute.xlu1 %2802  ;;  %vm8423_vm0 = vmor %vm832_vm10, %vm833_vm11 }
 0x346   : > { %v829_v7 = vsub.f32 1.0, %v828_v56  ;;  %v2697_v20 = vsel %vm2696_vm12, %v8135_v48, %v2695_v59  ;;  %v8406_v10 = vmax.f32 %v2682_v51, 0.0  ;;  %v871_v58 = vmul.f32 %v10766_v17, %v864_v9 }
 0x347   : > { %v8410_v34 = vmul.f32 %v8347_v43, %v1921_v45  ;;  %vm2698_vm13 = vcmp.eq.f32.partialorder %v8135_v48, 0.0  ;;  %v509_v25 = vadd.f32 %v10732_v24, %v10769_v6  ;;  %v1649_v59 = vmul.f32 %v1648_v52, %v8208_v4 }
 0x348   : > { %v830_v30 = vmul.f32 %v5465_v54, %v829_v7  ;;  %v2700_v56 = vsel %vm2698_vm13, %v2699_v47, %v2697_v20  ;;  %vm1202_vm14 = vweird.f32 %v8178_v50  ;;  %vm1203_vm15 = vweird.f32 %v8237_v33 }
 0x349   : > { %v839_v48 = vor.u32 1.1754944e-38, %v838_v36  ;;  %v870_v24 = vmul.f32 %v10766_v17, %v8083_v1  ;;  %v8429_v12 = vmax.f32 %v2700_v56, 1e-12  ;;  %vm1650_vm1 = vcmp.eq.f32.partialorder %v8208_v4, inf  ;;  %vm8474_vm10 = vmor %vm1202_vm14, %vm1203_vm15 }
 0x34a   : > { %v5467_v51 = vpop.eup %5466  ;;  %v831_v9 = vadd.f32 %v5465_v54, %v830_v30  ;;  %vm837_vm2 = vcmp.eq.f32.partialorder %v836_v62, 8.507059e+37  ;;  %v1651_v45 = vsel %vm1650_vm1, %v8208_v4, %v1649_v59  ;;  %v2871_v3 = vmul.f32 %v2870_v13, %v8202_v26 }
 0x34b   : > { %v1158_v21 = vmul.f32 %v5467_v51, %v8393_v53  ;;  %v894_v47 = vmul.f32 %v881_v28, %v509_v25  ;;  %5468 = vrcp.f32 %v8429_v12  ;;  %v1653_v36 = vand.u32 2147483648, %v8208_v4 }
 0x34c   : > { %v835_v1 = vsel %vm8423_vm0, %v5465_v54, %v831_v9  ;;  %vm1162_vm7 = vweird.f32 %v8393_v53  ;;  %v1168_v17 = vand.u32 2147483648, %v8393_v53  ;;  %vm1652_vm3 = vcmp.eq.f32.partialorder %v8208_v4, 0.0 }
 0x34d   : > { %v840_v62 = vsel %vm837_vm2, %v839_v48, %v835_v1  ;;  %v1159_v7 = vsub.f32 1.0, %v1158_v21  ;;  %v1654_v20 = vsel %vm1652_vm3, %v1653_v36, %v1651_v45  ;;  %vm2872_vm4 = vcmp.eq.f32.partialorder %v8202_v26, inf }
 0x34e   : > { %v898_v52 = vperm.slane %v840_v62, 0  ;;  %v1166_v13 = vand.u32 2147483647, %v8393_v53  ;;  %v8444_v30 = vmax.f32 %v1654_v20, 1e-12  ;;  %v2873_v28 = vsel %vm2872_vm4, %v8202_v26, %v2871_v3 }
 0x34f   : > { %v1160_v6 = vmul.f32 %v5467_v51, %v1159_v7  ;;  %vm1163_vm5 = vweird.f32 %v5467_v51  ;;  %vm2874_vm6 = vcmp.eq.f32.partialorder %v8202_v26, 0.0  ;;  %v2875_v54 = vand.u32 2147483648, %v8202_v26 }
 0x350   : > { %v900_v4 = vmul.f32 %v898_v52, %v8336_v22  ;;  %v902_v25 = vmul.f32 %v898_v52, %v8130_v60  ;;  %v903_v56 = vmul.f32 %v898_v52, %v8354_v61  ;;  %v901_v59 = vmul.f32 %v898_v52, %v894_v47  ;;  %vm1164_vm8 = vmor %vm1162_vm7, %vm1163_vm5  ;;  %v8467_v60 = vpop.permute.xlu1 %1395 }
 0x351   : > { %v5469_v8 = vpop.eup %5468  ;;  %v1161_v48 = vadd.f32 %v5467_v51, %v1160_v6  ;;  %v1169_v9 = vor.u32 1.1754944e-38, %v1168_v17  ;;  %5470 = vrcp.f32 %v8444_v30  ;;  %v2876_v45 = vsel %vm2874_vm6, %v2875_v54, %v2873_v28  ;;  %v8499_v6 = vld [vmem:[#allocation5] sm:$0x1] }
 0x352   : > { %v8454_v3 = vsub.f32 %v8385_v39, %v900_v4  ;;  %v8456_v21 = vsub.f32 %v871_v58, %v902_v25  ;;  %v8459_v26 = vsub.f32 %v8365_v14, %v903_v56  ;;  %v8464_v22 = vsub.f32 %v870_v24, %v901_v59  ;;  %v1355_v24 = vpop.permute.xlu0 %1354 }
 0x353   : > { %5472 = vrsqrt.f32 %v8406_v10  ;;  %v1165_v61 = vsel %vm1164_vm8, %v5467_v51, %v1161_v48  ;;  %vm1167_vm9 = vcmp.eq.f32.partialorder %v1166_v13, 8.507059e+37  ;;  %v2742_v39 = vmul.f32 %v5469_v8, %v8429_v12 }
 0x354   : > { %v1208_v53 = vand.u32 2147483648, %v8178_v50  ;;  %v1170_v58 = vsel %vm1167_vm9, %v1169_v9, %v1165_v61  ;;  %vm1924_vm11 = vweird.f32 %v8278_v42  ;;  %vm1925_vm12 = vweird.f32 %v8347_v43 }
 0x355   : > { %1410 = vperm.xlu2 %5272, %v1170_v58   ;;  %v1928_v51 = vand.u32 2147483647, %v8278_v42  ;;  %v1930_v47 = vand.u32 2147483648, %v8278_v42  ;;  %v2743_v36 = vsub.f32 1.0, %v2742_v39  ;;  %v8483_v1 = vmax.f32 %v2876_v45, 1e-12  ;;  %vm8494_vm13 = vmor %vm1924_vm11, %vm1925_vm12 }
 0x356   : > { %v1206_v17 = vand.u32 2147483647, %v8178_v50  ;;  %v1923_v62 = vadd.f32 %v8347_v43, %v8410_v34  ;;  %v2750_v7 = vand.u32 2147483647, %v8429_v12  ;;  %v2752_v20 = vand.u32 2147483648, %v8429_v12  ;;  %v10778_v39 = vld [vmem:[#allocation25_spill] sm:$0xff] }
 0x357   : > { %v5471_v52 = vpop.eup %5470  ;;  %v1205_v13 = vsel %vm8474_vm10, %v8237_v33, %v8391_v29  ;;  %v2744_v28 = vmul.f32 %v5469_v8, %v2743_v36  ;;  %vm2747_vm14 = vweird.f32 %v5469_v8  ;;  %v1357_v50 = vadd.f32 %v8152_v5, %v1355_v24 }
 0x358   : > { %v8503_v34 = vadd.f32 %v8499_v6, %v8416_v31  ;;  %v8505_v54 = vor.u32 1.1754944e-38, %v1208_v53  ;;  %v1705_v4 = vmul.f32 %v5471_v52, %v8444_v30  ;;  %5474 = vrcp.f32 %v8483_v1  ;;  %v1968_v36 = vpop.permute.xlu1 %1967 }
 0x359   : > { %v8509_v25 = vpop.eup %5472  ;;  %vm8511_vm15 = vcmp.eq.f32.partialorder %v1928_v51, 8.507059e+37  ;;  %v1931_v59 = vor.u32 1.1754944e-38, %v1930_v47  ;;  %v2745_v5 = vadd.f32 %v5469_v8, %v2744_v28  ;;  %vm2746_vm0 = vweird.f32 %v8429_v12 }
 0x35a   : > { %v1927_v31 = vsel %vm8494_vm13, %v8347_v43, %v1923_v62  ;;  %vm2748_vm1 = vmor %vm2746_vm0, %vm2747_vm14  ;;  %vm2751_vm2 = vcmp.eq.f32.partialorder %v2750_v7, 8.507059e+37  ;;  %v2753_v48 = vor.u32 1.1754944e-38, %v2752_v20  ;;  %v1706_v9 = vsub.f32 1.0, %v1705_v4  ;;  %v10779_v20 = vld [vmem:[#allocation70_spill] sm:$0xff] }
 0x35b   : > { %v2749_v45 = vsel %vm2748_vm1, %v5469_v8, %v2745_v5  ;;  %v1715_v61 = vand.u32 2147483648, %v8444_v30  ;;  %v1363_v53 = vsub.f32 %v1357_v50, %v10778_v39  ;;  %v2363_v58 = vmul.f32 0.5, %v8341_v16  ;;  %v10780_v16 = vld [vmem:[#allocation62_spill] sm:$0xff] }
 0x35c   : > { %v2754_v24 = vsel %vm2751_vm2, %v2753_v48, %v2749_v45  ;;  %v1707_v51 = vmul.f32 %v5471_v52, %v1706_v9  ;;  %vm1710_vm7 = vweird.f32 %v5471_v52  ;;  %v1713_v12 = vand.u32 2147483647, %v8444_v30 }
 0x35d   : > { %v8525_v47 = vmul.f32 %v8509_v25, %v8406_v10  ;;  %v2810_v43 = vsub.f32 %v8503_v34, %v8071_v11  ;;  %3018 = vperm.xlu1 %5271, %v2754_v24   ;;  %v8529_v8 = vmax.f32 %v1363_v53, 0.0  ;;  %v2364_v62 = vsub.f32 1.5, %v2363_v58 }
 0x35e   : > { %v5475_v7 = vpop.eup %5474  ;;  %v1578_v42 = vadd.f32 %v10780_v16, %v10779_v20  ;;  %v1708_v28 = vadd.f32 %v5471_v52, %v1707_v51  ;;  %vm1709_vm3 = vweird.f32 %v8444_v30  ;;  %v2717_v50 = vsub.f32 1.5, %v8368_v37 }
 0x35f   : > { %vm8535_vm4 = vcmp.eq.f32.partialorder %v1206_v17, 8.507059e+37  ;;  %v1932_v11 = vsel %vm8511_vm15, %v1931_v59, %v1927_v31  ;;  %vm1711_vm5 = vmor %vm1709_vm3, %vm1710_vm7  ;;  %v1716_v34 = vor.u32 1.1754944e-38, %v1715_v61  ;;  %v2918_v5 = vmul.f32 %v5475_v7, %v8483_v1 }
 0x360   : > { %5476 = vrsqrt.f32 %v8529_v8  ;;  %v1985_v48 = vmul.f32 %v1968_v36, %v1578_v42  ;;  %v1712_v9 = vsel %vm1711_vm5, %v5471_v52, %v1708_v28  ;;  %vm1714_vm6 = vcmp.eq.f32.partialorder %v1713_v12, 8.507059e+37 }
 0x361   : > { %v2365_v30 = vmul.f32 %v8253_v57, %v2364_v62  ;;  %v1717_v37 = vsel %vm1714_vm6, %v1716_v34, %v1712_v9  ;;  %v2919_v17 = vsub.f32 1.0, %v2918_v5  ;;  %vm2922_vm8 = vweird.f32 %v8483_v1  ;;  %v10783_v5 = vld [vmem:[#allocation90_spill] sm:$0xff] }
 0x362   : > { %v2718_v45 = vmul.f32 %v8266_v63, %v2717_v50  ;;  %1951 = vperm.xlu2 %5272, %v1717_v37   ;;  %v2926_v56 = vand.u32 2147483647, %v8483_v1  ;;  %v2928_v59 = vand.u32 2147483648, %v8483_v1  ;;  %vm2367_vm9 = vcmp.eq.f32.partialorder %v8186_v35, inf  ;;  %v8571_v1 = vld [vmem:[#allocation3 + $0x18] sm:$0xff] }
 0x363   : > { %v2366_v31 = vmul.f32 %v2365_v30, %v8186_v35  ;;  %v2920_v61 = vmul.f32 %v5475_v7, %v2919_v17  ;;  %vm2923_vm11 = vweird.f32 %v5475_v7  ;;  %v2370_v52 = vand.u32 2147483648, %v8186_v35 }
 0x364   : > { %v2719_v57 = vmul.f32 %v2718_v45, %v8196_v0  ;;  %vm2369_vm12 = vcmp.eq.f32.partialorder %v8186_v35, 0.0  ;;  %vm2720_vm13 = vcmp.eq.f32.partialorder %v8196_v0, inf  ;;  %v2723_v63 = vand.u32 2147483648, %v8196_v0  ;;  %vm2924_vm15 = vmor %vm2922_vm8, %vm2923_vm11  ;;  %v10784_v45 = vld [vmem:[#allocation92_spill] sm:$0xff] }
 0x365   : > { %v2368_v39 = vsel %vm2367_vm9, %v8186_v35, %v2366_v31  ;;  %v2921_v58 = vadd.f32 %v5475_v7, %v2920_v61  ;;  %vm2722_vm14 = vcmp.eq.f32.partialorder %v8196_v0, 0.0  ;;  %v2929_v12 = vor.u32 1.1754944e-38, %v2928_v59 }
 0x366   : > { %v5477_v53 = vpop.eup %5476  ;;  %v2371_v24 = vsel %vm2369_vm12, %v2370_v52, %v2368_v39  ;;  %v2721_v51 = vsel %vm2720_vm13, %v8196_v0, %v2719_v57  ;;  %v8564_v20 = vperm.slane %v1932_v11, 0  ;;  %vm2927_vm0 = vcmp.eq.f32.partialorder %v2926_v56, 8.507059e+37 }
 0x367   : > { %v1366_v36 = vmul.f32 %v5477_v53, %v8529_v8  ;;  %v8562_v62 = vmax.f32 %v2371_v24, 1e-12  ;;  %v2724_v35 = vsel %vm2722_vm14, %v2723_v63, %v2721_v51  ;;  %v2925_v42 = vsel %vm2924_vm15, %v5475_v7, %v2921_v58  ;;  %v8626_v63 = vpop.permute.xlu1 %2477 }
 0x368   : > { %v8566_v28 = vmax.f32 %v2724_v35, 1e-12  ;;  %v3408_v50 = vmul.f32 %v8332_v38, %v8362_v55  ;;  %v2930_v34 = vsel %vm2927_vm0, %v2929_v12, %v2925_v42  ;;  %v8576_v30 = vmul.f32 0.5, %v8319_v2 }
 0x369   : > { %v1367_v0 = vmul.f32 %v5477_v53, %v1366_v36  ;;  %5478 = vrcp.f32 %v8562_v62  ;;  %v1992_v7 = vmul.f32 %v8564_v20, %v1985_v48  ;;  %3049 = vperm.xlu0 %5281, %v2930_v34   ;;  %v8580_v11 = vmax.f32 %v2810_v43, 0.0  ;;  %v8591_v48 = vld [vmem:[#allocation2 + $0x10] sm:$0xff] }
 0x36a   : > { %5480 = vrcp.f32 %v8566_v28  ;;  %v1210_v55 = vsel %vm8535_vm4, %v8505_v54, %v1205_v13  ;;  %v427_v37 = vlaneseq  ;;  %v2880_v17 = vmul.f32 0.5, %v8351_v44 }
 0x36b   : > { %v1368_v2 = vmul.f32 0.5, %v1367_v0  ;;  %v1961_v43 = vmul.f32 %v8296_v18, %v8377_v15  ;;  %v2703_v14 = vmul.f32 %v8509_v25, %v8525_v47  ;;  %v8600_v33 = vmul.f32 0.5, %v8358_v46 }
 0x36c   : > { %v8602_v29 = vmul.f32 0.5, %v3408_v50  ;;  %v8606_v13 = vmul.f32 %v8388_v49, %v8325_v19  ;;  %v1413_v54 = vmul.f32 %v8467_v60, %v8288_v41  ;;  %v8610_v4 = vperm.slane %v1210_v55, 0 }
 0x36d   : > { %v1369_v44 = vsub.f32 1.5, %v1368_v2  ;;  %v8613_v59 = vstv %s6044_s29  ;;  %v1996_v15 = vsub.f32 %v1961_v43, %v1992_v7  ;;  %5482 = vrsqrt.f32 %v8580_v11 }
 0x36e   : > { %v8616_v46 = vshrl.u32 %v427_v37, 7  ;;  %v8618_v47 = vand.u32 127, %v427_v37  ;;  %v2704_v57 = vmul.f32 0.5, %v2703_v14  ;;  %vm1372_vm10 = vcmp.eq.f32.partialorder %v8529_v8, inf }
 0x36f   : > { %v5479_v31 = vpop.eup %5478  ;;  %v1370_v61 = vmul.f32 %v5477_v53, %v1369_v44  ;;  %v1375_v39 = vand.u32 2147483648, %v8529_v8  ;;  %vm1374_vm1 = vcmp.eq.f32.partialorder %v8529_v8, 0.0  ;;  %v8631_v53 = vpop.permute.xlu0 %1426  ;;  %v8634_v51 = vmul.f32 %v8610_v4, %v1413_v54 }
 0x370   : > { %10785 = vst [vmem:[#allocation71_spill] sm:$0xff] %v8616_v46  ;;  %v5481_v52 = vpop.eup %5480  ;;  %v2422_v41 = vmul.f32 %v5479_v31, %v8562_v62  ;;  %v8624_v60 = vadd.s32 16, %v8616_v46  ;;  %v2000_v12 = vand.u32 2147483647, %v1996_v15  ;;  %v2008_v36 = vmul.f32 0.5, %v1996_v15 }
 0x371   : > { %v1371_v58 = vmul.f32 %v1370_v61, %v8529_v8  ;;  %v2772_v24 = vmul.f32 %v5481_v52, %v8566_v28  ;;  %v2430_v50 = vand.u32 2147483647, %v8562_v62  ;;  %v2432_v34 = vand.u32 2147483648, %v8562_v62 }
 0x372   : > { %v2423_v35 = vsub.f32 1.0, %v2422_v41  ;;  %vm2427_vm2 = vweird.f32 %v5479_v31  ;;  %v2782_v55 = vand.u32 2147483648, %v8566_v28  ;;  %vm2777_vm7 = vweird.f32 %v5481_v52 }
 0x373   : > { %v1373_v42 = vsel %vm1372_vm10, %v8529_v8, %v1371_v58  ;;  %v2773_v0 = vsub.f32 1.0, %v2772_v24  ;;  %v8640_v2 = vpop.eup %5482  ;;  %v2780_v14 = vand.u32 2147483647, %v8566_v28  ;;  %v8645_v8 = vmul.f32 %v2008_v36, %v1996_v15 }
 0x374   : > { %v2424_v7 = vmul.f32 %v5479_v31, %v2423_v35  ;;  %v1376_v37 = vsel %vm1374_vm1, %v1375_v39, %v1373_v42  ;;  %vm2426_vm3 = vweird.f32 %v8562_v62  ;;  %v2881_v61 = vsub.f32 1.5, %v2880_v17 }
 0x375   : > { %v2774_v43 = vmul.f32 %v5481_v52, %v2773_v0  ;;  %v8643_v44 = vmax.f32 %v1376_v37, 1e-12  ;;  %vm2428_vm4 = vmor %vm2426_vm3, %vm2427_vm2  ;;  %v2433_v41 = vor.u32 1.1754944e-38, %v2432_v34  ;;  %vm2776_vm5 = vweird.f32 %v8566_v28  ;;  %v10788_v0 = vld [vmem:[#allocation40_spill] sm:$0xff] }
 0x376   : > { %v2425_v54 = vadd.f32 %v5479_v31, %v2424_v7  ;;  %vm2431_vm6 = vcmp.eq.f32.partialorder %v2430_v50, 8.507059e+37  ;;  %vm2778_vm8 = vmor %vm2776_vm5, %vm2777_vm7  ;;  %v2783_v24 = vor.u32 1.1754944e-38, %v2782_v55  ;;  %v2882_v15 = vmul.f32 %v8298_v23, %v2881_v61  ;;  %v8664_v23 = vpop.permute.xlu1 %1405  ;;  %v10790_v61 = vld [vmem:[#allocation82_spill] sm:$0xff] }
 0x377   : > { %v2775_v58 = vadd.f32 %v5481_v52, %v2774_v43  ;;  %5484 = vrcp.f32 %v8643_v44  ;;  %v8653_v36 = vadd.f32 -0.5, %v2000_v12  ;;  %vm2781_vm9 = vcmp.eq.f32.partialorder %v2780_v14, 8.507059e+37  ;;  %v8655_v17 = vpop.permute.xlu0 %1441 }
 0x378   : > { %v2429_v39 = vsel %vm2428_vm4, %v5479_v31, %v2425_v54  ;;  %vm8657_vm11 = vcmp.lt.f32.partialorder %v2000_v12, 1.0  ;;  %v2883_v31 = vmul.f32 %v2882_v15, %v8210_v27  ;;  %v2705_v50 = vsub.f32 1.5, %v2704_v57 }
 0x379   : > { %v2434_v35 = vsel %vm2431_vm6, %v2433_v41, %v2429_v39  ;;  %v2779_v62 = vsel %vm2778_vm8, %v5481_v52, %v2775_v58  ;;  %v8662_v34 = vstv %s1511_s25  ;;  %v10789_v52 = vld [vmem:[#allocation58_spill] sm:$0xff]  ;;  %vm2884_vm12 = vcmp.eq.f32.partialorder %v8210_v27, inf  ;;  %s5114_s25 = spop %5113 }
 0x37a   : > { %2523 = vperm.xlu2 %5272, %v2434_v35   ;;  %v2784_v28 = vsel %vm2781_vm9, %v2783_v24, %v2779_v62  ;;  %v1027_v7 = vadd.f32 %v10789_v52, %v10788_v0  ;;  %v2887_v12 = vand.u32 2147483648, %v8210_v27  ;;  %v2885_v55 = vsel %vm2884_vm12, %v8210_v27, %v2883_v31 }
 0x37b   : > { %3028 = vperm.xlu1 %5271, %v2784_v28   ;;  %vm2886_vm13 = vcmp.eq.f32.partialorder %v8210_v27, 0.0  ;;  %v2706_v37 = vmul.f32 %v8509_v25, %v2705_v50  ;;  %v2729_v57 = vsub.f32 1.5, %v8576_v30  ;;  %v8681_v41 = vadd.f32 %v10757_v40, %v10790_v61  ;;  %v10791_v50 = vld [vmem:[#allocation47_spill] sm:$0xff] }
 0x37c   : > { %v2888_v58 = vsel %vm2886_vm13, %v2887_v12, %v2885_v55  ;;  %vm1383_vm14 = vweird.f32 %v8643_v44  ;;  %v1387_v39 = vand.u32 2147483647, %v8643_v44  ;;  %v1389_v24 = vand.u32 2147483648, %v8643_v44 }
 0x37d   : > { %v5485_v43 = vpop.eup %5484  ;;  %v8686_v25 = vmax.f32 %v2888_v58, 1e-12  ;;  %v2707_v30 = vmul.f32 %v2706_v37, %v8406_v10  ;;  %vm2708_vm15 = vcmp.eq.f32.partialorder %v8406_v10, inf  ;;  %v2730_v15 = vmul.f32 %v8246_v32, %v2729_v57  ;;  %v10792_v37 = vld [vmem:[#allocation36_spill] sm:$0xff] }
 0x37e   : > { %v1379_v27 = vmul.f32 %v5485_v43, %v8643_v44  ;;  %vm1384_vm0 = vweird.f32 %v5485_v43  ;;  %v2711_v62 = vand.u32 2147483648, %v8406_v10  ;;  %v8695_v28 = vstv %s960_s28  ;;  %s3134_s28 = sadd.s32 5, %s6044_s29 }
 0x37f   : > { %5486 = vrcp.f32 %v8686_v25  ;;  %v2709_v31 = vsel %vm2708_vm15, %v8406_v10, %v2707_v30  ;;  %vm2710_vm10 = vcmp.eq.f32.partialorder %v8406_v10, 0.0  ;;  %v2731_v0 = vmul.f32 %v2730_v15, %v10791_v50  ;;  %v8700_v12 = vpop.permute.xlu0 %1941  ;;  %vm8708_vm2 = vmor %vm1383_vm14, %vm1384_vm0 }
 0x380   : > { %v1380_v35 = vsub.f32 1.0, %v1379_v27  ;;  %v2712_v32 = vsel %vm2710_vm10, %v2711_v62, %v2709_v31  ;;  %vm2732_vm1 = vcmp.eq.f32.partialorder %v10791_v50, inf  ;;  %v2735_v57 = vand.u32 2147483648, %v10791_v50 }
 0x381   : > { %v1390_v10 = vor.u32 1.1754944e-38, %v1389_v24  ;;  %v8712_v58 = vmax.f32 %v2712_v32, 1e-12  ;;  %v2733_v27 = vsel %vm2732_vm1, %v10791_v50, %v2731_v0  ;;  %vm2734_vm7 = vcmp.eq.f32.partialorder %v10791_v50, 0.0  ;;  %v10795_v50 = vld [vmem:[#allocation76_spill] sm:$0xff] }
 0x382   : > { %v1381_v55 = vmul.f32 %v5485_v43, %v1380_v35  ;;  %2851 = vrot.lane.b32.xlu2 %v10792_v37, %s5886_s26  ;;  %vm937_vm3 = vcmp.ne.s32.totalorder %v8618_v47, %v8613_v59  ;;  %vm933_vm4 = vcmp.ne.s32.totalorder %v8616_v46, %v8613_v59  ;;  %vm1388_vm5 = vcmp.eq.f32.partialorder %v1387_v39, 8.507059e+37  ;;  %v1947_v35 = vpop.permute.xlu1 %1946  ;;  %v10796_v39 = vld [vmem:[#allocation61_spill] sm:$0xff]  ;;  %s2052_s26 = sadd.s32 3, %s6044_s29 }
 0x383   : > { %v2736_v44 = vsel %vm2734_vm7, %v2735_v57, %v2733_v27  ;;  %vm1484_vm6 = vcmp.ne.s32.totalorder %v8616_v46, %v8695_v28  ;;  %vm1488_vm8 = vcmp.ne.s32.totalorder %v8618_v47, %v8695_v28  ;;  %v908_v24 = vand.u32 2147483647, %v8454_v3  ;;  %vm8779_vm10 = vmand %vm933_vm4, %vm937_vm3 }
 0x384   : > { %v1382_v30 = vadd.f32 %v5485_v43, %v1381_v55  ;;  %v916_v15 = vmul.f32 0.5, %v8454_v3  ;;  %5488 = vrcp.f32 %v8712_v58  ;;  %v1547_v0 = vadd.f32 %v10796_v39, %v10795_v50  ;;  %v10797_v55 = vld [vmem:[#allocation55_spill] sm:$0xff] }
 0x385   : > { %v5487_v62 = vpop.eup %5486  ;;  %v1030_v32 = vadd.f32 %v10789_v52, %v10797_v55  ;;  %v8733_v57 = vmax.f32 %v2736_v44, 1e-12  ;;  %vm2025_vm9 = vcmp.ne.s32.totalorder %v8616_v46, %v8662_v34  ;;  %vm2029_vm12 = vcmp.ne.s32.totalorder %v8618_v47, %v8662_v34 }
 0x386   : > { %v1386_v31 = vsel %vm8708_vm2, %v5485_v43, %v1382_v30  ;;  %v1444_v56 = vmul.f32 %v8631_v53, %v1027_v7  ;;  %v2933_v61 = vmul.f32 %v5487_v62, %v8686_v25  ;;  %v10798_v43 = vld [vmem:[#allocation49_spill] sm:$0xff]  ;;  %v1956_v9 = vmul.f32 %v1947_v35, %v1547_v0  ;;  %vm8792_vm2 = vmand %vm1484_vm6, %vm1488_vm8 }
 0x387   : > { %v1391_v27 = vsel %vm1388_vm5, %v1390_v10, %v1386_v31  ;;  %v1580_v30 = vadd.f32 %v10780_v16, %v10798_v43  ;;  %v1447_v44 = vmul.f32 %v8655_v17, %v1030_v32  ;;  %5490 = vrcp.f32 %v8733_v57  ;;  %v1978_v31 = vpop.permute.xlu0 %1977  ;;  %v8757_v17 = vpop.permute.xlu2 %2508  ;;  %vm2040_vm5 = vmand %vm2025_vm9, %vm2029_vm12 }
 0x388   : > { %v8743_v50 = vperm.slane %v1391_v27, 0  ;;  %v920_v55 = vmul.f32 %v916_v15, %v8454_v3  ;;  %v5004_v14 = vadd.f32 -0.5, %v908_v24  ;;  %v2934_v54 = vsub.f32 1.0, %v2933_v61 }
 0x389   : > { %v2943_v10 = vand.u32 2147483648, %v8686_v25  ;;  %vm8749_vm13 = vcmp.lt.f32.partialorder %v908_v24, 1.0  ;;  %v1987_v35 = vmul.f32 %v1978_v31, %v1580_v30  ;;  %v1415_v3 = vmul.f32 %v8664_v23, %v8681_v41 }
 0x38a   : > { %v1451_v7 = vmul.f32 %v8743_v50, %v1444_v56  ;;  %v8755_v27 = vmul.f32 %v8743_v50, %v1447_v44  ;;  %v5489_v0 = vpop.eup %5488  ;;  %v2935_v15 = vmul.f32 %v5487_v62, %v2934_v54  ;;  %vm2938_vm14 = vweird.f32 %v5487_v62 }
 0x38b   : > { %v2941_v32 = vand.u32 2147483647, %v8686_v25  ;;  %v1963_v61 = vmul.f32 %v8296_v18, %v1956_v9  ;;  %v2757_v56 = vmul.f32 %v5489_v0, %v8712_v58  ;;  %v1994_v43 = vmul.f32 %v8564_v20, %v1987_v35 }
 0x38c   : > { %v1455_v24 = vsub.f32 %v8634_v51, %v1451_v7  ;;  %v928_v30 = vsel %vm8749_vm13, %v920_v55, %v5004_v14  ;;  %v2936_v44 = vadd.f32 %v5487_v62, %v2935_v15  ;;  %vm2937_vm15 = vweird.f32 %v8686_v25 }
 0x38d   : > { %v2944_v31 = vor.u32 1.1754944e-38, %v2943_v10  ;;  %v8769_v23 = vpop.eup %5490  ;;  %vm2939_vm0 = vmor %vm2937_vm15, %vm2938_vm14  ;;  %v2758_v37 = vsub.f32 1.0, %v2757_v56  ;;  %v8771_v51 = vsub.f32 %v1963_v61, %v1994_v43  ;;  %vm2942_vm1 = vcmp.eq.f32.partialorder %v2941_v32, 8.507059e+37 }
 0x38e   : > { %v1459_v54 = vand.u32 2147483647, %v1455_v24  ;;  %v1467_v41 = vmul.f32 0.5, %v1455_v24  ;;  %v2940_v14 = vsel %vm2939_vm0, %v5487_v62, %v2936_v44  ;;  %v2767_v25 = vand.u32 2147483648, %v8712_v58 }
 0x38f   : > { %v2787_v55 = vmul.f32 %v8769_v23, %v8733_v57  ;;  %v2945_v35 = vsel %vm2942_vm1, %v2944_v31, %v2940_v14  ;;  %v2759_v15 = vmul.f32 %v5489_v0, %v2758_v37  ;;  %vm2762_vm4 = vweird.f32 %v5489_v0  ;;  %v2262_v56 = vpop.permute.xlu0 %2261  ;;  %v1437_v44 = vpop.permute.xlu2 %1436  ;;  %v10807_v31 = vld [vmem:[#allocation85_spill] sm:$0xff] }
 0x390   : > { %vm8796_vm7 = vcmp.lt.f32.partialorder %v1459_v54, 1.0  ;;  %v1471_v62 = vmul.f32 %v1467_v41, %v1455_v24  ;;  %v5014_v7 = vadd.f32 -0.5, %v1459_v54  ;;  %3054 = vperm.xlu1 %5271, %v2945_v35   ;;  %v2765_v32 = vand.u32 2147483647, %v8712_v58 }
 0x391   : > { %v2788_v61 = vsub.f32 1.0, %v2787_v55  ;;  %v952_v43 = vsel %vm8779_vm10, %v928_v30, 0.0  ;;  %v2264_v37 = vadd.f32 %v8499_v6, %v2262_v56  ;;  %v1029_v54 = vadd.f32 %v10789_v52, %v10807_v31 }
 0x392   : > { %v1479_v24 = vsel %vm8796_vm7, %v1471_v62, %v5014_v7  ;;  %v2760_v14 = vadd.f32 %v5489_v0, %v2759_v15  ;;  %vm2761_vm6 = vweird.f32 %v8712_v58  ;;  %v918_v9 = vmul.f32 0.5, %v8456_v21  ;;  %v10808_v62 = vld [vmem:[#allocation95_spill] sm:$0xff] }
 0x393   : > { %v1503_v41 = vsel %vm8792_vm2, %v1479_v24, 0.0  ;;  %v2789_v55 = vmul.f32 %v8769_v23, %v2788_v61  ;;  %vm2763_vm9 = vmor %vm2761_vm6, %vm2762_vm4  ;;  %v2768_v53 = vor.u32 1.1754944e-38, %v2767_v25  ;;  %v2269_v6 = vsub.f32 %v2264_v37, %v10808_v62 }
 0x394   : > { %v1507_v30 = vadd.f32 %v1503_v41, %v952_v43  ;;  %v10809_v7 = vsel %vm8657_vm11, %v8645_v8, %v8653_v36  ;;  %v2764_v35 = vsel %vm2763_vm9, %v5489_v0, %v2760_v14  ;;  %vm2766_vm13 = vcmp.eq.f32.partialorder %v2765_v32, 8.507059e+37 }
 0x395   : > { %v2044_v10 = vsel %vm2040_vm5, %v10809_v7, 0.0  ;;  %v1446_v15 = vmul.f32 %v1437_v44, %v1029_v54  ;;  %vm935_vm14 = vcmp.ne.s32.totalorder %v8624_v60, %v8613_v59  ;;  %v2769_v61 = vsel %vm2766_vm13, %v2768_v53, %v2764_v35 }
 0x396   : > { %v8828_v58 = vadd.f32 %v2044_v10, %v1507_v30  ;;  %v8830_v56 = vmax.f32 %v2269_v6, 0.0  ;;  %v1422_v25 = vmul.f32 %v8610_v4, %v1415_v3  ;;  %3023 = vperm.xlu2 %5272, %v2769_v61   ;;  %v2790_v42 = vadd.f32 %v8769_v23, %v2789_v55  ;;  %v10816_v55 = vld [vmem:[#allocation18_spill] sm:$0xff]  ;;  %vm950_vm2 = vmand %vm935_vm14, %vm937_vm3 }
 0x397   : > { %vm2792_vm15 = vweird.f32 %v8769_v23  ;;  %v1453_v8 = vmul.f32 %v8743_v50, %v1446_v15  ;;  %v922_v36 = vmul.f32 %v918_v9, %v8456_v21  ;;  %v10811_v0 = vand.u32 2147483647, %v8456_v21  ;;  %v2438_v54 = vpop.permute.xlu0 %2437  ;;  %v8862_v9 = vld [vmem:[#allocation7] sm:$0x1]  ;;  %v8865_v30 = vpop.permute.xlu2 %1400 }
 0x398   : > { %10810 = vst [vmem:[#allocation57_spill] sm:$0xff] %v8828_v58  ;;  %v2797_v43 = vand.u32 2147483648, %v8733_v57  ;;  %5492 = vrsqrt.f32 %v8830_v56  ;;  %v10815_v37 = vmov 5   ;;  %vm2791_vm0 = vweird.f32 %v8733_v57 }
 0x399   : > { %v5006_v32 = vadd.f32 -0.5, %v10811_v0  ;;  %v10812_v24 = vmov %v10811_v0  ;;  %5273 = vset.pattern.permute.xlu1 %v10815_v37  ;;  %v2795_v44 = vand.u32 2147483647, %v8733_v57  ;;  %v1457_v31 = vsub.f32 %v1422_v25, %v1453_v8  ;;  %vm8856_vm10 = vmor %vm2791_vm0, %vm2792_vm15  ;;  %v10820_v8 = vld [vmem:[#allocation63_spill] sm:$0xff] }
 0x39a   : > { %vm8843_vm11 = vcmp.lt.f32.partialorder %v10812_v24, 1.0  ;;  %v3258_v41 = vsub.f32 1.5, %v8600_v33  ;;  %v2813_v14 = vmul.f32 %v8640_v2, %v8580_v11  ;;  %3140 = vperm.xlu1 %5273, %v10816_v55   ;;  %vm1486_vm1 = vcmp.ne.s32.totalorder %v8624_v60, %v8695_v28 }
 0x39b   : > { %v2440_v57 = vadd.f32 %v8862_v9, %v2438_v54  ;;  %v3444_v33 = vmul.f32 %v8388_v49, %v8606_v13  ;;  %v2794_v53 = vsel %vm8856_vm10, %v8769_v23, %v2790_v42  ;;  %v1461_v62 = vand.u32 2147483647, %v1457_v31  ;;  %v10819_v13 = vld [vmem:[#allocation41_spill] sm:$0xff]  ;;  %vm1501_vm4 = vmand %vm1486_vm1, %vm1488_vm8 }
 0x39c   : > { %v1469_v6 = vmul.f32 0.5, %v1457_v31  ;;  %v3410_v7 = vsub.f32 1.5, %v8602_v29  ;;  %v930_v10 = vsel %vm8843_vm11, %v922_v36, %v5006_v32  ;;  %v2798_v35 = vor.u32 1.1754944e-38, %v2797_v43 }
 0x39d   : > { %v2445_v15 = vsub.f32 %v2440_v57, %v10819_v13  ;;  %vm2796_vm7 = vcmp.eq.f32.partialorder %v2795_v44, 8.507059e+37  ;;  %vm1465_vm5 = vcmp.lt.f32.partialorder %v1461_v62, 1.0  ;;  %v5016_v23 = vadd.f32 -0.5, %v1461_v62 }
 0x39e   : > { %v1473_v29 = vmul.f32 %v1469_v6, %v1457_v31  ;;  %v5493_v61 = vpop.eup %5492  ;;  %v2814_v25 = vmul.f32 %v8640_v2, %v2813_v14  ;;  %v2799_v42 = vsel %vm2796_vm7, %v2798_v35, %v2794_v53  ;;  %v1546_v0 = vadd.f32 %v10796_v39, %v10820_v8  ;;  %v10821_v31 = vld [vmem:[#allocation59_spill] sm:$0xff]  ;;  %v10822_v6 = vld [vmem:[#allocation69_spill] sm:$0xff] }
 0x39f   : > { %v8888_v24 = vmax.f32 %v2445_v15, 0.0  ;;  %v3445_v36 = vmul.f32 0.5, %v3444_v33  ;;  %v954_v32 = vsel %vm950_vm2, %v930_v10, 0.0  ;;  %3033 = vperm.xlu2 %5272, %v2799_v42   ;;  %v2272_v43 = vmul.f32 %v5493_v61, %v8830_v56  ;;  %v8897_v33 = vpop.permute.xlu0 %2487  ;;  %v10827_v42 = vld [vmem:[#allocation34_spill] sm:$0xff]  ;;  %v1973_v8 = vpop.permute.xlu2 %1972 }
 0x3a0   : > { %v1481_v3 = vsel %vm1465_vm5, %v1473_v29, %v5016_v23  ;;  %v1955_v44 = vmul.f32 %v8700_v12, %v1546_v0  ;;  %v1579_v14 = vadd.f32 %v10780_v16, %v10821_v31  ;;  %v2002_v21 = vand.u32 2147483647, %v8771_v51  ;;  %v10824_v12 = vld [vmem:[#allocation75_spill] sm:$0xff] }
 0x3a1   : > { %v1505_v54 = vsel %vm1501_vm4, %v1481_v3, 0.0  ;;  %5494 = vrsqrt.f32 %v8888_v24  ;;  %v2010_v57 = vmul.f32 0.5, %v8771_v51  ;;  %v2273_v53 = vmul.f32 %v5493_v61, %v2272_v43  ;;  %v10828_v0 = vld [vmem:[#allocation67_spill] sm:$0xff] }
 0x3a2   : > { %v1509_v62 = vadd.f32 %v1505_v54, %v954_v32  ;;  %v10823_v10 = vsub.f32 %v8571_v1, %v10783_v5  ;;  %v10825_v13 = vsub.f32 %v8591_v48, %v10784_v45  ;;  %v2815_v29 = vmul.f32 0.5, %v2814_v25  ;;  %3152 = vperm.xlu1 %5273, %v10827_v42  }
 0x3a3   : > { %v917_v23 = vmul.f32 0.5, %v8464_v22  ;;  %v3259_v32 = vmul.f32 %v10828_v0, %v3258_v41  ;;  %v909_v43 = vand.u32 2147483647, %v8464_v22  ;;  %v2274_v3 = vmul.f32 0.5, %v2273_v53 }
 0x3a4   : > { %v8903_v35 = vsub.f32 %v10823_v10, %v10822_v6  ;;  %v8909_v15 = vsub.f32 %v10825_v13, %v10824_v12  ;;  %v1986_v1 = vmul.f32 %v1973_v8, %v1579_v14  ;;  %v3411_v5 = vmul.f32 %v8332_v38, %v3410_v7  ;;  %v10837_v8 = vld [vmem:[#allocation51_spill] sm:$0xff] }
 0x3a5   : > { %v3446_v54 = vsub.f32 1.5, %v3445_v36  ;;  %v8917_v31 = vadd.s32 8, %v8616_v46  ;;  %v1962_v48 = vmul.f32 %v8296_v18, %v1955_v44  ;;  %v2014_v45 = vmul.f32 %v2010_v57, %v8771_v51 }
 0x3a6   : > { %10826 = vst [vmem:[#allocation79_spill] sm:$0xff] %v8909_v15  ;;  %v5026_v25 = vadd.f32 -0.5, %v2002_v21  ;;  %v2275_v6 = vsub.f32 1.5, %v2274_v3  ;;  %v1993_v10 = vmul.f32 %v8564_v20, %v1986_v1  ;;  %v2816_v41 = vsub.f32 1.5, %v2815_v29  ;;  %v10836_v29 = vld [vmem:[#allocation53_spill] sm:$0xff] }
 0x3a7   : > { %10829 = vst [vmem:[#allocation65_spill] sm:$0xff] %v8917_v31  ;;  %v5495_v13 = vpop.eup %5494  ;;  %v921_v0 = vmul.f32 %v917_v23, %v8464_v22  ;;  %vm2027_vm6 = vcmp.ne.s32.totalorder %v8624_v60, %v8662_v34  ;;  %vm8925_vm9 = vcmp.lt.f32.partialorder %v2002_v21, 1.0  ;;  %v5005_v7 = vadd.f32 -0.5, %v909_v43  ;;  %v8956_v1 = vld [vmem:[#allocation2 + $0x8] sm:$0xff] }
 0x3a8   : > { %v2276_v36 = vmul.f32 %v5493_v61, %v2275_v6  ;;  %v2448_v44 = vmul.f32 %v5495_v13, %v8888_v24  ;;  %v1997_v51 = vsub.f32 %v1962_v48, %v1993_v10  ;;  %vm934_vm13 = vcmp.ne.s32.totalorder %v8917_v31, %v8613_v59  ;;  %vm8941_vm11 = vmand %vm2027_vm6, %vm2029_vm12  ;;  %v10839_v10 = vld [vmem:[#allocation27_spill] sm:$0xff]  ;;  %v10842_v6 = vld [vmem:[#allocation48_spill] sm:$0xff] }
 0x3a9   : > { %vm8932_vm14 = vcmp.lt.f32.partialorder %v909_v43, 1.0  ;;  %vm2278_vm15 = vcmp.eq.f32.partialorder %v8830_v56, inf  ;;  %v2281_v22 = vand.u32 2147483648, %v8830_v56  ;;  %v2022_v61 = vsel %vm8925_vm9, %v2014_v45, %v5026_v25  ;;  %v8961_v45 = vpop.permute.xlu0 %2513  ;;  %vm949_vm10 = vmand %vm934_vm13, %vm937_vm3 }
 0x3aa   : > { %v2277_v57 = vmul.f32 %v2276_v36, %v8830_v56  ;;  %vm2280_vm0 = vcmp.eq.f32.partialorder %v8830_v56, 0.0  ;;  %v2449_v53 = vmul.f32 %v5495_v13, %v2448_v44  ;;  %v3260_v23 = vmul.f32 %v3259_v32, %v10836_v29  ;;  %3177 = vperm.xlu1 %5273, %v10839_v10   ;;  %v10840_v32 = vld [vmem:[#allocation73_spill] sm:$0xff] }
 0x3ab   : > { %v8951_v43 = vmul.f32 %v3411_v5, %v10837_v8  ;;  %v8954_v3 = vmul.f32 %v8388_v49, %v3446_v54  ;;  %v929_v49 = vsel %vm8932_vm14, %v921_v0, %v5005_v7  ;;  %v10841_v5 = vld [vmem:[#allocation68_spill] sm:$0xff]  ;;  %v8977_v36 = vmul.f32 %v8640_v2, %v2816_v41  ;;  %v10843_v2 = vld [vmem:[#allocation74_spill] sm:$0xff] }
 0x3ac   : > { %v2086_v54 = vadd.f32 %v10841_v5, %v10840_v32  ;;  %v2279_v25 = vsel %vm2278_vm15, %v8830_v56, %v2277_v57  ;;  %v2450_v38 = vmul.f32 0.5, %v2449_v53  ;;  %v2046_v44 = vsel %vm8941_vm11, %v2022_v61, 0.0  ;;  %v10844_v41 = vld [vmem:[#allocation38_spill] sm:$0xff]  ;;  %v8994_v61 = vpop.permute.xlu1 %2518 }
 0x3ad   : > { %v995_v10 = vadd.f32 %v10757_v40, %v10842_v6  ;;  %v2282_v0 = vsel %vm2280_vm0, %v2281_v22, %v2279_v25  ;;  %v2001_v32 = vand.u32 2147483647, %v1997_v51  ;;  %v2009_v42 = vmul.f32 0.5, %v1997_v51  ;;  %v10845_v22 = vld [vmem:[#allocation86_spill] sm:$0xff] }
 0x3ae   : > { %v2451_v7 = vsub.f32 1.5, %v2450_v38  ;;  %v8985_v14 = vmax.f32 %v2282_v0, 1e-12  ;;  %v8987_v55 = vsel %vm949_vm10, %v929_v49, 0.0  ;;  %v8990_v57 = vmul.f32 %v8626_v63, %v2086_v54  ;;  %v10846_v49 = vld [vmem:[#allocation83_spill] sm:$0xff]  ;;  %v10847_v38 = vld [vmem:[#allocation46_spill] sm:$0xff] }
 0x3af   : > { %v2119_v21 = vadd.f32 %v10844_v41, %v10843_v2  ;;  %v8996_v53 = vadd.f32 %v2046_v44, %v1509_v62  ;;  %v1414_v56 = vmul.f32 %v8865_v30, %v995_v10  ;;  %v2088_v25 = vadd.f32 %v10841_v5, %v10845_v22  ;;  %v10848_v44 = vld [vmem:[#allocation21_spill] sm:$0xff]  ;;  %v10851_v2 = vld [vmem:[#allocation80_spill] sm:$0xff] }
 0x3b0   : > { %v2452_v6 = vmul.f32 %v5495_v13, %v2451_v7  ;;  %5496 = vrcp.f32 %v8985_v14  ;;  %vm2454_vm1 = vcmp.eq.f32.partialorder %v8888_v24, inf  ;;  %v2457_v63 = vand.u32 2147483648, %v8888_v24 }
 0x3b1   : > { %v2121_v54 = vadd.f32 %v10844_v41, %v10846_v49  ;;  %v2087_v0 = vadd.f32 %v10841_v5, %v10847_v38  ;;  %vm2456_vm2 = vcmp.eq.f32.partialorder %v8888_v24, 0.0  ;;  %v2013_v30 = vmul.f32 %v2009_v42, %v1997_v51  ;;  %v10852_v49 = vld [vmem:[#allocation66_spill] sm:$0xff] }
 0x3b2   : > { %v2453_v62 = vmul.f32 %v2452_v6, %v8888_v24  ;;  %v5025_v13 = vadd.f32 -0.5, %v2001_v32  ;;  %v9011_v10 = vmul.f32 %v8757_v17, %v2119_v21  ;;  %3210 = vrot.lane.b32.xlu1 %v10848_v44, %s5888_s18  ;;  %vm9015_vm7 = vcmp.lt.f32.partialorder %v2001_v32, 1.0  ;;  %v10854_v17 = vld [vmem:[#allocation52_spill] sm:$0xff]  ;;  %v10855_v32 = vld [vmem:[#allocation77_spill] sm:$0xff] }
 0x3b3   : > { %v2120_v22 = vadd.f32 %v10844_v41, %v10851_v2  ;;  %v1028_v6 = vadd.f32 %v10789_v52, %v10852_v49  ;;  %v1421_v42 = vmul.f32 %v8610_v4, %v1414_v56  ;;  %v10853_v51 = vmov 0   ;;  %v2984_v56 = vld [vmem:[#allocation1 + $0x4] ss:$9 sm:$0xff] }
 0x3b4   : > { %v2455_v38 = vsel %vm2454_vm1, %v8888_v24, %v2453_v62  ;;  %5277 = vset.pattern.permute.xlu1 %v10853_v51  ;;  %v9028_v21 = vadd.f32 %v10757_v40, %v10854_v17  ;;  %v9032_v44 = vadd.f32 %v10780_v16, %v10855_v32  ;;  %v9035_v2 = vmul.f32 %v8897_v33, %v2088_v25  ;;  %v2979_v24 = vpop.permute.xlu0 %2978  ;;  %v10856_v17 = vld [vmem:[#allocation20_spill] sm:$0xff]  ;;  %v1432_v7 = vpop.permute.xlu1 %1431  ;;  %v10859_v51 = vld [vmem:[#allocation35_spill] sm:$0xff] }
 0x3b5   : > { %vm2026_vm4 = vcmp.ne.s32.totalorder %v8917_v31, %v8662_v34  ;;  %v2458_v52 = vsel %vm2456_vm2, %v2457_v63, %v2455_v38  ;;  %vm3261_vm5 = vcmp.eq.f32.partialorder %v10836_v29, inf  ;;  %v2021_v40 = vsel %vm9015_vm7, %v2013_v30, %v5025_v13  ;;  %3347 = vst [vmem:[#allocation1] sm:$0xff] %v10856_v17  ;;  %v2483_v38 = vpop.permute.xlu2 %2482 }
 0x3b6   : > { %v5497_v62 = vpop.eup %5496  ;;  %v9042_v49 = vmax.f32 %v2458_v52, 1e-12  ;;  %v2981_v16 = vadd.f32 %v8862_v9, %v2979_v24  ;;  %v3262_v33 = vsel %vm3261_vm5, %v10836_v29, %v3260_v23  ;;  %vm2289_vm6 = vweird.f32 %v8985_v14  ;;  %vm9061_vm14 = vmand %vm2026_vm4, %vm2029_vm12 }
 0x3b7   : > { %v2285_v25 = vmul.f32 %v5497_v62, %v8985_v14  ;;  %v2293_v63 = vand.u32 2147483647, %v8985_v14  ;;  %v3264_v32 = vand.u32 2147483648, %v10836_v29  ;;  %vm2290_vm9 = vweird.f32 %v5497_v62 }
 0x3b8   : > { %v2295_v30 = vand.u32 2147483648, %v8985_v14  ;;  %5498 = vrcp.f32 %v9042_v49  ;;  %vm3263_vm13 = vcmp.eq.f32.partialorder %v10836_v29, 0.0  ;;  %v2986_v13 = vsub.f32 %v2981_v16, %v2984_v56  ;;  %vm9082_vm15 = vmor %vm2289_vm6, %vm2290_vm9 }
 0x3b9   : > { %v2286_v9 = vsub.f32 1.0, %v2285_v25  ;;  %v3265_v52 = vsel %vm3263_vm13, %v3264_v32, %v3262_v33  ;;  %v1445_v24 = vmul.f32 %v1432_v7, %v1028_v6  ;;  %v2469_v17 = vand.u32 2147483647, %v9042_v49 }
 0x3ba   : > { %v9067_v37 = vmul.f32 %v8961_v45, %v2120_v22  ;;  %v9069_v29 = vstv %s2052_s26  ;;  %v9071_v25 = vmax.f32 %v3265_v52, 1e-12  ;;  %3216 = vrot.lane.b32.xlu1 %v10859_v51, %s5888_s18  ;;  %v2471_v15 = vand.u32 2147483648, %v9042_v49  ;;  %s5891_s26 = smov 121  }
 0x3bb   : > { %v2287_v58 = vmul.f32 %v5497_v62, %v2286_v9  ;;  %v9076_v48 = vmax.f32 %v2986_v13, 0.0  ;;  %v1452_v56 = vmul.f32 %v8743_v50, %v1445_v24  ;;  %vm9086_vm11 = vcmp.eq.f32.partialorder %v2293_v63, 8.507059e+37 }
 0x3bc   : > { %v2296_v6 = vor.u32 1.1754944e-38, %v2295_v30  ;;  %v2045_v16 = vsel %vm9061_vm14, %v2021_v40, 0.0  ;;  %5500 = vrcp.f32 %v9071_v25  ;;  %v9094_v50 = vmul.f32 %v8994_v61, %v2121_v54 }
 0x3bd   : > { %v2288_v33 = vadd.f32 %v5497_v62, %v2287_v58  ;;  %v2496_v32 = vmul.f32 %v2483_v38, %v2087_v0  ;;  %5502 = vrsqrt.f32 %v9076_v48  ;;  %vm2465_vm0 = vweird.f32 %v9042_v49 }
 0x3be   : > { %v5499_v14 = vpop.eup %5498  ;;  %vm9098_vm10 = vcmp.eq.f32.partialorder %v2469_v17, 8.507059e+37  ;;  %vm1485_vm1 = vcmp.ne.s32.totalorder %v8917_v31, %v8695_v28  ;;  %v1456_v40 = vsub.f32 %v1421_v42, %v1452_v56  ;;  %v2472_v54 = vor.u32 1.1754944e-38, %v2471_v15  ;;  %v1983_v42 = vpop.permute.xlu1 %1982 }
 0x3bf   : > { %v2292_v58 = vsel %vm9082_vm15, %v5497_v62, %v2288_v33  ;;  %v2461_v61 = vmul.f32 %v5499_v14, %v9042_v49  ;;  %v9108_v0 = vadd.s32 24, %v8616_v46  ;;  %v911_v30 = vand.u32 2147483647, %v8459_v26  ;;  %v1411_v62 = vpop.permute.xlu2 %1410  ;;  %vm9124_vm7 = vmand %vm1485_vm1, %vm1488_vm8 }
 0x3c0   : > { %v2297_v38 = vsel %vm9086_vm11, %v2296_v6, %v2292_v58  ;;  %v1460_v17 = vand.u32 2147483647, %v1456_v40  ;;  %v1468_v7 = vmul.f32 0.5, %v1456_v40  ;;  %vm2466_vm2 = vweird.f32 %v5499_v14  ;;  %v10871_v58 = vld [vmem:[#allocation31_spill] sm:$0xff] }
 0x3c1   : > { %10866 = vst [vmem:[#allocation39_spill] sm:$0xff] %v9108_v0  ;;  %v9113_v9 = vperm.slane %v2297_v38, 0  ;;  %v2462_v23 = vsub.f32 1.0, %v2461_v61  ;;  %v919_v45 = vmul.f32 0.5, %v8459_v26  ;;  %vm9145_vm5 = vmor %vm2465_vm0, %vm2466_vm2  ;;  %vm3317_vm6 = vweird.f32 %v9071_v25 }
 0x3c2   : > { %v9116_v13 = vpop.eup %5500  ;;  %vm9128_vm4 = vcmp.lt.f32.partialorder %v1460_v17, 1.0  ;;  %v1472_v24 = vmul.f32 %v1468_v7, %v1456_v40  ;;  %v5015_v56 = vadd.f32 -0.5, %v1460_v17  ;;  %3388 = vrot.lane.b32.xlu1 %v10871_v58, %s5888_s18  ;;  %v3323_v17 = vand.u32 2147483648, %v9071_v25 }
 0x3c3   : > { %v9133_v22 = vpop.eup %5502  ;;  %v2502_v6 = vmul.f32 %v9113_v9, %v8990_v57  ;;  %v2504_v33 = vmul.f32 %v9113_v9, %v9035_v2  ;;  %v2463_v61 = vmul.f32 %v5499_v14, %v2462_v23  ;;  %v2503_v38 = vmul.f32 %v9113_v9, %v2496_v32 }
 0x3c4   : > { %v2989_v57 = vmul.f32 %v9133_v22, %v9076_v48  ;;  %v3313_v2 = vmul.f32 %v9116_v13, %v9071_v25  ;;  %v1480_v7 = vsel %vm9128_vm4, %v1472_v24, %v5015_v56  ;;  %vm936_vm9 = vcmp.ne.s32.totalorder %v9108_v0, %v8613_v59 }
 0x3c5   : > { %v2464_v32 = vadd.f32 %v5499_v14, %v2463_v61  ;;  %v1504_v49 = vsel %vm9124_vm7, %v1480_v7, 0.0  ;;  %v1416_v23 = vmul.f32 %v1411_v62, %v9028_v21  ;;  %vm2568_vm13 = vcmp.ne.s32.totalorder %v8624_v60, %v9069_v29  ;;  %vm9214_vm7 = vmand %vm936_vm9, %vm937_vm3 }
 0x3c6   : > { %vm2570_vm14 = vcmp.ne.s32.totalorder %v8618_v47, %v9069_v29  ;;  %v2990_v52 = vmul.f32 %v9133_v22, %v2989_v57  ;;  %v3314_v24 = vsub.f32 1.0, %v3313_v2  ;;  %v1508_v56 = vadd.f32 %v1504_v49, %v8987_v55 }
 0x3c7   : > { %vm9168_vm15 = vcmp.lt.f32.partialorder %v911_v30, 1.0  ;;  %v2468_v15 = vsel %vm9145_vm5, %v5499_v14, %v2464_v32  ;;  %v923_v21 = vmul.f32 %v919_v45, %v8459_v26  ;;  %v5007_v62 = vadd.f32 -0.5, %v911_v30  ;;  %vm2583_vm9 = vmand %vm2568_vm13, %vm2570_vm14 }
 0x3c8   : > { %v1423_v7 = vmul.f32 %v8610_v4, %v1416_v23  ;;  %v2473_v58 = vsel %vm9098_vm10, %v2472_v54, %v2468_v15  ;;  %v3315_v57 = vmul.f32 %v9116_v13, %v3314_v24  ;;  %v9179_v2 = vadd.f32 %v2045_v16, %v1508_v56  ;;  %v2493_v23 = vpop.permute.xlu1 %2492 }
 0x3c9   : > { %vm3413_vm11 = vcmp.eq.f32.partialorder %v10837_v8, inf  ;;  %vm2819_vm0 = vcmp.eq.f32.partialorder %v8580_v11, inf  ;;  %v9183_v55 = vperm.slane %v2473_v58, 0  ;;  %vm3318_vm1 = vweird.f32 %v9116_v13  ;;  %v5661_v58 = vld [vmem:[%s6055_s6 + $0x5] sm:$0x1] }
 0x3ca   : > { %v1458_v26 = vsub.f32 %v1423_v7, %v8755_v27  ;;  %v3414_v4 = vsel %vm3413_vm11, %v10837_v8, %v8951_v43  ;;  %v2991_v14 = vmul.f32 0.5, %v2990_v52  ;;  %v3316_v63 = vadd.f32 %v9116_v13, %v3315_v57  ;;  %3519 = vperm.xlu1 %5277, %v5661_v58   ;;  %v1952_v43 = vpop.permute.xlu2 %1951  ;;  %vm9222_vm4 = vmor %vm3317_vm6, %vm3318_vm1  ;;  %v10884_v58 = vld [vmem:[#allocation42_spill] sm:$0xff] }
 0x3cb   : > { %v3416_v54 = vand.u32 2147483648, %v10837_v8  ;;  %v1988_v16 = vmul.f32 %v1983_v42, %v9032_v44  ;;  %v2533_v30 = vmul.f32 %v9183_v55, %v9011_v10  ;;  %v2534_v45 = vmul.f32 %v9183_v55, %v9067_v37 }
 0x3cc   : > { %v2535_v27 = vmul.f32 %v9183_v55, %v9094_v50  ;;  %v1462_v40 = vand.u32 2147483647, %v1458_v26  ;;  %vm1487_vm10 = vcmp.ne.s32.totalorder %v9108_v0, %v8695_v28  ;;  %v931_v32 = vsel %vm9168_vm15, %v923_v21, %v5007_v62  ;;  %v10886_v50 = vld [vmem:[#allocation64_spill] sm:$0xff] }
 0x3cd   : > { %v1470_v44 = vmul.f32 0.5, %v1458_v26  ;;  %vm3415_vm2 = vcmp.eq.f32.partialorder %v10837_v8, 0.0  ;;  %v9204_v10 = vsub.f32 %v2502_v6, %v2533_v30  ;;  %v9206_v37 = vsub.f32 %v2503_v38, %v2534_v45  ;;  %vm1502_vm3 = vmand %vm1487_vm10, %vm1488_vm8 }
 0x3ce   : > { %v2539_v42 = vsub.f32 %v2504_v33, %v2535_v27  ;;  %v3417_v49 = vsel %vm3415_vm2, %v3416_v54, %v3414_v4  ;;  %v2992_v52 = vsub.f32 1.5, %v2991_v14  ;;  %vm9226_vm5 = vcmp.lt.f32.partialorder %v1462_v40, 1.0 }
 0x3cf   : > { %v1474_v59 = vmul.f32 %v1470_v44, %v1458_v26  ;;  %v5017_v33 = vadd.f32 -0.5, %v1462_v40  ;;  %v2818_v38 = vmul.f32 %v8977_v36, %v8580_v11  ;;  %v3320_v61 = vsel %vm9222_vm4, %v9116_v13, %v3316_v63 }
 0x3d0   : > { %v2543_v24 = vand.u32 2147483647, %v2539_v42  ;;  %v2551_v56 = vmul.f32 0.5, %v2539_v42  ;;  %v10882_v15 = vand.u32 2147483647, %v9071_v25  ;;  %v3324_v21 = vor.u32 1.1754944e-38, %v3323_v17 }
 0x3d1   : > { %v1482_v36 = vsel %vm9226_vm5, %v1474_v59, %v5017_v33  ;;  %v9245_v62 = vmax.f32 %v3417_v49, 1e-12  ;;  %v955_v25 = vsel %vm9214_vm7, %v931_v32, 0.0  ;;  %v2993_v17 = vmul.f32 %v9133_v22, %v2992_v52  ;;  %v10883_v22 = vld [vmem:[#allocation89_spill] sm:$0xff] }
 0x3d2   : > { %vm3322_vm6 = vcmp.eq.f32.partialorder %v10882_v15, 8.507059e+37  ;;  %vm2547_vm15 = vcmp.lt.f32.partialorder %v2543_v24, 1.0  ;;  %v2555_v13 = vmul.f32 %v2551_v56, %v2539_v42  ;;  %v5036_v28 = vadd.f32 -0.5, %v2543_v24  ;;  %v10885_v42 = vld [vmem:[#allocation87_spill] sm:$0xff] }
 0x3d3   : > { %v3325_v7 = vsel %vm3322_vm6, %v3324_v21, %v3320_v61  ;;  %v1506_v57 = vsel %vm1502_vm3, %v1482_v36, 0.0  ;;  %5504 = vrcp.f32 %v9245_v62  ;;  %v3448_v26 = vmul.f32 %v8954_v3, %v8325_v19  ;;  %v5663_v36 = vld [vmem:[%s6055_s6 + $0x4] ss:$0 sm:$0xff] }
 0x3d4   : > { %v2822_v4 = vand.u32 2147483648, %v8580_v11  ;;  %v2563_v14 = vsel %vm2547_vm15, %v2555_v13, %v5036_v28  ;;  %3569 = vperm.xlu1 %5277, %v3325_v7   ;;  %v9260_v63 = vadd.f32 %v1506_v57, %v955_v25  ;;  %v9265_v54 = vsel %vm2819_vm0, %v8580_v11, %v2818_v38  ;;  %v2524_v32 = vpop.permute.xlu2 %2523  ;;  %v5664_v25 = vld [vmem:[#allocation6 + $0x18] sm:$0xff] }
 0x3d5   : > { %v2587_v30 = vsel %vm2583_vm9, %v2563_v14, 0.0  ;;  %v1548_v45 = vadd.f32 %v10796_v39, %v10883_v22  ;;  %v2089_v27 = vadd.f32 %v10841_v5, %v10884_v58  ;;  %vm2821_vm8 = vcmp.eq.f32.partialorder %v8580_v11, 0.0 }
 0x3d6   : > { %v9273_v3 = vadd.f32 %v2587_v30, %v8996_v53  ;;  %v2998_v40 = vand.u32 2147483648, %v9076_v48  ;;  %v2122_v44 = vadd.f32 %v10844_v41, %v8903_v35  ;;  %v9280_v49 = vadd.f32 %v10886_v50, %v10885_v42  ;;  %v9287_v53 = vpop.permute.xlu1 %2849 }
 0x3d7   : > { %v9283_v39 = vmul.f32 %v2993_v17, %v9076_v48  ;;  %v1995_v5 = vmul.f32 %v8564_v20, %v1988_v16  ;;  %v1957_v52 = vmul.f32 %v1952_v43, %v1548_v45  ;;  %vm3449_vm13 = vcmp.eq.f32.partialorder %v8325_v19, inf }
 0x3d8   : > { %v2542_v8 = vand.u32 2147483647, %v9206_v37  ;;  %v3450_v6 = vsel %vm3449_vm13, %v8325_v19, %v3448_v26  ;;  %v3452_v35 = vand.u32 2147483648, %v8325_v19  ;;  %v2498_v41 = vmul.f32 %v2493_v23, %v2089_v27 }
 0x3d9   : > { %v5505_v59 = vpop.eup %5504  ;;  %v2550_v33 = vmul.f32 0.5, %v9206_v37  ;;  %v1964_v38 = vmul.f32 %v8296_v18, %v1957_v52  ;;  %vm3451_vm11 = vcmp.eq.f32.partialorder %v8325_v19, 0.0  ;;  %v2529_v20 = vmul.f32 %v2524_v32, %v2122_v44  ;;  %v9306_v19 = vld [vmem:[#allocation6 + $0x10] sm:$0xff] }
 0x3da   : > { %v3459_v16 = vmul.f32 %v5505_v59, %v9245_v62  ;;  %v3467_v43 = vand.u32 2147483647, %v9245_v62  ;;  %v3453_v24 = vsel %vm3451_vm11, %v3452_v35, %v3450_v6  ;;  %v2505_v56 = vmul.f32 %v9113_v9, %v2498_v41 }
 0x3db   : > { %v3469_v61 = vand.u32 2147483648, %v9245_v62  ;;  %v1999_v15 = vsub.f32 %v1964_v38, %v1995_v5  ;;  %v9299_v23 = vmax.f32 %v3453_v24, 1e-12  ;;  %v2536_v21 = vmul.f32 %v9183_v55, %v2529_v20 }
 0x3dc   : > { %vm2995_vm0 = vcmp.eq.f32.partialorder %v9076_v48, inf  ;;  %v3460_v18 = vsub.f32 1.0, %v3459_v16  ;;  %vm3463_vm1 = vweird.f32 %v9245_v62  ;;  %vm2028_vm10 = vcmp.ne.s32.totalorder %v9108_v0, %v8662_v34  ;;  %v2852_v26 = vpop.permute.xlu2 %2851 }
 0x3dd   : > { %v2843_v9 = vadd.f32 %v5663_v36, %v9306_v19  ;;  %v2003_v13 = vand.u32 2147483647, %v1999_v15  ;;  %v2011_v28 = vmul.f32 0.5, %v1999_v15  ;;  %5506 = vrcp.f32 %v9299_v23  ;;  %vm9323_vm5 = vmand %vm2028_vm10, %vm2029_vm12 }
 0x3de   : > { %v2844_v17 = vadd.f32 %v5664_v25, %v5663_v36  ;;  %vm2567_vm2 = vcmp.ne.s32.totalorder %v8917_v31, %v9069_v29  ;;  %v3461_v55 = vmul.f32 %v5505_v59, %v3460_v18  ;;  %vm3464_vm7 = vweird.f32 %v5505_v59  ;;  %v3019_v52 = vpop.permute.xlu1 %3018 }
 0x3df   : > { %vm9313_vm4 = vcmp.eq.f32.partialorder %v3467_v43, 8.507059e+37  ;;  %v2540_v57 = vsub.f32 %v2505_v56, %v2536_v21  ;;  %v3470_v14 = vor.u32 1.1754944e-38, %v3469_v61  ;;  %vm9327_vm3 = vcmp.lt.f32.partialorder %v2003_v13, 1.0  ;;  %vm3465_vm12 = vmor %vm3463_vm1, %vm3464_vm7 }
 0x3e0   : > { %v2015_v45 = vmul.f32 %v2011_v28, %v1999_v15  ;;  %v5027_v58 = vadd.f32 -0.5, %v2003_v13  ;;  %vm2997_vm6 = vcmp.eq.f32.partialorder %v9076_v48, 0.0  ;;  %v3462_v27 = vadd.f32 %v5505_v59, %v3461_v55  ;;  %v10897_v55 = vld [vmem:[#allocation54_spill] sm:$0xff] }
 0x3e1   : > { %vm2569_vm9 = vcmp.ne.s32.totalorder %v9108_v0, %v9069_v29  ;;  %v2544_v32 = vand.u32 2147483647, %v2540_v57  ;;  %v2859_v44 = vsub.f32 %v2843_v9, %v9287_v53  ;;  %v2552_v42 = vmul.f32 0.5, %v2540_v57 }
 0x3e2   : > { %v2023_v34 = vsel %vm9327_vm3, %v2015_v45, %v5027_v58  ;;  %v2860_v5 = vsub.f32 %v2844_v17, %v2852_v26  ;;  %v2823_v6 = vsel %vm2821_vm8, %v2822_v4, %v9265_v54  ;;  %v3466_v35 = vsel %vm3465_vm12, %v5505_v59, %v3462_v27  ;;  %vm2584_vm8 = vmand %vm2569_vm9, %vm2570_vm14  ;;  %v10899_v27 = vld [vmem:[#allocation79_spill] sm:$0xff] }
 0x3e3   : > { %v2047_v41 = vsel %vm9323_vm5, %v2023_v34, 0.0  ;;  %vm9346_vm15 = vcmp.lt.f32.partialorder %v2544_v32, 1.0  ;;  %v5037_v62 = vadd.f32 -0.5, %v2544_v32  ;;  %v5507_v38 = vpop.eup %5506  ;;  %v2549_v20 = vmul.f32 0.5, %v9204_v10 }
 0x3e4   : > { %v3471_v16 = vsel %vm9313_vm4, %v3470_v14, %v3466_v35  ;;  %v2051_v43 = vadd.f32 %v2047_v41, %v9260_v63  ;;  %v2556_v11 = vmul.f32 %v2552_v42, %v2540_v57  ;;  %vm9362_vm13 = vcmp.lt.f32.partialorder %v2542_v8, 1.0 }
 0x3e5   : > { %3590 = vperm.xlu1 %5277, %v3471_v16   ;;  %v3504_v54 = vmul.f32 %v5507_v38, %v9299_v23  ;;  %v9367_v59 = vmax.f32 %v2823_v6, 1e-12  ;;  %v9370_v63 = vmul.f32 %v3019_v52, %v9280_v49  ;;  %v2554_v24 = vmul.f32 %v2550_v33, %v9206_v37 }
 0x3e6   : > { %v5035_v56 = vadd.f32 -0.5, %v2542_v8  ;;  %v2564_v61 = vsel %vm9346_vm15, %v2556_v11, %v5037_v62  ;;  %v9377_v15 = vmax.f32 %v2859_v44, 0.0  ;;  %v9379_v36 = vmax.f32 %v2860_v5, 0.0  ;;  %v10900_v44 = vld [vmem:[#allocation57_spill] sm:$0xff]  ;;  %v9432_v62 = vld [vmem:[#allocation2 + $0x18] sm:$0xff] }
 0x3e7   : > { %v3505_v21 = vsub.f32 1.0, %v3504_v54  ;;  %v2588_v18 = vsel %vm2584_vm8, %v2564_v61, 0.0  ;;  %5508 = vrcp.f32 %v9367_v59  ;;  %v2996_v49 = vsel %vm2995_vm0, %v9076_v48, %v9283_v39  ;;  %vm2582_vm0 = vmand %vm2567_vm2, %vm2570_vm14 }
 0x3e8   : > { %v3514_v33 = vand.u32 2147483648, %v9299_v23  ;;  %v9387_v37 = vadd.f32 %v2588_v18, %v2051_v43  ;;  %vm2566_vm11 = vcmp.ne.s32.totalorder %v8616_v46, %v9069_v29  ;;  %vm3509_vm1 = vweird.f32 %v5507_v38 }
 0x3e9   : > { %v3506_v8 = vmul.f32 %v5507_v38, %v3505_v21  ;;  %v3512_v9 = vand.u32 2147483647, %v9299_v23  ;;  %v2541_v13 = vand.u32 2147483647, %v9204_v10  ;;  %v2562_v39 = vsel %vm9362_vm13, %v2554_v24, %v5035_v56  ;;  %vm2581_vm7 = vmand %vm2566_vm11, %vm2570_vm14  ;;  %v9450_v21 = vld [vmem:[%s6085_s17] sm:$0xff] }
 0x3ea   : > { %vm3508_vm10 = vweird.f32 %v9299_v23  ;;  %5510 = vrsqrt.f32 %v9377_v15  ;;  %v2553_v28 = vmul.f32 %v2549_v20, %v9204_v10  ;;  %v10898_v7 = vsub.f32 %v8956_v1, %v10897_v55 }
 0x3eb   : > { %v3507_v25 = vadd.f32 %v5507_v38, %v3506_v8  ;;  %5512 = vrsqrt.f32 %v9379_v36  ;;  %vm2545_vm4 = vcmp.lt.f32.partialorder %v2541_v13, 1.0  ;;  %v5034_v17 = vadd.f32 -0.5, %v2541_v13  ;;  %vm3510_vm2 = vmor %vm3508_vm10, %vm3509_vm1 }
 0x3ec   : > { %v2620_v57 = vsub.f32 %v10898_v7, %v10824_v12  ;;  %v3515_v23 = vor.u32 1.1754944e-38, %v3514_v33  ;;  %v2999_v10 = vsel %vm2997_vm6, %v2998_v40, %v2996_v49  ;;  %v2586_v14 = vsel %vm2582_vm0, %v2562_v39, 0.0  ;;  %v9455_v49 = vld [vmem:[#allocation3] sm:$0xff]  ;;  %v10904_v33 = vld [vmem:[#allocation94_spill] sm:$0xff] }
 0x3ed   : > { %v5509_v26 = vpop.eup %5508  ;;  %v3511_v30 = vsel %vm3510_vm2, %v5507_v38, %v3507_v25  ;;  %vm3513_vm5 = vcmp.eq.f32.partialorder %v3512_v9, 8.507059e+37  ;;  %v2561_v29 = vsel %vm2545_vm4, %v2553_v28, %v5034_v17  ;;  %v2629_v1 = vadd.f32 %v10886_v50, %v10899_v27  ;;  %v3029_v52 = vpop.permute.xlu1 %3028  ;;  %v10901_v38 = vld [vmem:[#allocation56_spill] sm:$0xff] }
 0x3ee   : > { %v3516_v22 = vsel %vm3513_vm5, %v3515_v23, %v3511_v30  ;;  %v2826_v45 = vmul.f32 %v5509_v26, %v9367_v59  ;;  %v2585_v58 = vsel %vm2581_vm7, %v2561_v29, 0.0  ;;  %vm2830_vm14 = vweird.f32 %v9367_v59  ;;  %v10906_v25 = vld [vmem:[#allocation24_spill] sm:$0xff]  ;;  %v10907_v29 = vld [vmem:[#allocation43_spill] sm:$0xff] }
 0x3ef   : > { %3605 = vperm.xlu1 %5277, %v3516_v22   ;;  %v2836_v32 = vand.u32 2147483648, %v9367_v59  ;;  %v9422_v48 = vadd.f32 %v2585_v58, %v10900_v44  ;;  %v3000_v40 = vmax.f32 %v2999_v10, 1e-12  ;;  %vm2831_vm3 = vweird.f32 %v5509_v26  ;;  %v9467_v30 = vld [vmem:[#allocation3 + $0x8] sm:$0xff] }
 0x3f0   : > { %v9424_v34 = vpop.eup %5510  ;;  %v2827_v42 = vsub.f32 1.0, %v2826_v45  ;;  %v2834_v5 = vand.u32 2147483647, %v9367_v59  ;;  %v9428_v6 = vadd.f32 %v2586_v14, %v9179_v2  ;;  %v3038_v53 = vmul.f32 %v3029_v52, %v2629_v1  ;;  %vm9438_vm6 = vmor %vm2830_vm14, %vm2831_vm3  ;;  %v3024_v24 = vpop.permute.xlu2 %3023 }
 0x3f1   : > { %v9430_v35 = vpop.eup %5512  ;;  %5514 = vrcp.f32 %v3000_v40  ;;  %v2617_v20 = vsub.f32 %v9432_v62, %v10901_v38  ;;  %v2837_v43 = vor.u32 1.1754944e-38, %v2836_v32  ;;  %v2628_v2 = vadd.f32 %v10886_v50, %v2620_v57 }
 0x3f2   : > { %v2828_v41 = vmul.f32 %v5509_v26, %v2827_v42  ;;  %v2890_v11 = vmul.f32 %v9424_v34, %v9377_v15  ;;  %v2902_v4 = vmul.f32 %v9430_v35, %v9379_v36  ;;  %vm2835_vm9 = vcmp.eq.f32.partialorder %v2834_v5, 8.507059e+37 }
 0x3f3   : > { %v3037_v56 = vmul.f32 %v3024_v24, %v2628_v2  ;;  %v9453_v18 = vperm.slane %v9450_v21, 4  ;;  %v2647_v8 = vsub.f32 %v9455_v49, %v10904_v33  ;;  %v2622_v9 = vsub.f32 %v2617_v20, %v10824_v12  ;;  %v10910_v20 = vld [vmem:[#allocation19_spill] sm:$0xff] }
 0x3f4   : > { %v2829_v54 = vadd.f32 %v5509_v26, %v2828_v41  ;;  %v10905_v13 = vmov 6   ;;  %v2891_v28 = vmul.f32 %v9424_v34, %v2890_v11  ;;  %v2903_v17 = vmul.f32 %v9430_v35, %v2902_v4 }
 0x3f5   : > { %vm3006_vm12 = vweird.f32 %v3000_v40  ;;  %v3010_v57 = vand.u32 2147483647, %v3000_v40  ;;  %v3012_v23 = vand.u32 2147483648, %v3000_v40  ;;  %v2648_v22 = vsub.f32 %v9467_v30, %v10907_v29  ;;  %v10911_v29 = vld [vmem:[#allocation33_spill] sm:$0xff] }
 0x3f6   : > { %v2833_v59 = vsel %vm9438_vm6, %v5509_v26, %v2829_v54  ;;  %v2630_v45 = vadd.f32 %v10886_v50, %v2622_v9  ;;  %v2652_v58 = vsub.f32 %v2647_v8, %v9453_v18  ;;  %v2892_v27 = vmul.f32 0.5, %v2891_v28 }
 0x3f7   : > { %v5515_v61 = vpop.eup %5514  ;;  %5280 = vset.pattern.permute.xlu1 %v10905_v13  ;;  %v2838_v39 = vsel %vm2835_vm9, %v2837_v43, %v2833_v59  ;;  %v2904_v44 = vmul.f32 0.5, %v2903_v17  ;;  %v3013_v42 = vor.u32 1.1754944e-38, %v3012_v23  ;;  %vm3011_vm13 = vcmp.eq.f32.partialorder %v3010_v57, 8.507059e+37 }
 0x3f8   : > { %3689 = vperm.xlu1 %5280, %v10906_v25   ;;  %v3041_v55 = vperm.slane %v2838_v39, 0  ;;  %v3002_v7 = vmul.f32 %v5515_v61, %v3000_v40  ;;  %vm3007_vm15 = vweird.f32 %v5515_v61  ;;  %v2653_v50 = vsub.f32 %v2648_v22, %v9453_v18 }
 0x3f9   : > { %v3034_v32 = vpop.permute.xlu2 %3033  ;;  %vm9475_vm8 = vmor %vm3006_vm12, %vm3007_vm15  ;;  %v9481_v41 = vstv %s5112_s3  ;;  %v2893_v43 = vsub.f32 1.5, %v2892_v27  ;;  %v9489_v2 = vstv %s2593_s4  ;;  %v2905_v4 = vsub.f32 1.5, %v2904_v44  ;;  %s4216_s4 = sadd.s32 7, %s6044_s29 }
 0x3fa   : > { %v3043_v10 = vmul.f32 %v3041_v55, %v9370_v63  ;;  %v3003_v26 = vsub.f32 1.0, %v3002_v7  ;;  %v3044_v12 = vmul.f32 %v3041_v55, %v3037_v56  ;;  %v9465_v14 = vmul.f32 %v3041_v55, %v3038_v53  ;;  %v3050_v53 = vpop.permute.xlu0 %3049 }
 0x3fb   : > { %v3039_v5 = vmul.f32 %v3034_v32, %v2630_v45  ;;  %v2660_v40 = vadd.f32 %v9481_v41, %v2652_v58  ;;  %v2894_v56 = vmul.f32 %v9424_v34, %v2893_v43  ;;  %v2661_v59 = vadd.f32 %v9481_v41, %v2653_v50 }
 0x3fc   : > { %v3004_v1 = vmul.f32 %v5515_v61, %v3003_v26  ;;  %v2906_v33 = vmul.f32 %v9430_v35, %v2905_v4  ;;  %vm3107_vm11 = vcmp.ne.s32.totalorder %v8616_v46, %v9489_v2  ;;  %vm3111_vm1 = vcmp.ne.s32.totalorder %v8618_v47, %v9489_v2 }
 0x3fd   : > { %v9483_v38 = vmul.f32 %v3041_v55, %v3039_v5  ;;  %v3067_v54 = vmul.f32 %v3050_v53, %v2660_v40  ;;  %v2895_v8 = vmul.f32 %v2894_v56, %v9377_v15  ;;  %vm2896_vm0 = vcmp.eq.f32.partialorder %v9377_v15, inf  ;;  %vm3122_vm2 = vmand %vm3107_vm11, %vm3111_vm1  ;;  %v10912_v53 = vld [vmem:[#allocation28_spill] sm:$0xff] }
 0x3fe   : > { %v3005_v52 = vadd.f32 %v5515_v61, %v3004_v1  ;;  %vm2898_vm10 = vcmp.eq.f32.partialorder %v9377_v15, 0.0  ;;  %v2899_v34 = vand.u32 2147483648, %v9377_v15  ;;  %v2907_v9 = vmul.f32 %v2906_v33, %v9379_v36 }
 0x3ff   : > { %v2897_v28 = vsel %vm2896_vm0, %v9377_v15, %v2895_v8  ;;  %vm2908_vm7 = vcmp.eq.f32.partialorder %v9379_v36, inf  ;;  %v2911_v17 = vand.u32 2147483648, %v9379_v36  ;;  %vm2910_vm4 = vcmp.eq.f32.partialorder %v9379_v36, 0.0 }
 0x400   : > { %3714 = vperm.xlu1 %5280, %v10910_v20   ;;  %v3009_v16 = vsel %vm9475_vm8, %v5515_v61, %v3005_v52  ;;  %v2900_v7 = vsel %vm2898_vm10, %v2899_v34, %v2897_v28  ;;  %v2909_v57 = vsel %vm2908_vm7, %v9379_v36, %v2907_v9  ;;  %vm3108_vm14 = vcmp.ne.s32.totalorder %v8917_v31, %v9489_v2 }
 0x401   : > { %v3014_v11 = vsel %vm3011_vm13, %v3013_v42, %v3009_v16  ;;  %v2915_v22 = vmax.f32 %v2900_v7, 1e-12  ;;  %v2912_v45 = vsel %vm2910_vm4, %v2911_v17, %v2909_v57  ;;  %vm3123_vm3 = vmand %vm3108_vm14, %vm3111_vm1  ;;  %v10913_v43 = vmov 0   ;;  %v10915_v17 = vld [vmem:[#allocation23_spill] sm:$0xff] }
 0x402   : > { %v9491_v24 = vperm.slane %v3014_v11, 0  ;;  %v3055_v35 = vpop.permute.xlu1 %3054  ;;  %v2916_v58 = vmax.f32 %v2912_v45, 1e-12 }
 0x403   : > { %v3068_v55 = vmul.f32 %v3055_v35, %v2661_v59  ;;  %5516 = vrcp.f32 %v2915_v22  ;;  %v2958_v59 = vand.u32 2147483648, %v2915_v22  ;;  %vm2952_vm12 = vweird.f32 %v2915_v22 }
 0x404   : > { %v3074_v61 = vmul.f32 %v9491_v24, %v3067_v54  ;;  %5518 = vrcp.f32 %v2916_v58  ;;  %v2973_v34 = vand.u32 2147483648, %v2916_v58  ;;  %v2971_v28 = vand.u32 2147483647, %v2916_v58 }
 0x405   : > { %vm2967_vm11 = vweird.f32 %v2916_v58 }
 0x406   : > { %v3078_v39 = vsub.f32 %v3043_v10, %v3074_v61  ;;  %v3075_v10 = vmul.f32 %v9491_v24, %v3068_v55  ;;  %v2956_v61 = vand.u32 2147483647, %v2915_v22  ;;  %vm2972_vm10 = vcmp.eq.f32.partialorder %v2971_v28, 8.507059e+37 }
 0x408   : > { %v3082_v23 = vand.u32 2147483647, %v3078_v39  ;;  %v3090_v26 = vmul.f32 0.5, %v3078_v39  ;;  %3726 = vperm.xlu1 %5280, %v10911_v29   ;;  %v3079_v36 = vsub.f32 %v3044_v12, %v3075_v10  ;;  %vm2957_vm13 = vcmp.eq.f32.partialorder %v2956_v61, 8.507059e+37  ;;  %v10916_v10 = vld [vmem:[#allocation30_spill] sm:$0xff] }
 0x409   : > { %v5517_v12 = vpop.eup %5516  ;;  %v9567_v61 = vld [vmem:[%s6055_s6 + $0x5] ss:$0 sm:$0xff] }
 0x40a   : > { %vm3086_vm5 = vcmp.lt.f32.partialorder %v3082_v23, 1.0  ;;  %v3094_v15 = vmul.f32 %v3090_v26, %v3078_v39  ;;  %v5044_v27 = vadd.f32 -0.5, %v3082_v23  ;;  %v3083_v44 = vand.u32 2147483647, %v3079_v36 }
 0x40b   : > { %v3091_v63 = vmul.f32 0.5, %v3079_v36  ;;  %v2948_v16 = vmul.f32 %v5517_v12, %v2915_v22  ;;  %vm2953_vm9 = vweird.f32 %v5517_v12  ;;  %v2974_v23 = vor.u32 1.1754944e-38, %v2973_v34 }
 0x40c   : > { %v3102_v1 = vsel %vm3086_vm5, %v3094_v15, %v5044_v27  ;;  %vm3087_vm6 = vcmp.lt.f32.partialorder %v3083_v44, 1.0  ;;  %v5045_v52 = vadd.f32 -0.5, %v3083_v44  ;;  %v9527_v50 = vpop.permute.xlu1 %3140  ;;  %vm2954_vm8 = vmor %vm2952_vm12, %vm2953_vm9  ;;  %v10917_v15 = vmov 5   ;;  %v10918_v27 = vld [vmem:[#allocation29_spill] sm:$0xff] }
 0x40d   : > { %v3126_v32 = vsel %vm3122_vm2, %v3102_v1, 0.0  ;;  %v3095_v5 = vmul.f32 %v3091_v63, %v3079_v36  ;;  %v2949_v54 = vsub.f32 1.0, %v2948_v16  ;;  %v9545_v36 = vld [vmem:[#allocation4] sm:$0xff] }
 0x40e   : > { %v9522_v42 = vadd.f32 %v3126_v32, %v9422_v48  ;;  %v5519_v48 = vpop.eup %5518 }
 0x40f   : > { %v3103_v40 = vsel %vm3087_vm6, %v3095_v5, %v5045_v52  ;;  %v2963_v56 = vmul.f32 %v5519_v48, %v2916_v58  ;;  %v2950_v33 = vmul.f32 %v5517_v12, %v2949_v54  ;;  %vm2968_vm15 = vweird.f32 %v5519_v48  ;;  %v9548_v58 = vld [vmem:[%s6050_s5 + $0x5] ss:$0 sm:$0xff] }
 0x410   : > { %3755 = vrot.lane.b32.xlu1 %v10912_v53, %s5890_s8  ;;  %v3127_v11 = vsel %vm3123_vm3, %v3103_v40, 0.0  ;;  %vm2969_vm0 = vmor %vm2967_vm11, %vm2968_vm15  ;;  %v3206_v1 = vadd.f32 %v9548_v58, %v9545_v36  ;;  %v9553_v5 = vld [vmem:[#allocation4 + $0x18] sm:$0xff] }
 0x411   : > { %5282 = vset.pattern.permute.xlu1 %v10913_v43  ;;  %v9533_v4 = vadd.f32 %v3127_v11, %v9428_v6  ;;  %v2964_v8 = vsub.f32 1.0, %v2963_v56  ;;  %v2951_v39 = vadd.f32 %v5517_v12, %v2950_v33  ;;  %v2959_v6 = vor.u32 1.1754944e-38, %v2958_v59  ;;  %v10919_v40 = vld [vmem:[#allocation22_spill] sm:$0xff]  ;;  %v9564_v33 = vld [vmem:[#allocation6 + $0x8] sm:$0xff] }
 0x412   : > { %v3209_v52 = vadd.f32 %v9553_v5, %v9548_v58  ;;  %v10920_v59 = vld [vmem:[#allocation26_spill] sm:$0xff] }
 0x413   : > { %10914 = vst [vmem:[#allocation50_spill] sm:$0xff] %v9533_v4  ;;  %v2965_v35 = vmul.f32 %v5519_v48, %v2964_v8  ;;  %v2955_v55 = vsel %vm2954_vm8, %v5517_v12, %v2951_v39  ;;  %v9557_v12 = vld [vmem:[#allocation1 + $0x5] ss:$9 sm:$0xff]  ;;  %v3383_v8 = vadd.f32 %v9567_v61, %v9564_v33 }
 0x414   : > { %v9535_v9 = vpop.permute.xlu1 %3152  ;;  %v2960_v57 = vsel %vm2957_vm13, %v2959_v6, %v2955_v55  ;;  %3523 = vst [vmem:[#allocation1] sm:$0xff] %v10919_v40  ;;  %v5677_v4 = vld [vmem:[%s6050_s5 + $0x5] sm:$0x1] }
 0x415   : > { %v2966_v7 = vadd.f32 %v5519_v48, %v2965_v35  ;;  %3059 = vperm.xlu2 %5272, %v2960_v57   ;;  %v10921_v35 = vld [vmem:[#allocation20_spill] sm:$0xff] }
 0x417   : > { %v2970_v26 = vsel %vm2969_vm0, %v5519_v48, %v2966_v7 }
 0x418   : > { %3927 = vrot.lane.b32.xlu1 %v10915_v17, %s5890_s8  ;;  %v2975_v22 = vsel %vm2972_vm10, %v2974_v23, %v2970_v26 }
 0x419   : > { %3064 = vperm.xlu0 %5281, %v2975_v22  }
 0x41b   : > { %v3525_v39 = vld [vmem:[#allocation1 + $0x5] ss:$9 sm:$0xff] }
 0x41c   : > { %v9539_v45 = vpop.permute.xlu1 %3177  ;;  %3888 = vst [vmem:[#allocation1] sm:$0xff] %v10921_v35 }
 0x41d   : > { %5274 = vset.pattern.permute.xlu2 %v10917_v15  ;;  %v10922_v15 = vld [vmem:[#allocation32_spill] sm:$0xff] }
 0x41e   : > { %3144 = vperm.xlu2 %5274, %v10918_v27  }
 0x420   : > { %3931 = vrot.lane.b32.xlu1 %v10916_v10, %s5890_s8 }
 0x424   : > { %v3211_v32 = vpop.permute.xlu1 %3210 }
 0x425   : > { %v3222_v44 = vsub.f32 %v3206_v1, %v3211_v32 }
 0x426   : > { %3173 = vperm.xlu2 %5274, %v10910_v20  }
 0x427   : > { %v3226_v63 = vmax.f32 %v3222_v44, 0.0  ;;  %v5674_v44 = vld [vmem:[#allocation2 + $0x10] sm:$0xff] }
 0x429   : > { %5520 = vrsqrt.f32 %v3226_v63  ;;  %vm3237_vm7 = vcmp.eq.f32.partialorder %v3226_v63, inf  ;;  %vm3239_vm4 = vcmp.eq.f32.partialorder %v3226_v63, 0.0 }
 0x42c   : > { %v3217_v16 = vpop.permute.xlu1 %3216 }
 0x42d   : > { %v3225_v48 = vsub.f32 %v3209_v52, %v3217_v16  ;;  %v10923_v52 = vld [vmem:[#allocation44_spill] sm:$0xff] }
 0x42e   : > { %3181 = vperm.xlu2 %5274, %v10920_v59   ;;  %v3157_v16 = vsub.f32 %v5674_v44, %v10923_v52  ;;  %v9584_v44 = vstv %s5114_s25 }
 0x42f   : > { %v5521_v11 = vpop.eup %5520  ;;  %v9560_v54 = vmax.f32 %v3225_v48, 0.0  ;;  %v5675_v48 = vld [vmem:[%s6068_s7] sm:$0xff] }
 0x430   : > { %v3231_v56 = vmul.f32 %v5521_v11, %v3226_v63 }
 0x431   : > { %5522 = vrsqrt.f32 %v9560_v54  ;;  %vm3273_vm3 = vcmp.eq.f32.partialorder %v9560_v54, inf  ;;  %vm3275_vm9 = vcmp.eq.f32.partialorder %v9560_v54, 0.0 }
 0x432   : > { %v3232_v34 = vmul.f32 %v5521_v11, %v3231_v56  ;;  %v9581_v56 = vperm.slane %v5675_v48, 5 }
 0x434   : > { %v3233_v28 = vmul.f32 0.5, %v3232_v34  ;;  %v3389_v6 = vpop.permute.xlu1 %3388  ;;  %v3162_v59 = vsub.f32 %v3157_v16, %v9581_v56 }
 0x435   : > { %v3399_v55 = vsub.f32 %v3383_v8, %v3389_v6  ;;  %v3240_v8 = vand.u32 2147483648, %v3226_v63 }
 0x436   : > { %v3234_v7 = vsub.f32 1.5, %v3233_v28  ;;  %3212 = vrot.lane.b32.xlu2 %v10922_v15, %s5888_s18  ;;  %v5676_v28 = vld [vmem:[#allocation7] sm:$0x1] }
 0x437   : > { %v5523_v57 = vpop.eup %5522  ;;  %v9572_v23 = vmax.f32 %v3399_v55, 0.0  ;;  %5276 = vset.pattern.permute.xlu2 %v10913_v43 }
 0x438   : > { %v3235_v26 = vmul.f32 %v5521_v11, %v3234_v7  ;;  %v3267_v22 = vmul.f32 %v5523_v57, %v9560_v54 }
 0x439   : > { %5524 = vrsqrt.f32 %v9572_v23  ;;  %vm3425_vm12 = vcmp.eq.f32.partialorder %v9572_v23, inf  ;;  %vm3427_vm15 = vcmp.eq.f32.partialorder %v9572_v23, 0.0 }
 0x43a   : > { %v3236_v1 = vmul.f32 %v3235_v26, %v3226_v63  ;;  %v3268_v32 = vmul.f32 %v5523_v57, %v3267_v22 }
 0x43c   : > { %v3520_v11 = vpop.permute.xlu1 %3519  ;;  %v3238_v34 = vsel %vm3237_vm7, %v3226_v63, %v3236_v1  ;;  %v3269_v7 = vmul.f32 0.5, %v3268_v32  ;;  %v3170_v32 = vadd.f32 %v9584_v44, %v3162_v59 }
 0x43d   : > { %v3522_v6 = vadd.f32 %v5676_v28, %v3520_v11  ;;  %v3241_v55 = vsel %vm3239_vm4, %v3240_v8, %v3238_v34 }
 0x43e   : > { %v3278_v26 = vmax.f32 %v3241_v55, 1e-12  ;;  %3343 = vperm.xlu2 %5276, %v5677_v4   ;;  %v3270_v63 = vsub.f32 1.5, %v3269_v7 }
 0x43f   : > { %v5525_v22 = vpop.eup %5524  ;;  %v3527_v35 = vsub.f32 %v3522_v6, %v3525_v39 }
 0x440   : > { %v3419_v52 = vmul.f32 %v5525_v22, %v9572_v23  ;;  %5526 = vrcp.f32 %v3278_v26  ;;  %v3271_v16 = vmul.f32 %v5523_v57, %v3270_v63  ;;  %v3291_v40 = vand.u32 2147483647, %v3278_v26 }
 0x441   : > { %v9587_v48 = vmax.f32 %v3527_v35, 0.0  ;;  %v3293_v7 = vand.u32 2147483648, %v3278_v26  ;;  %vm3287_vm5 = vweird.f32 %v3278_v26  ;;  %v3276_v63 = vand.u32 2147483648, %v9560_v54 }
 0x442   : > { %v3420_v1 = vmul.f32 %v5525_v22, %v3419_v52  ;;  %v3272_v52 = vmul.f32 %v3271_v16, %v9560_v54  ;;  %vm3292_vm14 = vcmp.eq.f32.partialorder %v3291_v40, 8.507059e+37  ;;  %v3428_v40 = vand.u32 2147483648, %v9572_v23 }
 0x443   : > { %5528 = vrsqrt.f32 %v9587_v48  ;;  %vm3536_vm8 = vcmp.eq.f32.partialorder %v9587_v48, inf  ;;  %vm3538_vm13 = vcmp.eq.f32.partialorder %v9587_v48, 0.0 }
 0x444   : > { %v3421_v8 = vmul.f32 0.5, %v3420_v1 }
 0x446   : > { %v3570_v11 = vpop.permute.xlu1 %3569  ;;  %v5527_v39 = vpop.eup %5526  ;;  %v3422_v28 = vsub.f32 1.5, %v3421_v8  ;;  %3390 = vrot.lane.b32.xlu2 %v10916_v10, %s5888_s18  ;;  %s5116_s18 = spop %5115 }
 0x447   : > { %v9592_v34 = vmul.f32 %v3570_v11, %v3170_v32  ;;  %v3283_v6 = vmul.f32 %v5527_v39, %v3278_v26  ;;  %vm3288_vm2 = vweird.f32 %v5527_v39  ;;  %s5118_s3 = spop %5117 }
 0x448   : > { %v3423_v55 = vmul.f32 %v5525_v22, %v3422_v28  ;;  %v3294_v22 = vor.u32 1.1754944e-38, %v3293_v7  ;;  %vm3289_vm6 = vmor %vm3287_vm5, %vm3288_vm2  ;;  %v3274_v28 = vsel %vm3273_vm3, %v9560_v54, %v3272_v52  ;;  %v3539_v54 = vand.u32 2147483648, %v9587_v48 }
 0x449   : > { %10924 = vst [vmem:[#allocation81_spill] sm:$0xff] %v9592_v34  ;;  %v5529_v35 = vpop.eup %5528  ;;  %v3284_v4 = vsub.f32 1.0, %v3283_v6  ;;  %v3277_v6 = vsel %vm3275_vm9, %v3276_v63, %v3274_v28 }
 0x44a   : > { %v3530_v59 = vmul.f32 %v5529_v35, %v9587_v48  ;;  %v3424_v1 = vmul.f32 %v3423_v55, %v9572_v23  ;;  %v3281_v7 = vmax.f32 %v3277_v6, 1e-12 }
 0x44b   : > { %v3285_v32 = vmul.f32 %v5527_v39, %v3284_v4 }
 0x44c   : > { %v3531_v11 = vmul.f32 %v5529_v35, %v3530_v59  ;;  %v3426_v55 = vsel %vm3425_vm12, %v9572_v23, %v3424_v1  ;;  %5530 = vrcp.f32 %v3281_v7  ;;  %vm3332_vm0 = vweird.f32 %v3281_v7 }
 0x44d   : > { %v3286_v57 = vadd.f32 %v5527_v39, %v3285_v32  ;;  %v3429_v59 = vsel %vm3427_vm15, %v3428_v40, %v3426_v55  ;;  %v9622_v55 = vstv %s5116_s18  ;;  %vm3109_vm15 = vcmp.ne.s32.totalorder %v8624_v60, %v9489_v2 }
 0x44e   : > { %v3532_v8 = vmul.f32 0.5, %v3531_v11  ;;  %v3455_v52 = vmax.f32 %v3429_v59, 1e-12  ;;  %v9613_v11 = vld [vmem:[#allocation3 + $0x18] sm:$0xff]  ;;  %v3338_v59 = vand.u32 2147483648, %v3281_v7 }
 0x44f   : > { %v3290_v16 = vsel %vm3289_vm6, %v5527_v39, %v3286_v57  ;;  %v10925_v57 = vld [vmem:[#allocation45_spill] sm:$0xff] }
 0x450   : > { %v3533_v26 = vsub.f32 1.5, %v3532_v8  ;;  %v3295_v4 = vsel %vm3292_vm14, %v3294_v22, %v3290_v16  ;;  %v3191_v23 = vsub.f32 %v9613_v11, %v10925_v57  ;;  %v9618_v22 = vperm.slane %v9450_v21, 5 }
 0x451   : > { %3559 = vperm.xlu2 %5276, %v3295_v4   ;;  %5532 = vrcp.f32 %v3455_v52  ;;  %v3336_v4 = vand.u32 2147483647, %v3281_v7  ;;  %vm3478_vm4 = vweird.f32 %v3455_v52  ;;  %v3482_v31 = vand.u32 2147483647, %v3455_v52 }
 0x452   : > { %v3534_v32 = vmul.f32 %v5529_v35, %v3533_v26  ;;  %v5531_v8 = vpop.eup %5530  ;;  %v3196_v16 = vsub.f32 %v3191_v23, %v9618_v22  ;;  %v3339_v23 = vor.u32 1.1754944e-38, %v3338_v59 }
 0x453   : > { %v3328_v6 = vmul.f32 %v5531_v8, %v3281_v7  ;;  %vm3333_vm11 = vweird.f32 %v5531_v8  ;;  %vm3337_vm7 = vcmp.eq.f32.partialorder %v3336_v4, 8.507059e+37  ;;  %vm3483_vm12 = vcmp.eq.f32.partialorder %v3482_v31, 8.507059e+37 }
 0x454   : > { %v3535_v39 = vmul.f32 %v3534_v32, %v9587_v48  ;;  %v3204_v21 = vadd.f32 %v9622_v55, %v3196_v16  ;;  %vm3334_vm10 = vmor %vm3332_vm0, %vm3333_vm11  ;;  %vm3110_vm11 = vcmp.ne.s32.totalorder %v9108_v0, %v9489_v2 }
 0x455   : > { %v3329_v26 = vsub.f32 1.0, %v3328_v6 }
 0x456   : > { %v3537_v35 = vsel %vm3536_vm8, %v9587_v48, %v3535_v39  ;;  %vm3124_vm8 = vmand %vm3109_vm15, %vm3111_vm1 }
 0x457   : > { %v9611_v1 = vpop.permute.xlu1 %3590  ;;  %v3540_v63 = vsel %vm3538_vm13, %v3539_v54, %v3537_v35  ;;  %v5533_v40 = vpop.eup %5532  ;;  %v3330_v57 = vmul.f32 %v5531_v8, %v3329_v26  ;;  %v3484_v26 = vand.u32 2147483648, %v3455_v52 }
 0x458   : > { %v3541_v28 = vmax.f32 %v3540_v63, 1e-12  ;;  %v3474_v32 = vmul.f32 %v5533_v40, %v3455_v52  ;;  %vm3479_vm2 = vweird.f32 %v5533_v40 }
 0x459   : > { %v3331_v35 = vadd.f32 %v5531_v8, %v3330_v57  ;;  %vm3480_vm3 = vmor %vm3478_vm4, %vm3479_vm2  ;;  %v3485_v59 = vor.u32 1.1754944e-38, %v3484_v26 }
 0x45a   : > { %5534 = vrcp.f32 %v3541_v28  ;;  %v3475_v39 = vsub.f32 1.0, %v3474_v32  ;;  %v3553_v34 = vand.u32 2147483648, %v3541_v28  ;;  %vm3547_vm5 = vweird.f32 %v3541_v28 }
 0x45b   : > { %v3335_v6 = vsel %vm3334_vm10, %v5531_v8, %v3331_v35  ;;  %v3551_v32 = vand.u32 2147483647, %v3541_v28  ;;  %vm3125_vm10 = vmand %vm3110_vm11, %vm3111_vm1 }
 0x45c   : > { %v3476_v10 = vmul.f32 %v5533_v40, %v3475_v39  ;;  %v3340_v53 = vsel %vm3337_vm7, %v3339_v23, %v3335_v6  ;;  %v3554_v4 = vor.u32 1.1754944e-38, %v3553_v34  ;;  %v10926_v39 = vld [vmem:[#allocation60_spill] sm:$0xff] }
 0x45d   : > { %3574 = vperm.xlu2 %5276, %v3340_v53   ;;  %vm3552_vm9 = vcmp.eq.f32.partialorder %v3551_v32, 8.507059e+37  ;;  %v10928_v32 = vld [vmem:[#allocation34_spill] sm:$0xff] }
 0x45e   : > { %v3477_v16 = vadd.f32 %v5533_v40, %v3476_v10 }
 0x460   : > { %v5535_v63 = vpop.eup %5534 }
 0x461   : > { %v3606_v48 = vpop.permute.xlu1 %3605  ;;  %v3543_v25 = vmul.f32 %v5535_v63, %v3541_v28  ;;  %vm3548_vm14 = vweird.f32 %v5535_v63 }
 0x462   : > { %v3611_v54 = vmul.f32 %v3606_v48, %v3204_v21  ;;  %v3481_v21 = vsel %vm3480_vm3, %v5533_v40, %v3477_v16  ;;  %vm3549_vm6 = vmor %vm3547_vm5, %vm3548_vm14  ;;  %v9625_v48 = vld [vmem:[#allocation3 + $0x10] sm:$0xff] }
 0x463   : > { %v3544_v29 = vsub.f32 1.0, %v3543_v25  ;;  %v3486_v8 = vsel %vm3483_vm12, %v3485_v59, %v3481_v21  ;;  %v2649_v10 = vsub.f32 %v9625_v48, %v10926_v39  ;;  %v10927_v40 = vld [vmem:[#allocation18_spill] sm:$0xff] }
 0x465   : > { %v3545_v7 = vmul.f32 %v5535_v63, %v3544_v29  ;;  %3595 = vperm.xlu2 %5276, %v3486_v8   ;;  %v2654_v29 = vsub.f32 %v2649_v10, %v9453_v18  ;;  %v10930_v8 = vld [vmem:[#allocation27_spill] sm:$0xff] }
 0x467   : > { %v3546_v57 = vadd.f32 %v5535_v63, %v3545_v7  ;;  %v2662_v34 = vadd.f32 %v9481_v41, %v2654_v29 }
 0x469   : > { %v3550_v25 = vsel %vm3549_vm6, %v5535_v63, %v3546_v57 }
 0x46a   : > { %v3555_v52 = vsel %vm3552_vm9, %v3554_v4, %v3550_v25  ;;  %v10929_v4 = vld [vmem:[#allocation37_spill] sm:$0xff] }
 0x46b   : > { %v9629_v35 = vperm.slane %v3555_v52, 0  ;;  %v2650_v59 = vsub.f32 %v9613_v11, %v10929_v4  ;;  %v10932_v4 = vld [vmem:[#allocation31_spill] sm:$0xff] }
 0x46d   : > { %v9633_v53 = vmul.f32 %v9629_v35, %v3611_v54  ;;  %5278 = vset.pattern.permute.xlu2 %v10905_v13  ;;  %v2655_v25 = vsub.f32 %v2650_v59, %v9453_v18  ;;  %v9683_v59 = vld [vmem:[#allocation5] sm:$0x1] }
 0x46e   : > { %3681 = vperm.xlu2 %5278, %v10927_v40  }
 0x46f   : > { %v3060_v28 = vpop.permute.xlu2 %3059 }
 0x470   : > { %v3069_v31 = vmul.f32 %v3060_v28, %v2662_v34  ;;  %v2663_v34 = vadd.f32 %v9481_v41, %v2655_v25  ;;  %v10931_v28 = vld [vmem:[#allocation21_spill] sm:$0xff] }
 0x472   : > { %v3076_v23 = vmul.f32 %v9491_v24, %v3069_v31 }
 0x474   : > { %v3080_v63 = vsub.f32 %v9465_v14, %v3076_v23 }
 0x476   : > { %v3084_v6 = vand.u32 2147483647, %v3080_v63  ;;  %v3092_v16 = vmul.f32 0.5, %v3080_v63  ;;  %3693 = vperm.xlu2 %5278, %v10928_v32  }
 0x478   : > { %vm3088_vm13 = vcmp.lt.f32.partialorder %v3084_v6, 1.0  ;;  %v3096_v54 = vmul.f32 %v3092_v16, %v3080_v63  ;;  %v5046_v26 = vadd.f32 -0.5, %v3084_v6  ;;  %v9645_v13 = vpop.permute.xlu2 %3144  ;;  %v9671_v6 = vld [vmem:[#allocation4 + $0x8] sm:$0xff] }
 0x479   : > { %v3207_v16 = vadd.f32 %v9671_v6, %v9548_v58 }
 0x47a   : > { %v3104_v7 = vsel %vm3088_vm13, %v3096_v54, %v5046_v26 }
 0x47b   : > { %v3128_v21 = vsel %vm3124_vm8, %v3104_v7, 0.0 }
 0x47c   : > { %v9649_v14 = vadd.f32 %v3128_v21, %v9273_v3 }
 0x47e   : > { %3718 = vperm.xlu2 %5278, %v10930_v8  }
 0x480   : > { %v3174_v57 = vpop.permute.xlu2 %3173 }
 0x481   : > { %v3188_v39 = vsub.f32 %v9455_v49, %v3174_v57 }
 0x483   : > { %v3193_v10 = vsub.f32 %v3188_v39, %v9618_v22 }
 0x485   : > { %v3201_v52 = vadd.f32 %v9622_v55, %v3193_v10  ;;  %v3384_v10 = vadd.f32 %v9567_v61, %v9306_v19 }
 0x486   : > { %3751 = vrot.lane.b32.xlu2 %v10931_v28, %s5890_s8 }
 0x487   : > { %v3608_v29 = vmul.f32 %v9611_v1, %v3201_v52  ;;  %5283 = vset.pattern.permute.xlu2 %v10913_v43 }
 0x488   : > { %v9660_v3 = vpop.permute.xlu2 %3181 }
 0x48b   : > { %v3065_v11 = vpop.permute.xlu0 %3064 }
 0x48c   : > { %v3070_v31 = vmul.f32 %v3065_v11, %v2663_v34  ;;  %v10933_v34 = vld [vmem:[#allocation36_spill] sm:$0xff] }
 0x48e   : > { %v3077_v49 = vmul.f32 %v9491_v24, %v3070_v31  ;;  %3757 = vrot.lane.b32.xlu2 %v10859_v51, %s5890_s8 }
 0x490   : > { %v3081_v23 = vsub.f32 %v9483_v38, %v3077_v49  ;;  %v3213_v63 = vpop.permute.xlu2 %3212 }
 0x491   : > { %v3223_v26 = vsub.f32 %v3207_v16, %v3213_v63  ;;  %v9706_v16 = vmul.f32 %v9629_v35, %v3608_v29 }
 0x492   : > { %v3085_v18 = vand.u32 2147483647, %v3081_v23  ;;  %v3093_v1 = vmul.f32 0.5, %v3081_v23 }
 0x493   : > { %v9686_v58 = vmax.f32 %v3223_v26, 0.0 }
 0x494   : > { %vm3089_vm0 = vcmp.lt.f32.partialorder %v3085_v18, 1.0  ;;  %v3097_v41 = vmul.f32 %v3093_v1, %v3081_v23  ;;  %v5047_v38 = vadd.f32 -0.5, %v3085_v18  ;;  %v9699_v23 = vpop.permute.xlu1 %3689 }
 0x495   : > { %5536 = vrsqrt.f32 %v9686_v58  ;;  %vm3249_vm4 = vcmp.eq.f32.partialorder %v9686_v58, inf  ;;  %vm3251_vm2 = vcmp.eq.f32.partialorder %v9686_v58, 0.0 }
 0x496   : > { %v3105_v24 = vsel %vm3089_vm0, %v3097_v41, %v5047_v38  ;;  %3929 = vrot.lane.b32.xlu2 %v10932_v4, %s5890_s8 }
 0x497   : > { %v3129_v54 = vsel %vm3125_vm10, %v3105_v24, 0.0 }
 0x498   : > { %v9679_v7 = vadd.f32 %v3129_v54, %v9387_v37  ;;  %v3344_v21 = vpop.permute.xlu2 %3343  ;;  %v9692_v37 = vld [vmem:[#allocation2] sm:$0xff] }
 0x499   : > { %v3346_v57 = vadd.f32 %v9683_v59, %v3344_v21  ;;  %v3155_v25 = vsub.f32 %v9692_v37, %v9527_v50 }
 0x49b   : > { %v3351_v2 = vsub.f32 %v3346_v57, %v9557_v12  ;;  %v3160_v31 = vsub.f32 %v3155_v25, %v9581_v56  ;;  %v5537_v49 = vpop.eup %5536 }
 0x49c   : > { %v3243_v1 = vmul.f32 %v5537_v49, %v9686_v58  ;;  %v9708_v57 = vpop.permute.xlu1 %3714 }
 0x49d   : > { %v3352_v39 = vmax.f32 %v3351_v2, 0.0  ;;  %v3168_v18 = vadd.f32 %v9584_v44, %v3160_v31  ;;  %10934 = vst [vmem:[#allocation91_spill] sm:$0xff] %v9708_v57 }
 0x49e   : > { %3933 = vrot.lane.b32.xlu2 %v10933_v34, %s5890_s8  ;;  %v3244_v54 = vmul.f32 %v5537_v49, %v3243_v1 }
 0x49f   : > { %5538 = vrsqrt.f32 %v3352_v39  ;;  %vm3360_vm1 = vcmp.eq.f32.partialorder %v3352_v39, inf  ;;  %v3363_v31 = vand.u32 2147483648, %v3352_v39  ;;  %vm3362_vm7 = vcmp.eq.f32.partialorder %v3352_v39, 0.0 }
 0x4a0   : > { %v3391_v52 = vpop.permute.xlu2 %3390  ;;  %v3245_v25 = vmul.f32 0.5, %v3244_v54 }
 0x4a1   : > { %v3400_v11 = vsub.f32 %v3384_v10, %v3391_v52 }
 0x4a3   : > { %v3404_v12 = vmax.f32 %v3400_v11, 0.0  ;;  %v3158_v11 = vsub.f32 %v9432_v62, %v9535_v9 }
 0x4a4   : > { %v9715_v54 = vpop.permute.xlu1 %3726 }
 0x4a5   : > { %v5539_v19 = vpop.eup %5538  ;;  %5540 = vrsqrt.f32 %v3404_v12  ;;  %v3163_v1 = vsub.f32 %v3158_v11, %v9581_v56  ;;  %vm3437_vm5 = vcmp.eq.f32.partialorder %v3404_v12, inf  ;;  %vm3439_vm14 = vcmp.eq.f32.partialorder %v3404_v12, 0.0 }
 0x4a6   : > { %v3354_v61 = vmul.f32 %v5539_v19, %v3352_v39 }
 0x4a7   : > { %v3171_v62 = vadd.f32 %v9584_v44, %v3163_v1 }
 0x4a8   : > { %v3355_v50 = vmul.f32 %v5539_v19, %v3354_v61 }
 0x4aa   : > { %v3356_v38 = vmul.f32 0.5, %v3355_v50 }
 0x4ab   : > { %v3560_v63 = vpop.permute.xlu2 %3559  ;;  %v5541_v24 = vpop.eup %5540 }
 0x4ac   : > { %v9703_v41 = vmul.f32 %v3560_v63, %v3168_v18  ;;  %v3357_v26 = vsub.f32 1.5, %v3356_v38  ;;  %v3431_v21 = vmul.f32 %v5541_v24, %v3404_v12  ;;  %v3246_v63 = vsub.f32 1.5, %v3245_v25 }
 0x4ae   : > { %v3358_v2 = vmul.f32 %v5539_v19, %v3357_v26  ;;  %v3432_v10 = vmul.f32 %v5541_v24, %v3431_v21  ;;  %v3247_v38 = vmul.f32 %v5537_v49, %v3246_v63  ;;  %v3189_v19 = vsub.f32 %v9467_v30, %v9539_v45 }
 0x4af   : > { %v3252_v21 = vand.u32 2147483648, %v9686_v58 }
 0x4b0   : > { %v3359_v52 = vmul.f32 %v3358_v2, %v3352_v39  ;;  %v3433_v29 = vmul.f32 0.5, %v3432_v10  ;;  %v3248_v9 = vmul.f32 %v3247_v38, %v9686_v58  ;;  %v3194_v30 = vsub.f32 %v3189_v19, %v9618_v22  ;;  %v9727_v38 = vpop.permute.xlu1 %3755 }
 0x4b2   : > { %v3361_v61 = vsel %vm3360_vm1, %v3352_v39, %v3359_v52  ;;  %v3434_v57 = vsub.f32 1.5, %v3433_v29  ;;  %v3250_v10 = vsel %vm3249_vm4, %v9686_v58, %v3248_v9  ;;  %v3440_v52 = vand.u32 2147483648, %v3404_v12 }
 0x4b3   : > { %v3364_v18 = vsel %vm3362_vm7, %v3363_v31, %v3361_v61  ;;  %v3253_v45 = vsel %vm3251_vm2, %v3252_v21, %v3250_v10  ;;  %v3202_v1 = vadd.f32 %v9622_v55, %v3194_v30  ;;  %v9734_v30 = vstv %s3134_s28 }
 0x4b4   : > { %v3365_v50 = vmax.f32 %v3364_v18, 1e-12  ;;  %v3435_v26 = vmul.f32 %v5541_v24, %v3434_v57  ;;  %v3279_v31 = vmax.f32 %v3253_v45, 1e-12  ;;  %vm3648_vm15 = vcmp.ne.s32.totalorder %v8616_v46, %v9734_v30 }
 0x4b5   : > { %vm3652_vm8 = vcmp.ne.s32.totalorder %v8618_v47, %v9734_v30  ;;  %vm3651_vm11 = vcmp.ne.s32.totalorder %v9108_v0, %v9734_v30 }
 0x4b6   : > { %5542 = vrcp.f32 %v3365_v50  ;;  %v3436_v49 = vmul.f32 %v3435_v26, %v3404_v12  ;;  %v3377_v29 = vand.u32 2147483648, %v3365_v50  ;;  %v3375_v58 = vand.u32 2147483647, %v3365_v50  ;;  %vm3663_vm4 = vmand %vm3648_vm15, %vm3652_vm8 }
 0x4b7   : > { %v3575_v39 = vpop.permute.xlu2 %3574  ;;  %5544 = vrcp.f32 %v3279_v31  ;;  %vm3371_vm6 = vweird.f32 %v3365_v50  ;;  %vm3302_vm0 = vweird.f32 %v3279_v31 }
 0x4b8   : > { %v3580_v2 = vmul.f32 %v3575_v39, %v3171_v62  ;;  %v3438_v24 = vsel %vm3437_vm5, %v3404_v12, %v3436_v49  ;;  %v3378_v9 = vor.u32 1.1754944e-38, %v3377_v29  ;;  %vm3376_vm12 = vcmp.eq.f32.partialorder %v3375_v58, 8.507059e+37 }
 0x4b9   : > { %v3441_v57 = vsel %vm3439_vm14, %v3440_v52, %v3438_v24  ;;  %v3306_v24 = vand.u32 2147483647, %v3279_v31  ;;  %vm3666_vm14 = vmand %vm3651_vm11, %vm3652_vm8 }
 0x4ba   : > { %v9724_v18 = vmax.f32 %v3441_v57, 1e-12 }
 0x4bb   : > { %vm9754_vm10 = vcmp.eq.f32.partialorder %v3306_v24, 8.507059e+37 }
 0x4bc   : > { %v5543_v25 = vpop.eup %5542  ;;  %5546 = vrcp.f32 %v9724_v18 }
 0x4bd   : > { %v3367_v11 = vmul.f32 %v5543_v25, %v3365_v50  ;;  %vm3372_vm3 = vweird.f32 %v5543_v25  ;;  %v5545_v26 = vpop.eup %5544  ;;  %v3308_v50 = vand.u32 2147483648, %v3279_v31 }
 0x4be   : > { %vm3373_vm9 = vmor %vm3371_vm6, %vm3372_vm3  ;;  %v3298_v49 = vmul.f32 %v5545_v26, %v3279_v31  ;;  %vm3303_vm13 = vweird.f32 %v5545_v26  ;;  %vm3493_vm3 = vweird.f32 %v9724_v18 }
 0x4bf   : > { %v3368_v61 = vsub.f32 1.0, %v3367_v11  ;;  %v3596_v19 = vpop.permute.xlu2 %3595  ;;  %vm3304_vm1 = vmor %vm3302_vm0, %vm3303_vm13 }
 0x4c0   : > { %v3609_v12 = vmul.f32 %v3596_v19, %v3202_v1  ;;  %v3299_v11 = vsub.f32 1.0, %v3298_v49  ;;  %v9752_v1 = vpop.permute.xlu1 %3927 }
 0x4c1   : > { %v3369_v63 = vmul.f32 %v5543_v25, %v3368_v61 }
 0x4c2   : > { %v9732_v21 = vmul.f32 %v9629_v35, %v3609_v12  ;;  %v5547_v52 = vpop.eup %5546  ;;  %v3300_v29 = vmul.f32 %v5545_v26, %v3299_v11  ;;  %v3309_v12 = vor.u32 1.1754944e-38, %v3308_v50  ;;  %v3499_v11 = vand.u32 2147483648, %v9724_v18  ;;  %v9796_v50 = vld [vmem:[%s6050_s5 + $0x6] ss:$0 sm:$0xff] }
 0x4c3   : > { %v3370_v62 = vadd.f32 %v5543_v25, %v3369_v63  ;;  %vm3494_vm7 = vweird.f32 %v5547_v52 }
 0x4c4   : > { %v3301_v19 = vadd.f32 %v5545_v26, %v3300_v29  ;;  %vm3495_vm6 = vmor %vm3493_vm3, %vm3494_vm7 }
 0x4c5   : > { %v3374_v39 = vsel %vm3373_vm9, %v5543_v25, %v3370_v62  ;;  %v3489_v25 = vmul.f32 %v5547_v52, %v9724_v18 }
 0x4c6   : > { %v3379_v10 = vsel %vm3376_vm12, %v3378_v9, %v3374_v39  ;;  %v3305_v49 = vsel %vm3304_vm1, %v5545_v26, %v3301_v19 }
 0x4c7   : > { %v9736_v45 = vperm.slane %v3379_v10, 0 }
 0x4c9   : > { %v3584_v57 = vmul.f32 %v9736_v45, %v9703_v41  ;;  %v3587_v61 = vmul.f32 %v9736_v45, %v3580_v2  ;;  %v9750_v41 = vpop.permute.xlu2 %3681  ;;  %v3490_v2 = vsub.f32 1.0, %v3489_v25 }
 0x4cb   : > { %v3619_v63 = vsub.f32 %v3584_v57, %v9706_v16  ;;  %v3622_v58 = vsub.f32 %v3587_v61, %v9633_v53  ;;  %v3491_v53 = vmul.f32 %v5547_v52, %v3490_v2  ;;  %v3310_v61 = vsel %vm9754_vm10, %v3309_v12, %v3305_v49 }
 0x4cc   : > { %3564 = vperm.xlu0 %5281, %v3310_v61  }
 0x4cd   : > { %v3623_v9 = vand.u32 2147483647, %v3619_v63  ;;  %v3631_v39 = vmul.f32 0.5, %v3619_v63  ;;  %v3626_v16 = vand.u32 2147483647, %v3622_v58  ;;  %v3634_v10 = vmul.f32 0.5, %v3622_v58 }
 0x4ce   : > { %v3492_v25 = vadd.f32 %v5547_v52, %v3491_v53  ;;  %v3932_v53 = vpop.permute.xlu1 %3931 }
 0x4cf   : > { %vm3627_vm2 = vcmp.lt.f32.partialorder %v3623_v9, 1.0  ;;  %v3635_v31 = vmul.f32 %v3631_v39, %v3619_v63  ;;  %v5054_v24 = vadd.f32 -0.5, %v3623_v9  ;;  %vm9766_vm5 = vcmp.lt.f32.partialorder %v3626_v16, 1.0  ;;  %v9784_v9 = vld [vmem:[%s6055_s6 + $0x6] ss:$0 sm:$0xff] }
 0x4d0   : > { %v3638_v26 = vmul.f32 %v3634_v10, %v3622_v58  ;;  %v5057_v57 = vadd.f32 -0.5, %v3626_v16  ;;  %v3497_v63 = vand.u32 2147483647, %v9724_v18  ;;  %v3496_v39 = vsel %vm3495_vm6, %v5547_v52, %v3492_v25  ;;  %v5683_v10 = vld [vmem:[#allocation6 + $0x10] sm:$0xff] }
 0x4d1   : > { %v3643_v29 = vsel %vm3627_vm2, %v3635_v31, %v5054_v24  ;;  %v9789_v12 = vpop.permute.xlu2 %3693  ;;  %v3500_v18 = vor.u32 1.1754944e-38, %v3499_v11  ;;  %v3925_v49 = vadd.f32 %v5683_v10, %v9784_v9  ;;  %v9802_v52 = vld [vmem:[#allocation4 + $0x10] sm:$0xff]  ;;  %v3747_v11 = vadd.f32 %v9545_v36, %v9796_v50 }
 0x4d2   : > { %v3667_v2 = vsel %vm3663_vm4, %v3643_v29, 0.0  ;;  %v3646_v19 = vsel %vm9766_vm5, %v3638_v26, %v5057_v57  ;;  %vm3498_vm9 = vcmp.eq.f32.partialorder %v3497_v63, 8.507059e+37 }
 0x4d3   : > { %v9787_v58 = vadd.f32 %v3667_v2, %v9522_v42  ;;  %v3670_v62 = vsel %vm3666_vm14, %v3646_v19, 0.0  ;;  %v3501_v31 = vsel %vm3498_vm9, %v3500_v18, %v3496_v39  ;;  %v3941_v24 = vsub.f32 %v3925_v49, %v3932_v53 }
 0x4d4   : > { %v9792_v16 = vadd.f32 %v3670_v62, %v9679_v7  ;;  %3600 = vperm.xlu0 %5281, %v3501_v31   ;;  %v3749_v7 = vadd.f32 %v9802_v52, %v9796_v50  ;;  %v3750_v19 = vadd.f32 %v9553_v5, %v9796_v50  ;;  %v5685_v62 = vld [vmem:[%s6050_s5 + $0x6] sm:$0x1]  ;;  %v3924_v31 = vadd.f32 %v9564_v33, %v9784_v9 }
 0x4d5   : > { %10939 = vst [vmem:[#allocation72_spill] sm:$0xff] %v9787_v58  ;;  %v9800_v26 = vmax.f32 %v3941_v24, 0.0  ;;  %v9830_v33 = vld [vmem:[#allocation6 + $0x18] sm:$0xff] }
 0x4d6   : > { %10940 = vst [vmem:[#allocation78_spill] sm:$0xff] %v9792_v16  ;;  %v3765_v57 = vsub.f32 %v3749_v7, %v9727_v38  ;;  %v5686_v7 = vld [vmem:[%s6055_s6 + $0x6] sm:$0x1] }
 0x4d7   : > { %5548 = vrsqrt.f32 %v9800_v26  ;;  %vm3978_vm13 = vcmp.eq.f32.partialorder %v9800_v26, inf  ;;  %vm3980_vm10 = vcmp.eq.f32.partialorder %v9800_v26, 0.0 }
 0x4d8   : > { %v9812_v2 = vmax.f32 %v3765_v57, 0.0 }
 0x4d9   : > { %v9798_v42 = vpop.permute.xlu2 %3718 }
 0x4da   : > { %vm3802_vm7 = vcmp.eq.f32.partialorder %v9812_v2, inf  ;;  %vm3804_vm5 = vcmp.eq.f32.partialorder %v9812_v2, 0.0 }
 0x4dc   : > { %3753 = vrot.lane.b32.xlu0 %v10922_v15, %s5890_s8 }
 0x4dd   : > { %v5549_v63 = vpop.eup %5548 }
 0x4de   : > { %v3972_v36 = vmul.f32 %v5549_v63, %v9800_v26 }
 0x4e0   : > { %v3973_v10 = vmul.f32 %v5549_v63, %v3972_v36 }
 0x4e1   : > { %v3752_v61 = vpop.permute.xlu2 %3751 }
 0x4e2   : > { %v3763_v25 = vsub.f32 %v3747_v11, %v3752_v61  ;;  %v3974_v11 = vmul.f32 0.5, %v3973_v10  ;;  %v3926_v10 = vadd.f32 %v9830_v33, %v9784_v9 }
 0x4e4   : > { %v3767_v29 = vmax.f32 %v3763_v25, 0.0  ;;  %3884 = vperm.xlu0 %5281, %v5685_v62  }
 0x4e6   : > { %5550 = vrsqrt.f32 %v3767_v29  ;;  %vm3778_vm12 = vcmp.eq.f32.partialorder %v3767_v29, inf  ;;  %vm3780_vm15 = vcmp.eq.f32.partialorder %v3767_v29, 0.0 }
 0x4e7   : > { %5552 = vrsqrt.f32 %v9812_v2 }
 0x4e9   : > { %v3758_v39 = vpop.permute.xlu2 %3757 }
 0x4ea   : > { %v3766_v18 = vsub.f32 %v3750_v19, %v3758_v39  ;;  %v3975_v39 = vsub.f32 1.5, %v3974_v11 }
 0x4ec   : > { %v5551_v38 = vpop.eup %5550  ;;  %v9819_v49 = vmax.f32 %v3766_v18, 0.0  ;;  %4060 = vperm.xlu0 %5281, %v5686_v7   ;;  %v5892_v7 = vmov 7  }
 0x4ed   : > { %v3772_v53 = vmul.f32 %v5551_v38, %v3767_v29  ;;  %v5553_v24 = vpop.eup %5552 }
 0x4ee   : > { %5554 = vrsqrt.f32 %v9819_v49  ;;  %v3796_v25 = vmul.f32 %v5553_v24, %v9812_v2  ;;  %vm3814_vm11 = vcmp.eq.f32.partialorder %v9819_v49, inf  ;;  %vm3816_vm0 = vcmp.eq.f32.partialorder %v9819_v49, 0.0 }
 0x4ef   : > { %v3773_v5 = vmul.f32 %v5551_v38, %v3772_v53 }
 0x4f0   : > { %v3797_v32 = vmul.f32 %v5553_v24, %v3796_v25 }
 0x4f1   : > { %v3774_v57 = vmul.f32 0.5, %v3773_v5  ;;  %v3930_v61 = vpop.permute.xlu2 %3929 }
 0x4f2   : > { %v3940_v19 = vsub.f32 %v3924_v31, %v3930_v61  ;;  %v3976_v31 = vmul.f32 %v5549_v63, %v3975_v39  ;;  %v3798_v25 = vmul.f32 0.5, %v3797_v32  ;;  %v3817_v32 = vand.u32 2147483648, %v9819_v49 }
 0x4f3   : > { %v3775_v62 = vsub.f32 1.5, %v3774_v57 }
 0x4f4   : > { %v5555_v36 = vpop.eup %5554  ;;  %v9826_v18 = vmax.f32 %v3940_v19, 0.0  ;;  %4294 = vrot.lane.b32.xlu0 %v10922_v15, %s5891_s26  ;;  %v3977_v0 = vmul.f32 %v3976_v31, %v9800_v26  ;;  %v3799_v39 = vsub.f32 1.5, %v3798_v25 }
 0x4f5   : > { %v3776_v58 = vmul.f32 %v5551_v38, %v3775_v62  ;;  %v3808_v46 = vmul.f32 %v5555_v36, %v9819_v49  ;;  %5285 = vset.pattern.permute.xlu0 %v5892_v7  ;;  %v3781_v38 = vand.u32 2147483648, %v3767_v29 }
 0x4f6   : > { %5556 = vrsqrt.f32 %v9826_v18  ;;  %v3800_v31 = vmul.f32 %v5553_v24, %v3799_v39  ;;  %vm3966_vm3 = vcmp.eq.f32.partialorder %v9826_v18, inf  ;;  %vm3968_vm9 = vcmp.eq.f32.partialorder %v9826_v18, 0.0 }
 0x4f7   : > { %v3777_v53 = vmul.f32 %v3776_v58, %v3767_v29  ;;  %v3809_v5 = vmul.f32 %v5555_v36, %v3808_v46 }
 0x4f9   : > { %v3810_v11 = vmul.f32 0.5, %v3809_v5  ;;  %v3934_v57 = vpop.permute.xlu2 %3933  ;;  %v3779_v61 = vsel %vm3778_vm12, %v3767_v29, %v3777_v53 }
 0x4fa   : > { %v3942_v19 = vsub.f32 %v3926_v10, %v3934_v57  ;;  %v3782_v62 = vsel %vm3780_vm15, %v3781_v38, %v3779_v61 }
 0x4fb   : > { %v3811_v16 = vsub.f32 1.5, %v3810_v11  ;;  %v3819_v58 = vmax.f32 %v3782_v62, 1e-12 }
 0x4fc   : > { %v5557_v46 = vpop.eup %5556  ;;  %v9838_v40 = vmax.f32 %v3942_v19, 0.0  ;;  %4468 = vrot.lane.b32.xlu0 %v10915_v17, %s5891_s26 }
 0x4fd   : > { %v3812_v15 = vmul.f32 %v5555_v36, %v3811_v16  ;;  %v3960_v63 = vmul.f32 %v5557_v46, %v9826_v18  ;;  %5558 = vrcp.f32 %v3819_v58  ;;  %v3979_v16 = vsel %vm3978_vm13, %v9800_v26, %v3977_v0 }
 0x4fe   : > { %5560 = vrsqrt.f32 %v9838_v40  ;;  %v3981_v36 = vand.u32 2147483648, %v9800_v26  ;;  %vm3828_vm4 = vweird.f32 %v3819_v58  ;;  %vm3990_vm15 = vcmp.eq.f32.partialorder %v9838_v40, inf }
 0x4ff   : > { %v3813_v53 = vmul.f32 %v3812_v15, %v9819_v49  ;;  %v3961_v29 = vmul.f32 %v5557_v46, %v3960_v63  ;;  %v3801_v15 = vmul.f32 %v3800_v31, %v9812_v2  ;;  %v3834_v63 = vand.u32 2147483648, %v3819_v58 }
 0x500   : > { %v3982_v17 = vsel %vm3980_vm10, %v3981_v36, %v3979_v16  ;;  %v3805_v36 = vand.u32 2147483648, %v9812_v2 }
 0x501   : > { %v3962_v10 = vmul.f32 0.5, %v3961_v29  ;;  %v3815_v5 = vsel %vm3814_vm11, %v9819_v49, %v3813_v53  ;;  %v9855_v25 = vmax.f32 %v3982_v17, 1e-12  ;;  %v3832_v53 = vand.u32 2147483647, %v3819_v58 }
 0x502   : > { %v3818_v38 = vsel %vm3816_vm0, %v3817_v32, %v3815_v5  ;;  %v3803_v16 = vsel %vm3802_vm7, %v9812_v2, %v3801_v15  ;;  %v3835_v31 = vor.u32 1.1754944e-38, %v3834_v63  ;;  %vm3992_vm0 = vcmp.eq.f32.partialorder %v9838_v40, 0.0 }
 0x503   : > { %v5559_v11 = vpop.eup %5558  ;;  %v3963_v57 = vsub.f32 1.5, %v3962_v10  ;;  %v9853_v61 = vmax.f32 %v3818_v38, 1e-12  ;;  %vm3833_vm14 = vcmp.eq.f32.partialorder %v3832_v53, 8.507059e+37 }
 0x504   : > { %v5561_v19 = vpop.eup %5560  ;;  %v3824_v0 = vmul.f32 %v5559_v11, %v3819_v58  ;;  %4474 = vrot.lane.b32.xlu0 %v10933_v34, %s5891_s26  ;;  %vm3829_vm1 = vweird.f32 %v5559_v11 }
 0x505   : > { %v3984_v62 = vmul.f32 %v5561_v19, %v9838_v40  ;;  %5562 = vrcp.f32 %v9853_v61  ;;  %v3964_v26 = vmul.f32 %v5557_v46, %v3963_v57  ;;  %vm3830_vm2 = vmor %vm3828_vm4, %vm3829_vm1  ;;  %v3806_v57 = vsel %vm3804_vm5, %v3805_v36, %v3803_v16 }
 0x506   : > { %v3825_v49 = vsub.f32 1.0, %v3824_v0  ;;  %5564 = vrcp.f32 %v9855_v25  ;;  %vm3873_vm12 = vweird.f32 %v9853_v61  ;;  %vm4034_vm1 = vweird.f32 %v9855_v25 }
 0x507   : > { %v3985_v24 = vmul.f32 %v5561_v19, %v3984_v62  ;;  %v3965_v46 = vmul.f32 %v3964_v26, %v9826_v18  ;;  %v3877_v62 = vand.u32 2147483647, %v9853_v61  ;;  %v3879_v26 = vand.u32 2147483648, %v9853_v61 }
 0x508   : > { %v3826_v39 = vmul.f32 %v5559_v11, %v3825_v49 }
 0x509   : > { %v3986_v29 = vmul.f32 0.5, %v3985_v24  ;;  %v3821_v24 = vmax.f32 %v3806_v57, 1e-12  ;;  %v3967_v63 = vsel %vm3966_vm3, %v9826_v18, %v3965_v46  ;;  %v3880_v36 = vor.u32 1.1754944e-38, %v3879_v26 }
 0x50a   : > { %v3827_v32 = vadd.f32 %v5559_v11, %v3826_v39  ;;  %v3993_v46 = vand.u32 2147483648, %v9838_v40  ;;  %vm3878_vm11 = vcmp.eq.f32.partialorder %v3877_v62, 8.507059e+37  ;;  %v4040_v57 = vand.u32 2147483648, %v9855_v25 }
 0x50b   : > { %v5563_v10 = vpop.eup %5562  ;;  %v3987_v5 = vsub.f32 1.5, %v3986_v29  ;;  %5566 = vrcp.f32 %v3821_v24  ;;  %vm3858_vm5 = vweird.f32 %v3821_v24 }
 0x50c   : > { %v5565_v34 = vpop.eup %5564  ;;  %v3831_v38 = vsel %vm3830_vm2, %v5559_v11, %v3827_v32  ;;  %v3869_v17 = vmul.f32 %v5563_v10, %v9853_v61  ;;  %4226 = vperm.xlu0 %5285, %v10918_v27   ;;  %vm3874_vm6 = vweird.f32 %v5563_v10 }
 0x50d   : > { %v3988_v0 = vmul.f32 %v5561_v19, %v3987_v5  ;;  %v3836_v58 = vsel %vm3833_vm14, %v3835_v31, %v3831_v38  ;;  %v4030_v15 = vmul.f32 %v5565_v34, %v9855_v25  ;;  %v3969_v19 = vand.u32 2147483648, %v9826_v18  ;;  %vm3875_vm13 = vmor %vm3873_vm12, %vm3874_vm6 }
 0x50e   : > { %4100 = vperm.xlu1 %5282, %v3836_v58   ;;  %v3870_v49 = vsub.f32 1.0, %v3869_v17  ;;  %vm4035_vm10 = vweird.f32 %v5565_v34 }
 0x50f   : > { %v3989_v2 = vmul.f32 %v3988_v0, %v9838_v40  ;;  %v4031_v11 = vsub.f32 1.0, %v4030_v15  ;;  %v3970_v53 = vsel %vm3968_vm9, %v3969_v19, %v3967_v63  ;;  %vm4036_vm7 = vmor %vm4034_vm1, %vm4035_vm10  ;;  %v4041_v15 = vor.u32 1.1754944e-38, %v4040_v57 }
 0x510   : > { %v3871_v39 = vmul.f32 %v5563_v10, %v3870_v49  ;;  %v3996_v16 = vmax.f32 %v3970_v53, 1e-12 }
 0x511   : > { %v4032_v32 = vmul.f32 %v5565_v34, %v4031_v11  ;;  %v3991_v27 = vsel %vm3990_vm15, %v9838_v40, %v3989_v2  ;;  %v5567_v61 = vpop.eup %5566 }
 0x512   : > { %v3872_v29 = vadd.f32 %v5563_v10, %v3871_v39  ;;  %5568 = vrcp.f32 %v3996_v16  ;;  %v3994_v31 = vsel %vm3992_vm0, %v3993_v46, %v3991_v27  ;;  %v3854_v0 = vmul.f32 %v5567_v61, %v3821_v24  ;;  %v10942_v27 = vld [vmem:[#allocation28_spill] sm:$0xff] }
 0x513   : > { %v4033_v38 = vadd.f32 %v5565_v34, %v4032_v32  ;;  %v3998_v17 = vmax.f32 %v3994_v31, 1e-12  ;;  %vm3859_vm2 = vweird.f32 %v5567_v61  ;;  %v3864_v39 = vand.u32 2147483648, %v3821_v24 }
 0x514   : > { %v3876_v5 = vsel %vm3875_vm13, %v5563_v10, %v3872_v29  ;;  %4255 = vperm.xlu0 %5285, %v10910_v20   ;;  %v4038_v10 = vand.u32 2147483647, %v9855_v25  ;;  %v3855_v58 = vsub.f32 1.0, %v3854_v0  ;;  %v10941_v20 = vld [vmem:[#allocation33_spill] sm:$0xff]  ;;  %v3862_v25 = vand.u32 2147483647, %v3821_v24  ;;  %vm3860_vm14 = vmor %vm3858_vm5, %vm3859_vm2 }
 0x515   : > { %v3881_v18 = vsel %vm3878_vm11, %v3880_v36, %v3876_v5  ;;  %5570 = vrcp.f32 %v3998_v17  ;;  %v4037_v62 = vsel %vm4036_vm7, %v5565_v34, %v4033_v38  ;;  %v3865_v34 = vor.u32 1.1754944e-38, %v3864_v39  ;;  %v5070_v0 = vld [vmem:[%s6050_s5 + $0x7] sm:$0x1] }
 0x516   : > { %4115 = vperm.xlu1 %5282, %v3881_v18   ;;  %vm4039_vm4 = vcmp.eq.f32.partialorder %v4038_v10, 8.507059e+37  ;;  %v3856_v49 = vmul.f32 %v5567_v61, %v3855_v58  ;;  %vm3863_vm3 = vcmp.eq.f32.partialorder %v3862_v25, 8.507059e+37  ;;  %v4025_v18 = vand.u32 2147483648, %v3996_v16  ;;  %v10943_v10 = vld [vmem:[#allocation81_spill] sm:$0xff]  ;;  %5121 = vpush %v5070_v0 }
 0x517   : > { %v4042_v2 = vsel %vm4039_vm4, %v4041_v15, %v4037_v62  ;;  %vm4019_vm9 = vweird.f32 %v3996_v16  ;;  %v4023_v24 = vand.u32 2147483647, %v3996_v16  ;;  %v3586_v58 = vmul.f32 %v9736_v45, %v10943_v10 }
 0x518   : > { %v5569_v40 = vpop.eup %5568  ;;  %v3857_v63 = vadd.f32 %v5567_v61, %v3856_v49  ;;  %v4026_v38 = vor.u32 1.1754944e-38, %v4025_v18  ;;  %v4055_v15 = vand.u32 2147483648, %v3998_v17  ;;  %vm4049_vm11 = vweird.f32 %v3998_v17 }
 0x519   : > { %v4015_v26 = vmul.f32 %v5569_v40, %v3996_v16  ;;  %vm4020_vm6 = vweird.f32 %v5569_v40  ;;  %vm4024_vm15 = vcmp.eq.f32.partialorder %v4023_v24, 8.507059e+37  ;;  %v4053_v16 = vand.u32 2147483647, %v3998_v17 }
 0x51a   : > { %v3861_v29 = vsel %vm3860_vm14, %v5567_v61, %v3857_v63  ;;  %vm4021_vm12 = vmor %vm4019_vm9, %vm4020_vm6  ;;  %vm3650_vm2 = vcmp.ne.s32.totalorder %v8624_v60, %v9734_v30 }
 0x51b   : > { %v5571_v11 = vpop.eup %5570  ;;  %v4016_v19 = vsub.f32 1.0, %v4015_v26  ;;  %v3866_v46 = vsel %vm3863_vm3, %v3865_v34, %v3861_v29  ;;  %vm4054_vm10 = vcmp.eq.f32.partialorder %v4053_v16, 8.507059e+37  ;;  %vm3665_vm5 = vmand %vm3650_vm2, %vm3652_vm8 }
 0x51c   : > { %4267 = vperm.xlu0 %5285, %v10941_v20   ;;  %v4045_v53 = vmul.f32 %v5571_v11, %v3998_v17  ;;  %vm4050_vm13 = vweird.f32 %v5571_v11  ;;  %v9900_v20 = vld [vmem:[#allocation6] sm:$0xff] }
 0x51d   : > { %v4017_v32 = vmul.f32 %v5569_v40, %v4016_v19  ;;  %vm4051_vm0 = vmor %vm4049_vm11, %vm4050_vm13  ;;  %v3923_v63 = vadd.f32 %v9900_v20, %v9784_v9 }
 0x51e   : > { %4141 = vperm.xlu1 %5282, %v4042_v2   ;;  %v4046_v36 = vsub.f32 1.0, %v4045_v53 }
 0x51f   : > { %v4018_v5 = vadd.f32 %v5569_v40, %v4017_v32  ;;  %v3939_v17 = vsub.f32 %v3923_v63, %v9752_v1  ;;  %v10944_v1 = vld [vmem:[#allocation65_spill] sm:$0xff] }
 0x520   : > { %v4047_v31 = vmul.f32 %v5571_v11, %v4046_v36  ;;  %vm3649_vm1 = vcmp.ne.s32.totalorder %v10944_v1, %v9734_v30 }
 0x521   : > { %v4022_v61 = vsel %vm4021_vm12, %v5569_v40, %v4018_v5  ;;  %v4056_v40 = vor.u32 1.1754944e-38, %v4055_v15  ;;  %v9909_v53 = vmax.f32 %v3939_v17, 0.0  ;;  %vm3664_vm7 = vmand %vm3649_vm1, %vm3652_vm8 }
 0x522   : > { %v4048_v57 = vadd.f32 %v5571_v11, %v4047_v31  ;;  %v4027_v62 = vsel %vm4024_vm15, %v4026_v38, %v4022_v61  ;;  %v10947_v31 = vld [vmem:[#allocation50_spill] sm:$0xff]  ;;  %v3748_v38 = vadd.f32 %v9671_v6, %v9796_v50  ;;  %v9938_v6 = vld [vmem:[%s6055_s6 + $0x7] sm:$0x1] }
 0x523   : > { %5572 = vrsqrt.f32 %v9909_v53  ;;  %5123 = vpush %v9938_v6  ;;  %vm3954_vm8 = vcmp.eq.f32.partialorder %v9909_v53, inf  ;;  %vm3956_vm3 = vcmp.eq.f32.partialorder %v9909_v53, 0.0 }
 0x524   : > { %5289 = vset.pattern.permute.xlu0 %v10913_v43  ;;  %v4052_v49 = vsel %vm4051_vm0, %v5571_v11, %v4048_v57  ;;  %v3190_v11 = vsub.f32 %v9625_v48, %v9660_v3  ;;  %v10945_v48 = vld [vmem:[#allocation24_spill] sm:$0xff] }
 0x525   : > { %4110 = vperm.xlu0 %5289, %v3866_v46   ;;  %v4057_v26 = vsel %vm4054_vm10, %v4056_v40, %v4052_v49 }
 0x526   : > { %4296 = vrot.lane.b32.xlu1 %v10942_v27, %s5891_s26  ;;  %v10946_v27 = vld [vmem:[#allocation22_spill] sm:$0xff] }
 0x529   : > { %v5573_v46 = vpop.eup %5572 }
 0x52a   : > { %v3948_v57 = vmul.f32 %v5573_v46, %v9909_v53 }
 0x52c   : > { %v3949_v16 = vmul.f32 %v5573_v46, %v3948_v57 }
 0x52d   : > { %4136 = vperm.xlu0 %5289, %v4027_v62  }
 0x52e   : > { %4470 = vrot.lane.b32.xlu1 %v10932_v4, %s5891_s26  ;;  %v9896_v4 = vld [vmem:[#allocation2 + $0x8] sm:$0xff]  ;;  %v3950_v30 = vmul.f32 0.5, %v3949_v16 }
 0x52f   : > { %v3156_v2 = vsub.f32 %v9896_v4, %v9645_v13  ;;  %v3195_v13 = vsub.f32 %v3190_v11, %v9618_v22 }
 0x530   : > { %v3951_v17 = vsub.f32 1.5, %v3950_v30 }
 0x531   : > { %v3161_v19 = vsub.f32 %v3156_v2, %v9581_v56  ;;  %v3203_v34 = vadd.f32 %v9622_v55, %v3195_v13 }
 0x532   : > { %v3952_v13 = vmul.f32 %v5573_v46, %v3951_v17  ;;  %v3957_v46 = vand.u32 2147483648, %v9909_v53 }
 0x533   : > { %v3169_v39 = vadd.f32 %v9584_v44, %v3161_v19  ;;  %v3890_v44 = vld [vmem:[#allocation1 + $0x6] ss:$9 sm:$0xff] }
 0x534   : > { %4064 = vst [vmem:[#allocation1] sm:$0xff] %v10946_v27 }
 0x536   : > { %4146 = vperm.xlu1 %5282, %v4057_v26   ;;  %v10948_v26 = vld [vmem:[#allocation20_spill] sm:$0xff] }
 0x53b   : > { %v4066_v40 = vld [vmem:[#allocation1 + $0x6] ss:$9 sm:$0xff] }
 0x53c   : > { %4429 = vst [vmem:[#allocation1] sm:$0xff] %v10948_v26 }
 0x53e   : > { %4425 = vperm.xlu1 %5282, %v5070_v0   ;;  %v3565_v25 = vpop.permute.xlu0 %3564 }
 0x53f   : > { %v3578_v29 = vmul.f32 %v3565_v25, %v3169_v39 }
 0x541   : > { %v3585_v32 = vmul.f32 %v9736_v45, %v3578_v29 }
 0x543   : > { %v3620_v56 = vsub.f32 %v3585_v32, %v9732_v21 }
 0x545   : > { %v3624_v3 = vand.u32 2147483647, %v3620_v56  ;;  %v3632_v9 = vmul.f32 0.5, %v3620_v56 }
 0x546   : > { %5287 = vset.pattern.permute.xlu1 %v5892_v7  ;;  %v3601_v22 = vpop.permute.xlu0 %3600 }
 0x547   : > { %4230 = vperm.xlu1 %5287, %v10945_v48   ;;  %vm3628_vm4 = vcmp.lt.f32.partialorder %v3624_v3, 1.0  ;;  %v3636_v21 = vmul.f32 %v3632_v9, %v3620_v56  ;;  %v5055_v45 = vadd.f32 -0.5, %v3624_v3  ;;  %v3610_v36 = vmul.f32 %v3601_v22, %v3203_v34  ;;  %v9947_v3 = vld [vmem:[#allocation7] sm:$0x1] }
 0x548   : > { %v3953_v9 = vmul.f32 %v3952_v13, %v9909_v53 }
 0x549   : > { %v3644_v5 = vsel %vm3628_vm4, %v3636_v21, %v5055_v45  ;;  %v3617_v18 = vmul.f32 %v9629_v35, %v3610_v36 }
 0x54a   : > { %v3668_v24 = vsel %vm3664_vm7, %v3644_v5, 0.0  ;;  %v3955_v45 = vsel %vm3954_vm8, %v9909_v53, %v3953_v9 }
 0x54b   : > { %v9926_v61 = vadd.f32 %v3668_v24, %v10947_v31  ;;  %v3621_v55 = vsub.f32 %v3586_v58, %v3617_v18  ;;  %v3958_v24 = vsel %vm3956_vm3, %v3957_v46, %v3955_v45 }
 0x54c   : > { %v9957_v57 = vmax.f32 %v3958_v24, 1e-12  ;;  %v9983_v24 = vld [vmem:[%s6085_s17] sm:$0xff] }
 0x54d   : > { %v3625_v0 = vand.u32 2147483647, %v3621_v55  ;;  %v3633_v10 = vmul.f32 0.5, %v3621_v55 }
 0x54e   : > { %v3754_v62 = vpop.permute.xlu0 %3753  ;;  %vm4004_vm3 = vweird.f32 %v9957_v57 }
 0x54f   : > { %4259 = vperm.xlu1 %5287, %v10930_v8   ;;  %vm3629_vm14 = vcmp.lt.f32.partialorder %v3625_v0, 1.0  ;;  %v3637_v35 = vmul.f32 %v3633_v10, %v3621_v55  ;;  %v5056_v58 = vadd.f32 -0.5, %v3625_v0  ;;  %v3764_v15 = vsub.f32 %v3748_v38, %v3754_v62 }
 0x551   : > { %v3645_v50 = vsel %vm3629_vm14, %v3637_v35, %v5056_v58  ;;  %v3768_v49 = vmax.f32 %v3764_v15, 0.0 }
 0x552   : > { %v3669_v8 = vsel %vm3665_vm5, %v3645_v50, 0.0 }
 0x553   : > { %v9943_v2 = vadd.f32 %v3669_v8, %v9649_v14  ;;  %5574 = vrsqrt.f32 %v3768_v49  ;;  %vm3790_vm6 = vcmp.eq.f32.partialorder %v3768_v49, inf  ;;  %v3793_v58 = vand.u32 2147483648, %v3768_v49 }
 0x554   : > { %vm3792_vm9 = vcmp.eq.f32.partialorder %v3768_v49, 0.0 }
 0x556   : > { %v3885_v63 = vpop.permute.xlu0 %3884 }
 0x557   : > { %5290 = vset.pattern.permute.xlu1 %v10913_v43  ;;  %v3887_v19 = vadd.f32 %v9683_v59, %v3885_v63 }
 0x559   : > { %v5575_v11 = vpop.eup %5574  ;;  %v3892_v39 = vsub.f32 %v3887_v19, %v3890_v44 }
 0x55a   : > { %v3784_v25 = vmul.f32 %v5575_v11, %v3768_v49 }
 0x55b   : > { %v3893_v29 = vmax.f32 %v3892_v39, 0.0 }
 0x55c   : > { %v3785_v32 = vmul.f32 %v5575_v11, %v3784_v25  ;;  %v5691_v25 = vld [vmem:[%s6068_s7] sm:$0xff] }
 0x55d   : > { %5576 = vrsqrt.f32 %v3893_v29  ;;  %vm3901_vm12 = vcmp.eq.f32.partialorder %v3893_v29, inf  ;;  %v3904_v53 = vand.u32 2147483648, %v3893_v29  ;;  %vm3903_vm15 = vcmp.eq.f32.partialorder %v3893_v29, 0.0 }
 0x55e   : > { %v3786_v56 = vmul.f32 0.5, %v3785_v32  ;;  %v4061_v48 = vpop.permute.xlu0 %4060  ;;  %v9970_v13 = vperm.slane %v5691_v25, 6 }
 0x55f   : > { %v4063_v14 = vadd.f32 %v9947_v3, %v4061_v48 }
 0x560   : > { %v3787_v34 = vsub.f32 1.5, %v3786_v56 }
 0x561   : > { %v4068_v22 = vsub.f32 %v4063_v14, %v4066_v40 }
 0x562   : > { %v3788_v36 = vmul.f32 %v5575_v11, %v3787_v34 }
 0x563   : > { %v5577_v21 = vpop.eup %5576  ;;  %v4069_v59 = vmax.f32 %v4068_v22, 0.0  ;;  %v5692_v22 = vld [vmem:[#allocation2 + $0x18] sm:$0xff] }
 0x564   : > { %v3895_v44 = vmul.f32 %v5577_v21, %v3893_v29  ;;  %v3789_v55 = vmul.f32 %v3788_v36, %v3768_v49  ;;  %v9980_v36 = vstv %s5118_s3 }
 0x565   : > { %5578 = vrsqrt.f32 %v4069_v59  ;;  %vm4077_vm13 = vcmp.eq.f32.partialorder %v4069_v59, inf  ;;  %v4080_v56 = vand.u32 2147483648, %v4069_v59  ;;  %vm4079_vm11 = vcmp.eq.f32.partialorder %v4069_v59, 0.0 }
 0x566   : > { %v3896_v5 = vmul.f32 %v5577_v21, %v3895_v44  ;;  %v9954_v18 = vpop.permute.xlu0 %4294  ;;  %v3791_v35 = vsel %vm3790_vm6, %v3768_v49, %v3789_v55  ;;  %5580 = vrcp.f32 %v9957_v57  ;;  %v3696_v49 = vsub.f32 %v9692_v37, %v9750_v41 }
 0x567   : > { %v3794_v40 = vsel %vm3792_vm9, %v3793_v58, %v3791_v35  ;;  %v10949_v35 = vld [vmem:[#allocation93_spill] sm:$0xff] }
 0x568   : > { %v3897_v31 = vmul.f32 0.5, %v3896_v5  ;;  %v3820_v30 = vmax.f32 %v3794_v40, 1e-12  ;;  %v3701_v9 = vsub.f32 %v3696_v49, %v9970_v13 }
 0x56a   : > { %v3898_v38 = vsub.f32 1.5, %v3897_v31  ;;  %5582 = vrcp.f32 %v3820_v30  ;;  %v9986_v31 = vperm.slane %v9983_v24, 6  ;;  %v3849_v55 = vand.u32 2147483648, %v3820_v30 }
 0x56b   : > { %v5579_v0 = vpop.eup %5578  ;;  %vm3843_vm10 = vweird.f32 %v3820_v30 }
 0x56c   : > { %v3899_v10 = vmul.f32 %v5577_v21, %v3898_v38  ;;  %v4071_v62 = vmul.f32 %v5579_v0, %v4069_v59  ;;  %v9964_v11 = vpop.eup %5580  ;;  %v3699_v21 = vsub.f32 %v5692_v22, %v9789_v12  ;;  %v3847_v12 = vand.u32 2147483647, %v3820_v30 }
 0x56d   : > { %v4000_v48 = vmul.f32 %v9964_v11, %v9957_v57  ;;  %v3850_v49 = vor.u32 1.1754944e-38, %v3849_v55  ;;  %vm4005_vm14 = vweird.f32 %v9964_v11  ;;  %v10014_v55 = vld [vmem:[%s6055_s6 + $0x7] ss:$0 sm:$0xff]  ;;  %s3675_s6 = sadd.s32 6, %s6044_s29 }
 0x56e   : > { %v3900_v15 = vmul.f32 %v3899_v10, %v3893_v29  ;;  %v4072_v16 = vmul.f32 %v5579_v0, %v4071_v62  ;;  %v9959_v50 = vpop.permute.xlu0 %4468  ;;  %v9991_v62 = vld [vmem:[#allocation3 + $0x10] sm:$0xff]  ;;  %vm3848_vm4 = vcmp.eq.f32.partialorder %v3847_v12, 8.507059e+37  ;;  %vm10021_vm6 = vmor %vm4004_vm3, %vm4005_vm14 }
 0x56f   : > { %v4001_v5 = vsub.f32 1.0, %v4000_v48  ;;  %v3731_v58 = vsub.f32 %v9991_v62, %v10949_v35  ;;  %v5695_v48 = vld [vmem:[#allocation4 + $0x8] sm:$0xff] }
 0x570   : > { %v3902_v8 = vsel %vm3901_vm12, %v3893_v29, %v3900_v15  ;;  %v4073_v26 = vmul.f32 0.5, %v4072_v16  ;;  %v5583_v14 = vpop.eup %5582  ;;  %v3704_v15 = vsub.f32 %v3699_v21, %v9970_v13  ;;  %v9997_v16 = vld [vmem:[%s6050_s5 + $0x7] ss:$0 sm:$0xff]  ;;  %s5120_s5 = spop %5119 }
 0x571   : > { %v3905_v63 = vsel %vm3903_vm15, %v3904_v53, %v3902_v8  ;;  %v3839_v41 = vmul.f32 %v5583_v14, %v3820_v30  ;;  %vm3844_vm0 = vweird.f32 %v5583_v14 }
 0x572   : > { %v4074_v19 = vsub.f32 1.5, %v4073_v26  ;;  %v9962_v17 = vmax.f32 %v3905_v63, 1e-12  ;;  %vm3845_vm1 = vmor %vm3843_vm10, %vm3844_vm0 }
 0x573   : > { %v3840_v46 = vsub.f32 1.0, %v3839_v41 }
 0x574   : > { %v4075_v39 = vmul.f32 %v5579_v0, %v4074_v19  ;;  %5584 = vrcp.f32 %v9962_v17  ;;  %v3918_v63 = vand.u32 2147483648, %v9962_v17  ;;  %v4002_v19 = vmul.f32 %v9964_v11, %v4001_v5 }
 0x575   : > { %v3841_v0 = vmul.f32 %v5583_v14, %v3840_v46  ;;  %v3916_v25 = vand.u32 2147483647, %v9962_v17  ;;  %vm3912_vm2 = vweird.f32 %v9962_v17  ;;  %v3712_v46 = vadd.f32 %v9980_v36, %v3704_v15 }
 0x576   : > { %v4076_v32 = vmul.f32 %v4075_v39, %v4069_v59  ;;  %v9972_v29 = vpop.permute.xlu0 %4474  ;;  %v3919_v22 = vor.u32 1.1754944e-38, %v3918_v63  ;;  %v4003_v21 = vadd.f32 %v9964_v11, %v4002_v19 }
 0x577   : > { %v3842_v26 = vadd.f32 %v5583_v14, %v3841_v0  ;;  %vm3917_vm8 = vcmp.eq.f32.partialorder %v3916_v25, 8.507059e+37 }
 0x578   : > { %v4078_v37 = vsel %vm4077_vm13, %v4069_v59, %v4076_v32  ;;  %v3709_v59 = vadd.f32 %v9980_v36, %v3701_v9  ;;  %v4289_v9 = vadd.f32 %v5695_v48, %v9997_v16 }
 0x579   : > { %v4081_v34 = vsel %vm4079_vm11, %v4080_v56, %v4078_v37  ;;  %v3846_v32 = vsel %vm3845_vm1, %v5583_v14, %v3842_v26  ;;  %v4010_v56 = vand.u32 2147483648, %v9957_v57 }
 0x57a   : > { %v9978_v44 = vmax.f32 %v4081_v34, 1e-12  ;;  %v5585_v45 = vpop.eup %5584  ;;  %v3851_v30 = vsel %vm3848_vm4, %v3850_v49, %v3846_v32  ;;  %v3736_v34 = vsub.f32 %v3731_v58, %v9986_v31  ;;  %v4305_v12 = vsub.f32 %v4289_v9, %v9954_v18 }
 0x57b   : > { %v3908_v38 = vmul.f32 %v5585_v45, %v9962_v17  ;;  %vm3913_vm7 = vweird.f32 %v5585_v45  ;;  %4105 = vperm.xlu2 %5283, %v3851_v30   ;;  %v4008_v17 = vand.u32 2147483647, %v9957_v57  ;;  %v4007_v57 = vsel %vm10021_vm6, %v9964_v11, %v4003_v21 }
 0x57c   : > { %5586 = vrcp.f32 %v9978_v44  ;;  %vm3914_vm5 = vmor %vm3912_vm2, %vm3913_vm7  ;;  %v4092_v26 = vand.u32 2147483647, %v9978_v44  ;;  %v4094_v18 = vand.u32 2147483648, %v9978_v44  ;;  %vm4088_vm15 = vweird.f32 %v9978_v44 }
 0x57d   : > { %v3909_v40 = vsub.f32 1.0, %v3908_v38  ;;  %v4011_v38 = vor.u32 1.1754944e-38, %v4010_v56  ;;  %vm4009_vm12 = vcmp.eq.f32.partialorder %v4008_v17, 8.507059e+37  ;;  %v4464_v11 = vadd.f32 %v9900_v20, %v10014_v55 }
 0x57e   : > { %v9999_v53 = vpop.permute.xlu0 %4226  ;;  %vm4093_vm11 = vcmp.eq.f32.partialorder %v4092_v26, 8.507059e+37  ;;  %v10088_v26 = vld [vmem:[#allocation3 + $0x18] sm:$0xff] }
 0x57f   : > { %v3910_v39 = vmul.f32 %v5585_v45, %v3909_v40  ;;  %v4467_v40 = vadd.f32 %v9830_v33, %v10014_v55  ;;  %v10042_v33 = vmax.f32 %v4305_v12, 0.0  ;;  %v4012_v25 = vsel %vm4009_vm12, %v4011_v38, %v4007_v57  ;;  %v10075_v12 = vld [vmem:[#allocation3 + $0x8] sm:$0xff] }
 0x580   : > { %v4101_v10 = vpop.permute.xlu1 %4100  ;;  %v10084_v57 = vstv %s3675_s6 }
 0x581   : > { %v4118_v8 = vmul.f32 %v4101_v10, %v3709_v59  ;;  %v3911_v37 = vadd.f32 %v5585_v45, %v3910_v39  ;;  %v10040_v39 = vstv %s5120_s5  ;;  %v4483_v56 = vsub.f32 %v4467_v40, %v9972_v29 }
 0x582   : > { %v5587_v41 = vpop.eup %5586  ;;  %v3744_v48 = vadd.f32 %v10040_v39, %v3736_v34  ;;  %5588 = vrsqrt.f32 %v10042_v33  ;;  %v4480_v29 = vsub.f32 %v4464_v11, %v9959_v50  ;;  %v10071_v50 = vld [vmem:[#allocation1 + $0x7] ss:$9 sm:$0xff]  ;;  %vm4191_vm0 = vcmp.ne.s32.totalorder %v8624_v60, %v10084_v57 }
 0x583   : > { %v3915_v14 = vsel %vm3914_vm5, %v5585_v45, %v3911_v37  ;;  %v4084_v5 = vmul.f32 %v5587_v41, %v9978_v44  ;;  %vm4089_vm9 = vweird.f32 %v5587_v41  ;;  %4131 = vperm.xlu2 %5283, %v4012_v25   ;;  %4605 = vst [vmem:[#allocation1] sm:$0xff] %v10946_v27  ;;  %vm4193_vm10 = vcmp.ne.s32.totalorder %v8618_v47, %v10084_v57 }
 0x584   : > { %v3920_v59 = vsel %vm3917_vm8, %v3919_v22, %v3915_v14  ;;  %vm4090_vm13 = vmor %vm4088_vm15, %vm4089_vm9  ;;  %v10049_v22 = vld [vmem:[#allocation2 + $0x10] sm:$0xff]  ;;  %vm4331_vm3 = vcmp.eq.f32.partialorder %v10042_v33, inf  ;;  %vm4333_vm6 = vcmp.eq.f32.partialorder %v10042_v33, 0.0 }
 0x585   : > { %v10019_v10 = vperm.slane %v3920_v59, 0  ;;  %v4085_v15 = vsub.f32 1.0, %v4084_v5  ;;  %v3698_v21 = vsub.f32 %v10049_v22, %v9699_v23  ;;  %v4290_v5 = vadd.f32 %v9802_v52, %v9997_v16  ;;  %vm4206_vm1 = vmand %vm4191_vm0, %vm4193_vm10 }
 0x586   : > { %v10025_v35 = vpop.permute.xlu0 %4255  ;;  %v10065_v23 = vmax.f32 %v4480_v29, 0.0  ;;  %v3730_v52 = vsub.f32 %v10075_v12, %v9798_v42  ;;  %v3732_v42 = vsub.f32 %v10088_v26, %v9715_v54 }
 0x587   : > { %v10035_v63 = vmul.f32 %v10019_v10, %v4118_v8  ;;  %v4086_v49 = vmul.f32 %v5587_v41, %v4085_v15  ;;  %v4095_v8 = vor.u32 1.1754944e-38, %v4094_v18  ;;  %v3703_v34 = vsub.f32 %v3698_v21, %v9970_v13 }
 0x588   : > { %v4116_v0 = vpop.permute.xlu1 %4115  ;;  %v5589_v59 = vpop.eup %5588  ;;  %v3735_v18 = vsub.f32 %v3730_v52, %v9986_v31  ;;  %vm4495_vm15 = vcmp.eq.f32.partialorder %v10065_v23, inf }
 0x589   : > { %v4121_v58 = vmul.f32 %v4116_v0, %v3712_v46  ;;  %v4087_v32 = vadd.f32 %v5587_v41, %v4086_v49  ;;  %v10059_v46 = vmax.f32 %v4483_v56, 0.0  ;;  %v3711_v38 = vadd.f32 %v9980_v36, %v3703_v34 }
 0x58b   : > { %v10038_v19 = vmul.f32 %v10019_v10, %v4121_v58  ;;  %v4091_v9 = vsel %vm4090_vm13, %v5587_v41, %v4087_v32  ;;  %4292 = vrot.lane.b32.xlu2 %v10931_v28, %s5891_s26  ;;  %5590 = vrsqrt.f32 %v10059_v46  ;;  %v4325_v28 = vmul.f32 %v5589_v59, %v10042_v33 }
 0x58c   : > { %v4096_v37 = vsel %vm4093_vm11, %v4095_v8, %v4091_v9  ;;  %5284 = vset.pattern.permute.xlu2 %v5892_v7  ;;  %5592 = vrsqrt.f32 %v10065_v23  ;;  %vm4531_vm9 = vcmp.eq.f32.partialorder %v10059_v46, inf  ;;  %vm4533_vm12 = vcmp.eq.f32.partialorder %v10059_v46, 0.0 }
 0x58d   : > { %v10056_v14 = vperm.slane %v4096_v37, 0  ;;  %v4326_v49 = vmul.f32 %v5589_v59, %v4325_v28  ;;  %v10952_v28 = vld [vmem:[#allocation30_spill] sm:$0xff]  ;;  %vm4497_vm13 = vcmp.eq.f32.partialorder %v10065_v23, 0.0 }
 0x58e   : > { %v10054_v44 = vpop.permute.xlu0 %4267 }
 0x58f   : > { %v4327_v9 = vmul.f32 0.5, %v4326_v49 }
 0x590   : > { %v4142_v30 = vpop.permute.xlu1 %4141 }
 0x591   : > { %v4151_v20 = vmul.f32 %v4142_v30, %v3744_v48  ;;  %v5591_v40 = vpop.eup %5590  ;;  %v3737_v48 = vsub.f32 %v3732_v42, %v9986_v31 }
 0x592   : > { %v5593_v32 = vpop.eup %5592  ;;  %v4525_v11 = vmul.f32 %v5591_v40, %v10059_v46 }
 0x593   : > { %v4158_v41 = vmul.f32 %v10056_v14, %v4151_v20  ;;  %4298 = vrot.lane.b32.xlu2 %v10859_v51, %s5891_s26  ;;  %v3743_v51 = vadd.f32 %v10040_v39, %v3735_v18  ;;  %v4489_v21 = vmul.f32 %v5593_v32, %v10065_v23  ;;  %v3745_v42 = vadd.f32 %v10040_v39, %v3737_v48  ;;  %v10954_v48 = vld [vmem:[#allocation39_spill] sm:$0xff] }
 0x594   : > { %vm4192_vm4 = vcmp.ne.s32.totalorder %v10954_v48, %v10084_v57 }
 0x595   : > { %vm4207_vm14 = vmand %vm4192_vm4, %vm4193_vm10 }
 0x597   : > { %v4111_v45 = vpop.permute.xlu0 %4110 }
 0x598   : > { %v4297_v17 = vpop.permute.xlu1 %4296  ;;  %v4120_v58 = vmul.f32 %v4111_v45, %v3711_v38  ;;  %v4328_v38 = vsub.f32 1.5, %v4327_v9 }
 0x599   : > { %v4306_v0 = vsub.f32 %v4290_v5, %v4297_v17 }
 0x59a   : > { %v4127_v27 = vmul.f32 %v10019_v10, %v4120_v58  ;;  %v4490_v58 = vmul.f32 %v5593_v32, %v4489_v21 }
 0x59b   : > { %v10082_v15 = vmax.f32 %v4306_v0, 0.0  ;;  %4472 = vrot.lane.b32.xlu2 %v10952_v28, %s5891_s26 }
 0x59c   : > { %v4162_v25 = vsub.f32 %v4127_v27, %v4158_v41  ;;  %v4526_v41 = vmul.f32 %v5591_v40, %v4525_v11  ;;  %v4491_v9 = vmul.f32 0.5, %v4490_v58 }
 0x59d   : > { %5594 = vrsqrt.f32 %v10082_v15  ;;  %vm4343_vm2 = vcmp.eq.f32.partialorder %v10082_v15, inf  ;;  %vm4345_vm5 = vcmp.eq.f32.partialorder %v10082_v15, 0.0 }
 0x59e   : > { %v4166_v56 = vand.u32 2147483647, %v4162_v25  ;;  %v4174_v54 = vmul.f32 0.5, %v4162_v25  ;;  %v4527_v18 = vmul.f32 0.5, %v4526_v41  ;;  %v4492_v41 = vsub.f32 1.5, %v4491_v9 }
 0x59f   : > { %v4137_v30 = vpop.permute.xlu0 %4136 }
 0x5a0   : > { %v10100_v8 = vpop.permute.xlu1 %4470  ;;  %vm4170_vm7 = vcmp.lt.f32.partialorder %v4166_v56, 1.0  ;;  %v4178_v20 = vmul.f32 %v4174_v54, %v4162_v25  ;;  %v5066_v29 = vadd.f32 -0.5, %v4166_v56  ;;  %v4150_v5 = vmul.f32 %v4137_v30, %v3743_v51 }
 0x5a1   : > { %v4329_v56 = vmul.f32 %v5589_v59, %v4328_v38  ;;  %v4528_v51 = vsub.f32 1.5, %v4527_v18  ;;  %v4493_v58 = vmul.f32 %v5593_v32, %v4492_v41  ;;  %v4534_v32 = vand.u32 2147483648, %v10059_v46 }
 0x5a2   : > { %v4186_v17 = vsel %vm4170_vm7, %v4178_v20, %v5066_v29  ;;  %v10112_v45 = vmul.f32 %v10056_v14, %v4150_v5 }
 0x5a3   : > { %v5595_v37 = vpop.eup %5594  ;;  %v4210_v0 = vsel %vm4206_vm1, %v4186_v17, 0.0  ;;  %v4330_v21 = vmul.f32 %v4329_v56, %v10042_v33  ;;  %v4529_v17 = vmul.f32 %v5591_v40, %v4528_v51  ;;  %v4334_v40 = vand.u32 2147483648, %v10042_v33 }
 0x5a4   : > { %v4337_v34 = vmul.f32 %v5595_v37, %v10082_v15  ;;  %v10115_v27 = vadd.f32 %v4210_v0, %v9943_v2  ;;  %v4494_v9 = vmul.f32 %v4493_v58, %v10065_v23 }
 0x5a5   : > { %v4332_v28 = vsel %vm4331_vm3, %v10042_v33, %v4330_v21 }
 0x5a6   : > { %v4338_v52 = vmul.f32 %v5595_v37, %v4337_v34  ;;  %v10953_v34 = vld [vmem:[#allocation18_spill] sm:$0xff] }
 0x5a7   : > { %4222 = vperm.xlu2 %5284, %v10953_v34  }
 0x5a8   : > { %v4339_v49 = vmul.f32 0.5, %v4338_v52  ;;  %v4147_v25 = vpop.permute.xlu1 %4146 }
 0x5a9   : > { %v4152_v11 = vmul.f32 %v4147_v25, %v3745_v42  ;;  %v4335_v25 = vsel %vm4333_vm6, %v4334_v40, %v4332_v28 }
 0x5aa   : > { %v4340_v54 = vsub.f32 1.5, %v4339_v49 }
 0x5ab   : > { %v4159_v30 = vmul.f32 %v10056_v14, %v4152_v11  ;;  %v10955_v11 = vld [vmem:[#allocation78_spill] sm:$0xff] }
 0x5ac   : > { %v4341_v20 = vmul.f32 %v5595_v37, %v4340_v54  ;;  %v10141_v54 = vmax.f32 %v4335_v25, 1e-12 }
 0x5ad   : > { %v4163_v29 = vsub.f32 %v10038_v19, %v4159_v30  ;;  %v4346_v19 = vand.u32 2147483648, %v10082_v15 }
 0x5ae   : > { %v4342_v2 = vmul.f32 %v4341_v20, %v10082_v15  ;;  %v4496_v20 = vsel %vm4495_vm15, %v10065_v23, %v4494_v9 }
 0x5af   : > { %v4167_v5 = vand.u32 2147483647, %v4163_v29  ;;  %v4175_v59 = vmul.f32 0.5, %v4163_v29  ;;  %5286 = vset.pattern.permute.xlu2 %v10913_v43 }
 0x5b0   : > { %v4344_v38 = vsel %vm4343_vm2, %v10082_v15, %v4342_v2  ;;  %v4530_v15 = vmul.f32 %v4529_v17, %v10059_v46  ;;  %4601 = vperm.xlu2 %5286, %v9938_v6  }
 0x5b1   : > { %vm4171_vm8 = vcmp.lt.f32.partialorder %v4167_v5, 1.0  ;;  %v4179_v37 = vmul.f32 %v4175_v59, %v4163_v29  ;;  %v5067_v0 = vadd.f32 -0.5, %v4167_v5  ;;  %v4347_v52 = vsel %vm4345_vm5, %v4346_v19, %v4344_v38  ;;  %v10956_v59 = vld [vmem:[#allocation34_spill] sm:$0xff] }
 0x5b2   : > { %v4362_v18 = vmax.f32 %v4347_v52, 1e-12  ;;  %v4532_v33 = vsel %vm4531_vm9, %v10059_v46, %v4530_v15  ;;  %v4498_v29 = vand.u32 2147483648, %v10065_v23  ;;  %vm4384_vm5 = vweird.f32 %v10141_v54 }
 0x5b3   : > { %v4187_v42 = vsel %vm4171_vm8, %v4179_v37, %v5067_v0  ;;  %v4535_v51 = vsel %vm4533_vm12, %v4534_v32, %v4532_v33  ;;  %v4390_v32 = vand.u32 2147483648, %v10141_v54 }
 0x5b4   : > { %v4211_v49 = vsel %vm4207_vm14, %v4187_v42, 0.0  ;;  %5596 = vrcp.f32 %v4362_v18  ;;  %v4539_v6 = vmax.f32 %v4535_v51, 1e-12  ;;  %v4499_v2 = vsel %vm4497_vm13, %v4498_v29, %v4496_v20 }
 0x5b5   : > { %v10138_v56 = vadd.f32 %v4211_v49, %v10955_v11  ;;  %5598 = vrcp.f32 %v10141_v54  ;;  %v4405_v5 = vand.u32 2147483648, %v4362_v18  ;;  %v4403_v38 = vand.u32 2147483647, %v4362_v18  ;;  %v10957_v49 = vld [vmem:[#allocation26_spill] sm:$0xff] }
 0x5b6   : > { %5600 = vrcp.f32 %v4539_v6  ;;  %v4536_v19 = vmax.f32 %v4499_v2, 1e-12  ;;  %vm4399_vm0 = vweird.f32 %v4362_v18  ;;  %v4594_v25 = vand.u32 2147483647, %v4539_v6 }
 0x5b7   : > { %v4406_v23 = vor.u32 1.1754944e-38, %v4405_v5  ;;  %vm4404_vm7 = vcmp.eq.f32.partialorder %v4403_v38, 8.507059e+37  ;;  %v4596_v11 = vand.u32 2147483648, %v4539_v6  ;;  %v4388_v51 = vand.u32 2147483647, %v10141_v54 }
 0x5b8   : > { %5288 = vset.pattern.permute.xlu2 %v5892_v7  ;;  %5602 = vrcp.f32 %v4536_v19  ;;  %vm4590_vm8 = vweird.f32 %v4539_v6  ;;  %vm4595_vm6 = vcmp.eq.f32.partialorder %v4594_v25, 8.507059e+37  ;;  %vm4545_vm15 = vweird.f32 %v4536_v19 }
 0x5b9   : > { %4234 = vperm.xlu2 %5288, %v10956_v59   ;;  %vm4389_vm9 = vcmp.eq.f32.partialorder %v4388_v51, 8.507059e+37  ;;  %v4549_v38 = vand.u32 2147483647, %v4536_v19 }
 0x5ba   : > { %v5597_v30 = vpop.eup %5596 }
 0x5bb   : > { %v4395_v21 = vmul.f32 %v5597_v30, %v4362_v18  ;;  %v5599_v34 = vpop.eup %5598  ;;  %vm4400_vm11 = vweird.f32 %v5597_v30 }
 0x5bc   : > { %v4380_v46 = vmul.f32 %v5599_v34, %v10141_v54  ;;  %vm4401_vm1 = vmor %vm4399_vm0, %vm4400_vm11  ;;  %v5601_v52 = vpop.eup %5600  ;;  %vm4385_vm4 = vweird.f32 %v5599_v34  ;;  %vm4550_vm11 = vcmp.eq.f32.partialorder %v4549_v38, 8.507059e+37  ;;  %vm4190_vm0 = vcmp.ne.s32.totalorder %v10944_v1, %v10084_v57 }
 0x5bd   : > { %v4396_v41 = vsub.f32 1.0, %v4395_v21  ;;  %v4586_v58 = vmul.f32 %v5601_v52, %v4539_v6  ;;  %vm4591_vm2 = vweird.f32 %v5601_v52  ;;  %vm10160_vm14 = vmor %vm4384_vm5, %vm4385_vm4  ;;  %v4597_v21 = vor.u32 1.1754944e-38, %v4596_v11 }
 0x5be   : > { %v4381_v37 = vsub.f32 1.0, %v4380_v46  ;;  %v5603_v15 = vpop.eup %5602  ;;  %vm4592_vm3 = vmor %vm4590_vm8, %vm4591_vm2  ;;  %v4391_v46 = vor.u32 1.1754944e-38, %v4390_v32  ;;  %v4551_v6 = vand.u32 2147483648, %v4536_v19 }
 0x5bf   : > { %v4397_v17 = vmul.f32 %v5597_v30, %v4396_v41  ;;  %v4587_v42 = vsub.f32 1.0, %v4586_v58  ;;  %v4541_v18 = vmul.f32 %v5603_v15, %v4536_v19  ;;  %vm4546_vm12 = vweird.f32 %v5603_v15 }
 0x5c0   : > { %v4382_v7 = vmul.f32 %v5599_v34, %v4381_v37  ;;  %vm4547_vm13 = vmor %vm4545_vm15, %vm4546_vm12 }
 0x5c1   : > { %v4398_v0 = vadd.f32 %v5597_v30, %v4397_v17  ;;  %4263 = vperm.xlu2 %5288, %v10957_v49   ;;  %v4588_v33 = vmul.f32 %v5601_v52, %v4587_v42  ;;  %v4542_v29 = vsub.f32 1.0, %v4541_v18 }
 0x5c2   : > { %v4383_v9 = vadd.f32 %v5599_v34, %v4382_v7 }
 0x5c3   : > { %v4402_v28 = vsel %vm4401_vm1, %v5597_v30, %v4398_v0  ;;  %v4589_v20 = vadd.f32 %v5601_v52, %v4588_v33  ;;  %v4543_v5 = vmul.f32 %v5603_v15, %v4542_v29  ;;  %v4552_v0 = vor.u32 1.1754944e-38, %v4551_v6  ;;  %vm4205_vm1 = vmand %vm4190_vm0, %vm4193_vm10  ;;  %v5701_v29 = vld [vmem:[#allocation4] sm:$0xff] }
 0x5c4   : > { %v4407_v40 = vsel %vm4404_vm7, %v4406_v23, %v4402_v28  ;;  %v4387_v2 = vsel %vm10160_vm14, %v5599_v34, %v4383_v9  ;;  %v10960_v34 = vld [vmem:[#allocation84_spill] sm:$0xff] }
 0x5c5   : > { %4651 = vperm.xlu0 %5289, %v4407_v40   ;;  %v4593_v41 = vsel %vm4592_vm3, %v5601_v52, %v4589_v20  ;;  %v4392_v17 = vsel %vm4389_vm9, %v4391_v46, %v4387_v2  ;;  %v4544_v54 = vadd.f32 %v5603_v15, %v4543_v5  ;;  %v3697_v23 = vsub.f32 %v9896_v4, %v10960_v34  ;;  %v10171_v40 = vld [vmem:[#allocation3] sm:$0xff]  ;;  %v5700_v9 = vld [vmem:[#allocation6 + $0x8] sm:$0xff] }
 0x5c6   : > { %v4598_v59 = vsel %vm4595_vm6, %v4597_v21, %v4593_v41  ;;  %v4465_v33 = vadd.f32 %v5700_v9, %v10014_v55  ;;  %v4288_v21 = vadd.f32 %v5701_v29, %v9997_v16  ;;  %v10962_v2 = vld [vmem:[#allocation71_spill] sm:$0xff]  ;;  %v10963_v6 = vld [vmem:[#allocation72_spill] sm:$0xff] }
 0x5c7   : > { %v4548_v37 = vsel %vm4547_vm13, %v5603_v15, %v4544_v54  ;;  %v3702_v28 = vsub.f32 %v3697_v23, %v9970_v13  ;;  %vm4189_vm4 = vcmp.ne.s32.totalorder %v10962_v2, %v10084_v57 }
 0x5c8   : > { %v4553_v52 = vsel %vm4550_vm11, %v4552_v0, %v4548_v37  ;;  %v4481_v30 = vsub.f32 %v4465_v33, %v10100_v8  ;;  %vm4204_vm2 = vmand %vm4189_vm4, %vm4193_vm10  ;;  %v5702_v37 = vld [vmem:[#allocation4 + $0x18] sm:$0xff] }
 0x5c9   : > { %5291 = vset.pattern.permute.xlu2 %v10913_v43  ;;  %v10961_v43 = vld [vmem:[#allocation91_spill] sm:$0xff]  ;;  %v3710_v58 = vadd.f32 %v9980_v36, %v3702_v28  ;;  %v4291_v0 = vadd.f32 %v5702_v37, %v9997_v16 }
 0x5ca   : > { %4646 = vperm.xlu2 %5291, %v4392_v17   ;;  %v3729_v7 = vsub.f32 %v10171_v40, %v10961_v43  ;;  %v10195_v46 = vmax.f32 %v4481_v30, 0.0 }
 0x5cc   : > { %v3734_v15 = vsub.f32 %v3729_v7, %v9986_v31  ;;  %5604 = vrsqrt.f32 %v10195_v46  ;;  %v5703_v7 = vld [vmem:[#allocation6 + $0x10] sm:$0xff]  ;;  %vm4507_vm6 = vcmp.eq.f32.partialorder %v10195_v46, inf  ;;  %vm4509_vm9 = vcmp.eq.f32.partialorder %v10195_v46, 0.0 }
 0x5cd   : > { %4687 = vperm.xlu0 %5289, %v4598_v59  }
 0x5ce   : > { %v3742_v11 = vadd.f32 %v10040_v39, %v3734_v15 }
 0x5d2   : > { %4672 = vperm.xlu2 %5291, %v4553_v52   ;;  %v5605_v57 = vpop.eup %5604 }
 0x5d5   : > { %v4106_v42 = vpop.permute.xlu2 %4105 }
 0x5d6   : > { %v4119_v19 = vmul.f32 %v4106_v42, %v3710_v58  ;;  %v4466_v58 = vadd.f32 %v5703_v7, %v10014_v55  ;;  %v4501_v42 = vmul.f32 %v5605_v57, %v10195_v46 }
 0x5d8   : > { %v4126_v49 = vmul.f32 %v10019_v10, %v4119_v19 }
 0x5da   : > { %v4161_v4 = vsub.f32 %v4126_v49, %v10112_v45 }
 0x5dc   : > { %v4165_v25 = vand.u32 2147483647, %v4161_v4  ;;  %v4173_v13 = vmul.f32 0.5, %v4161_v4 }
 0x5dd   : > { %v4132_v18 = vpop.permute.xlu2 %4131 }
 0x5de   : > { %vm4169_vm7 = vcmp.lt.f32.partialorder %v4165_v25, 1.0  ;;  %v4177_v36 = vmul.f32 %v4173_v13, %v4161_v4  ;;  %v5065_v31 = vadd.f32 -0.5, %v4165_v25  ;;  %v4149_v10 = vmul.f32 %v4132_v18, %v3742_v11 }
 0x5df   : > { %v4502_v25 = vmul.f32 %v5605_v57, %v4501_v42 }
 0x5e0   : > { %v4185_v45 = vsel %vm4169_vm7, %v4177_v36, %v5065_v31  ;;  %v4156_v32 = vmul.f32 %v10056_v14, %v4149_v10 }
 0x5e1   : > { %v4209_v51 = vsel %vm4205_vm1, %v4185_v45, 0.0  ;;  %v4503_v18 = vmul.f32 0.5, %v4502_v25 }
 0x5e2   : > { %v10189_v39 = vadd.f32 %v4209_v51, %v9926_v61  ;;  %v4160_v20 = vsub.f32 %v10035_v63, %v4156_v32 }
 0x5e3   : > { %v4504_v45 = vsub.f32 1.5, %v4503_v18 }
 0x5e4   : > { %v4164_v41 = vand.u32 2147483647, %v4160_v20  ;;  %v4172_v5 = vmul.f32 0.5, %v4160_v20 }
 0x5e5   : > { %v4293_v59 = vpop.permute.xlu2 %4292 }
 0x5e6   : > { %vm4168_vm5 = vcmp.lt.f32.partialorder %v4164_v41, 1.0  ;;  %v4176_v61 = vmul.f32 %v4172_v5, %v4160_v20  ;;  %v5064_v14 = vadd.f32 -0.5, %v4164_v41  ;;  %v4304_v8 = vsub.f32 %v4288_v21, %v4293_v59 }
 0x5e7   : > { %v4505_v41 = vmul.f32 %v5605_v57, %v4504_v45 }
 0x5e8   : > { %v4184_v63 = vsel %vm4168_vm5, %v4176_v61, %v5064_v14  ;;  %v4308_v17 = vmax.f32 %v4304_v8, 0.0 }
 0x5e9   : > { %v4208_v54 = vsel %vm4204_vm2, %v4184_v63, 0.0 }
 0x5ea   : > { %v10202_v38 = vadd.f32 %v4208_v54, %v10963_v6  ;;  %5606 = vrsqrt.f32 %v4308_v17  ;;  %vm4319_vm10 = vcmp.eq.f32.partialorder %v4308_v17, inf  ;;  %v4322_v30 = vand.u32 2147483648, %v4308_v17 }
 0x5eb   : > { %vm4321_vm14 = vcmp.eq.f32.partialorder %v4308_v17, 0.0  ;;  %v4506_v54 = vmul.f32 %v4505_v41, %v10195_v46 }
 0x5ed   : > { %v4299_v34 = vpop.permute.xlu2 %4298 }
 0x5ee   : > { %v4307_v23 = vsub.f32 %v4291_v0, %v4299_v34 }
 0x5f0   : > { %v5607_v52 = vpop.eup %5606  ;;  %v4311_v28 = vmax.f32 %v4307_v23, 0.0  ;;  %v4508_v23 = vsel %vm4507_vm6, %v10195_v46, %v4506_v54 }
 0x5f1   : > { %v4313_v43 = vmul.f32 %v5607_v52, %v4308_v17 }
 0x5f2   : > { %5608 = vrsqrt.f32 %v4311_v28  ;;  %vm4355_vm8 = vcmp.eq.f32.partialorder %v4311_v28, inf  ;;  %v4358_v8 = vand.u32 2147483648, %v4311_v28  ;;  %vm4357_vm3 = vcmp.eq.f32.partialorder %v4311_v28, 0.0 }
 0x5f3   : > { %v4314_v19 = vmul.f32 %v5607_v52, %v4313_v43  ;;  %v4510_v43 = vand.u32 2147483648, %v10195_v46 }
 0x5f5   : > { %v4315_v15 = vmul.f32 0.5, %v4314_v19  ;;  %v4473_v49 = vpop.permute.xlu2 %4472 }
 0x5f6   : > { %v4482_v4 = vsub.f32 %v4466_v58, %v4473_v49 }
 0x5f7   : > { %v4316_v13 = vsub.f32 1.5, %v4315_v15 }
 0x5f8   : > { %v5609_v11 = vpop.eup %5608  ;;  %v4486_v16 = vmax.f32 %v4482_v4, 0.0 }
 0x5f9   : > { %v4317_v9 = vmul.f32 %v5607_v52, %v4316_v13  ;;  %v4349_v33 = vmul.f32 %v5609_v11, %v4311_v28 }
 0x5fa   : > { %5610 = vrsqrt.f32 %v4486_v16  ;;  %vm4519_vm12 = vcmp.eq.f32.partialorder %v4486_v16, inf  ;;  %v4522_v13 = vand.u32 2147483648, %v4486_v16  ;;  %vm4521_vm11 = vcmp.eq.f32.partialorder %v4486_v16, 0.0 }
 0x5fb   : > { %v4350_v36 = vmul.f32 %v5609_v11, %v4349_v33  ;;  %v4318_v31 = vmul.f32 %v4317_v9, %v4308_v17 }
 0x5fd   : > { %v4351_v10 = vmul.f32 0.5, %v4350_v36  ;;  %v4320_v29 = vsel %vm4319_vm10, %v4308_v17, %v4318_v31 }
 0x5fe   : > { %v4323_v21 = vsel %vm4321_vm14, %v4322_v30, %v4320_v29 }
 0x5ff   : > { %v4352_v32 = vsub.f32 1.5, %v4351_v10  ;;  %v4360_v61 = vmax.f32 %v4323_v21, 1e-12 }
 0x600   : > { %v5611_v55 = vpop.eup %5610 }
 0x601   : > { %v4353_v51 = vmul.f32 %v5609_v11, %v4352_v32  ;;  %v4513_v20 = vmul.f32 %v5611_v55, %v4486_v16  ;;  %5612 = vrcp.f32 %v4360_v61  ;;  %v4375_v58 = vand.u32 2147483648, %v4360_v61 }
 0x602   : > { %v4373_v49 = vand.u32 2147483647, %v4360_v61  ;;  %vm4369_vm13 = vweird.f32 %v4360_v61 }
 0x603   : > { %v4354_v5 = vmul.f32 %v4353_v51, %v4311_v28  ;;  %v4514_v59 = vmul.f32 %v5611_v55, %v4513_v20  ;;  %v4376_v9 = vor.u32 1.1754944e-38, %v4375_v58  ;;  %v4426_v58 = vpop.permute.xlu1 %4425 }
 0x604   : > { %vm4374_vm1 = vcmp.eq.f32.partialorder %v4373_v49, 8.507059e+37  ;;  %v4607_v49 = vld [vmem:[#allocation1 + $0x7] ss:$9 sm:$0xff] }
 0x605   : > { %v4515_v14 = vmul.f32 0.5, %v4514_v59  ;;  %v4356_v63 = vsel %vm4355_vm8, %v4311_v28, %v4354_v5  ;;  %v4511_v28 = vsel %vm4509_vm9, %v4510_v43, %v4508_v23 }
 0x606   : > { %v4359_v37 = vsel %vm4357_vm3, %v4358_v8, %v4356_v63  ;;  %v4537_v42 = vmax.f32 %v4511_v28, 1e-12  ;;  %v10212_v8 = vpop.permute.xlu2 %4222 }
 0x607   : > { %v4516_v6 = vsub.f32 1.5, %v4515_v14  ;;  %v4363_v0 = vmax.f32 %v4359_v37, 1e-12  ;;  %v5613_v17 = vpop.eup %5612 }
 0x608   : > { %v4365_v52 = vmul.f32 %v5613_v17, %v4360_v61  ;;  %vm4370_vm15 = vweird.f32 %v5613_v17  ;;  %v4566_v14 = vand.u32 2147483648, %v4537_v42  ;;  %vm4560_vm14 = vweird.f32 %v4537_v42 }
 0x609   : > { %v4517_v34 = vmul.f32 %v5611_v55, %v4516_v6  ;;  %5614 = vrcp.f32 %v4363_v0  ;;  %vm4371_vm0 = vmor %vm4369_vm13, %vm4370_vm15  ;;  %v4420_v36 = vand.u32 2147483648, %v4363_v0  ;;  %v4418_v32 = vand.u32 2147483647, %v4363_v0 }
 0x60a   : > { %v4366_v7 = vsub.f32 1.0, %v4365_v52  ;;  %5616 = vrcp.f32 %v4537_v42  ;;  %vm4414_vm4 = vweird.f32 %v4363_v0  ;;  %v4564_v63 = vand.u32 2147483647, %v4537_v42 }
 0x60b   : > { %v4518_v57 = vmul.f32 %v4517_v34, %v4486_v16  ;;  %v4421_v20 = vor.u32 1.1754944e-38, %v4420_v36  ;;  %vm4419_vm5 = vcmp.eq.f32.partialorder %v4418_v32, 8.507059e+37 }
 0x60c   : > { %v4367_v15 = vmul.f32 %v5613_v17, %v4366_v7  ;;  %vm4565_vm6 = vcmp.eq.f32.partialorder %v4564_v63, 8.507059e+37 }
 0x60d   : > { %v4520_v4 = vsel %vm4519_vm12, %v4486_v16, %v4518_v57 }
 0x60e   : > { %v4368_v11 = vadd.f32 %v5613_v17, %v4367_v15  ;;  %v4523_v46 = vsel %vm4521_vm11, %v4522_v13, %v4520_v4  ;;  %v4602_v28 = vpop.permute.xlu2 %4601 }
 0x60f   : > { %v5615_v19 = vpop.eup %5614  ;;  %v4538_v45 = vmax.f32 %v4523_v46, 1e-12  ;;  %v4604_v15 = vadd.f32 %v9947_v3, %v4602_v28  ;;  %v5705_v28 = vld [vmem:[%s6068_s7] sm:$0xff]  ;;  %s5122_s7 = spop %5121 }
 0x610   : > { %v4410_v25 = vmul.f32 %v5615_v19, %v4363_v0  ;;  %v4372_v18 = vsel %vm4371_vm0, %v5613_v17, %v4368_v11  ;;  %vm4415_vm7 = vweird.f32 %v5615_v19  ;;  %v5617_v55 = vpop.eup %5616  ;;  %v4567_v17 = vor.u32 1.1754944e-38, %v4566_v14  ;;  %s5124_s17 = spop %5123 }
 0x611   : > { %v4377_v31 = vsel %vm4374_vm1, %v4376_v9, %v4372_v18  ;;  %5618 = vrcp.f32 %v4538_v45  ;;  %vm4416_vm2 = vmor %vm4414_vm4, %vm4415_vm7  ;;  %v4556_v51 = vmul.f32 %v5617_v55, %v4537_v42  ;;  %vm4561_vm10 = vweird.f32 %v5617_v55  ;;  %v5704_v42 = vld [vmem:[#allocation5] sm:$0x1] }
 0x612   : > { %v4411_v33 = vsub.f32 1.0, %v4410_v25  ;;  %4641 = vperm.xlu1 %5290, %v4377_v31   ;;  %vm4562_vm8 = vmor %vm4560_vm14, %vm4561_vm10  ;;  %v4581_v6 = vand.u32 2147483648, %v4538_v45  ;;  %v4579_v34 = vand.u32 2147483647, %v4538_v45  ;;  %vm4575_vm9 = vweird.f32 %v4538_v45 }
 0x613   : > { %v4557_v29 = vsub.f32 1.0, %v4556_v51  ;;  %v4609_v25 = vsub.f32 %v4604_v15, %v4607_v49 }
 0x614   : > { %v4412_v10 = vmul.f32 %v5615_v19, %v4411_v33  ;;  %v4582_v52 = vor.u32 1.1754944e-38, %v4581_v6  ;;  %vm4580_vm15 = vcmp.eq.f32.partialorder %v4579_v34, 8.507059e+37 }
 0x615   : > { %v4558_v41 = vmul.f32 %v5617_v55, %v4557_v29  ;;  %v4610_v11 = vmax.f32 %v4609_v25, 0.0 }
 0x616   : > { %v4413_v30 = vadd.f32 %v5615_v19, %v4412_v10 }
 0x617   : > { %v5619_v5 = vpop.eup %5618  ;;  %v4559_v59 = vadd.f32 %v5617_v55, %v4558_v41  ;;  %vm4618_vm11 = vcmp.eq.f32.partialorder %v4610_v11, inf  ;;  %v4621_v29 = vand.u32 2147483648, %v4610_v11  ;;  %vm4620_vm1 = vcmp.eq.f32.partialorder %v4610_v11, 0.0  ;;  %v10216_v41 = vpop.permute.xlu2 %4234 }
 0x618   : > { %v4417_v16 = vsel %vm4416_vm2, %v5615_v19, %v4413_v30  ;;  %v4571_v61 = vmul.f32 %v5619_v5, %v4538_v45  ;;  %vm4576_vm3 = vweird.f32 %v5619_v5  ;;  %v4428_v19 = vadd.f32 %v5704_v42, %v4426_v58 }
 0x619   : > { %v4422_v21 = vsel %vm4419_vm5, %v4421_v20, %v4417_v16  ;;  %v4563_v37 = vsel %vm4562_vm8, %v5617_v55, %v4559_v59  ;;  %vm4577_vm12 = vmor %vm4575_vm9, %vm4576_vm3  ;;  %v10222_v58 = vperm.slane %v5705_v28, 7 }
 0x61a   : > { %4656 = vperm.xlu1 %5290, %v4422_v21   ;;  %v4572_v54 = vsub.f32 1.0, %v4571_v61  ;;  %v4568_v57 = vsel %vm4565_vm6, %v4567_v17, %v4563_v37  ;;  %v4433_v4 = vsub.f32 %v4428_v19, %v10071_v50 }
 0x61c   : > { %v4573_v0 = vmul.f32 %v5619_v5, %v4572_v54  ;;  %v4434_v13 = vmax.f32 %v4433_v4, 0.0 }
 0x61e   : > { %v4574_v23 = vadd.f32 %v5619_v5, %v4573_v0  ;;  %5620 = vrsqrt.f32 %v4434_v13  ;;  %vm4442_vm13 = vcmp.eq.f32.partialorder %v4434_v13, inf  ;;  %v4445_v16 = vand.u32 2147483648, %v4434_v13 }
 0x61f   : > { %5622 = vrsqrt.f32 %v4610_v11  ;;  %vm4444_vm0 = vcmp.eq.f32.partialorder %v4434_v13, 0.0  ;;  %v4264_v63 = vpop.permute.xlu2 %4263 }
 0x620   : > { %v4578_v43 = vsel %vm4577_vm12, %v5619_v5, %v4574_v23  ;;  %v4272_v49 = vsub.f32 %v9991_v62, %v4264_v63 }
 0x621   : > { %v4583_v7 = vsel %vm4580_vm15, %v4582_v52, %v4578_v43 }
 0x622   : > { %4677 = vperm.xlu1 %5290, %v4568_v57   ;;  %4682 = vperm.xlu2 %5291, %v4583_v7   ;;  %v4231_v57 = vpop.permute.xlu1 %4230 }
 0x623   : > { %v4239_v7 = vsub.f32 %v10049_v22, %v4231_v57  ;;  %v5707_v57 = vld [vmem:[#allocation2 + $0x18] sm:$0xff] }
 0x624   : > { %v5621_v9 = vpop.eup %5620 }
 0x625   : > { %v5623_v33 = vpop.eup %5622  ;;  %v4436_v46 = vmul.f32 %v5621_v9, %v4434_v13 }
 0x626   : > { %v4612_v18 = vmul.f32 %v5623_v33, %v4610_v11 }
 0x627   : > { %v4437_v36 = vmul.f32 %v5621_v9, %v4436_v46  ;;  %v10218_v34 = vpop.permute.xlu2 %4646  ;;  %v4244_v46 = vsub.f32 %v4239_v7, %v10222_v58 }
 0x628   : > { %v4613_v31 = vmul.f32 %v5623_v33, %v4612_v18 }
 0x629   : > { %v4438_v10 = vmul.f32 0.5, %v4437_v36 }
 0x62a   : > { %v4614_v45 = vmul.f32 0.5, %v4613_v31 }
 0x62b   : > { %v4439_v32 = vsub.f32 1.5, %v4438_v10 }
 0x62c   : > { %v4615_v55 = vsub.f32 1.5, %v4614_v45 }
 0x62d   : > { %v4440_v30 = vmul.f32 %v5621_v9, %v4439_v32  ;;  %v4270_v32 = vsub.f32 %v10171_v40, %v10025_v35 }
 0x62e   : > { %v4616_v3 = vmul.f32 %v5623_v33, %v4615_v55  ;;  %v10234_v33 = vperm.slane %v9983_v24, 7  ;;  %v10246_v24 = vstv %s5122_s7 }
 0x62f   : > { %v4441_v51 = vmul.f32 %v4440_v30, %v4434_v13  ;;  %v4673_v9 = vpop.permute.xlu2 %4672  ;;  %v5706_v30 = vld [vmem:[#allocation2] sm:$0xff] }
 0x630   : > { %v4617_v50 = vmul.f32 %v4616_v3, %v4610_v11  ;;  %v4277_v31 = vsub.f32 %v4272_v49, %v10234_v33  ;;  %v4237_v3 = vsub.f32 %v5706_v30, %v10212_v8  ;;  %v5708_v49 = vld [vmem:[#allocation2 + $0x8] sm:$0xff] }
 0x631   : > { %v4443_v20 = vsel %vm4442_vm13, %v4434_v13, %v4441_v51  ;;  %v4252_v51 = vadd.f32 %v10246_v24, %v4244_v46  ;;  %v4759_v46 = vld [vmem:[#allocation8 + $0x10] sm:$0xff] }
 0x632   : > { %v4619_v21 = vsel %vm4618_vm11, %v4610_v11, %v4617_v50  ;;  %v4446_v5 = vsel %vm4444_vm0, %v4445_v16, %v4443_v20  ;;  %v10252_v50 = vstv %s5124_s17  ;;  %v4260_v16 = vpop.permute.xlu1 %4259  ;;  %v4242_v40 = vsub.f32 %v4237_v3, %v10222_v58 }
 0x633   : > { %v4622_v59 = vsel %vm4620_vm1, %v4621_v29, %v4619_v21  ;;  %v4447_v61 = vmax.f32 %v4446_v5, 1e-12  ;;  %v4285_v5 = vadd.f32 %v10252_v50, %v4277_v31  ;;  %vm4765_vm11 = vcmask 261120  }
 0x634   : > { %v4623_v14 = vmax.f32 %v4622_v59, 1e-12  ;;  %v4275_v59 = vsub.f32 %v4270_v32, %v10234_v33 }
 0x635   : > { %5624 = vrcp.f32 %v4447_v61  ;;  %vm4453_vm7 = vweird.f32 %v4447_v61  ;;  %v4457_v42 = vand.u32 2147483647, %v4447_v61  ;;  %v4459_v19 = vand.u32 2147483648, %v4447_v61 }
 0x636   : > { %5626 = vrcp.f32 %v4623_v14  ;;  %vm4629_vm2 = vweird.f32 %v4623_v14  ;;  %v4635_v15 = vand.u32 2147483648, %v4623_v14  ;;  %v4633_v11 = vand.u32 2147483647, %v4623_v14 }
 0x637   : > { %vm10237_vm8 = vcmp.eq.f32.partialorder %v4457_v42, 8.507059e+37  ;;  %v4460_v18 = vor.u32 1.1754944e-38, %v4459_v19  ;;  %v4652_v55 = vpop.permute.xlu0 %4651 }
 0x638   : > { %v4636_v36 = vor.u32 1.1754944e-38, %v4635_v15  ;;  %vm4634_vm3 = vcmp.eq.f32.partialorder %v4633_v11, 8.507059e+37  ;;  %v4661_v21 = vmul.f32 %v4652_v55, %v4252_v51 }
 0x63b   : > { %v5625_v54 = vpop.eup %5624 }
 0x63c   : > { %v5627_v6 = vpop.eup %5626  ;;  %v4449_v37 = vmul.f32 %v5625_v54, %v4447_v61  ;;  %vm4454_vm4 = vweird.f32 %v5625_v54 }
 0x63d   : > { %v4625_v0 = vmul.f32 %v5627_v6, %v4623_v14  ;;  %vm4630_vm5 = vweird.f32 %v5627_v6  ;;  %vm10225_vm10 = vmor %vm4453_vm7, %vm4454_vm4 }
 0x63e   : > { %v4450_v17 = vsub.f32 1.0, %v4449_v37  ;;  %vm10229_vm14 = vmor %vm4629_vm2, %vm4630_vm5  ;;  %v4273_v37 = vsub.f32 %v10088_v26, %v10054_v44 }
 0x63f   : > { %v4626_v23 = vsub.f32 1.0, %v4625_v0  ;;  %v4283_v0 = vadd.f32 %v10252_v50, %v4275_v59 }
 0x640   : > { %v4451_v52 = vmul.f32 %v5625_v54, %v4450_v17  ;;  %v4278_v44 = vsub.f32 %v4273_v37, %v10234_v33 }
 0x641   : > { %v4627_v43 = vmul.f32 %v5627_v6, %v4626_v23  ;;  %v4250_v23 = vadd.f32 %v10246_v24, %v4242_v40 }
 0x642   : > { %v4452_v4 = vadd.f32 %v5625_v54, %v4451_v52  ;;  %v4240_v52 = vsub.f32 %v5707_v57, %v10216_v41  ;;  %v4286_v22 = vadd.f32 %v10252_v50, %v4278_v44 }
 0x643   : > { %v4628_v13 = vadd.f32 %v5627_v6, %v4627_v43  ;;  %v4690_v43 = vmul.f32 %v4673_v9, %v4283_v0 }
 0x644   : > { %v4456_v10 = vsel %vm10225_vm10, %v5625_v54, %v4452_v4  ;;  %v10265_v54 = vstv %s4216_s4  ;;  %v4238_v4 = vsub.f32 %v5708_v49, %v9999_v53  ;;  %v4245_v25 = vsub.f32 %v4240_v52, %v10222_v58 }
 0x645   : > { %v4632_v45 = vsel %vm10229_vm14, %v5627_v6, %v4628_v13  ;;  %v4461_v20 = vsel %vm10237_vm8, %v4460_v18, %v4456_v10  ;;  %vm4732_vm6 = vcmp.ne.s32.totalorder %v8624_v60, %v10265_v54  ;;  %vm4734_vm9 = vcmp.ne.s32.totalorder %v8618_v47, %v10265_v54  ;;  %v4688_v13 = vpop.permute.xlu0 %4687 }
 0x646   : > { %v4637_v29 = vsel %vm4634_vm3, %v4636_v36, %v4632_v45  ;;  %v10260_v61 = vperm.slane %v4461_v20, 0  ;;  %vm4747_vm12 = vmand %vm4732_vm6, %vm4734_vm9  ;;  %vm4730_vm13 = vcmp.ne.s32.totalorder %v10962_v2, %v10265_v54  ;;  %v4271_v18 = vsub.f32 %v10075_v12, %v4260_v16  ;;  %v4757_v16 = vld [vmem:[#allocation8] sm:$0xff] }
 0x647   : > { %v10262_v8 = vperm.slane %v4637_v29, 0  ;;  %v4243_v53 = vsub.f32 %v4238_v4, %v10222_v58  ;;  %v4693_v45 = vmul.f32 %v4688_v13, %v4286_v22  ;;  %v4253_v55 = vadd.f32 %v10246_v24, %v4245_v25  ;;  %vm4745_vm0 = vmand %vm4730_vm13, %vm4734_vm9 }
 0x648   : > { %v4668_v63 = vmul.f32 %v10260_v61, %v4661_v21  ;;  %vm4733_vm7 = vcmp.ne.s32.totalorder %v10954_v48, %v10265_v54  ;;  %vm4731_vm5 = vcmp.ne.s32.totalorder %v10944_v1, %v10265_v54 }
 0x649   : > { %v4697_v26 = vmul.f32 %v10262_v8, %v4690_v43  ;;  %v4700_v58 = vmul.f32 %v10262_v8, %v4693_v45  ;;  %v4251_v21 = vadd.f32 %v10246_v24, %v4243_v53  ;;  %vm4748_vm4 = vmand %vm4733_vm7, %vm4734_vm9 }
 0x64a   : > { %vm4746_vm10 = vmand %vm4731_vm5, %vm4734_vm9 }
 0x67c   : > { %v4683_v35 = vpop.permute.xlu2 %4682 }
 0x67d   : > { %v4692_v14 = vmul.f32 %v4683_v35, %v4285_v5  ;;  %v4660_v35 = vmul.f32 %v10218_v34, %v4251_v21 }
 0x67f   : > { %v4699_v6 = vmul.f32 %v10262_v8, %v4692_v14  ;;  %v4667_v34 = vmul.f32 %v10260_v61, %v4660_v35 }
 0x681   : > { %v4703_v17 = vsub.f32 %v4668_v63, %v4699_v6 }
 0x683   : > { %v4707_v28 = vand.u32 2147483647, %v4703_v17  ;;  %v4715_v42 = vmul.f32 0.5, %v4703_v17 }
 0x684   : > { %v4642_v7 = vpop.permute.xlu1 %4641 }
 0x685   : > { %v4659_v19 = vmul.f32 %v4642_v7, %v4250_v23  ;;  %vm4711_vm15 = vcmp.lt.f32.partialorder %v4707_v28, 1.0  ;;  %v4719_v41 = vmul.f32 %v4715_v42, %v4703_v17  ;;  %v5076_v15 = vadd.f32 -0.5, %v4707_v28  ;;  %v4760_v17 = vld [vmem:[#allocation8 + $0x18] sm:$0xff]  ;;  %v4758_v42 = vld [vmem:[#allocation8 + $0x8] sm:$0xff] }
 0x687   : > { %v4666_v60 = vmul.f32 %v10260_v61, %v4659_v19  ;;  %v4727_v11 = vsel %vm4711_vm15, %v4719_v41, %v5076_v15 }
 0x688   : > { %v4751_v62 = vsel %vm4747_vm12, %v4727_v11, 0.0 }
 0x689   : > { %v4701_v9 = vsub.f32 %v4666_v60, %v4697_v26  ;;  %v4755_v36 = vadd.f32 %v4751_v62, %v10115_v27  ;;  %v4276_v27 = vsub.f32 %v4271_v18, %v10234_v33 }
 0x68b   : > { %v4705_v31 = vand.u32 2147483647, %v4701_v9  ;;  %v4713_v10 = vmul.f32 0.5, %v4701_v9  ;;  %v4763_v30 = vadd.f32 %v4759_v46, %v4755_v36  ;;  %v4284_v33 = vadd.f32 %v10252_v50, %v4276_v27 }
 0x68c   : > { %v4657_v32 = vpop.permute.xlu1 %4656 }
 0x68d   : > { %vm4709_vm1 = vcmp.lt.f32.partialorder %v4705_v31, 1.0  ;;  %v4717_v2 = vmul.f32 %v4713_v10, %v4701_v9  ;;  %v5074_v3 = vadd.f32 -0.5, %v4705_v31  ;;  %v4662_v12 = vmul.f32 %v4657_v32, %v4253_v55  ;;  %4768 = vst.msk [vmem:[#allocation8 + $0x10] sm:$0xff] %vm4765_vm11, %v4763_v30 }
 0x68f   : > { %v4725_v51 = vsel %vm4709_vm1, %v4717_v2, %v5074_v3  ;;  %v4669_v29 = vmul.f32 %v10260_v61, %v4662_v12 }
 0x690   : > { %v4749_v20 = vsel %vm4745_vm0, %v4725_v51, 0.0 }
 0x691   : > { %v4753_v5 = vadd.f32 %v4749_v20, %v10202_v38  ;;  %v4704_v59 = vsub.f32 %v4669_v29, %v4700_v58 }
 0x693   : > { %v4761_v40 = vadd.f32 %v4757_v16, %v4753_v5  ;;  %v4708_v14 = vand.u32 2147483647, %v4704_v59  ;;  %v4716_v63 = vmul.f32 0.5, %v4704_v59 }
 0x694   : > { %v4678_v6 = vpop.permute.xlu1 %4677 }
 0x695   : > { %4766 = vst.msk [vmem:[#allocation8] sm:$0xff] %vm4765_vm11, %v4761_v40  ;;  %v4691_v37 = vmul.f32 %v4678_v6, %v4284_v33  ;;  %vm4712_vm2 = vcmp.lt.f32.partialorder %v4708_v14, 1.0  ;;  %v4720_v38 = vmul.f32 %v4716_v63, %v4704_v59  ;;  %v5077_v24 = vadd.f32 -0.5, %v4708_v14 }
 0x697   : > { %v4698_v0 = vmul.f32 %v10262_v8, %v4691_v37  ;;  %v4728_v48 = vsel %vm4712_vm2, %v4720_v38, %v5077_v24 }
 0x698   : > { %v4752_v50 = vsel %vm4748_vm4, %v4728_v48, 0.0 }
 0x699   : > { %v4702_v23 = vsub.f32 %v4667_v34, %v4698_v0  ;;  %v4756_v57 = vadd.f32 %v4752_v50, %v10138_v56 }
 0x69b   : > { %v4706_v52 = vand.u32 2147483647, %v4702_v23  ;;  %v4714_v43 = vmul.f32 0.5, %v4702_v23  ;;  %v4764_v7 = vadd.f32 %v4760_v17, %v4756_v57 }
 0x69d   : > { %vm4710_vm14 = vcmp.lt.f32.partialorder %v4706_v52, 1.0  ;;  %v4718_v61 = vmul.f32 %v4714_v43, %v4702_v23  ;;  %v5075_v28 = vadd.f32 -0.5, %v4706_v52  ;;  %4769 = vst.msk [vmem:[#allocation8 + $0x18] sm:$0xff] %vm4765_vm11, %v4764_v7 }
 0x69f   : > { %v4726_v8 = vsel %vm4710_vm14, %v4718_v61, %v5075_v28 }
 0x6a0   : > { %v4750_v19 = vsel %vm4746_vm10, %v4726_v8, 0.0 }
 0x6a1   : > { %v4754_v56 = vadd.f32 %v4750_v19, %v10189_v39  ;;  %4773 = sbr.rel (%p5078_p2) target bundleno = 1898 (0x76a), region = 44 }
 0x6a3   : > { %v4762_v44 = vadd.f32 %v4758_v42, %v4754_v56 }
 0x6a5   : > { %4767 = vst.msk [vmem:[#allocation8 + $0x8] sm:$0xff] %vm4765_vm11, %v4762_v44 }
 0x6a6   : > { %v4774_v1 = vld [vmem:[#allocation8] sm:$0xff]  ;;  %v4776_v47 = vld [vmem:[#allocation8 + $0x10] sm:$0xff]  ;;  %v4777_v54 = vld [vmem:[#allocation8 + $0x18] sm:$0xff] }
 0x6a7   : > { %v4778_v41 = vsel %vm4765_vm11, %v4774_v1, 0.0  ;;  %v4781_v60 = vsel %vm4765_vm11, %v4776_v47, 0.0  ;;  %v4783_v39 = vsel %vm4765_vm11, %v4777_v54, 0.0 }
 0x6ac   : > { %v4775_v26 = vld [vmem:[#allocation8 + $0x8] sm:$0xff] }
 0x6ad   : > { %v4779_v15 = vsel %vm4765_vm11, %v4775_v26, 0.0 }
 0x6ae   : > { %v4780_v49 = vadd.f32 %v4779_v15, %v4778_v41 }
 0x6b0   : > { %v4782_v4 = vadd.f32 %v4781_v60, %v4780_v49 }
 0x6b2   : > { %v4784_v25 = vadd.f32 %v4783_v39, %v4782_v4 }
 0x6b4   : > { %4785 = vadd.xlane.f32.xlu0 %v4784_v25 }
 0x727   : > { %v4786_v13 = vpop.xlane.xlu0 %4785 }
 0x728   : > { %v4787_v11 = vrot.slane %v4786_v13, 4 }
 0x72a   : > { %v4788_v9 = vadd.f32 %v4787_v11, %v4786_v13 }
 0x72c   : > { %v4789_v22 = vrot.slane %v4788_v9, 2 }
 0x72e   : > { %v4790_v46 = vadd.f32 %v4789_v22, %v4788_v9 }
 0x730   : > { %v4791_v62 = vrot.slane %v4790_v46, 1 }
 0x732   : > { %v4792_v18 = vadd.f32 %v4791_v62, %v4790_v46 }
 0x734   : > { %5125 = vpush %v4792_v18 }
 0x765   : > { %s5126_s12 = spop %5125 }
 0x766   : > { %s4794_s29 = smul.f32 3.0517578e-05, %s5126_s12 }
 0x768   : > { %v4795_v36 = vstv %s4794_s29 }
 0x769   : > { %4797 = vst [vmem:[%s167_s24] sm:$0xff] %v4795_v36 }
 0x76a PF: > { %s5080_s8 = sshll.u32 %s5859_s13, 3  ;;  %s4811_s26 = sshll.u32 %s167_s24, 4  ;;  %s4812_s26 = int_to_ptr.vmem [resolvable:$true] %s4811_s26 }
 0x76b   : > { %s4809_s28 = scalar_lea.hbm %s10375_s2, %s5080_s8  ;;  %s4799_s5 = scalar_lea.sflag [#allocation11], %s165_s21 }
 0x76c   : > { %s4813_s3 = sshll.u32 %s4809_s28, 4  ;;  %s5789_s4 = scalar_lea.hbm %s10375_s2, 16  ;;  %s4814_s3 = int_to_ptr.hbm [resolvable:$true] %s4813_s3 }
 0x76d   : > { %s5783_s6 = sshra.s32 %s4814_s3, 4  ;;  %s5784_s6 = int_to_ptr.hbm [resolvable:$true] %s5783_s6 }
 0x76e   : > { %s5785_s7 = scalar_lea.hbm %s5784_s6, 8  ;;  %p5790_p7 = scmp.lt.s32.totalorder %s5784_s6, %s10375_s2 }
 0x76f   : > { %p5786_p4 = scmp.ne.s32.totalorder %s5784_s6, %s5785_s7  ;;  %p5791_p8 = scmp.lt.s32.totalorder %s5789_s4, %s5785_s7 }
 0x771   : > { %p5787_p5 = pnand %p5786_p4, %p5958_p3  ;;  %p5792_p10 = por %p5791_p8, %p5790_p7 }
 0x773   : > { %p5788_p6 = pneg %p5787_p5 }
 0x775   : > { %p5793_p11 = pnand %p5792_p10, %p5788_p6 }
 0x777   : > { %5796 = shalt.err (!%p5793_p11)
}
 0x778   : > { %5135 = dma.vmem_to_hbm [thread:$0]  (%p5958_p3), %s4812_s26, 128, %s4814_s3, %s4799_s5  }
 0x779 PF: > { %p5152_p12 = scmp.ge.s32.totalorder %s5871_s16, 2  ;;  %s4825_s21 = sand.u32 1, %s5843_s9  }
 0x77a   : > { %s4826_s27 = scalar_lea.sflag [#allocation11], %s4825_s21 }
 0x77b   : > { %p5145_p13 = pnand %p5152_p12, %p5968_p9 }
 0x77d   : > { %p5146_p0 = pneg %p5145_p13 }
 0x77f   : > { %5838 = dma.done.wait (%p5146_p0), %s4826_s27, 128  }
 0x780   : > { %5840 = vsyncadd (%p5146_p0), %s4826_s27, 4294967168  ;;  %s17_s16 = sadd.s32 1, %s5871_s16   ;;  %s10970_s9 = smov %s5847_s10 }
 0x781   : > { %p14_p1 = scmp.ge.s32.totalorder %s17_s16, 6   ;;  %s10971_s10 = smov %s5851_s11 }
 0x782   : > { %s10972_s11 = smov %s5988_s30  ;;  %s10973_s12 = smov %s5863_s14 }
 0x783   : > { %s10974_s13 = smov %s5867_s15  ;;  %s10975_s14 = smov %s10978_s19 }
 0x784   : > { %s10976_s15 = smov %s10982_s20  ;;  %16 = sbr.rel (!%p14_p1) target bundleno = 7 (0x7), region = 111 }
 0x789   :  { %4832 = vsyncpa [#allocation10], 1 }
 0x78a   :  { %4834 = vsyncpa [#allocation10 + $0x1], 1 }
 0x78b   :  { %4835 = vsyncpa [#allocation13], 1 }
 0x78c   :  { %4836 = vsyncpa [#allocation11], 1 }
 0x78d   :  { %4838 = vsyncpa [#allocation11 + $0x1], 1 }

</bundles_post_ra>
